<compile_context>
chip_gen: v5e
topology: v5e:2x2
jax: 0.10.0
libtpu: 0.0.40
codegen_flags: <defaults>
</compile_context>

<pallas_src>
import functools

import numpy as np
import jax
import jax.numpy as jnp
from jax.experimental import pallas as pl
from jax.experimental.pallas import tpu as pltpu


def _round_up(x, m):
    return (x + m - 1) // m * m


def _g2net_kernel(x_ref, mask_ref, wcb_ref, w0_ref, w1_ref, bcat_ref, out_ref,
                  feat_sc, *, offsets, gp, extc, chunk, n_ch, kk, hid):
    # x_ref:    (BT, GTOT)     padded images: batch on sublanes, pixels on lanes
    # mask_ref: (1, EXTC)      1/(H*W) at valid output pixels, 0 elsewhere
    # wcb_ref:  (C*(KK+1),)    SMEM scalars: per-channel [w_0..w_{KK-1}, bias]
    # w0_ref:   (C, HID)       head linear-0 weight
    # w1_ref:   (HID, LPAD)    head linear-1 weight (zero-padded to 128 lanes)
    # bcat_ref: (1, HID+LPAD)  concatenated biases [b0 | b1 (padded)]
    # out_ref:  (BT, LPAD)
    # feat_sc:  (BT, C)        VMEM scratch: pooled features
    feat_sc[...] = jnp.zeros_like(feat_sc)

    # conv3x3 + SiLU + masked GAP, chunked over the pixel (lane) axis so the
    # live vreg set stays ~ (KK + 2) slabs of (BT, chunk) regardless of image
    # size -- no (C, TOT) accumulator, no spills.
    for s in range(0, extc, chunk):
        cw = min(chunk, extc - s)
        m = mask_ref[:, s:s + cw]                                   # (1, cw)
        # The KK shifted tap slabs are loaded once per chunk and reused by all
        # output channels.  Out-of-window lanes only ever read this row's own
        # zero padding (each batch row is a separate sublane, so a tap can
        # never read a neighboring image); those lanes carry mask == 0 and are
        # zeroed in the pool below.
        taps = [x_ref[:, gp + s + off: gp + s + off + cw] for off in offsets]
        for c in range(n_ch):
            base = c * (kk + 1)
            acc = taps[0] * wcb_ref[base]                           # scalar * slab (VPU)
            for t in range(1, kk):
                acc = acc + taps[t] * wcb_ref[base + t]
            conv = acc + wcb_ref[base + kk]                         # + conv bias
            act = conv * jax.nn.sigmoid(conv)                       # SiLU
            # masked global-average-pool partial: lane reduction per channel
            feat_sc[:, c:c + 1] += jnp.sum(act * m, axis=1, keepdims=True)

    # Custom2LinearHead (nn.Dropout(p=0.5) is identity at inference).
    feat = feat_sc[...]                                             # (BT, C)
    b0 = bcat_ref[:, :hid]
    b1 = bcat_ref[:, hid:]
    h = jnp.dot(feat, w0_ref[...], preferred_element_type=jnp.float32) + b0
    y = jnp.dot(h, w1_ref[...], preferred_element_type=jnp.float32) + b1
    out_ref[...] = y.astype(out_ref.dtype)                          # lane-dense (BT, LPAD)


def g2net_forward(x_nchw, params, *, batch_tile=None, chunk_lanes=512):
    B, Cin, H, W = x_nchw.shape
    assert Cin == 1, "backbone created with in_chans=1"
    wc, bc, w0, b0, w1, b1 = (params[k] for k in ("wc", "bc", "w0", "b0", "w1", "b1"))
    KK, C = wc.shape
    K = int(round(KK ** 0.5))
    pad = K // 2
    HID = w0.shape[1]
    L = w1.shape[1]
    LPAD = _round_up(max(L, 128), 128)

    Hp, Wp = H + 2 * pad, W + 2 * pad
    NP = Hp * Wp                                  # flattened padded image length
    EXTC = _round_up(NP, 128)                     # conv/pool compute width (lanes)
    HALO = pad * (Wp + 1)                         # max |tap offset|
    GP = _round_up(HALO, 128)                     # leading zero pad before each image
    GTOT = _round_up(GP + EXTC + HALO, 128)       # total lane width per batch row
    # Tap slices x[:, GP+s+off : GP+s+off+cw] must stay inside one row:
    assert GP >= HALO and GTOT >= GP + EXTC + HALO

    # Batch tiling: >=2 grid steps when B>=2 (both v7x TensorCores get work via
    # the "parallel" axis), capped at 8 so a tile fills a vreg's 8 sublanes.
    if batch_tile is None:
        batch_tile = min(8, max(1, pl.cdiv(B, 2)))
    BT = batch_tile
    n_tiles = pl.cdiv(B, BT)
    Bpad = n_tiles * BT

    # ---- wrapper-side layout plumbing (zero-pad + flatten only; no im2col) ----
    xp = jnp.pad(x_nchw[:, 0].astype(jnp.float32), ((0, 0), (pad, pad), (pad, pad)))
    xflat = xp.reshape(B, NP)
    xbig = jnp.pad(xflat, ((0, Bpad - B), (GP, GTOT - GP - NP)))    # (Bpad, GTOT)
    x3 = xbig.reshape(n_tiles, BT, GTOT)

    # masked-mean weights over the flattened padded image (shared by all rows)
    mask_np = np.zeros((1, EXTC), np.float32)
    for r in range(pad, pad + H):
        base = r * Wp + pad
        mask_np[0, base:base + W] = 1.0 / (H * W)
    mask = jnp.asarray(mask_np)

    # tap offsets in flat padded-image coordinates, same (kh*K + kw) order as wc
    offsets = tuple((kh - pad) * Wp + (kw - pad) for kh in range(K) for kw in range(K))

    # conv weights + bias packed per-channel into one small SMEM scalar vector
    wcb = jnp.concatenate([wc.T.astype(jnp.float32),
                           bc.reshape(C, 1).astype(jnp.float32)], axis=1).reshape(-1)

    w0f = w0.astype(jnp.float32)
    w1p = jnp.pad(w1.astype(jnp.float32), ((0, 0), (0, LPAD - L)))  # (HID, LPAD)
    bcat = jnp.concatenate(
        [b0.reshape(1, HID).astype(jnp.float32),
         jnp.pad(b1.reshape(1, L).astype(jnp.float32), ((0, 0), (0, LPAD - L)))],
        axis=1)                                                     # (1, HID+LPAD)

    chunk = max(128, _round_up(min(chunk_lanes, EXTC), 128))

    kernel = functools.partial(_g2net_kernel, offsets=offsets, gp=GP, extc=EXTC,
                               chunk=chunk, n_ch=C, kk=KK, hid=HID)

    out = pl.pallas_call(
        kernel,
        out_shape=jax.ShapeDtypeStruct((n_tiles, BT, LPAD), jnp.float32),
        grid_spec=pltpu.PrefetchScalarGridSpec(
            num_scalar_prefetch=0,
            grid=(n_tiles,),
            in_specs=[
                pl.BlockSpec((None, BT, GTOT), lambda i: (i, 0, 0)),    # image tile
                pl.BlockSpec((1, EXTC), lambda i: (0, 0)),              # GAP mask
                pl.BlockSpec(memory_space=pltpu.MemorySpace.SMEM),      # conv w+b scalars
                pl.BlockSpec((C, HID), lambda i: (0, 0)),               # head l0 weight
                pl.BlockSpec((HID, LPAD), lambda i: (0, 0)),            # head l1 weight
                pl.BlockSpec((1, HID + LPAD), lambda i: (0, 0)),        # [b0 | b1]
            ],
            out_specs=pl.BlockSpec((None, BT, LPAD), lambda i: (i, 0, 0)),
            scratch_shapes=[pltpu.VMEM((BT, C), jnp.float32)],
        ),
        compiler_params=pltpu.CompilerParams(
            dimension_semantics=("parallel",)),   # batch tiles shard across v7x TCs
    )(x3, mask, wcb, w0f, w1p, bcat)

    return out.reshape(Bpad, LPAD)[:B, :L]                              # (B, L)


def g2net_reference(x_nchw, params):
    # Pure-JAX reference of the same forward (for correctness check).
    wc, bc, w0, b0, w1, b1 = (params[k] for k in ("wc", "bc", "w0", "b0", "w1", "b1"))
    B, _, H, W = x_nchw.shape
    K = int(round(wc.shape[0] ** 0.5))
    pad = K // 2
    xp = jnp.pad(x_nchw[:, 0].astype(jnp.float32), ((0, 0), (pad, pad), (pad, pad)))
    taps = jnp.stack([xp[:, kh:kh + H, kw:kw + W]
                      for kh in range(K) for kw in range(K)], axis=-1)  # (B,H,W,KK)
    conv = jnp.einsum("bhwk,kc->bhwc", taps, wc) + bc
    act = conv * jax.nn.sigmoid(conv)
    feat = act.mean(axis=(1, 2))                                        # (B, C)
    h = feat @ w0 + b0
    y = h @ w1 + b1
    return y


def init_params(key, C=32, K=3, HID=256, L=1):
    ks = jax.random.split(key, 6)
    return {
        "wc": jax.random.normal(ks[0], (K * K, C), jnp.float32) * 0.1,
        "bc": jax.random.normal(ks[1], (C,), jnp.float32) * 0.01,
        "w0": jax.random.normal(ks[2], (C, HID), jnp.float32) * (1.0 / C ** 0.5),
        "b0": jax.random.normal(ks[3], (HID,), jnp.float32) * 0.01,
        "w1": jax.random.normal(ks[4], (HID, L), jnp.float32) * (1.0 / HID ** 0.5),
        "b1": jax.random.normal(ks[5], (L,), jnp.float32) * 0.01,
    }


if __name__ == "__main__":
    key = jax.random.PRNGKey(0)
    kx, kp = jax.random.split(key)

    B, Cin, H, W = 2, 1, 16, 16          # NCHW, in_chans=1 per G2NetModel.__init__
    x = jax.random.normal(kx, (B, Cin, H, W), jnp.float32)
    params = init_params(kp, C=32, K=3, HID=256, L=1)

    out = jax.block_until_ready(g2net_forward(x, params))
    ref = g2net_reference(x, params)

    assert out.shape == (B, 1), out.shape
    assert jnp.allclose(out, ref, atol=2e-3, rtol=2e-2), (out, ref)

    print("KERNEL_OK")
</pallas_src>

<mosaic_0001>
module attributes {stable_mosaic.version = 11 : i64} {
  func.func @_g2net_kernel(%arg0: i32, %arg1: memref<1x1x640xf32, #tpu.memory_space<vmem>>, %arg2: memref<1x384xf32, #tpu.memory_space<vmem>>, %arg3: memref<320xf32, #tpu.memory_space<smem>>, %arg4: memref<32x256xf32, #tpu.memory_space<vmem>>, %arg5: memref<256x128xf32, #tpu.memory_space<vmem>>, %arg6: memref<1x384xf32, #tpu.memory_space<vmem>>, %arg7: memref<1x1x128xf32, #tpu.memory_space<vmem>>, %arg8: memref<1x32xf32, #tpu.memory_space<vmem>>) attributes {dimension_semantics = [#tpu.dimension_semantics<parallel>], iteration_bounds = array<i64: 2>, scalar_prefetch = 0 : i64, scratch_operands = 1 : i64, tpu.core_type = #tpu.core_type<tc>, window_params = [{transform_indices = @transform_0, window_bounds = array<i64: 1, 1, 640>}, {pipeline_mode = #tpu.pipeline_mode<synchronous>, transform_indices = @transform_1, window_bounds = array<i64: 1, 384>}, {transform_indices = @transform_2, window_bounds = array<i64: 320>}, {pipeline_mode = #tpu.pipeline_mode<synchronous>, transform_indices = @transform_3, window_bounds = array<i64: 32, 256>}, {pipeline_mode = #tpu.pipeline_mode<synchronous>, transform_indices = @transform_4, window_bounds = array<i64: 256, 128>}, {pipeline_mode = #tpu.pipeline_mode<synchronous>, transform_indices = @transform_5, window_bounds = array<i64: 1, 384>}, {transform_indices = @transform_6, window_bounds = array<i64: 1, 1, 128>}]} {
    %cst = arith.constant 0.000000e+00 : f32
    %0 = vector.broadcast %cst : f32 to vector<1x32xf32>
    %c0 = arith.constant 0 : index
    %c0_0 = arith.constant 0 : index
    %1 = vector.load %arg8[%c0, %c0_0] : memref<1x32xf32, #tpu.memory_space<vmem>>, vector<1x32xf32>
    tpu.vector_store %arg8[%c0, %c0_0], %0 {strides = array<i32>} : memref<1x32xf32, #tpu.memory_space<vmem>>, vector<1x32xf32>,
    %c0_1 = arith.constant 0 : index
    %c0_2 = arith.constant 0 : index
    %2 = vector.load %arg2[%c0_1, %c0_2] : memref<1x384xf32, #tpu.memory_space<vmem>>, vector<1x384xf32>
    %c0_3 = arith.constant 0 : index
    %c0_4 = arith.constant 0 : index
    %c109 = arith.constant 109 : index
    %3 = vector.load %arg1[%c0_3, %c0_4, %c109] : memref<1x1x640xf32, #tpu.memory_space<vmem>>, vector<1x1x384xf32>
    %4 = vector.shape_cast %3 : vector<1x1x384xf32> to vector<1x384xf32>
    %c0_5 = arith.constant 0 : index
    %c0_6 = arith.constant 0 : index
    %c110 = arith.constant 110 : index
    %5 = vector.load %arg1[%c0_5, %c0_6, %c110] : memref<1x1x640xf32, #tpu.memory_space<vmem>>, vector<1x1x384xf32>
    %6 = vector.shape_cast %5 : vector<1x1x384xf32> to vector<1x384xf32>
    %c0_7 = arith.constant 0 : index
    %c0_8 = arith.constant 0 : index
    %c111 = arith.constant 111 : index
    %7 = vector.load %arg1[%c0_7, %c0_8, %c111] : memref<1x1x640xf32, #tpu.memory_space<vmem>>, vector<1x1x384xf32>
    %8 = vector.shape_cast %7 : vector<1x1x384xf32> to vector<1x384xf32>
    %c0_9 = arith.constant 0 : index
    %c0_10 = arith.constant 0 : index
    %c127 = arith.constant 127 : index
    %9 = vector.load %arg1[%c0_9, %c0_10, %c127] : memref<1x1x640xf32, #tpu.memory_space<vmem>>, vector<1x1x384xf32>
    %10 = vector.shape_cast %9 : vector<1x1x384xf32> to vector<1x384xf32>
    %c0_11 = arith.constant 0 : index
    %c0_12 = arith.constant 0 : index
    %c128 = arith.constant 128 : index
    %11 = vector.load %arg1[%c0_11, %c0_12, %c128] : memref<1x1x640xf32, #tpu.memory_space<vmem>>, vector<1x1x384xf32>
    %12 = vector.shape_cast %11 : vector<1x1x384xf32> to vector<1x384xf32>
    %c0_13 = arith.constant 0 : index
    %c0_14 = arith.constant 0 : index
    %c129 = arith.constant 129 : index
    %13 = vector.load %arg1[%c0_13, %c0_14, %c129] : memref<1x1x640xf32, #tpu.memory_space<vmem>>, vector<1x1x384xf32>
    %14 = vector.shape_cast %13 : vector<1x1x384xf32> to vector<1x384xf32>
    %c0_15 = arith.constant 0 : index
    %c0_16 = arith.constant 0 : index
    %c145 = arith.constant 145 : index
    %15 = vector.load %arg1[%c0_15, %c0_16, %c145] : memref<1x1x640xf32, #tpu.memory_space<vmem>>, vector<1x1x384xf32>
    %16 = vector.shape_cast %15 : vector<1x1x384xf32> to vector<1x384xf32>
    %c0_17 = arith.constant 0 : index
    %c0_18 = arith.constant 0 : index
    %c146 = arith.constant 146 : index
    %17 = vector.load %arg1[%c0_17, %c0_18, %c146] : memref<1x1x640xf32, #tpu.memory_space<vmem>>, vector<1x1x384xf32>
    %18 = vector.shape_cast %17 : vector<1x1x384xf32> to vector<1x384xf32>
    %c0_19 = arith.constant 0 : index
    %c0_20 = arith.constant 0 : index
    %c147 = arith.constant 147 : index
    %19 = vector.load %arg1[%c0_19, %c0_20, %c147] : memref<1x1x640xf32, #tpu.memory_space<vmem>>, vector<1x1x384xf32>
    %20 = vector.shape_cast %19 : vector<1x1x384xf32> to vector<1x384xf32>
    %c0_21 = arith.constant 0 : index
    %21 = memref.load %arg3[%c0_21] : memref<320xf32, #tpu.memory_space<smem>>
    %22 = vector.broadcast %21 : f32 to vector<1x384xf32>
    %23 = arith.mulf %4, %22 : vector<1x384xf32>
    %c1 = arith.constant 1 : index
    %24 = memref.load %arg3[%c1] : memref<320xf32, #tpu.memory_space<smem>>
    %25 = vector.broadcast %24 : f32 to vector<1x384xf32>
    %26 = arith.mulf %6, %25 : vector<1x384xf32>
    %27 = arith.addf %23, %26 : vector<1x384xf32>
    %c2 = arith.constant 2 : index
    %28 = memref.load %arg3[%c2] : memref<320xf32, #tpu.memory_space<smem>>
    %29 = vector.broadcast %28 : f32 to vector<1x384xf32>
    %30 = arith.mulf %8, %29 : vector<1x384xf32>
    %31 = arith.addf %27, %30 : vector<1x384xf32>
    %c3 = arith.constant 3 : index
    %32 = memref.load %arg3[%c3] : memref<320xf32, #tpu.memory_space<smem>>
    %33 = vector.broadcast %32 : f32 to vector<1x384xf32>
    %34 = arith.mulf %10, %33 : vector<1x384xf32>
    %35 = arith.addf %31, %34 : vector<1x384xf32>
    %c4 = arith.constant 4 : index
    %36 = memref.load %arg3[%c4] : memref<320xf32, #tpu.memory_space<smem>>
    %37 = vector.broadcast %36 : f32 to vector<1x384xf32>
    %38 = arith.mulf %12, %37 : vector<1x384xf32>
    %39 = arith.addf %35, %38 : vector<1x384xf32>
    %c5 = arith.constant 5 : index
    %40 = memref.load %arg3[%c5] : memref<320xf32, #tpu.memory_space<smem>>
    %41 = vector.broadcast %40 : f32 to vector<1x384xf32>
    %42 = arith.mulf %14, %41 : vector<1x384xf32>
    %43 = arith.addf %39, %42 : vector<1x384xf32>
    %c6 = arith.constant 6 : index
    %44 = memref.load %arg3[%c6] : memref<320xf32, #tpu.memory_space<smem>>
    %45 = vector.broadcast %44 : f32 to vector<1x384xf32>
    %46 = arith.mulf %16, %45 : vector<1x384xf32>
    %47 = arith.addf %43, %46 : vector<1x384xf32>
    %c7 = arith.constant 7 : index
    %48 = memref.load %arg3[%c7] : memref<320xf32, #tpu.memory_space<smem>>
    %49 = vector.broadcast %48 : f32 to vector<1x384xf32>
    %50 = arith.mulf %18, %49 : vector<1x384xf32>
    %51 = arith.addf %47, %50 : vector<1x384xf32>
    %c8 = arith.constant 8 : index
    %52 = memref.load %arg3[%c8] : memref<320xf32, #tpu.memory_space<smem>>
    %53 = vector.broadcast %52 : f32 to vector<1x384xf32>
    %54 = arith.mulf %20, %53 : vector<1x384xf32>
    %55 = arith.addf %51, %54 : vector<1x384xf32>
    %c9 = arith.constant 9 : index
    %56 = memref.load %arg3[%c9] : memref<320xf32, #tpu.memory_space<smem>>
    %57 = vector.broadcast %56 : f32 to vector<1x384xf32>
    %58 = arith.addf %55, %57 : vector<1x384xf32>
    %59 = arith.negf %58 : vector<1x384xf32>
    %60 = math.exp %59 : vector<1x384xf32>
    %cst_22 = arith.constant 1.000000e+00 : f32
    %61 = vector.broadcast %cst_22 : f32 to vector<1x384xf32>
    %62 = arith.addf %61, %60 : vector<1x384xf32>
    %63 = arith.divf %61, %62 : vector<1x384xf32>
    %64 = arith.mulf %58, %63 : vector<1x384xf32>
    %c0_23 = arith.constant 0 : index
    %c0_24 = arith.constant 0 : index
    %65 = vector.load %arg8[%c0_23, %c0_24] : memref<1x32xf32, #tpu.memory_space<vmem>>, vector<1x1xf32>
    %66 = arith.mulf %64, %2 : vector<1x384xf32>
    %cst_25 = arith.constant dense<0.000000e+00> : vector<1xf32>
    %67 = vector.multi_reduction <add>, %66, %cst_25 [1] : vector<1x384xf32> to vector<1xf32>
    %68 = vector.shape_cast %67 : vector<1xf32> to vector<1x1xf32>
    %69 = arith.addf %65, %68 : vector<1x1xf32>
    %c0_26 = arith.constant 0 : index
    %c0_27 = arith.constant 0 : index
    %70 = vector.load %arg8[%c0_26, %c0_27] : memref<1x32xf32, #tpu.memory_space<vmem>>, vector<1x1xf32>
    tpu.vector_store %arg8[%c0_26, %c0_27], %69 {strides = array<i32>} : memref<1x32xf32, #tpu.memory_space<vmem>>, vector<1x1xf32>,
    %c10 = arith.constant 10 : index
    %71 = memref.load %arg3[%c10] : memref<320xf32, #tpu.memory_space<smem>>
    %72 = vector.broadcast %71 : f32 to vector<1x384xf32>
    %73 = arith.mulf %4, %72 : vector<1x384xf32>
    %c11 = arith.constant 11 : index
    %74 = memref.load %arg3[%c11] : memref<320xf32, #tpu.memory_space<smem>>
    %75 = vector.broadcast %74 : f32 to vector<1x384xf32>
    %76 = arith.mulf %6, %75 : vector<1x384xf32>
    %77 = arith.addf %73, %76 : vector<1x384xf32>
    %c12 = arith.constant 12 : index
    %78 = memref.load %arg3[%c12] : memref<320xf32, #tpu.memory_space<smem>>
    %79 = vector.broadcast %78 : f32 to vector<1x384xf32>
    %80 = arith.mulf %8, %79 : vector<1x384xf32>
    %81 = arith.addf %77, %80 : vector<1x384xf32>
    %c13 = arith.constant 13 : index
    %82 = memref.load %arg3[%c13] : memref<320xf32, #tpu.memory_space<smem>>
    %83 = vector.broadcast %82 : f32 to vector<1x384xf32>
    %84 = arith.mulf %10, %83 : vector<1x384xf32>
    %85 = arith.addf %81, %84 : vector<1x384xf32>
    %c14 = arith.constant 14 : index
    %86 = memref.load %arg3[%c14] : memref<320xf32, #tpu.memory_space<smem>>
    %87 = vector.broadcast %86 : f32 to vector<1x384xf32>
    %88 = arith.mulf %12, %87 : vector<1x384xf32>
    %89 = arith.addf %85, %88 : vector<1x384xf32>
    %c15 = arith.constant 15 : index
    %90 = memref.load %arg3[%c15] : memref<320xf32, #tpu.memory_space<smem>>
    %91 = vector.broadcast %90 : f32 to vector<1x384xf32>
    %92 = arith.mulf %14, %91 : vector<1x384xf32>
    %93 = arith.addf %89, %92 : vector<1x384xf32>
    %c16 = arith.constant 16 : index
    %94 = memref.load %arg3[%c16] : memref<320xf32, #tpu.memory_space<smem>>
    %95 = vector.broadcast %94 : f32 to vector<1x384xf32>
    %96 = arith.mulf %16, %95 : vector<1x384xf32>
    %97 = arith.addf %93, %96 : vector<1x384xf32>
    %c17 = arith.constant 17 : index
    %98 = memref.load %arg3[%c17] : memref<320xf32, #tpu.memory_space<smem>>
    %99 = vector.broadcast %98 : f32 to vector<1x384xf32>
    %100 = arith.mulf %18, %99 : vector<1x384xf32>
    %101 = arith.addf %97, %100 : vector<1x384xf32>
    %c18 = arith.constant 18 : index
    %102 = memref.load %arg3[%c18] : memref<320xf32, #tpu.memory_space<smem>>
    %103 = vector.broadcast %102 : f32 to vector<1x384xf32>
    %104 = arith.mulf %20, %103 : vector<1x384xf32>
    %105 = arith.addf %101, %104 : vector<1x384xf32>
    %c19 = arith.constant 19 : index
    %106 = memref.load %arg3[%c19] : memref<320xf32, #tpu.memory_space<smem>>
    %107 = vector.broadcast %106 : f32 to vector<1x384xf32>
    %108 = arith.addf %105, %107 : vector<1x384xf32>
    %109 = arith.negf %108 : vector<1x384xf32>
    %110 = math.exp %109 : vector<1x384xf32>
    %cst_28 = arith.constant 1.000000e+00 : f32
    %111 = vector.broadcast %cst_28 : f32 to vector<1x384xf32>
    %112 = arith.addf %111, %110 : vector<1x384xf32>
    %113 = arith.divf %111, %112 : vector<1x384xf32>
    %114 = arith.mulf %108, %113 : vector<1x384xf32>
    %c0_29 = arith.constant 0 : index
    %c1_30 = arith.constant 1 : index
    %115 = vector.load %arg8[%c0_29, %c1_30] : memref<1x32xf32, #tpu.memory_space<vmem>>, vector<1x1xf32>
    %116 = arith.mulf %114, %2 : vector<1x384xf32>
    %cst_31 = arith.constant dense<0.000000e+00> : vector<1xf32>
    %117 = vector.multi_reduction <add>, %116, %cst_31 [1] : vector<1x384xf32> to vector<1xf32>
    %118 = vector.shape_cast %117 : vector<1xf32> to vector<1x1xf32>
    %119 = arith.addf %115, %118 : vector<1x1xf32>
    %c0_32 = arith.constant 0 : index
    %c1_33 = arith.constant 1 : index
    %120 = vector.load %arg8[%c0_32, %c1_33] : memref<1x32xf32, #tpu.memory_space<vmem>>, vector<1x1xf32>
    tpu.vector_store %arg8[%c0_32, %c1_33], %119 {strides = array<i32>} : memref<1x32xf32, #tpu.memory_space<vmem>>, vector<1x1xf32>,
    %c20 = arith.constant 20 : index
    %121 = memref.load %arg3[%c20] : memref<320xf32, #tpu.memory_space<smem>>
    %122 = vector.broadcast %121 : f32 to vector<1x384xf32>
    %123 = arith.mulf %4, %122 : vector<1x384xf32>
    %c21 = arith.constant 21 : index
    %124 = memref.load %arg3[%c21] : memref<320xf32, #tpu.memory_space<smem>>
    %125 = vector.broadcast %124 : f32 to vector<1x384xf32>
    %126 = arith.mulf %6, %125 : vector<1x384xf32>
    %127 = arith.addf %123, %126 : vector<1x384xf32>
    %c22 = arith.constant 22 : index
    %128 = memref.load %arg3[%c22] : memref<320xf32, #tpu.memory_space<smem>>
    %129 = vector.broadcast %128 : f32 to vector<1x384xf32>
    %130 = arith.mulf %8, %129 : vector<1x384xf32>
    %131 = arith.addf %127, %130 : vector<1x384xf32>
    %c23 = arith.constant 23 : index
    %132 = memref.load %arg3[%c23] : memref<320xf32, #tpu.memory_space<smem>>
    %133 = vector.broadcast %132 : f32 to vector<1x384xf32>
    %134 = arith.mulf %10, %133 : vector<1x384xf32>
    %135 = arith.addf %131, %134 : vector<1x384xf32>
    %c24 = arith.constant 24 : index
    %136 = memref.load %arg3[%c24] : memref<320xf32, #tpu.memory_space<smem>>
    %137 = vector.broadcast %136 : f32 to vector<1x384xf32>
    %138 = arith.mulf %12, %137 : vector<1x384xf32>
    %139 = arith.addf %135, %138 : vector<1x384xf32>
    %c25 = arith.constant 25 : index
    %140 = memref.load %arg3[%c25] : memref<320xf32, #tpu.memory_space<smem>>
    %141 = vector.broadcast %140 : f32 to vector<1x384xf32>
    %142 = arith.mulf %14, %141 : vector<1x384xf32>
    %143 = arith.addf %139, %142 : vector<1x384xf32>
    %c26 = arith.constant 26 : index
    %144 = memref.load %arg3[%c26] : memref<320xf32, #tpu.memory_space<smem>>
    %145 = vector.broadcast %144 : f32 to vector<1x384xf32>
    %146 = arith.mulf %16, %145 : vector<1x384xf32>
    %147 = arith.addf %143, %146 : vector<1x384xf32>
    %c27 = arith.constant 27 : index
    %148 = memref.load %arg3[%c27] : memref<320xf32, #tpu.memory_space<smem>>
    %149 = vector.broadcast %148 : f32 to vector<1x384xf32>
    %150 = arith.mulf %18, %149 : vector<1x384xf32>
    %151 = arith.addf %147, %150 : vector<1x384xf32>
    %c28 = arith.constant 28 : index
    %152 = memref.load %arg3[%c28] : memref<320xf32, #tpu.memory_space<smem>>
    %153 = vector.broadcast %152 : f32 to vector<1x384xf32>
    %154 = arith.mulf %20, %153 : vector<1x384xf32>
    %155 = arith.addf %151, %154 : vector<1x384xf32>
    %c29 = arith.constant 29 : index
    %156 = memref.load %arg3[%c29] : memref<320xf32, #tpu.memory_space<smem>>
    %157 = vector.broadcast %156 : f32 to vector<1x384xf32>
    %158 = arith.addf %155, %157 : vector<1x384xf32>
    %159 = arith.negf %158 : vector<1x384xf32>
    %160 = math.exp %159 : vector<1x384xf32>
    %cst_34 = arith.constant 1.000000e+00 : f32
    %161 = vector.broadcast %cst_34 : f32 to vector<1x384xf32>
    %162 = arith.addf %161, %160 : vector<1x384xf32>
    %163 = arith.divf %161, %162 : vector<1x384xf32>
    %164 = arith.mulf %158, %163 : vector<1x384xf32>
    %c0_35 = arith.constant 0 : index
    %c2_36 = arith.constant 2 : index
    %165 = vector.load %arg8[%c0_35, %c2_36] : memref<1x32xf32, #tpu.memory_space<vmem>>, vector<1x1xf32>
    %166 = arith.mulf %164, %2 : vector<1x384xf32>
    %cst_37 = arith.constant dense<0.000000e+00> : vector<1xf32>
    %167 = vector.multi_reduction <add>, %166, %cst_37 [1] : vector<1x384xf32> to vector<1xf32>
    %168 = vector.shape_cast %167 : vector<1xf32> to vector<1x1xf32>
    %169 = arith.addf %165, %168 : vector<1x1xf32>
    %c0_38 = arith.constant 0 : index
    %c2_39 = arith.constant 2 : index
    %170 = vector.load %arg8[%c0_38, %c2_39] : memref<1x32xf32, #tpu.memory_space<vmem>>, vector<1x1xf32>
    tpu.vector_store %arg8[%c0_38, %c2_39], %169 {strides = array<i32>} : memref<1x32xf32, #tpu.memory_space<vmem>>, vector<1x1xf32>,
    %c30 = arith.constant 30 : index
    %171 = memref.load %arg3[%c30] : memref<320xf32, #tpu.memory_space<smem>>
    %172 = vector.broadcast %171 : f32 to vector<1x384xf32>
    %173 = arith.mulf %4, %172 : vector<1x384xf32>
    %c31 = arith.constant 31 : index
    %174 = memref.load %arg3[%c31] : memref<320xf32, #tpu.memory_space<smem>>
    %175 = vector.broadcast %174 : f32 to vector<1x384xf32>
    %176 = arith.mulf %6, %175 : vector<1x384xf32>
    %177 = arith.addf %173, %176 : vector<1x384xf32>
    %c32 = arith.constant 32 : index
    %178 = memref.load %arg3[%c32] : memref<320xf32, #tpu.memory_space<smem>>
    %179 = vector.broadcast %178 : f32 to vector<1x384xf32>
    %180 = arith.mulf %8, %179 : vector<1x384xf32>
    %181 = arith.addf %177, %180 : vector<1x384xf32>
    %c33 = arith.constant 33 : index
    %182 = memref.load %arg3[%c33] : memref<320xf32, #tpu.memory_space<smem>>
    %183 = vector.broadcast %182 : f32 to vector<1x384xf32>
    %184 = arith.mulf %10, %183 : vector<1x384xf32>
    %185 = arith.addf %181, %184 : vector<1x384xf32>
    %c34 = arith.constant 34 : index
    %186 = memref.load %arg3[%c34] : memref<320xf32, #tpu.memory_space<smem>>
    %187 = vector.broadcast %186 : f32 to vector<1x384xf32>
    %188 = arith.mulf %12, %187 : vector<1x384xf32>
    %189 = arith.addf %185, %188 : vector<1x384xf32>
    %c35 = arith.constant 35 : index
    %190 = memref.load %arg3[%c35] : memref<320xf32, #tpu.memory_space<smem>>
    %191 = vector.broadcast %190 : f32 to vector<1x384xf32>
    %192 = arith.mulf %14, %191 : vector<1x384xf32>
    %193 = arith.addf %189, %192 : vector<1x384xf32>
    %c36 = arith.constant 36 : index
    %194 = memref.load %arg3[%c36] : memref<320xf32, #tpu.memory_space<smem>>
    %195 = vector.broadcast %194 : f32 to vector<1x384xf32>
    %196 = arith.mulf %16, %195 : vector<1x384xf32>
    %197 = arith.addf %193, %196 : vector<1x384xf32>
    %c37 = arith.constant 37 : index
    %198 = memref.load %arg3[%c37] : memref<320xf32, #tpu.memory_space<smem>>
    %199 = vector.broadcast %198 : f32 to vector<1x384xf32>
    %200 = arith.mulf %18, %199 : vector<1x384xf32>
    %201 = arith.addf %197, %200 : vector<1x384xf32>
    %c38 = arith.constant 38 : index
    %202 = memref.load %arg3[%c38] : memref<320xf32, #tpu.memory_space<smem>>
    %203 = vector.broadcast %202 : f32 to vector<1x384xf32>
    %204 = arith.mulf %20, %203 : vector<1x384xf32>
    %205 = arith.addf %201, %204 : vector<1x384xf32>
    %c39 = arith.constant 39 : index
    %206 = memref.load %arg3[%c39] : memref<320xf32, #tpu.memory_space<smem>>
    %207 = vector.broadcast %206 : f32 to vector<1x384xf32>
    %208 = arith.addf %205, %207 : vector<1x384xf32>
    %209 = arith.negf %208 : vector<1x384xf32>
    %210 = math.exp %209 : vector<1x384xf32>
    %cst_40 = arith.constant 1.000000e+00 : f32
    %211 = vector.broadcast %cst_40 : f32 to vector<1x384xf32>
    %212 = arith.addf %211, %210 : vector<1x384xf32>
    %213 = arith.divf %211, %212 : vector<1x384xf32>
    %214 = arith.mulf %208, %213 : vector<1x384xf32>
    %c0_41 = arith.constant 0 : index
    %c3_42 = arith.constant 3 : index
    %215 = vector.load %arg8[%c0_41, %c3_42] : memref<1x32xf32, #tpu.memory_space<vmem>>, vector<1x1xf32>
    %216 = arith.mulf %214, %2 : vector<1x384xf32>
    %cst_43 = arith.constant dense<0.000000e+00> : vector<1xf32>
    %217 = vector.multi_reduction <add>, %216, %cst_43 [1] : vector<1x384xf32> to vector<1xf32>
    %218 = vector.shape_cast %217 : vector<1xf32> to vector<1x1xf32>
    %219 = arith.addf %215, %218 : vector<1x1xf32>
    %c0_44 = arith.constant 0 : index
    %c3_45 = arith.constant 3 : index
    %220 = vector.load %arg8[%c0_44, %c3_45] : memref<1x32xf32, #tpu.memory_space<vmem>>, vector<1x1xf32>
    tpu.vector_store %arg8[%c0_44, %c3_45], %219 {strides = array<i32>} : memref<1x32xf32, #tpu.memory_space<vmem>>, vector<1x1xf32>,
    %c40 = arith.constant 40 : index
    %221 = memref.load %arg3[%c40] : memref<320xf32, #tpu.memory_space<smem>>
    %222 = vector.broadcast %221 : f32 to vector<1x384xf32>
    %223 = arith.mulf %4, %222 : vector<1x384xf32>
    %c41 = arith.constant 41 : index
    %224 = memref.load %arg3[%c41] : memref<320xf32, #tpu.memory_space<smem>>
    %225 = vector.broadcast %224 : f32 to vector<1x384xf32>
    %226 = arith.mulf %6, %225 : vector<1x384xf32>
    %227 = arith.addf %223, %226 : vector<1x384xf32>
    %c42 = arith.constant 42 : index
    %228 = memref.load %arg3[%c42] : memref<320xf32, #tpu.memory_space<smem>>
    %229 = vector.broadcast %228 : f32 to vector<1x384xf32>
    %230 = arith.mulf %8, %229 : vector<1x384xf32>
    %231 = arith.addf %227, %230 : vector<1x384xf32>
    %c43 = arith.constant 43 : index
    %232 = memref.load %arg3[%c43] : memref<320xf32, #tpu.memory_space<smem>>
    %233 = vector.broadcast %232 : f32 to vector<1x384xf32>
    %234 = arith.mulf %10, %233 : vector<1x384xf32>
    %235 = arith.addf %231, %234 : vector<1x384xf32>
    %c44 = arith.constant 44 : index
    %236 = memref.load %arg3[%c44] : memref<320xf32, #tpu.memory_space<smem>>
    %237 = vector.broadcast %236 : f32 to vector<1x384xf32>
    %238 = arith.mulf %12, %237 : vector<1x384xf32>
    %239 = arith.addf %235, %238 : vector<1x384xf32>
    %c45 = arith.constant 45 : index
    %240 = memref.load %arg3[%c45] : memref<320xf32, #tpu.memory_space<smem>>
    %241 = vector.broadcast %240 : f32 to vector<1x384xf32>
    %242 = arith.mulf %14, %241 : vector<1x384xf32>
    %243 = arith.addf %239, %242 : vector<1x384xf32>
    %c46 = arith.constant 46 : index
    %244 = memref.load %arg3[%c46] : memref<320xf32, #tpu.memory_space<smem>>
    %245 = vector.broadcast %244 : f32 to vector<1x384xf32>
    %246 = arith.mulf %16, %245 : vector<1x384xf32>
    %247 = arith.addf %243, %246 : vector<1x384xf32>
    %c47 = arith.constant 47 : index
    %248 = memref.load %arg3[%c47] : memref<320xf32, #tpu.memory_space<smem>>
    %249 = vector.broadcast %248 : f32 to vector<1x384xf32>
    %250 = arith.mulf %18, %249 : vector<1x384xf32>
    %251 = arith.addf %247, %250 : vector<1x384xf32>
    %c48 = arith.constant 48 : index
    %252 = memref.load %arg3[%c48] : memref<320xf32, #tpu.memory_space<smem>>
    %253 = vector.broadcast %252 : f32 to vector<1x384xf32>
    %254 = arith.mulf %20, %253 : vector<1x384xf32>
    %255 = arith.addf %251, %254 : vector<1x384xf32>
    %c49 = arith.constant 49 : index
    %256 = memref.load %arg3[%c49] : memref<320xf32, #tpu.memory_space<smem>>
    %257 = vector.broadcast %256 : f32 to vector<1x384xf32>
    %258 = arith.addf %255, %257 : vector<1x384xf32>
    %259 = arith.negf %258 : vector<1x384xf32>
    %260 = math.exp %259 : vector<1x384xf32>
    %cst_46 = arith.constant 1.000000e+00 : f32
    %261 = vector.broadcast %cst_46 : f32 to vector<1x384xf32>
    %262 = arith.addf %261, %260 : vector<1x384xf32>
    %263 = arith.divf %261, %262 : vector<1x384xf32>
    %264 = arith.mulf %258, %263 : vector<1x384xf32>
    %c0_47 = arith.constant 0 : index
    %c4_48 = arith.constant 4 : index
    %265 = vector.load %arg8[%c0_47, %c4_48] : memref<1x32xf32, #tpu.memory_space<vmem>>, vector<1x1xf32>
    %266 = arith.mulf %264, %2 : vector<1x384xf32>
    %cst_49 = arith.constant dense<0.000000e+00> : vector<1xf32>
    %267 = vector.multi_reduction <add>, %266, %cst_49 [1] : vector<1x384xf32> to vector<1xf32>
    %268 = vector.shape_cast %267 : vector<1xf32> to vector<1x1xf32>
    %269 = arith.addf %265, %268 : vector<1x1xf32>
    %c0_50 = arith.constant 0 : index
    %c4_51 = arith.constant 4 : index
    %270 = vector.load %arg8[%c0_50, %c4_51] : memref<1x32xf32, #tpu.memory_space<vmem>>, vector<1x1xf32>
    tpu.vector_store %arg8[%c0_50, %c4_51], %269 {strides = array<i32>} : memref<1x32xf32, #tpu.memory_space<vmem>>, vector<1x1xf32>,
    %c50 = arith.constant 50 : index
    %271 = memref.load %arg3[%c50] : memref<320xf32, #tpu.memory_space<smem>>
    %272 = vector.broadcast %271 : f32 to vector<1x384xf32>
    %273 = arith.mulf %4, %272 : vector<1x384xf32>
    %c51 = arith.constant 51 : index
    %274 = memref.load %arg3[%c51] : memref<320xf32, #tpu.memory_space<smem>>
    %275 = vector.broadcast %274 : f32 to vector<1x384xf32>
    %276 = arith.mulf %6, %275 : vector<1x384xf32>
    %277 = arith.addf %273, %276 : vector<1x384xf32>
    %c52 = arith.constant 52 : index
    %278 = memref.load %arg3[%c52] : memref<320xf32, #tpu.memory_space<smem>>
    %279 = vector.broadcast %278 : f32 to vector<1x384xf32>
    %280 = arith.mulf %8, %279 : vector<1x384xf32>
    %281 = arith.addf %277, %280 : vector<1x384xf32>
    %c53 = arith.constant 53 : index
    %282 = memref.load %arg3[%c53] : memref<320xf32, #tpu.memory_space<smem>>
    %283 = vector.broadcast %282 : f32 to vector<1x384xf32>
    %284 = arith.mulf %10, %283 : vector<1x384xf32>
    %285 = arith.addf %281, %284 : vector<1x384xf32>
    %c54 = arith.constant 54 : index
    %286 = memref.load %arg3[%c54] : memref<320xf32, #tpu.memory_space<smem>>
    %287 = vector.broadcast %286 : f32 to vector<1x384xf32>
    %288 = arith.mulf %12, %287 : vector<1x384xf32>
    %289 = arith.addf %285, %288 : vector<1x384xf32>
    %c55 = arith.constant 55 : index
    %290 = memref.load %arg3[%c55] : memref<320xf32, #tpu.memory_space<smem>>
    %291 = vector.broadcast %290 : f32 to vector<1x384xf32>
    %292 = arith.mulf %14, %291 : vector<1x384xf32>
    %293 = arith.addf %289, %292 : vector<1x384xf32>
    %c56 = arith.constant 56 : index
    %294 = memref.load %arg3[%c56] : memref<320xf32, #tpu.memory_space<smem>>
    %295 = vector.broadcast %294 : f32 to vector<1x384xf32>
    %296 = arith.mulf %16, %295 : vector<1x384xf32>
    %297 = arith.addf %293, %296 : vector<1x384xf32>
    %c57 = arith.constant 57 : index
    %298 = memref.load %arg3[%c57] : memref<320xf32, #tpu.memory_space<smem>>
    %299 = vector.broadcast %298 : f32 to vector<1x384xf32>
    %300 = arith.mulf %18, %299 : vector<1x384xf32>
    %301 = arith.addf %297, %300 : vector<1x384xf32>
    %c58 = arith.constant 58 : index
    %302 = memref.load %arg3[%c58] : memref<320xf32, #tpu.memory_space<smem>>
    %303 = vector.broadcast %302 : f32 to vector<1x384xf32>
    %304 = arith.mulf %20, %303 : vector<1x384xf32>
    %305 = arith.addf %301, %304 : vector<1x384xf32>
    %c59 = arith.constant 59 : index
    %306 = memref.load %arg3[%c59] : memref<320xf32, #tpu.memory_space<smem>>
    %307 = vector.broadcast %306 : f32 to vector<1x384xf32>
    %308 = arith.addf %305, %307 : vector<1x384xf32>
    %309 = arith.negf %308 : vector<1x384xf32>
    %310 = math.exp %309 : vector<1x384xf32>
    %cst_52 = arith.constant 1.000000e+00 : f32
    %311 = vector.broadcast %cst_52 : f32 to vector<1x384xf32>
    %312 = arith.addf %311, %310 : vector<1x384xf32>
    %313 = arith.divf %311, %312 : vector<1x384xf32>
    %314 = arith.mulf %308, %313 : vector<1x384xf32>
    %c0_53 = arith.constant 0 : index
    %c5_54 = arith.constant 5 : index
    %315 = vector.load %arg8[%c0_53, %c5_54] : memref<1x32xf32, #tpu.memory_space<vmem>>, vector<1x1xf32>
    %316 = arith.mulf %314, %2 : vector<1x384xf32>
    %cst_55 = arith.constant dense<0.000000e+00> : vector<1xf32>
    %317 = vector.multi_reduction <add>, %316, %cst_55 [1] : vector<1x384xf32> to vector<1xf32>
    %318 = vector.shape_cast %317 : vector<1xf32> to vector<1x1xf32>
    %319 = arith.addf %315, %318 : vector<1x1xf32>
    %c0_56 = arith.constant 0 : index
    %c5_57 = arith.constant 5 : index
    %320 = vector.load %arg8[%c0_56, %c5_57] : memref<1x32xf32, #tpu.memory_space<vmem>>, vector<1x1xf32>
    tpu.vector_store %arg8[%c0_56, %c5_57], %319 {strides = array<i32>} : memref<1x32xf32, #tpu.memory_space<vmem>>, vector<1x1xf32>,
    %c60 = arith.constant 60 : index
    %321 = memref.load %arg3[%c60] : memref<320xf32, #tpu.memory_space<smem>>
    %322 = vector.broadcast %321 : f32 to vector<1x384xf32>
    %323 = arith.mulf %4, %322 : vector<1x384xf32>
    %c61 = arith.constant 61 : index
    %324 = memref.load %arg3[%c61] : memref<320xf32, #tpu.memory_space<smem>>
    %325 = vector.broadcast %324 : f32 to vector<1x384xf32>
    %326 = arith.mulf %6, %325 : vector<1x384xf32>
    %327 = arith.addf %323, %326 : vector<1x384xf32>
    %c62 = arith.constant 62 : index
    %328 = memref.load %arg3[%c62] : memref<320xf32, #tpu.memory_space<smem>>
    %329 = vector.broadcast %328 : f32 to vector<1x384xf32>
    %330 = arith.mulf %8, %329 : vector<1x384xf32>
    %331 = arith.addf %327, %330 : vector<1x384xf32>
    %c63 = arith.constant 63 : index
    %332 = memref.load %arg3[%c63] : memref<320xf32, #tpu.memory_space<smem>>
    %333 = vector.broadcast %332 : f32 to vector<1x384xf32>
    %334 = arith.mulf %10, %333 : vector<1x384xf32>
    %335 = arith.addf %331, %334 : vector<1x384xf32>
    %c64 = arith.constant 64 : index
    %336 = memref.load %arg3[%c64] : memref<320xf32, #tpu.memory_space<smem>>
    %337 = vector.broadcast %336 : f32 to vector<1x384xf32>
    %338 = arith.mulf %12, %337 : vector<1x384xf32>
    %339 = arith.addf %335, %338 : vector<1x384xf32>
    %c65 = arith.constant 65 : index
    %340 = memref.load %arg3[%c65] : memref<320xf32, #tpu.memory_space<smem>>
    %341 = vector.broadcast %340 : f32 to vector<1x384xf32>
    %342 = arith.mulf %14, %341 : vector<1x384xf32>
    %343 = arith.addf %339, %342 : vector<1x384xf32>
    %c66 = arith.constant 66 : index
    %344 = memref.load %arg3[%c66] : memref<320xf32, #tpu.memory_space<smem>>
    %345 = vector.broadcast %344 : f32 to vector<1x384xf32>
    %346 = arith.mulf %16, %345 : vector<1x384xf32>
    %347 = arith.addf %343, %346 : vector<1x384xf32>
    %c67 = arith.constant 67 : index
    %348 = memref.load %arg3[%c67] : memref<320xf32, #tpu.memory_space<smem>>
    %349 = vector.broadcast %348 : f32 to vector<1x384xf32>
    %350 = arith.mulf %18, %349 : vector<1x384xf32>
    %351 = arith.addf %347, %350 : vector<1x384xf32>
    %c68 = arith.constant 68 : index
    %352 = memref.load %arg3[%c68] : memref<320xf32, #tpu.memory_space<smem>>
    %353 = vector.broadcast %352 : f32 to vector<1x384xf32>
    %354 = arith.mulf %20, %353 : vector<1x384xf32>
    %355 = arith.addf %351, %354 : vector<1x384xf32>
    %c69 = arith.constant 69 : index
    %356 = memref.load %arg3[%c69] : memref<320xf32, #tpu.memory_space<smem>>
    %357 = vector.broadcast %356 : f32 to vector<1x384xf32>
    %358 = arith.addf %355, %357 : vector<1x384xf32>
    %359 = arith.negf %358 : vector<1x384xf32>
    %360 = math.exp %359 : vector<1x384xf32>
    %cst_58 = arith.constant 1.000000e+00 : f32
    %361 = vector.broadcast %cst_58 : f32 to vector<1x384xf32>
    %362 = arith.addf %361, %360 : vector<1x384xf32>
    %363 = arith.divf %361, %362 : vector<1x384xf32>
    %364 = arith.mulf %358, %363 : vector<1x384xf32>
    %c0_59 = arith.constant 0 : index
    %c6_60 = arith.constant 6 : index
    %365 = vector.load %arg8[%c0_59, %c6_60] : memref<1x32xf32, #tpu.memory_space<vmem>>, vector<1x1xf32>
    %366 = arith.mulf %364, %2 : vector<1x384xf32>
    %cst_61 = arith.constant dense<0.000000e+00> : vector<1xf32>
    %367 = vector.multi_reduction <add>, %366, %cst_61 [1] : vector<1x384xf32> to vector<1xf32>
    %368 = vector.shape_cast %367 : vector<1xf32> to vector<1x1xf32>
    %369 = arith.addf %365, %368 : vector<1x1xf32>
    %c0_62 = arith.constant 0 : index
    %c6_63 = arith.constant 6 : index
    %370 = vector.load %arg8[%c0_62, %c6_63] : memref<1x32xf32, #tpu.memory_space<vmem>>, vector<1x1xf32>
    tpu.vector_store %arg8[%c0_62, %c6_63], %369 {strides = array<i32>} : memref<1x32xf32, #tpu.memory_space<vmem>>, vector<1x1xf32>,
    %c70 = arith.constant 70 : index
    %371 = memref.load %arg3[%c70] : memref<320xf32, #tpu.memory_space<smem>>
    %372 = vector.broadcast %371 : f32 to vector<1x384xf32>
    %373 = arith.mulf %4, %372 : vector<1x384xf32>
    %c71 = arith.constant 71 : index
    %374 = memref.load %arg3[%c71] : memref<320xf32, #tpu.memory_space<smem>>
    %375 = vector.broadcast %374 : f32 to vector<1x384xf32>
    %376 = arith.mulf %6, %375 : vector<1x384xf32>
    %377 = arith.addf %373, %376 : vector<1x384xf32>
    %c72 = arith.constant 72 : index
    %378 = memref.load %arg3[%c72] : memref<320xf32, #tpu.memory_space<smem>>
    %379 = vector.broadcast %378 : f32 to vector<1x384xf32>
    %380 = arith.mulf %8, %379 : vector<1x384xf32>
    %381 = arith.addf %377, %380 : vector<1x384xf32>
    %c73 = arith.constant 73 : index
    %382 = memref.load %arg3[%c73] : memref<320xf32, #tpu.memory_space<smem>>
    %383 = vector.broadcast %382 : f32 to vector<1x384xf32>
    %384 = arith.mulf %10, %383 : vector<1x384xf32>
    %385 = arith.addf %381, %384 : vector<1x384xf32>
    %c74 = arith.constant 74 : index
    %386 = memref.load %arg3[%c74] : memref<320xf32, #tpu.memory_space<smem>>
    %387 = vector.broadcast %386 : f32 to vector<1x384xf32>
    %388 = arith.mulf %12, %387 : vector<1x384xf32>
    %389 = arith.addf %385, %388 : vector<1x384xf32>
    %c75 = arith.constant 75 : index
    %390 = memref.load %arg3[%c75] : memref<320xf32, #tpu.memory_space<smem>>
    %391 = vector.broadcast %390 : f32 to vector<1x384xf32>
    %392 = arith.mulf %14, %391 : vector<1x384xf32>
    %393 = arith.addf %389, %392 : vector<1x384xf32>
    %c76 = arith.constant 76 : index
    %394 = memref.load %arg3[%c76] : memref<320xf32, #tpu.memory_space<smem>>
    %395 = vector.broadcast %394 : f32 to vector<1x384xf32>
    %396 = arith.mulf %16, %395 : vector<1x384xf32>
    %397 = arith.addf %393, %396 : vector<1x384xf32>
    %c77 = arith.constant 77 : index
    %398 = memref.load %arg3[%c77] : memref<320xf32, #tpu.memory_space<smem>>
    %399 = vector.broadcast %398 : f32 to vector<1x384xf32>
    %400 = arith.mulf %18, %399 : vector<1x384xf32>
    %401 = arith.addf %397, %400 : vector<1x384xf32>
    %c78 = arith.constant 78 : index
    %402 = memref.load %arg3[%c78] : memref<320xf32, #tpu.memory_space<smem>>
    %403 = vector.broadcast %402 : f32 to vector<1x384xf32>
    %404 = arith.mulf %20, %403 : vector<1x384xf32>
    %405 = arith.addf %401, %404 : vector<1x384xf32>
    %c79 = arith.constant 79 : index
    %406 = memref.load %arg3[%c79] : memref<320xf32, #tpu.memory_space<smem>>
    %407 = vector.broadcast %406 : f32 to vector<1x384xf32>
    %408 = arith.addf %405, %407 : vector<1x384xf32>
    %409 = arith.negf %408 : vector<1x384xf32>
    %410 = math.exp %409 : vector<1x384xf32>
    %cst_64 = arith.constant 1.000000e+00 : f32
    %411 = vector.broadcast %cst_64 : f32 to vector<1x384xf32>
    %412 = arith.addf %411, %410 : vector<1x384xf32>
    %413 = arith.divf %411, %412 : vector<1x384xf32>
    %414 = arith.mulf %408, %413 : vector<1x384xf32>
    %c0_65 = arith.constant 0 : index
    %c7_66 = arith.constant 7 : index
    %415 = vector.load %arg8[%c0_65, %c7_66] : memref<1x32xf32, #tpu.memory_space<vmem>>, vector<1x1xf32>
    %416 = arith.mulf %414, %2 : vector<1x384xf32>
    %cst_67 = arith.constant dense<0.000000e+00> : vector<1xf32>
    %417 = vector.multi_reduction <add>, %416, %cst_67 [1] : vector<1x384xf32> to vector<1xf32>
    %418 = vector.shape_cast %417 : vector<1xf32> to vector<1x1xf32>
    %419 = arith.addf %415, %418 : vector<1x1xf32>
    %c0_68 = arith.constant 0 : index
    %c7_69 = arith.constant 7 : index
    %420 = vector.load %arg8[%c0_68, %c7_69] : memref<1x32xf32, #tpu.memory_space<vmem>>, vector<1x1xf32>
    tpu.vector_store %arg8[%c0_68, %c7_69], %419 {strides = array<i32>} : memref<1x32xf32, #tpu.memory_space<vmem>>, vector<1x1xf32>,
    %c80 = arith.constant 80 : index
    %421 = memref.load %arg3[%c80] : memref<320xf32, #tpu.memory_space<smem>>
    %422 = vector.broadcast %421 : f32 to vector<1x384xf32>
    %423 = arith.mulf %4, %422 : vector<1x384xf32>
    %c81 = arith.constant 81 : index
    %424 = memref.load %arg3[%c81] : memref<320xf32, #tpu.memory_space<smem>>
    %425 = vector.broadcast %424 : f32 to vector<1x384xf32>
    %426 = arith.mulf %6, %425 : vector<1x384xf32>
    %427 = arith.addf %423, %426 : vector<1x384xf32>
    %c82 = arith.constant 82 : index
    %428 = memref.load %arg3[%c82] : memref<320xf32, #tpu.memory_space<smem>>
    %429 = vector.broadcast %428 : f32 to vector<1x384xf32>
    %430 = arith.mulf %8, %429 : vector<1x384xf32>
    %431 = arith.addf %427, %430 : vector<1x384xf32>
    %c83 = arith.constant 83 : index
    %432 = memref.load %arg3[%c83] : memref<320xf32, #tpu.memory_space<smem>>
    %433 = vector.broadcast %432 : f32 to vector<1x384xf32>
    %434 = arith.mulf %10, %433 : vector<1x384xf32>
    %435 = arith.addf %431, %434 : vector<1x384xf32>
    %c84 = arith.constant 84 : index
    %436 = memref.load %arg3[%c84] : memref<320xf32, #tpu.memory_space<smem>>
    %437 = vector.broadcast %436 : f32 to vector<1x384xf32>
    %438 = arith.mulf %12, %437 : vector<1x384xf32>
    %439 = arith.addf %435, %438 : vector<1x384xf32>
    %c85 = arith.constant 85 : index
    %440 = memref.load %arg3[%c85] : memref<320xf32, #tpu.memory_space<smem>>
    %441 = vector.broadcast %440 : f32 to vector<1x384xf32>
    %442 = arith.mulf %14, %441 : vector<1x384xf32>
    %443 = arith.addf %439, %442 : vector<1x384xf32>
    %c86 = arith.constant 86 : index
    %444 = memref.load %arg3[%c86] : memref<320xf32, #tpu.memory_space<smem>>
    %445 = vector.broadcast %444 : f32 to vector<1x384xf32>
    %446 = arith.mulf %16, %445 : vector<1x384xf32>
    %447 = arith.addf %443, %446 : vector<1x384xf32>
    %c87 = arith.constant 87 : index
    %448 = memref.load %arg3[%c87] : memref<320xf32, #tpu.memory_space<smem>>
    %449 = vector.broadcast %448 : f32 to vector<1x384xf32>
    %450 = arith.mulf %18, %449 : vector<1x384xf32>
    %451 = arith.addf %447, %450 : vector<1x384xf32>
    %c88 = arith.constant 88 : index
    %452 = memref.load %arg3[%c88] : memref<320xf32, #tpu.memory_space<smem>>
    %453 = vector.broadcast %452 : f32 to vector<1x384xf32>
    %454 = arith.mulf %20, %453 : vector<1x384xf32>
    %455 = arith.addf %451, %454 : vector<1x384xf32>
    %c89 = arith.constant 89 : index
    %456 = memref.load %arg3[%c89] : memref<320xf32, #tpu.memory_space<smem>>
    %457 = vector.broadcast %456 : f32 to vector<1x384xf32>
    %458 = arith.addf %455, %457 : vector<1x384xf32>
    %459 = arith.negf %458 : vector<1x384xf32>
    %460 = math.exp %459 : vector<1x384xf32>
    %cst_70 = arith.constant 1.000000e+00 : f32
    %461 = vector.broadcast %cst_70 : f32 to vector<1x384xf32>
    %462 = arith.addf %461, %460 : vector<1x384xf32>
    %463 = arith.divf %461, %462 : vector<1x384xf32>
    %464 = arith.mulf %458, %463 : vector<1x384xf32>
    %c0_71 = arith.constant 0 : index
    %c8_72 = arith.constant 8 : index
    %465 = vector.load %arg8[%c0_71, %c8_72] : memref<1x32xf32, #tpu.memory_space<vmem>>, vector<1x1xf32>
    %466 = arith.mulf %464, %2 : vector<1x384xf32>
    %cst_73 = arith.constant dense<0.000000e+00> : vector<1xf32>
    %467 = vector.multi_reduction <add>, %466, %cst_73 [1] : vector<1x384xf32> to vector<1xf32>
    %468 = vector.shape_cast %467 : vector<1xf32> to vector<1x1xf32>
    %469 = arith.addf %465, %468 : vector<1x1xf32>
    %c0_74 = arith.constant 0 : index
    %c8_75 = arith.constant 8 : index
    %470 = vector.load %arg8[%c0_74, %c8_75] : memref<1x32xf32, #tpu.memory_space<vmem>>, vector<1x1xf32>
    tpu.vector_store %arg8[%c0_74, %c8_75], %469 {strides = array<i32>} : memref<1x32xf32, #tpu.memory_space<vmem>>, vector<1x1xf32>,
    %c90 = arith.constant 90 : index
    %471 = memref.load %arg3[%c90] : memref<320xf32, #tpu.memory_space<smem>>
    %472 = vector.broadcast %471 : f32 to vector<1x384xf32>
    %473 = arith.mulf %4, %472 : vector<1x384xf32>
    %c91 = arith.constant 91 : index
    %474 = memref.load %arg3[%c91] : memref<320xf32, #tpu.memory_space<smem>>
    %475 = vector.broadcast %474 : f32 to vector<1x384xf32>
    %476 = arith.mulf %6, %475 : vector<1x384xf32>
    %477 = arith.addf %473, %476 : vector<1x384xf32>
    %c92 = arith.constant 92 : index
    %478 = memref.load %arg3[%c92] : memref<320xf32, #tpu.memory_space<smem>>
    %479 = vector.broadcast %478 : f32 to vector<1x384xf32>
    %480 = arith.mulf %8, %479 : vector<1x384xf32>
    %481 = arith.addf %477, %480 : vector<1x384xf32>
    %c93 = arith.constant 93 : index
    %482 = memref.load %arg3[%c93] : memref<320xf32, #tpu.memory_space<smem>>
    %483 = vector.broadcast %482 : f32 to vector<1x384xf32>
    %484 = arith.mulf %10, %483 : vector<1x384xf32>
    %485 = arith.addf %481, %484 : vector<1x384xf32>
    %c94 = arith.constant 94 : index
    %486 = memref.load %arg3[%c94] : memref<320xf32, #tpu.memory_space<smem>>
    %487 = vector.broadcast %486 : f32 to vector<1x384xf32>
    %488 = arith.mulf %12, %487 : vector<1x384xf32>
    %489 = arith.addf %485, %488 : vector<1x384xf32>
    %c95 = arith.constant 95 : index
    %490 = memref.load %arg3[%c95] : memref<320xf32, #tpu.memory_space<smem>>
    %491 = vector.broadcast %490 : f32 to vector<1x384xf32>
    %492 = arith.mulf %14, %491 : vector<1x384xf32>
    %493 = arith.addf %489, %492 : vector<1x384xf32>
    %c96 = arith.constant 96 : index
    %494 = memref.load %arg3[%c96] : memref<320xf32, #tpu.memory_space<smem>>
    %495 = vector.broadcast %494 : f32 to vector<1x384xf32>
    %496 = arith.mulf %16, %495 : vector<1x384xf32>
    %497 = arith.addf %493, %496 : vector<1x384xf32>
    %c97 = arith.constant 97 : index
    %498 = memref.load %arg3[%c97] : memref<320xf32, #tpu.memory_space<smem>>
    %499 = vector.broadcast %498 : f32 to vector<1x384xf32>
    %500 = arith.mulf %18, %499 : vector<1x384xf32>
    %501 = arith.addf %497, %500 : vector<1x384xf32>
    %c98 = arith.constant 98 : index
    %502 = memref.load %arg3[%c98] : memref<320xf32, #tpu.memory_space<smem>>
    %503 = vector.broadcast %502 : f32 to vector<1x384xf32>
    %504 = arith.mulf %20, %503 : vector<1x384xf32>
    %505 = arith.addf %501, %504 : vector<1x384xf32>
    %c99 = arith.constant 99 : index
    %506 = memref.load %arg3[%c99] : memref<320xf32, #tpu.memory_space<smem>>
    %507 = vector.broadcast %506 : f32 to vector<1x384xf32>
    %508 = arith.addf %505, %507 : vector<1x384xf32>
    %509 = arith.negf %508 : vector<1x384xf32>
    %510 = math.exp %509 : vector<1x384xf32>
    %cst_76 = arith.constant 1.000000e+00 : f32
    %511 = vector.broadcast %cst_76 : f32 to vector<1x384xf32>
    %512 = arith.addf %511, %510 : vector<1x384xf32>
    %513 = arith.divf %511, %512 : vector<1x384xf32>
    %514 = arith.mulf %508, %513 : vector<1x384xf32>
    %c0_77 = arith.constant 0 : index
    %c9_78 = arith.constant 9 : index
    %515 = vector.load %arg8[%c0_77, %c9_78] : memref<1x32xf32, #tpu.memory_space<vmem>>, vector<1x1xf32>
    %516 = arith.mulf %514, %2 : vector<1x384xf32>
    %cst_79 = arith.constant dense<0.000000e+00> : vector<1xf32>
    %517 = vector.multi_reduction <add>, %516, %cst_79 [1] : vector<1x384xf32> to vector<1xf32>
    %518 = vector.shape_cast %517 : vector<1xf32> to vector<1x1xf32>
    %519 = arith.addf %515, %518 : vector<1x1xf32>
    %c0_80 = arith.constant 0 : index
    %c9_81 = arith.constant 9 : index
    %520 = vector.load %arg8[%c0_80, %c9_81] : memref<1x32xf32, #tpu.memory_space<vmem>>, vector<1x1xf32>
    tpu.vector_store %arg8[%c0_80, %c9_81], %519 {strides = array<i32>} : memref<1x32xf32, #tpu.memory_space<vmem>>, vector<1x1xf32>,
    %c100 = arith.constant 100 : index
    %521 = memref.load %arg3[%c100] : memref<320xf32, #tpu.memory_space<smem>>
    %522 = vector.broadcast %521 : f32 to vector<1x384xf32>
    %523 = arith.mulf %4, %522 : vector<1x384xf32>
    %c101 = arith.constant 101 : index
    %524 = memref.load %arg3[%c101] : memref<320xf32, #tpu.memory_space<smem>>
    %525 = vector.broadcast %524 : f32 to vector<1x384xf32>
    %526 = arith.mulf %6, %525 : vector<1x384xf32>
    %527 = arith.addf %523, %526 : vector<1x384xf32>
    %c102 = arith.constant 102 : index
    %528 = memref.load %arg3[%c102] : memref<320xf32, #tpu.memory_space<smem>>
    %529 = vector.broadcast %528 : f32 to vector<1x384xf32>
    %530 = arith.mulf %8, %529 : vector<1x384xf32>
    %531 = arith.addf %527, %530 : vector<1x384xf32>
    %c103 = arith.constant 103 : index
    %532 = memref.load %arg3[%c103] : memref<320xf32, #tpu.memory_space<smem>>
    %533 = vector.broadcast %532 : f32 to vector<1x384xf32>
    %534 = arith.mulf %10, %533 : vector<1x384xf32>
    %535 = arith.addf %531, %534 : vector<1x384xf32>
    %c104 = arith.constant 104 : index
    %536 = memref.load %arg3[%c104] : memref<320xf32, #tpu.memory_space<smem>>
    %537 = vector.broadcast %536 : f32 to vector<1x384xf32>
    %538 = arith.mulf %12, %537 : vector<1x384xf32>
    %539 = arith.addf %535, %538 : vector<1x384xf32>
    %c105 = arith.constant 105 : index
    %540 = memref.load %arg3[%c105] : memref<320xf32, #tpu.memory_space<smem>>
    %541 = vector.broadcast %540 : f32 to vector<1x384xf32>
    %542 = arith.mulf %14, %541 : vector<1x384xf32>
    %543 = arith.addf %539, %542 : vector<1x384xf32>
    %c106 = arith.constant 106 : index
    %544 = memref.load %arg3[%c106] : memref<320xf32, #tpu.memory_space<smem>>
    %545 = vector.broadcast %544 : f32 to vector<1x384xf32>
    %546 = arith.mulf %16, %545 : vector<1x384xf32>
    %547 = arith.addf %543, %546 : vector<1x384xf32>
    %c107 = arith.constant 107 : index
    %548 = memref.load %arg3[%c107] : memref<320xf32, #tpu.memory_space<smem>>
    %549 = vector.broadcast %548 : f32 to vector<1x384xf32>
    %550 = arith.mulf %18, %549 : vector<1x384xf32>
    %551 = arith.addf %547, %550 : vector<1x384xf32>
    %c108 = arith.constant 108 : index
    %552 = memref.load %arg3[%c108] : memref<320xf32, #tpu.memory_space<smem>>
    %553 = vector.broadcast %552 : f32 to vector<1x384xf32>
    %554 = arith.mulf %20, %553 : vector<1x384xf32>
    %555 = arith.addf %551, %554 : vector<1x384xf32>
    %c109_82 = arith.constant 109 : index
    %556 = memref.load %arg3[%c109_82] : memref<320xf32, #tpu.memory_space<smem>>
    %557 = vector.broadcast %556 : f32 to vector<1x384xf32>
    %558 = arith.addf %555, %557 : vector<1x384xf32>
    %559 = arith.negf %558 : vector<1x384xf32>
    %560 = math.exp %559 : vector<1x384xf32>
    %cst_83 = arith.constant 1.000000e+00 : f32
    %561 = vector.broadcast %cst_83 : f32 to vector<1x384xf32>
    %562 = arith.addf %561, %560 : vector<1x384xf32>
    %563 = arith.divf %561, %562 : vector<1x384xf32>
    %564 = arith.mulf %558, %563 : vector<1x384xf32>
    %c0_84 = arith.constant 0 : index
    %c10_85 = arith.constant 10 : index
    %565 = vector.load %arg8[%c0_84, %c10_85] : memref<1x32xf32, #tpu.memory_space<vmem>>, vector<1x1xf32>
    %566 = arith.mulf %564, %2 : vector<1x384xf32>
    %cst_86 = arith.constant dense<0.000000e+00> : vector<1xf32>
    %567 = vector.multi_reduction <add>, %566, %cst_86 [1] : vector<1x384xf32> to vector<1xf32>
    %568 = vector.shape_cast %567 : vector<1xf32> to vector<1x1xf32>
    %569 = arith.addf %565, %568 : vector<1x1xf32>
    %c0_87 = arith.constant 0 : index
    %c10_88 = arith.constant 10 : index
    %570 = vector.load %arg8[%c0_87, %c10_88] : memref<1x32xf32, #tpu.memory_space<vmem>>, vector<1x1xf32>
    tpu.vector_store %arg8[%c0_87, %c10_88], %569 {strides = array<i32>} : memref<1x32xf32, #tpu.memory_space<vmem>>, vector<1x1xf32>,
    %c110_89 = arith.constant 110 : index
    %571 = memref.load %arg3[%c110_89] : memref<320xf32, #tpu.memory_space<smem>>
    %572 = vector.broadcast %571 : f32 to vector<1x384xf32>
    %573 = arith.mulf %4, %572 : vector<1x384xf32>
    %c111_90 = arith.constant 111 : index
    %574 = memref.load %arg3[%c111_90] : memref<320xf32, #tpu.memory_space<smem>>
    %575 = vector.broadcast %574 : f32 to vector<1x384xf32>
    %576 = arith.mulf %6, %575 : vector<1x384xf32>
    %577 = arith.addf %573, %576 : vector<1x384xf32>
    %c112 = arith.constant 112 : index
    %578 = memref.load %arg3[%c112] : memref<320xf32, #tpu.memory_space<smem>>
    %579 = vector.broadcast %578 : f32 to vector<1x384xf32>
    %580 = arith.mulf %8, %579 : vector<1x384xf32>
    %581 = arith.addf %577, %580 : vector<1x384xf32>
    %c113 = arith.constant 113 : index
    %582 = memref.load %arg3[%c113] : memref<320xf32, #tpu.memory_space<smem>>
    %583 = vector.broadcast %582 : f32 to vector<1x384xf32>
    %584 = arith.mulf %10, %583 : vector<1x384xf32>
    %585 = arith.addf %581, %584 : vector<1x384xf32>
    %c114 = arith.constant 114 : index
    %586 = memref.load %arg3[%c114] : memref<320xf32, #tpu.memory_space<smem>>
    %587 = vector.broadcast %586 : f32 to vector<1x384xf32>
    %588 = arith.mulf %12, %587 : vector<1x384xf32>
    %589 = arith.addf %585, %588 : vector<1x384xf32>
    %c115 = arith.constant 115 : index
    %590 = memref.load %arg3[%c115] : memref<320xf32, #tpu.memory_space<smem>>
    %591 = vector.broadcast %590 : f32 to vector<1x384xf32>
    %592 = arith.mulf %14, %591 : vector<1x384xf32>
    %593 = arith.addf %589, %592 : vector<1x384xf32>
    %c116 = arith.constant 116 : index
    %594 = memref.load %arg3[%c116] : memref<320xf32, #tpu.memory_space<smem>>
    %595 = vector.broadcast %594 : f32 to vector<1x384xf32>
    %596 = arith.mulf %16, %595 : vector<1x384xf32>
    %597 = arith.addf %593, %596 : vector<1x384xf32>
    %c117 = arith.constant 117 : index
    %598 = memref.load %arg3[%c117] : memref<320xf32, #tpu.memory_space<smem>>
    %599 = vector.broadcast %598 : f32 to vector<1x384xf32>
    %600 = arith.mulf %18, %599 : vector<1x384xf32>
    %601 = arith.addf %597, %600 : vector<1x384xf32>
    %c118 = arith.constant 118 : index
    %602 = memref.load %arg3[%c118] : memref<320xf32, #tpu.memory_space<smem>>
    %603 = vector.broadcast %602 : f32 to vector<1x384xf32>
    %604 = arith.mulf %20, %603 : vector<1x384xf32>
    %605 = arith.addf %601, %604 : vector<1x384xf32>
    %c119 = arith.constant 119 : index
    %606 = memref.load %arg3[%c119] : memref<320xf32, #tpu.memory_space<smem>>
    %607 = vector.broadcast %606 : f32 to vector<1x384xf32>
    %608 = arith.addf %605, %607 : vector<1x384xf32>
    %609 = arith.negf %608 : vector<1x384xf32>
    %610 = math.exp %609 : vector<1x384xf32>
    %cst_91 = arith.constant 1.000000e+00 : f32
    %611 = vector.broadcast %cst_91 : f32 to vector<1x384xf32>
    %612 = arith.addf %611, %610 : vector<1x384xf32>
    %613 = arith.divf %611, %612 : vector<1x384xf32>
    %614 = arith.mulf %608, %613 : vector<1x384xf32>
    %c0_92 = arith.constant 0 : index
    %c11_93 = arith.constant 11 : index
    %615 = vector.load %arg8[%c0_92, %c11_93] : memref<1x32xf32, #tpu.memory_space<vmem>>, vector<1x1xf32>
    %616 = arith.mulf %614, %2 : vector<1x384xf32>
    %cst_94 = arith.constant dense<0.000000e+00> : vector<1xf32>
    %617 = vector.multi_reduction <add>, %616, %cst_94 [1] : vector<1x384xf32> to vector<1xf32>
    %618 = vector.shape_cast %617 : vector<1xf32> to vector<1x1xf32>
    %619 = arith.addf %615, %618 : vector<1x1xf32>
    %c0_95 = arith.constant 0 : index
    %c11_96 = arith.constant 11 : index
    %620 = vector.load %arg8[%c0_95, %c11_96] : memref<1x32xf32, #tpu.memory_space<vmem>>, vector<1x1xf32>
    tpu.vector_store %arg8[%c0_95, %c11_96], %619 {strides = array<i32>} : memref<1x32xf32, #tpu.memory_space<vmem>>, vector<1x1xf32>,
    %c120 = arith.constant 120 : index
    %621 = memref.load %arg3[%c120] : memref<320xf32, #tpu.memory_space<smem>>
    %622 = vector.broadcast %621 : f32 to vector<1x384xf32>
    %623 = arith.mulf %4, %622 : vector<1x384xf32>
    %c121 = arith.constant 121 : index
    %624 = memref.load %arg3[%c121] : memref<320xf32, #tpu.memory_space<smem>>
    %625 = vector.broadcast %624 : f32 to vector<1x384xf32>
    %626 = arith.mulf %6, %625 : vector<1x384xf32>
    %627 = arith.addf %623, %626 : vector<1x384xf32>
    %c122 = arith.constant 122 : index
    %628 = memref.load %arg3[%c122] : memref<320xf32, #tpu.memory_space<smem>>
    %629 = vector.broadcast %628 : f32 to vector<1x384xf32>
    %630 = arith.mulf %8, %629 : vector<1x384xf32>
    %631 = arith.addf %627, %630 : vector<1x384xf32>
    %c123 = arith.constant 123 : index
    %632 = memref.load %arg3[%c123] : memref<320xf32, #tpu.memory_space<smem>>
    %633 = vector.broadcast %632 : f32 to vector<1x384xf32>
    %634 = arith.mulf %10, %633 : vector<1x384xf32>
    %635 = arith.addf %631, %634 : vector<1x384xf32>
    %c124 = arith.constant 124 : index
    %636 = memref.load %arg3[%c124] : memref<320xf32, #tpu.memory_space<smem>>
    %637 = vector.broadcast %636 : f32 to vector<1x384xf32>
    %638 = arith.mulf %12, %637 : vector<1x384xf32>
    %639 = arith.addf %635, %638 : vector<1x384xf32>
    %c125 = arith.constant 125 : index
    %640 = memref.load %arg3[%c125] : memref<320xf32, #tpu.memory_space<smem>>
    %641 = vector.broadcast %640 : f32 to vector<1x384xf32>
    %642 = arith.mulf %14, %641 : vector<1x384xf32>
    %643 = arith.addf %639, %642 : vector<1x384xf32>
    %c126 = arith.constant 126 : index
    %644 = memref.load %arg3[%c126] : memref<320xf32, #tpu.memory_space<smem>>
    %645 = vector.broadcast %644 : f32 to vector<1x384xf32>
    %646 = arith.mulf %16, %645 : vector<1x384xf32>
    %647 = arith.addf %643, %646 : vector<1x384xf32>
    %c127_97 = arith.constant 127 : index
    %648 = memref.load %arg3[%c127_97] : memref<320xf32, #tpu.memory_space<smem>>
    %649 = vector.broadcast %648 : f32 to vector<1x384xf32>
    %650 = arith.mulf %18, %649 : vector<1x384xf32>
    %651 = arith.addf %647, %650 : vector<1x384xf32>
    %c128_98 = arith.constant 128 : index
    %652 = memref.load %arg3[%c128_98] : memref<320xf32, #tpu.memory_space<smem>>
    %653 = vector.broadcast %652 : f32 to vector<1x384xf32>
    %654 = arith.mulf %20, %653 : vector<1x384xf32>
    %655 = arith.addf %651, %654 : vector<1x384xf32>
    %c129_99 = arith.constant 129 : index
    %656 = memref.load %arg3[%c129_99] : memref<320xf32, #tpu.memory_space<smem>>
    %657 = vector.broadcast %656 : f32 to vector<1x384xf32>
    %658 = arith.addf %655, %657 : vector<1x384xf32>
    %659 = arith.negf %658 : vector<1x384xf32>
    %660 = math.exp %659 : vector<1x384xf32>
    %cst_100 = arith.constant 1.000000e+00 : f32
    %661 = vector.broadcast %cst_100 : f32 to vector<1x384xf32>
    %662 = arith.addf %661, %660 : vector<1x384xf32>
    %663 = arith.divf %661, %662 : vector<1x384xf32>
    %664 = arith.mulf %658, %663 : vector<1x384xf32>
    %c0_101 = arith.constant 0 : index
    %c12_102 = arith.constant 12 : index
    %665 = vector.load %arg8[%c0_101, %c12_102] : memref<1x32xf32, #tpu.memory_space<vmem>>, vector<1x1xf32>
    %666 = arith.mulf %664, %2 : vector<1x384xf32>
    %cst_103 = arith.constant dense<0.000000e+00> : vector<1xf32>
    %667 = vector.multi_reduction <add>, %666, %cst_103 [1] : vector<1x384xf32> to vector<1xf32>
    %668 = vector.shape_cast %667 : vector<1xf32> to vector<1x1xf32>
    %669 = arith.addf %665, %668 : vector<1x1xf32>
    %c0_104 = arith.constant 0 : index
    %c12_105 = arith.constant 12 : index
    %670 = vector.load %arg8[%c0_104, %c12_105] : memref<1x32xf32, #tpu.memory_space<vmem>>, vector<1x1xf32>
    tpu.vector_store %arg8[%c0_104, %c12_105], %669 {strides = array<i32>} : memref<1x32xf32, #tpu.memory_space<vmem>>, vector<1x1xf32>,
    %c130 = arith.constant 130 : index
    %671 = memref.load %arg3[%c130] : memref<320xf32, #tpu.memory_space<smem>>
    %672 = vector.broadcast %671 : f32 to vector<1x384xf32>
    %673 = arith.mulf %4, %672 : vector<1x384xf32>
    %c131 = arith.constant 131 : index
    %674 = memref.load %arg3[%c131] : memref<320xf32, #tpu.memory_space<smem>>
    %675 = vector.broadcast %674 : f32 to vector<1x384xf32>
    %676 = arith.mulf %6, %675 : vector<1x384xf32>
    %677 = arith.addf %673, %676 : vector<1x384xf32>
    %c132 = arith.constant 132 : index
    %678 = memref.load %arg3[%c132] : memref<320xf32, #tpu.memory_space<smem>>
    %679 = vector.broadcast %678 : f32 to vector<1x384xf32>
    %680 = arith.mulf %8, %679 : vector<1x384xf32>
    %681 = arith.addf %677, %680 : vector<1x384xf32>
    %c133 = arith.constant 133 : index
    %682 = memref.load %arg3[%c133] : memref<320xf32, #tpu.memory_space<smem>>
    %683 = vector.broadcast %682 : f32 to vector<1x384xf32>
    %684 = arith.mulf %10, %683 : vector<1x384xf32>
    %685 = arith.addf %681, %684 : vector<1x384xf32>
    %c134 = arith.constant 134 : index
    %686 = memref.load %arg3[%c134] : memref<320xf32, #tpu.memory_space<smem>>
    %687 = vector.broadcast %686 : f32 to vector<1x384xf32>
    %688 = arith.mulf %12, %687 : vector<1x384xf32>
    %689 = arith.addf %685, %688 : vector<1x384xf32>
    %c135 = arith.constant 135 : index
    %690 = memref.load %arg3[%c135] : memref<320xf32, #tpu.memory_space<smem>>
    %691 = vector.broadcast %690 : f32 to vector<1x384xf32>
    %692 = arith.mulf %14, %691 : vector<1x384xf32>
    %693 = arith.addf %689, %692 : vector<1x384xf32>
    %c136 = arith.constant 136 : index
    %694 = memref.load %arg3[%c136] : memref<320xf32, #tpu.memory_space<smem>>
    %695 = vector.broadcast %694 : f32 to vector<1x384xf32>
    %696 = arith.mulf %16, %695 : vector<1x384xf32>
    %697 = arith.addf %693, %696 : vector<1x384xf32>
    %c137 = arith.constant 137 : index
    %698 = memref.load %arg3[%c137] : memref<320xf32, #tpu.memory_space<smem>>
    %699 = vector.broadcast %698 : f32 to vector<1x384xf32>
    %700 = arith.mulf %18, %699 : vector<1x384xf32>
    %701 = arith.addf %697, %700 : vector<1x384xf32>
    %c138 = arith.constant 138 : index
    %702 = memref.load %arg3[%c138] : memref<320xf32, #tpu.memory_space<smem>>
    %703 = vector.broadcast %702 : f32 to vector<1x384xf32>
    %704 = arith.mulf %20, %703 : vector<1x384xf32>
    %705 = arith.addf %701, %704 : vector<1x384xf32>
    %c139 = arith.constant 139 : index
    %706 = memref.load %arg3[%c139] : memref<320xf32, #tpu.memory_space<smem>>
    %707 = vector.broadcast %706 : f32 to vector<1x384xf32>
    %708 = arith.addf %705, %707 : vector<1x384xf32>
    %709 = arith.negf %708 : vector<1x384xf32>
    %710 = math.exp %709 : vector<1x384xf32>
    %cst_106 = arith.constant 1.000000e+00 : f32
    %711 = vector.broadcast %cst_106 : f32 to vector<1x384xf32>
    %712 = arith.addf %711, %710 : vector<1x384xf32>
    %713 = arith.divf %711, %712 : vector<1x384xf32>
    %714 = arith.mulf %708, %713 : vector<1x384xf32>
    %c0_107 = arith.constant 0 : index
    %c13_108 = arith.constant 13 : index
    %715 = vector.load %arg8[%c0_107, %c13_108] : memref<1x32xf32, #tpu.memory_space<vmem>>, vector<1x1xf32>
    %716 = arith.mulf %714, %2 : vector<1x384xf32>
    %cst_109 = arith.constant dense<0.000000e+00> : vector<1xf32>
    %717 = vector.multi_reduction <add>, %716, %cst_109 [1] : vector<1x384xf32> to vector<1xf32>
    %718 = vector.shape_cast %717 : vector<1xf32> to vector<1x1xf32>
    %719 = arith.addf %715, %718 : vector<1x1xf32>
    %c0_110 = arith.constant 0 : index
    %c13_111 = arith.constant 13 : index
    %720 = vector.load %arg8[%c0_110, %c13_111] : memref<1x32xf32, #tpu.memory_space<vmem>>, vector<1x1xf32>
    tpu.vector_store %arg8[%c0_110, %c13_111], %719 {strides = array<i32>} : memref<1x32xf32, #tpu.memory_space<vmem>>, vector<1x1xf32>,
    %c140 = arith.constant 140 : index
    %721 = memref.load %arg3[%c140] : memref<320xf32, #tpu.memory_space<smem>>
    %722 = vector.broadcast %721 : f32 to vector<1x384xf32>
    %723 = arith.mulf %4, %722 : vector<1x384xf32>
    %c141 = arith.constant 141 : index
    %724 = memref.load %arg3[%c141] : memref<320xf32, #tpu.memory_space<smem>>
    %725 = vector.broadcast %724 : f32 to vector<1x384xf32>
    %726 = arith.mulf %6, %725 : vector<1x384xf32>
    %727 = arith.addf %723, %726 : vector<1x384xf32>
    %c142 = arith.constant 142 : index
    %728 = memref.load %arg3[%c142] : memref<320xf32, #tpu.memory_space<smem>>
    %729 = vector.broadcast %728 : f32 to vector<1x384xf32>
    %730 = arith.mulf %8, %729 : vector<1x384xf32>
    %731 = arith.addf %727, %730 : vector<1x384xf32>
    %c143 = arith.constant 143 : index
    %732 = memref.load %arg3[%c143] : memref<320xf32, #tpu.memory_space<smem>>
    %733 = vector.broadcast %732 : f32 to vector<1x384xf32>
    %734 = arith.mulf %10, %733 : vector<1x384xf32>
    %735 = arith.addf %731, %734 : vector<1x384xf32>
    %c144 = arith.constant 144 : index
    %736 = memref.load %arg3[%c144] : memref<320xf32, #tpu.memory_space<smem>>
    %737 = vector.broadcast %736 : f32 to vector<1x384xf32>
    %738 = arith.mulf %12, %737 : vector<1x384xf32>
    %739 = arith.addf %735, %738 : vector<1x384xf32>
    %c145_112 = arith.constant 145 : index
    %740 = memref.load %arg3[%c145_112] : memref<320xf32, #tpu.memory_space<smem>>
    %741 = vector.broadcast %740 : f32 to vector<1x384xf32>
    %742 = arith.mulf %14, %741 : vector<1x384xf32>
    %743 = arith.addf %739, %742 : vector<1x384xf32>
    %c146_113 = arith.constant 146 : index
    %744 = memref.load %arg3[%c146_113] : memref<320xf32, #tpu.memory_space<smem>>
    %745 = vector.broadcast %744 : f32 to vector<1x384xf32>
    %746 = arith.mulf %16, %745 : vector<1x384xf32>
    %747 = arith.addf %743, %746 : vector<1x384xf32>
    %c147_114 = arith.constant 147 : index
    %748 = memref.load %arg3[%c147_114] : memref<320xf32, #tpu.memory_space<smem>>
    %749 = vector.broadcast %748 : f32 to vector<1x384xf32>
    %750 = arith.mulf %18, %749 : vector<1x384xf32>
    %751 = arith.addf %747, %750 : vector<1x384xf32>
    %c148 = arith.constant 148 : index
    %752 = memref.load %arg3[%c148] : memref<320xf32, #tpu.memory_space<smem>>
    %753 = vector.broadcast %752 : f32 to vector<1x384xf32>
    %754 = arith.mulf %20, %753 : vector<1x384xf32>
    %755 = arith.addf %751, %754 : vector<1x384xf32>
    %c149 = arith.constant 149 : index
    %756 = memref.load %arg3[%c149] : memref<320xf32, #tpu.memory_space<smem>>
    %757 = vector.broadcast %756 : f32 to vector<1x384xf32>
    %758 = arith.addf %755, %757 : vector<1x384xf32>
    %759 = arith.negf %758 : vector<1x384xf32>
    %760 = math.exp %759 : vector<1x384xf32>
    %cst_115 = arith.constant 1.000000e+00 : f32
    %761 = vector.broadcast %cst_115 : f32 to vector<1x384xf32>
    %762 = arith.addf %761, %760 : vector<1x384xf32>
    %763 = arith.divf %761, %762 : vector<1x384xf32>
    %764 = arith.mulf %758, %763 : vector<1x384xf32>
    %c0_116 = arith.constant 0 : index
    %c14_117 = arith.constant 14 : index
    %765 = vector.load %arg8[%c0_116, %c14_117] : memref<1x32xf32, #tpu.memory_space<vmem>>, vector<1x1xf32>
    %766 = arith.mulf %764, %2 : vector<1x384xf32>
    %cst_118 = arith.constant dense<0.000000e+00> : vector<1xf32>
    %767 = vector.multi_reduction <add>, %766, %cst_118 [1] : vector<1x384xf32> to vector<1xf32>
    %768 = vector.shape_cast %767 : vector<1xf32> to vector<1x1xf32>
    %769 = arith.addf %765, %768 : vector<1x1xf32>
    %c0_119 = arith.constant 0 : index
    %c14_120 = arith.constant 14 : index
    %770 = vector.load %arg8[%c0_119, %c14_120] : memref<1x32xf32, #tpu.memory_space<vmem>>, vector<1x1xf32>
    tpu.vector_store %arg8[%c0_119, %c14_120], %769 {strides = array<i32>} : memref<1x32xf32, #tpu.memory_space<vmem>>, vector<1x1xf32>,
    %c150 = arith.constant 150 : index
    %771 = memref.load %arg3[%c150] : memref<320xf32, #tpu.memory_space<smem>>
    %772 = vector.broadcast %771 : f32 to vector<1x384xf32>
    %773 = arith.mulf %4, %772 : vector<1x384xf32>
    %c151 = arith.constant 151 : index
    %774 = memref.load %arg3[%c151] : memref<320xf32, #tpu.memory_space<smem>>
    %775 = vector.broadcast %774 : f32 to vector<1x384xf32>
    %776 = arith.mulf %6, %775 : vector<1x384xf32>
    %777 = arith.addf %773, %776 : vector<1x384xf32>
    %c152 = arith.constant 152 : index
    %778 = memref.load %arg3[%c152] : memref<320xf32, #tpu.memory_space<smem>>
    %779 = vector.broadcast %778 : f32 to vector<1x384xf32>
    %780 = arith.mulf %8, %779 : vector<1x384xf32>
    %781 = arith.addf %777, %780 : vector<1x384xf32>
    %c153 = arith.constant 153 : index
    %782 = memref.load %arg3[%c153] : memref<320xf32, #tpu.memory_space<smem>>
    %783 = vector.broadcast %782 : f32 to vector<1x384xf32>
    %784 = arith.mulf %10, %783 : vector<1x384xf32>
    %785 = arith.addf %781, %784 : vector<1x384xf32>
    %c154 = arith.constant 154 : index
    %786 = memref.load %arg3[%c154] : memref<320xf32, #tpu.memory_space<smem>>
    %787 = vector.broadcast %786 : f32 to vector<1x384xf32>
    %788 = arith.mulf %12, %787 : vector<1x384xf32>
    %789 = arith.addf %785, %788 : vector<1x384xf32>
    %c155 = arith.constant 155 : index
    %790 = memref.load %arg3[%c155] : memref<320xf32, #tpu.memory_space<smem>>
    %791 = vector.broadcast %790 : f32 to vector<1x384xf32>
    %792 = arith.mulf %14, %791 : vector<1x384xf32>
    %793 = arith.addf %789, %792 : vector<1x384xf32>
    %c156 = arith.constant 156 : index
    %794 = memref.load %arg3[%c156] : memref<320xf32, #tpu.memory_space<smem>>
    %795 = vector.broadcast %794 : f32 to vector<1x384xf32>
    %796 = arith.mulf %16, %795 : vector<1x384xf32>
    %797 = arith.addf %793, %796 : vector<1x384xf32>
    %c157 = arith.constant 157 : index
    %798 = memref.load %arg3[%c157] : memref<320xf32, #tpu.memory_space<smem>>
    %799 = vector.broadcast %798 : f32 to vector<1x384xf32>
    %800 = arith.mulf %18, %799 : vector<1x384xf32>
    %801 = arith.addf %797, %800 : vector<1x384xf32>
    %c158 = arith.constant 158 : index
    %802 = memref.load %arg3[%c158] : memref<320xf32, #tpu.memory_space<smem>>
    %803 = vector.broadcast %802 : f32 to vector<1x384xf32>
    %804 = arith.mulf %20, %803 : vector<1x384xf32>
    %805 = arith.addf %801, %804 : vector<1x384xf32>
    %c159 = arith.constant 159 : index
    %806 = memref.load %arg3[%c159] : memref<320xf32, #tpu.memory_space<smem>>
    %807 = vector.broadcast %806 : f32 to vector<1x384xf32>
    %808 = arith.addf %805, %807 : vector<1x384xf32>
    %809 = arith.negf %808 : vector<1x384xf32>
    %810 = math.exp %809 : vector<1x384xf32>
    %cst_121 = arith.constant 1.000000e+00 : f32
    %811 = vector.broadcast %cst_121 : f32 to vector<1x384xf32>
    %812 = arith.addf %811, %810 : vector<1x384xf32>
    %813 = arith.divf %811, %812 : vector<1x384xf32>
    %814 = arith.mulf %808, %813 : vector<1x384xf32>
    %c0_122 = arith.constant 0 : index
    %c15_123 = arith.constant 15 : index
    %815 = vector.load %arg8[%c0_122, %c15_123] : memref<1x32xf32, #tpu.memory_space<vmem>>, vector<1x1xf32>
    %816 = arith.mulf %814, %2 : vector<1x384xf32>
    %cst_124 = arith.constant dense<0.000000e+00> : vector<1xf32>
    %817 = vector.multi_reduction <add>, %816, %cst_124 [1] : vector<1x384xf32> to vector<1xf32>
    %818 = vector.shape_cast %817 : vector<1xf32> to vector<1x1xf32>
    %819 = arith.addf %815, %818 : vector<1x1xf32>
    %c0_125 = arith.constant 0 : index
    %c15_126 = arith.constant 15 : index
    %820 = vector.load %arg8[%c0_125, %c15_126] : memref<1x32xf32, #tpu.memory_space<vmem>>, vector<1x1xf32>
    tpu.vector_store %arg8[%c0_125, %c15_126], %819 {strides = array<i32>} : memref<1x32xf32, #tpu.memory_space<vmem>>, vector<1x1xf32>,
    %c160 = arith.constant 160 : index
    %821 = memref.load %arg3[%c160] : memref<320xf32, #tpu.memory_space<smem>>
    %822 = vector.broadcast %821 : f32 to vector<1x384xf32>
    %823 = arith.mulf %4, %822 : vector<1x384xf32>
    %c161 = arith.constant 161 : index
    %824 = memref.load %arg3[%c161] : memref<320xf32, #tpu.memory_space<smem>>
    %825 = vector.broadcast %824 : f32 to vector<1x384xf32>
    %826 = arith.mulf %6, %825 : vector<1x384xf32>
    %827 = arith.addf %823, %826 : vector<1x384xf32>
    %c162 = arith.constant 162 : index
    %828 = memref.load %arg3[%c162] : memref<320xf32, #tpu.memory_space<smem>>
    %829 = vector.broadcast %828 : f32 to vector<1x384xf32>
    %830 = arith.mulf %8, %829 : vector<1x384xf32>
    %831 = arith.addf %827, %830 : vector<1x384xf32>
    %c163 = arith.constant 163 : index
    %832 = memref.load %arg3[%c163] : memref<320xf32, #tpu.memory_space<smem>>
    %833 = vector.broadcast %832 : f32 to vector<1x384xf32>
    %834 = arith.mulf %10, %833 : vector<1x384xf32>
    %835 = arith.addf %831, %834 : vector<1x384xf32>
    %c164 = arith.constant 164 : index
    %836 = memref.load %arg3[%c164] : memref<320xf32, #tpu.memory_space<smem>>
    %837 = vector.broadcast %836 : f32 to vector<1x384xf32>
    %838 = arith.mulf %12, %837 : vector<1x384xf32>
    %839 = arith.addf %835, %838 : vector<1x384xf32>
    %c165 = arith.constant 165 : index
    %840 = memref.load %arg3[%c165] : memref<320xf32, #tpu.memory_space<smem>>
    %841 = vector.broadcast %840 : f32 to vector<1x384xf32>
    %842 = arith.mulf %14, %841 : vector<1x384xf32>
    %843 = arith.addf %839, %842 : vector<1x384xf32>
    %c166 = arith.constant 166 : index
    %844 = memref.load %arg3[%c166] : memref<320xf32, #tpu.memory_space<smem>>
    %845 = vector.broadcast %844 : f32 to vector<1x384xf32>
    %846 = arith.mulf %16, %845 : vector<1x384xf32>
    %847 = arith.addf %843, %846 : vector<1x384xf32>
    %c167 = arith.constant 167 : index
    %848 = memref.load %arg3[%c167] : memref<320xf32, #tpu.memory_space<smem>>
    %849 = vector.broadcast %848 : f32 to vector<1x384xf32>
    %850 = arith.mulf %18, %849 : vector<1x384xf32>
    %851 = arith.addf %847, %850 : vector<1x384xf32>
    %c168 = arith.constant 168 : index
    %852 = memref.load %arg3[%c168] : memref<320xf32, #tpu.memory_space<smem>>
    %853 = vector.broadcast %852 : f32 to vector<1x384xf32>
    %854 = arith.mulf %20, %853 : vector<1x384xf32>
    %855 = arith.addf %851, %854 : vector<1x384xf32>
    %c169 = arith.constant 169 : index
    %856 = memref.load %arg3[%c169] : memref<320xf32, #tpu.memory_space<smem>>
    %857 = vector.broadcast %856 : f32 to vector<1x384xf32>
    %858 = arith.addf %855, %857 : vector<1x384xf32>
    %859 = arith.negf %858 : vector<1x384xf32>
    %860 = math.exp %859 : vector<1x384xf32>
    %cst_127 = arith.constant 1.000000e+00 : f32
    %861 = vector.broadcast %cst_127 : f32 to vector<1x384xf32>
    %862 = arith.addf %861, %860 : vector<1x384xf32>
    %863 = arith.divf %861, %862 : vector<1x384xf32>
    %864 = arith.mulf %858, %863 : vector<1x384xf32>
    %c0_128 = arith.constant 0 : index
    %c16_129 = arith.constant 16 : index
    %865 = vector.load %arg8[%c0_128, %c16_129] : memref<1x32xf32, #tpu.memory_space<vmem>>, vector<1x1xf32>
    %866 = arith.mulf %864, %2 : vector<1x384xf32>
    %cst_130 = arith.constant dense<0.000000e+00> : vector<1xf32>
    %867 = vector.multi_reduction <add>, %866, %cst_130 [1] : vector<1x384xf32> to vector<1xf32>
    %868 = vector.shape_cast %867 : vector<1xf32> to vector<1x1xf32>
    %869 = arith.addf %865, %868 : vector<1x1xf32>
    %c0_131 = arith.constant 0 : index
    %c16_132 = arith.constant 16 : index
    %870 = vector.load %arg8[%c0_131, %c16_132] : memref<1x32xf32, #tpu.memory_space<vmem>>, vector<1x1xf32>
    tpu.vector_store %arg8[%c0_131, %c16_132], %869 {strides = array<i32>} : memref<1x32xf32, #tpu.memory_space<vmem>>, vector<1x1xf32>,
    %c170 = arith.constant 170 : index
    %871 = memref.load %arg3[%c170] : memref<320xf32, #tpu.memory_space<smem>>
    %872 = vector.broadcast %871 : f32 to vector<1x384xf32>
    %873 = arith.mulf %4, %872 : vector<1x384xf32>
    %c171 = arith.constant 171 : index
    %874 = memref.load %arg3[%c171] : memref<320xf32, #tpu.memory_space<smem>>
    %875 = vector.broadcast %874 : f32 to vector<1x384xf32>
    %876 = arith.mulf %6, %875 : vector<1x384xf32>
    %877 = arith.addf %873, %876 : vector<1x384xf32>
    %c172 = arith.constant 172 : index
    %878 = memref.load %arg3[%c172] : memref<320xf32, #tpu.memory_space<smem>>
    %879 = vector.broadcast %878 : f32 to vector<1x384xf32>
    %880 = arith.mulf %8, %879 : vector<1x384xf32>
    %881 = arith.addf %877, %880 : vector<1x384xf32>
    %c173 = arith.constant 173 : index
    %882 = memref.load %arg3[%c173] : memref<320xf32, #tpu.memory_space<smem>>
    %883 = vector.broadcast %882 : f32 to vector<1x384xf32>
    %884 = arith.mulf %10, %883 : vector<1x384xf32>
    %885 = arith.addf %881, %884 : vector<1x384xf32>
    %c174 = arith.constant 174 : index
    %886 = memref.load %arg3[%c174] : memref<320xf32, #tpu.memory_space<smem>>
    %887 = vector.broadcast %886 : f32 to vector<1x384xf32>
    %888 = arith.mulf %12, %887 : vector<1x384xf32>
    %889 = arith.addf %885, %888 : vector<1x384xf32>
    %c175 = arith.constant 175 : index
    %890 = memref.load %arg3[%c175] : memref<320xf32, #tpu.memory_space<smem>>
    %891 = vector.broadcast %890 : f32 to vector<1x384xf32>
    %892 = arith.mulf %14, %891 : vector<1x384xf32>
    %893 = arith.addf %889, %892 : vector<1x384xf32>
    %c176 = arith.constant 176 : index
    %894 = memref.load %arg3[%c176] : memref<320xf32, #tpu.memory_space<smem>>
    %895 = vector.broadcast %894 : f32 to vector<1x384xf32>
    %896 = arith.mulf %16, %895 : vector<1x384xf32>
    %897 = arith.addf %893, %896 : vector<1x384xf32>
    %c177 = arith.constant 177 : index
    %898 = memref.load %arg3[%c177] : memref<320xf32, #tpu.memory_space<smem>>
    %899 = vector.broadcast %898 : f32 to vector<1x384xf32>
    %900 = arith.mulf %18, %899 : vector<1x384xf32>
    %901 = arith.addf %897, %900 : vector<1x384xf32>
    %c178 = arith.constant 178 : index
    %902 = memref.load %arg3[%c178] : memref<320xf32, #tpu.memory_space<smem>>
    %903 = vector.broadcast %902 : f32 to vector<1x384xf32>
    %904 = arith.mulf %20, %903 : vector<1x384xf32>
    %905 = arith.addf %901, %904 : vector<1x384xf32>
    %c179 = arith.constant 179 : index
    %906 = memref.load %arg3[%c179] : memref<320xf32, #tpu.memory_space<smem>>
    %907 = vector.broadcast %906 : f32 to vector<1x384xf32>
    %908 = arith.addf %905, %907 : vector<1x384xf32>
    %909 = arith.negf %908 : vector<1x384xf32>
    %910 = math.exp %909 : vector<1x384xf32>
    %cst_133 = arith.constant 1.000000e+00 : f32
    %911 = vector.broadcast %cst_133 : f32 to vector<1x384xf32>
    %912 = arith.addf %911, %910 : vector<1x384xf32>
    %913 = arith.divf %911, %912 : vector<1x384xf32>
    %914 = arith.mulf %908, %913 : vector<1x384xf32>
    %c0_134 = arith.constant 0 : index
    %c17_135 = arith.constant 17 : index
    %915 = vector.load %arg8[%c0_134, %c17_135] : memref<1x32xf32, #tpu.memory_space<vmem>>, vector<1x1xf32>
    %916 = arith.mulf %914, %2 : vector<1x384xf32>
    %cst_136 = arith.constant dense<0.000000e+00> : vector<1xf32>
    %917 = vector.multi_reduction <add>, %916, %cst_136 [1] : vector<1x384xf32> to vector<1xf32>
    %918 = vector.shape_cast %917 : vector<1xf32> to vector<1x1xf32>
    %919 = arith.addf %915, %918 : vector<1x1xf32>
    %c0_137 = arith.constant 0 : index
    %c17_138 = arith.constant 17 : index
    %920 = vector.load %arg8[%c0_137, %c17_138] : memref<1x32xf32, #tpu.memory_space<vmem>>, vector<1x1xf32>
    tpu.vector_store %arg8[%c0_137, %c17_138], %919 {strides = array<i32>} : memref<1x32xf32, #tpu.memory_space<vmem>>, vector<1x1xf32>,
    %c180 = arith.constant 180 : index
    %921 = memref.load %arg3[%c180] : memref<320xf32, #tpu.memory_space<smem>>
    %922 = vector.broadcast %921 : f32 to vector<1x384xf32>
    %923 = arith.mulf %4, %922 : vector<1x384xf32>
    %c181 = arith.constant 181 : index
    %924 = memref.load %arg3[%c181] : memref<320xf32, #tpu.memory_space<smem>>
    %925 = vector.broadcast %924 : f32 to vector<1x384xf32>
    %926 = arith.mulf %6, %925 : vector<1x384xf32>
    %927 = arith.addf %923, %926 : vector<1x384xf32>
    %c182 = arith.constant 182 : index
    %928 = memref.load %arg3[%c182] : memref<320xf32, #tpu.memory_space<smem>>
    %929 = vector.broadcast %928 : f32 to vector<1x384xf32>
    %930 = arith.mulf %8, %929 : vector<1x384xf32>
    %931 = arith.addf %927, %930 : vector<1x384xf32>
    %c183 = arith.constant 183 : index
    %932 = memref.load %arg3[%c183] : memref<320xf32, #tpu.memory_space<smem>>
    %933 = vector.broadcast %932 : f32 to vector<1x384xf32>
    %934 = arith.mulf %10, %933 : vector<1x384xf32>
    %935 = arith.addf %931, %934 : vector<1x384xf32>
    %c184 = arith.constant 184 : index
    %936 = memref.load %arg3[%c184] : memref<320xf32, #tpu.memory_space<smem>>
    %937 = vector.broadcast %936 : f32 to vector<1x384xf32>
    %938 = arith.mulf %12, %937 : vector<1x384xf32>
    %939 = arith.addf %935, %938 : vector<1x384xf32>
    %c185 = arith.constant 185 : index
    %940 = memref.load %arg3[%c185] : memref<320xf32, #tpu.memory_space<smem>>
    %941 = vector.broadcast %940 : f32 to vector<1x384xf32>
    %942 = arith.mulf %14, %941 : vector<1x384xf32>
    %943 = arith.addf %939, %942 : vector<1x384xf32>
    %c186 = arith.constant 186 : index
    %944 = memref.load %arg3[%c186] : memref<320xf32, #tpu.memory_space<smem>>
    %945 = vector.broadcast %944 : f32 to vector<1x384xf32>
    %946 = arith.mulf %16, %945 : vector<1x384xf32>
    %947 = arith.addf %943, %946 : vector<1x384xf32>
    %c187 = arith.constant 187 : index
    %948 = memref.load %arg3[%c187] : memref<320xf32, #tpu.memory_space<smem>>
    %949 = vector.broadcast %948 : f32 to vector<1x384xf32>
    %950 = arith.mulf %18, %949 : vector<1x384xf32>
    %951 = arith.addf %947, %950 : vector<1x384xf32>
    %c188 = arith.constant 188 : index
    %952 = memref.load %arg3[%c188] : memref<320xf32, #tpu.memory_space<smem>>
    %953 = vector.broadcast %952 : f32 to vector<1x384xf32>
    %954 = arith.mulf %20, %953 : vector<1x384xf32>
    %955 = arith.addf %951, %954 : vector<1x384xf32>
    %c189 = arith.constant 189 : index
    %956 = memref.load %arg3[%c189] : memref<320xf32, #tpu.memory_space<smem>>
    %957 = vector.broadcast %956 : f32 to vector<1x384xf32>
    %958 = arith.addf %955, %957 : vector<1x384xf32>
    %959 = arith.negf %958 : vector<1x384xf32>
    %960 = math.exp %959 : vector<1x384xf32>
    %cst_139 = arith.constant 1.000000e+00 : f32
    %961 = vector.broadcast %cst_139 : f32 to vector<1x384xf32>
    %962 = arith.addf %961, %960 : vector<1x384xf32>
    %963 = arith.divf %961, %962 : vector<1x384xf32>
    %964 = arith.mulf %958, %963 : vector<1x384xf32>
    %c0_140 = arith.constant 0 : index
    %c18_141 = arith.constant 18 : index
    %965 = vector.load %arg8[%c0_140, %c18_141] : memref<1x32xf32, #tpu.memory_space<vmem>>, vector<1x1xf32>
    %966 = arith.mulf %964, %2 : vector<1x384xf32>
    %cst_142 = arith.constant dense<0.000000e+00> : vector<1xf32>
    %967 = vector.multi_reduction <add>, %966, %cst_142 [1] : vector<1x384xf32> to vector<1xf32>
    %968 = vector.shape_cast %967 : vector<1xf32> to vector<1x1xf32>
    %969 = arith.addf %965, %968 : vector<1x1xf32>
    %c0_143 = arith.constant 0 : index
    %c18_144 = arith.constant 18 : index
    %970 = vector.load %arg8[%c0_143, %c18_144] : memref<1x32xf32, #tpu.memory_space<vmem>>, vector<1x1xf32>
    tpu.vector_store %arg8[%c0_143, %c18_144], %969 {strides = array<i32>} : memref<1x32xf32, #tpu.memory_space<vmem>>, vector<1x1xf32>,
    %c190 = arith.constant 190 : index
    %971 = memref.load %arg3[%c190] : memref<320xf32, #tpu.memory_space<smem>>
    %972 = vector.broadcast %971 : f32 to vector<1x384xf32>
    %973 = arith.mulf %4, %972 : vector<1x384xf32>
    %c191 = arith.constant 191 : index
    %974 = memref.load %arg3[%c191] : memref<320xf32, #tpu.memory_space<smem>>
    %975 = vector.broadcast %974 : f32 to vector<1x384xf32>
    %976 = arith.mulf %6, %975 : vector<1x384xf32>
    %977 = arith.addf %973, %976 : vector<1x384xf32>
    %c192 = arith.constant 192 : index
    %978 = memref.load %arg3[%c192] : memref<320xf32, #tpu.memory_space<smem>>
    %979 = vector.broadcast %978 : f32 to vector<1x384xf32>
    %980 = arith.mulf %8, %979 : vector<1x384xf32>
    %981 = arith.addf %977, %980 : vector<1x384xf32>
    %c193 = arith.constant 193 : index
    %982 = memref.load %arg3[%c193] : memref<320xf32, #tpu.memory_space<smem>>
    %983 = vector.broadcast %982 : f32 to vector<1x384xf32>
    %984 = arith.mulf %10, %983 : vector<1x384xf32>
    %985 = arith.addf %981, %984 : vector<1x384xf32>
    %c194 = arith.constant 194 : index
    %986 = memref.load %arg3[%c194] : memref<320xf32, #tpu.memory_space<smem>>
    %987 = vector.broadcast %986 : f32 to vector<1x384xf32>
    %988 = arith.mulf %12, %987 : vector<1x384xf32>
    %989 = arith.addf %985, %988 : vector<1x384xf32>
    %c195 = arith.constant 195 : index
    %990 = memref.load %arg3[%c195] : memref<320xf32, #tpu.memory_space<smem>>
    %991 = vector.broadcast %990 : f32 to vector<1x384xf32>
    %992 = arith.mulf %14, %991 : vector<1x384xf32>
    %993 = arith.addf %989, %992 : vector<1x384xf32>
    %c196 = arith.constant 196 : index
    %994 = memref.load %arg3[%c196] : memref<320xf32, #tpu.memory_space<smem>>
    %995 = vector.broadcast %994 : f32 to vector<1x384xf32>
    %996 = arith.mulf %16, %995 : vector<1x384xf32>
    %997 = arith.addf %993, %996 : vector<1x384xf32>
    %c197 = arith.constant 197 : index
    %998 = memref.load %arg3[%c197] : memref<320xf32, #tpu.memory_space<smem>>
    %999 = vector.broadcast %998 : f32 to vector<1x384xf32>
    %1000 = arith.mulf %18, %999 : vector<1x384xf32>
    %1001 = arith.addf %997, %1000 : vector<1x384xf32>
    %c198 = arith.constant 198 : index
    %1002 = memref.load %arg3[%c198] : memref<320xf32, #tpu.memory_space<smem>>
    %1003 = vector.broadcast %1002 : f32 to vector<1x384xf32>
    %1004 = arith.mulf %20, %1003 : vector<1x384xf32>
    %1005 = arith.addf %1001, %1004 : vector<1x384xf32>
    %c199 = arith.constant 199 : index
    %1006 = memref.load %arg3[%c199] : memref<320xf32, #tpu.memory_space<smem>>
    %1007 = vector.broadcast %1006 : f32 to vector<1x384xf32>
    %1008 = arith.addf %1005, %1007 : vector<1x384xf32>
    %1009 = arith.negf %1008 : vector<1x384xf32>
    %1010 = math.exp %1009 : vector<1x384xf32>
    %cst_145 = arith.constant 1.000000e+00 : f32
    %1011 = vector.broadcast %cst_145 : f32 to vector<1x384xf32>
    %1012 = arith.addf %1011, %1010 : vector<1x384xf32>
    %1013 = arith.divf %1011, %1012 : vector<1x384xf32>
    %1014 = arith.mulf %1008, %1013 : vector<1x384xf32>
    %c0_146 = arith.constant 0 : index
    %c19_147 = arith.constant 19 : index
    %1015 = vector.load %arg8[%c0_146, %c19_147] : memref<1x32xf32, #tpu.memory_space<vmem>>, vector<1x1xf32>
    %1016 = arith.mulf %1014, %2 : vector<1x384xf32>
    %cst_148 = arith.constant dense<0.000000e+00> : vector<1xf32>
    %1017 = vector.multi_reduction <add>, %1016, %cst_148 [1] : vector<1x384xf32> to vector<1xf32>
    %1018 = vector.shape_cast %1017 : vector<1xf32> to vector<1x1xf32>
    %1019 = arith.addf %1015, %1018 : vector<1x1xf32>
    %c0_149 = arith.constant 0 : index
    %c19_150 = arith.constant 19 : index
    %1020 = vector.load %arg8[%c0_149, %c19_150] : memref<1x32xf32, #tpu.memory_space<vmem>>, vector<1x1xf32>
    tpu.vector_store %arg8[%c0_149, %c19_150], %1019 {strides = array<i32>} : memref<1x32xf32, #tpu.memory_space<vmem>>, vector<1x1xf32>,
    %c200 = arith.constant 200 : index
    %1021 = memref.load %arg3[%c200] : memref<320xf32, #tpu.memory_space<smem>>
    %1022 = vector.broadcast %1021 : f32 to vector<1x384xf32>
    %1023 = arith.mulf %4, %1022 : vector<1x384xf32>
    %c201 = arith.constant 201 : index
    %1024 = memref.load %arg3[%c201] : memref<320xf32, #tpu.memory_space<smem>>
    %1025 = vector.broadcast %1024 : f32 to vector<1x384xf32>
    %1026 = arith.mulf %6, %1025 : vector<1x384xf32>
    %1027 = arith.addf %1023, %1026 : vector<1x384xf32>
    %c202 = arith.constant 202 : index
    %1028 = memref.load %arg3[%c202] : memref<320xf32, #tpu.memory_space<smem>>
    %1029 = vector.broadcast %1028 : f32 to vector<1x384xf32>
    %1030 = arith.mulf %8, %1029 : vector<1x384xf32>
    %1031 = arith.addf %1027, %1030 : vector<1x384xf32>
    %c203 = arith.constant 203 : index
    %1032 = memref.load %arg3[%c203] : memref<320xf32, #tpu.memory_space<smem>>
    %1033 = vector.broadcast %1032 : f32 to vector<1x384xf32>
    %1034 = arith.mulf %10, %1033 : vector<1x384xf32>
    %1035 = arith.addf %1031, %1034 : vector<1x384xf32>
    %c204 = arith.constant 204 : index
    %1036 = memref.load %arg3[%c204] : memref<320xf32, #tpu.memory_space<smem>>
    %1037 = vector.broadcast %1036 : f32 to vector<1x384xf32>
    %1038 = arith.mulf %12, %1037 : vector<1x384xf32>
    %1039 = arith.addf %1035, %1038 : vector<1x384xf32>
    %c205 = arith.constant 205 : index
    %1040 = memref.load %arg3[%c205] : memref<320xf32, #tpu.memory_space<smem>>
    %1041 = vector.broadcast %1040 : f32 to vector<1x384xf32>
    %1042 = arith.mulf %14, %1041 : vector<1x384xf32>
    %1043 = arith.addf %1039, %1042 : vector<1x384xf32>
    %c206 = arith.constant 206 : index
    %1044 = memref.load %arg3[%c206] : memref<320xf32, #tpu.memory_space<smem>>
    %1045 = vector.broadcast %1044 : f32 to vector<1x384xf32>
    %1046 = arith.mulf %16, %1045 : vector<1x384xf32>
    %1047 = arith.addf %1043, %1046 : vector<1x384xf32>
    %c207 = arith.constant 207 : index
    %1048 = memref.load %arg3[%c207] : memref<320xf32, #tpu.memory_space<smem>>
    %1049 = vector.broadcast %1048 : f32 to vector<1x384xf32>
    %1050 = arith.mulf %18, %1049 : vector<1x384xf32>
    %1051 = arith.addf %1047, %1050 : vector<1x384xf32>
    %c208 = arith.constant 208 : index
    %1052 = memref.load %arg3[%c208] : memref<320xf32, #tpu.memory_space<smem>>
    %1053 = vector.broadcast %1052 : f32 to vector<1x384xf32>
    %1054 = arith.mulf %20, %1053 : vector<1x384xf32>
    %1055 = arith.addf %1051, %1054 : vector<1x384xf32>
    %c209 = arith.constant 209 : index
    %1056 = memref.load %arg3[%c209] : memref<320xf32, #tpu.memory_space<smem>>
    %1057 = vector.broadcast %1056 : f32 to vector<1x384xf32>
    %1058 = arith.addf %1055, %1057 : vector<1x384xf32>
    %1059 = arith.negf %1058 : vector<1x384xf32>
    %1060 = math.exp %1059 : vector<1x384xf32>
    %cst_151 = arith.constant 1.000000e+00 : f32
    %1061 = vector.broadcast %cst_151 : f32 to vector<1x384xf32>
    %1062 = arith.addf %1061, %1060 : vector<1x384xf32>
    %1063 = arith.divf %1061, %1062 : vector<1x384xf32>
    %1064 = arith.mulf %1058, %1063 : vector<1x384xf32>
    %c0_152 = arith.constant 0 : index
    %c20_153 = arith.constant 20 : index
    %1065 = vector.load %arg8[%c0_152, %c20_153] : memref<1x32xf32, #tpu.memory_space<vmem>>, vector<1x1xf32>
    %1066 = arith.mulf %1064, %2 : vector<1x384xf32>
    %cst_154 = arith.constant dense<0.000000e+00> : vector<1xf32>
    %1067 = vector.multi_reduction <add>, %1066, %cst_154 [1] : vector<1x384xf32> to vector<1xf32>
    %1068 = vector.shape_cast %1067 : vector<1xf32> to vector<1x1xf32>
    %1069 = arith.addf %1065, %1068 : vector<1x1xf32>
    %c0_155 = arith.constant 0 : index
    %c20_156 = arith.constant 20 : index
    %1070 = vector.load %arg8[%c0_155, %c20_156] : memref<1x32xf32, #tpu.memory_space<vmem>>, vector<1x1xf32>
    tpu.vector_store %arg8[%c0_155, %c20_156], %1069 {strides = array<i32>} : memref<1x32xf32, #tpu.memory_space<vmem>>, vector<1x1xf32>,
    %c210 = arith.constant 210 : index
    %1071 = memref.load %arg3[%c210] : memref<320xf32, #tpu.memory_space<smem>>
    %1072 = vector.broadcast %1071 : f32 to vector<1x384xf32>
    %1073 = arith.mulf %4, %1072 : vector<1x384xf32>
    %c211 = arith.constant 211 : index
    %1074 = memref.load %arg3[%c211] : memref<320xf32, #tpu.memory_space<smem>>
    %1075 = vector.broadcast %1074 : f32 to vector<1x384xf32>
    %1076 = arith.mulf %6, %1075 : vector<1x384xf32>
    %1077 = arith.addf %1073, %1076 : vector<1x384xf32>
    %c212 = arith.constant 212 : index
    %1078 = memref.load %arg3[%c212] : memref<320xf32, #tpu.memory_space<smem>>
    %1079 = vector.broadcast %1078 : f32 to vector<1x384xf32>
    %1080 = arith.mulf %8, %1079 : vector<1x384xf32>
    %1081 = arith.addf %1077, %1080 : vector<1x384xf32>
    %c213 = arith.constant 213 : index
    %1082 = memref.load %arg3[%c213] : memref<320xf32, #tpu.memory_space<smem>>
    %1083 = vector.broadcast %1082 : f32 to vector<1x384xf32>
    %1084 = arith.mulf %10, %1083 : vector<1x384xf32>
    %1085 = arith.addf %1081, %1084 : vector<1x384xf32>
    %c214 = arith.constant 214 : index
    %1086 = memref.load %arg3[%c214] : memref<320xf32, #tpu.memory_space<smem>>
    %1087 = vector.broadcast %1086 : f32 to vector<1x384xf32>
    %1088 = arith.mulf %12, %1087 : vector<1x384xf32>
    %1089 = arith.addf %1085, %1088 : vector<1x384xf32>
    %c215 = arith.constant 215 : index
    %1090 = memref.load %arg3[%c215] : memref<320xf32, #tpu.memory_space<smem>>
    %1091 = vector.broadcast %1090 : f32 to vector<1x384xf32>
    %1092 = arith.mulf %14, %1091 : vector<1x384xf32>
    %1093 = arith.addf %1089, %1092 : vector<1x384xf32>
    %c216 = arith.constant 216 : index
    %1094 = memref.load %arg3[%c216] : memref<320xf32, #tpu.memory_space<smem>>
    %1095 = vector.broadcast %1094 : f32 to vector<1x384xf32>
    %1096 = arith.mulf %16, %1095 : vector<1x384xf32>
    %1097 = arith.addf %1093, %1096 : vector<1x384xf32>
    %c217 = arith.constant 217 : index
    %1098 = memref.load %arg3[%c217] : memref<320xf32, #tpu.memory_space<smem>>
    %1099 = vector.broadcast %1098 : f32 to vector<1x384xf32>
    %1100 = arith.mulf %18, %1099 : vector<1x384xf32>
    %1101 = arith.addf %1097, %1100 : vector<1x384xf32>
    %c218 = arith.constant 218 : index
    %1102 = memref.load %arg3[%c218] : memref<320xf32, #tpu.memory_space<smem>>
    %1103 = vector.broadcast %1102 : f32 to vector<1x384xf32>
    %1104 = arith.mulf %20, %1103 : vector<1x384xf32>
    %1105 = arith.addf %1101, %1104 : vector<1x384xf32>
    %c219 = arith.constant 219 : index
    %1106 = memref.load %arg3[%c219] : memref<320xf32, #tpu.memory_space<smem>>
    %1107 = vector.broadcast %1106 : f32 to vector<1x384xf32>
    %1108 = arith.addf %1105, %1107 : vector<1x384xf32>
    %1109 = arith.negf %1108 : vector<1x384xf32>
    %1110 = math.exp %1109 : vector<1x384xf32>
    %cst_157 = arith.constant 1.000000e+00 : f32
    %1111 = vector.broadcast %cst_157 : f32 to vector<1x384xf32>
    %1112 = arith.addf %1111, %1110 : vector<1x384xf32>
    %1113 = arith.divf %1111, %1112 : vector<1x384xf32>
    %1114 = arith.mulf %1108, %1113 : vector<1x384xf32>
    %c0_158 = arith.constant 0 : index
    %c21_159 = arith.constant 21 : index
    %1115 = vector.load %arg8[%c0_158, %c21_159] : memref<1x32xf32, #tpu.memory_space<vmem>>, vector<1x1xf32>
    %1116 = arith.mulf %1114, %2 : vector<1x384xf32>
    %cst_160 = arith.constant dense<0.000000e+00> : vector<1xf32>
    %1117 = vector.multi_reduction <add>, %1116, %cst_160 [1] : vector<1x384xf32> to vector<1xf32>
    %1118 = vector.shape_cast %1117 : vector<1xf32> to vector<1x1xf32>
    %1119 = arith.addf %1115, %1118 : vector<1x1xf32>
    %c0_161 = arith.constant 0 : index
    %c21_162 = arith.constant 21 : index
    %1120 = vector.load %arg8[%c0_161, %c21_162] : memref<1x32xf32, #tpu.memory_space<vmem>>, vector<1x1xf32>
    tpu.vector_store %arg8[%c0_161, %c21_162], %1119 {strides = array<i32>} : memref<1x32xf32, #tpu.memory_space<vmem>>, vector<1x1xf32>,
    %c220 = arith.constant 220 : index
    %1121 = memref.load %arg3[%c220] : memref<320xf32, #tpu.memory_space<smem>>
    %1122 = vector.broadcast %1121 : f32 to vector<1x384xf32>
    %1123 = arith.mulf %4, %1122 : vector<1x384xf32>
    %c221 = arith.constant 221 : index
    %1124 = memref.load %arg3[%c221] : memref<320xf32, #tpu.memory_space<smem>>
    %1125 = vector.broadcast %1124 : f32 to vector<1x384xf32>
    %1126 = arith.mulf %6, %1125 : vector<1x384xf32>
    %1127 = arith.addf %1123, %1126 : vector<1x384xf32>
    %c222 = arith.constant 222 : index
    %1128 = memref.load %arg3[%c222] : memref<320xf32, #tpu.memory_space<smem>>
    %1129 = vector.broadcast %1128 : f32 to vector<1x384xf32>
    %1130 = arith.mulf %8, %1129 : vector<1x384xf32>
    %1131 = arith.addf %1127, %1130 : vector<1x384xf32>
    %c223 = arith.constant 223 : index
    %1132 = memref.load %arg3[%c223] : memref<320xf32, #tpu.memory_space<smem>>
    %1133 = vector.broadcast %1132 : f32 to vector<1x384xf32>
    %1134 = arith.mulf %10, %1133 : vector<1x384xf32>
    %1135 = arith.addf %1131, %1134 : vector<1x384xf32>
    %c224 = arith.constant 224 : index
    %1136 = memref.load %arg3[%c224] : memref<320xf32, #tpu.memory_space<smem>>
    %1137 = vector.broadcast %1136 : f32 to vector<1x384xf32>
    %1138 = arith.mulf %12, %1137 : vector<1x384xf32>
    %1139 = arith.addf %1135, %1138 : vector<1x384xf32>
    %c225 = arith.constant 225 : index
    %1140 = memref.load %arg3[%c225] : memref<320xf32, #tpu.memory_space<smem>>
    %1141 = vector.broadcast %1140 : f32 to vector<1x384xf32>
    %1142 = arith.mulf %14, %1141 : vector<1x384xf32>
    %1143 = arith.addf %1139, %1142 : vector<1x384xf32>
    %c226 = arith.constant 226 : index
    %1144 = memref.load %arg3[%c226] : memref<320xf32, #tpu.memory_space<smem>>
    %1145 = vector.broadcast %1144 : f32 to vector<1x384xf32>
    %1146 = arith.mulf %16, %1145 : vector<1x384xf32>
    %1147 = arith.addf %1143, %1146 : vector<1x384xf32>
    %c227 = arith.constant 227 : index
    %1148 = memref.load %arg3[%c227] : memref<320xf32, #tpu.memory_space<smem>>
    %1149 = vector.broadcast %1148 : f32 to vector<1x384xf32>
    %1150 = arith.mulf %18, %1149 : vector<1x384xf32>
    %1151 = arith.addf %1147, %1150 : vector<1x384xf32>
    %c228 = arith.constant 228 : index
    %1152 = memref.load %arg3[%c228] : memref<320xf32, #tpu.memory_space<smem>>
    %1153 = vector.broadcast %1152 : f32 to vector<1x384xf32>
    %1154 = arith.mulf %20, %1153 : vector<1x384xf32>
    %1155 = arith.addf %1151, %1154 : vector<1x384xf32>
    %c229 = arith.constant 229 : index
    %1156 = memref.load %arg3[%c229] : memref<320xf32, #tpu.memory_space<smem>>
    %1157 = vector.broadcast %1156 : f32 to vector<1x384xf32>
    %1158 = arith.addf %1155, %1157 : vector<1x384xf32>
    %1159 = arith.negf %1158 : vector<1x384xf32>
    %1160 = math.exp %1159 : vector<1x384xf32>
    %cst_163 = arith.constant 1.000000e+00 : f32
    %1161 = vector.broadcast %cst_163 : f32 to vector<1x384xf32>
    %1162 = arith.addf %1161, %1160 : vector<1x384xf32>
    %1163 = arith.divf %1161, %1162 : vector<1x384xf32>
    %1164 = arith.mulf %1158, %1163 : vector<1x384xf32>
    %c0_164 = arith.constant 0 : index
    %c22_165 = arith.constant 22 : index
    %1165 = vector.load %arg8[%c0_164, %c22_165] : memref<1x32xf32, #tpu.memory_space<vmem>>, vector<1x1xf32>
    %1166 = arith.mulf %1164, %2 : vector<1x384xf32>
    %cst_166 = arith.constant dense<0.000000e+00> : vector<1xf32>
    %1167 = vector.multi_reduction <add>, %1166, %cst_166 [1] : vector<1x384xf32> to vector<1xf32>
    %1168 = vector.shape_cast %1167 : vector<1xf32> to vector<1x1xf32>
    %1169 = arith.addf %1165, %1168 : vector<1x1xf32>
    %c0_167 = arith.constant 0 : index
    %c22_168 = arith.constant 22 : index
    %1170 = vector.load %arg8[%c0_167, %c22_168] : memref<1x32xf32, #tpu.memory_space<vmem>>, vector<1x1xf32>
    tpu.vector_store %arg8[%c0_167, %c22_168], %1169 {strides = array<i32>} : memref<1x32xf32, #tpu.memory_space<vmem>>, vector<1x1xf32>,
    %c230 = arith.constant 230 : index
    %1171 = memref.load %arg3[%c230] : memref<320xf32, #tpu.memory_space<smem>>
    %1172 = vector.broadcast %1171 : f32 to vector<1x384xf32>
    %1173 = arith.mulf %4, %1172 : vector<1x384xf32>
    %c231 = arith.constant 231 : index
    %1174 = memref.load %arg3[%c231] : memref<320xf32, #tpu.memory_space<smem>>
    %1175 = vector.broadcast %1174 : f32 to vector<1x384xf32>
    %1176 = arith.mulf %6, %1175 : vector<1x384xf32>
    %1177 = arith.addf %1173, %1176 : vector<1x384xf32>
    %c232 = arith.constant 232 : index
    %1178 = memref.load %arg3[%c232] : memref<320xf32, #tpu.memory_space<smem>>
    %1179 = vector.broadcast %1178 : f32 to vector<1x384xf32>
    %1180 = arith.mulf %8, %1179 : vector<1x384xf32>
    %1181 = arith.addf %1177, %1180 : vector<1x384xf32>
    %c233 = arith.constant 233 : index
    %1182 = memref.load %arg3[%c233] : memref<320xf32, #tpu.memory_space<smem>>
    %1183 = vector.broadcast %1182 : f32 to vector<1x384xf32>
    %1184 = arith.mulf %10, %1183 : vector<1x384xf32>
    %1185 = arith.addf %1181, %1184 : vector<1x384xf32>
    %c234 = arith.constant 234 : index
    %1186 = memref.load %arg3[%c234] : memref<320xf32, #tpu.memory_space<smem>>
    %1187 = vector.broadcast %1186 : f32 to vector<1x384xf32>
    %1188 = arith.mulf %12, %1187 : vector<1x384xf32>
    %1189 = arith.addf %1185, %1188 : vector<1x384xf32>
    %c235 = arith.constant 235 : index
    %1190 = memref.load %arg3[%c235] : memref<320xf32, #tpu.memory_space<smem>>
    %1191 = vector.broadcast %1190 : f32 to vector<1x384xf32>
    %1192 = arith.mulf %14, %1191 : vector<1x384xf32>
    %1193 = arith.addf %1189, %1192 : vector<1x384xf32>
    %c236 = arith.constant 236 : index
    %1194 = memref.load %arg3[%c236] : memref<320xf32, #tpu.memory_space<smem>>
    %1195 = vector.broadcast %1194 : f32 to vector<1x384xf32>
    %1196 = arith.mulf %16, %1195 : vector<1x384xf32>
    %1197 = arith.addf %1193, %1196 : vector<1x384xf32>
    %c237 = arith.constant 237 : index
    %1198 = memref.load %arg3[%c237] : memref<320xf32, #tpu.memory_space<smem>>
    %1199 = vector.broadcast %1198 : f32 to vector<1x384xf32>
    %1200 = arith.mulf %18, %1199 : vector<1x384xf32>
    %1201 = arith.addf %1197, %1200 : vector<1x384xf32>
    %c238 = arith.constant 238 : index
    %1202 = memref.load %arg3[%c238] : memref<320xf32, #tpu.memory_space<smem>>
    %1203 = vector.broadcast %1202 : f32 to vector<1x384xf32>
    %1204 = arith.mulf %20, %1203 : vector<1x384xf32>
    %1205 = arith.addf %1201, %1204 : vector<1x384xf32>
    %c239 = arith.constant 239 : index
    %1206 = memref.load %arg3[%c239] : memref<320xf32, #tpu.memory_space<smem>>
    %1207 = vector.broadcast %1206 : f32 to vector<1x384xf32>
    %1208 = arith.addf %1205, %1207 : vector<1x384xf32>
    %1209 = arith.negf %1208 : vector<1x384xf32>
    %1210 = math.exp %1209 : vector<1x384xf32>
    %cst_169 = arith.constant 1.000000e+00 : f32
    %1211 = vector.broadcast %cst_169 : f32 to vector<1x384xf32>
    %1212 = arith.addf %1211, %1210 : vector<1x384xf32>
    %1213 = arith.divf %1211, %1212 : vector<1x384xf32>
    %1214 = arith.mulf %1208, %1213 : vector<1x384xf32>
    %c0_170 = arith.constant 0 : index
    %c23_171 = arith.constant 23 : index
    %1215 = vector.load %arg8[%c0_170, %c23_171] : memref<1x32xf32, #tpu.memory_space<vmem>>, vector<1x1xf32>
    %1216 = arith.mulf %1214, %2 : vector<1x384xf32>
    %cst_172 = arith.constant dense<0.000000e+00> : vector<1xf32>
    %1217 = vector.multi_reduction <add>, %1216, %cst_172 [1] : vector<1x384xf32> to vector<1xf32>
    %1218 = vector.shape_cast %1217 : vector<1xf32> to vector<1x1xf32>
    %1219 = arith.addf %1215, %1218 : vector<1x1xf32>
    %c0_173 = arith.constant 0 : index
    %c23_174 = arith.constant 23 : index
    %1220 = vector.load %arg8[%c0_173, %c23_174] : memref<1x32xf32, #tpu.memory_space<vmem>>, vector<1x1xf32>
    tpu.vector_store %arg8[%c0_173, %c23_174], %1219 {strides = array<i32>} : memref<1x32xf32, #tpu.memory_space<vmem>>, vector<1x1xf32>,
    %c240 = arith.constant 240 : index
    %1221 = memref.load %arg3[%c240] : memref<320xf32, #tpu.memory_space<smem>>
    %1222 = vector.broadcast %1221 : f32 to vector<1x384xf32>
    %1223 = arith.mulf %4, %1222 : vector<1x384xf32>
    %c241 = arith.constant 241 : index
    %1224 = memref.load %arg3[%c241] : memref<320xf32, #tpu.memory_space<smem>>
    %1225 = vector.broadcast %1224 : f32 to vector<1x384xf32>
    %1226 = arith.mulf %6, %1225 : vector<1x384xf32>
    %1227 = arith.addf %1223, %1226 : vector<1x384xf32>
    %c242 = arith.constant 242 : index
    %1228 = memref.load %arg3[%c242] : memref<320xf32, #tpu.memory_space<smem>>
    %1229 = vector.broadcast %1228 : f32 to vector<1x384xf32>
    %1230 = arith.mulf %8, %1229 : vector<1x384xf32>
    %1231 = arith.addf %1227, %1230 : vector<1x384xf32>
    %c243 = arith.constant 243 : index
    %1232 = memref.load %arg3[%c243] : memref<320xf32, #tpu.memory_space<smem>>
    %1233 = vector.broadcast %1232 : f32 to vector<1x384xf32>
    %1234 = arith.mulf %10, %1233 : vector<1x384xf32>
    %1235 = arith.addf %1231, %1234 : vector<1x384xf32>
    %c244 = arith.constant 244 : index
    %1236 = memref.load %arg3[%c244] : memref<320xf32, #tpu.memory_space<smem>>
    %1237 = vector.broadcast %1236 : f32 to vector<1x384xf32>
    %1238 = arith.mulf %12, %1237 : vector<1x384xf32>
    %1239 = arith.addf %1235, %1238 : vector<1x384xf32>
    %c245 = arith.constant 245 : index
    %1240 = memref.load %arg3[%c245] : memref<320xf32, #tpu.memory_space<smem>>
    %1241 = vector.broadcast %1240 : f32 to vector<1x384xf32>
    %1242 = arith.mulf %14, %1241 : vector<1x384xf32>
    %1243 = arith.addf %1239, %1242 : vector<1x384xf32>
    %c246 = arith.constant 246 : index
    %1244 = memref.load %arg3[%c246] : memref<320xf32, #tpu.memory_space<smem>>
    %1245 = vector.broadcast %1244 : f32 to vector<1x384xf32>
    %1246 = arith.mulf %16, %1245 : vector<1x384xf32>
    %1247 = arith.addf %1243, %1246 : vector<1x384xf32>
    %c247 = arith.constant 247 : index
    %1248 = memref.load %arg3[%c247] : memref<320xf32, #tpu.memory_space<smem>>
    %1249 = vector.broadcast %1248 : f32 to vector<1x384xf32>
    %1250 = arith.mulf %18, %1249 : vector<1x384xf32>
    %1251 = arith.addf %1247, %1250 : vector<1x384xf32>
    %c248 = arith.constant 248 : index
    %1252 = memref.load %arg3[%c248] : memref<320xf32, #tpu.memory_space<smem>>
    %1253 = vector.broadcast %1252 : f32 to vector<1x384xf32>
    %1254 = arith.mulf %20, %1253 : vector<1x384xf32>
    %1255 = arith.addf %1251, %1254 : vector<1x384xf32>
    %c249 = arith.constant 249 : index
    %1256 = memref.load %arg3[%c249] : memref<320xf32, #tpu.memory_space<smem>>
    %1257 = vector.broadcast %1256 : f32 to vector<1x384xf32>
    %1258 = arith.addf %1255, %1257 : vector<1x384xf32>
    %1259 = arith.negf %1258 : vector<1x384xf32>
    %1260 = math.exp %1259 : vector<1x384xf32>
    %cst_175 = arith.constant 1.000000e+00 : f32
    %1261 = vector.broadcast %cst_175 : f32 to vector<1x384xf32>
    %1262 = arith.addf %1261, %1260 : vector<1x384xf32>
    %1263 = arith.divf %1261, %1262 : vector<1x384xf32>
    %1264 = arith.mulf %1258, %1263 : vector<1x384xf32>
    %c0_176 = arith.constant 0 : index
    %c24_177 = arith.constant 24 : index
    %1265 = vector.load %arg8[%c0_176, %c24_177] : memref<1x32xf32, #tpu.memory_space<vmem>>, vector<1x1xf32>
    %1266 = arith.mulf %1264, %2 : vector<1x384xf32>
    %cst_178 = arith.constant dense<0.000000e+00> : vector<1xf32>
    %1267 = vector.multi_reduction <add>, %1266, %cst_178 [1] : vector<1x384xf32> to vector<1xf32>
    %1268 = vector.shape_cast %1267 : vector<1xf32> to vector<1x1xf32>
    %1269 = arith.addf %1265, %1268 : vector<1x1xf32>
    %c0_179 = arith.constant 0 : index
    %c24_180 = arith.constant 24 : index
    %1270 = vector.load %arg8[%c0_179, %c24_180] : memref<1x32xf32, #tpu.memory_space<vmem>>, vector<1x1xf32>
    tpu.vector_store %arg8[%c0_179, %c24_180], %1269 {strides = array<i32>} : memref<1x32xf32, #tpu.memory_space<vmem>>, vector<1x1xf32>,
    %c250 = arith.constant 250 : index
    %1271 = memref.load %arg3[%c250] : memref<320xf32, #tpu.memory_space<smem>>
    %1272 = vector.broadcast %1271 : f32 to vector<1x384xf32>
    %1273 = arith.mulf %4, %1272 : vector<1x384xf32>
    %c251 = arith.constant 251 : index
    %1274 = memref.load %arg3[%c251] : memref<320xf32, #tpu.memory_space<smem>>
    %1275 = vector.broadcast %1274 : f32 to vector<1x384xf32>
    %1276 = arith.mulf %6, %1275 : vector<1x384xf32>
    %1277 = arith.addf %1273, %1276 : vector<1x384xf32>
    %c252 = arith.constant 252 : index
    %1278 = memref.load %arg3[%c252] : memref<320xf32, #tpu.memory_space<smem>>
    %1279 = vector.broadcast %1278 : f32 to vector<1x384xf32>
    %1280 = arith.mulf %8, %1279 : vector<1x384xf32>
    %1281 = arith.addf %1277, %1280 : vector<1x384xf32>
    %c253 = arith.constant 253 : index
    %1282 = memref.load %arg3[%c253] : memref<320xf32, #tpu.memory_space<smem>>
    %1283 = vector.broadcast %1282 : f32 to vector<1x384xf32>
    %1284 = arith.mulf %10, %1283 : vector<1x384xf32>
    %1285 = arith.addf %1281, %1284 : vector<1x384xf32>
    %c254 = arith.constant 254 : index
    %1286 = memref.load %arg3[%c254] : memref<320xf32, #tpu.memory_space<smem>>
    %1287 = vector.broadcast %1286 : f32 to vector<1x384xf32>
    %1288 = arith.mulf %12, %1287 : vector<1x384xf32>
    %1289 = arith.addf %1285, %1288 : vector<1x384xf32>
    %c255 = arith.constant 255 : index
    %1290 = memref.load %arg3[%c255] : memref<320xf32, #tpu.memory_space<smem>>
    %1291 = vector.broadcast %1290 : f32 to vector<1x384xf32>
    %1292 = arith.mulf %14, %1291 : vector<1x384xf32>
    %1293 = arith.addf %1289, %1292 : vector<1x384xf32>
    %c256 = arith.constant 256 : index
    %1294 = memref.load %arg3[%c256] : memref<320xf32, #tpu.memory_space<smem>>
    %1295 = vector.broadcast %1294 : f32 to vector<1x384xf32>
    %1296 = arith.mulf %16, %1295 : vector<1x384xf32>
    %1297 = arith.addf %1293, %1296 : vector<1x384xf32>
    %c257 = arith.constant 257 : index
    %1298 = memref.load %arg3[%c257] : memref<320xf32, #tpu.memory_space<smem>>
    %1299 = vector.broadcast %1298 : f32 to vector<1x384xf32>
    %1300 = arith.mulf %18, %1299 : vector<1x384xf32>
    %1301 = arith.addf %1297, %1300 : vector<1x384xf32>
    %c258 = arith.constant 258 : index
    %1302 = memref.load %arg3[%c258] : memref<320xf32, #tpu.memory_space<smem>>
    %1303 = vector.broadcast %1302 : f32 to vector<1x384xf32>
    %1304 = arith.mulf %20, %1303 : vector<1x384xf32>
    %1305 = arith.addf %1301, %1304 : vector<1x384xf32>
    %c259 = arith.constant 259 : index
    %1306 = memref.load %arg3[%c259] : memref<320xf32, #tpu.memory_space<smem>>
    %1307 = vector.broadcast %1306 : f32 to vector<1x384xf32>
    %1308 = arith.addf %1305, %1307 : vector<1x384xf32>
    %1309 = arith.negf %1308 : vector<1x384xf32>
    %1310 = math.exp %1309 : vector<1x384xf32>
    %cst_181 = arith.constant 1.000000e+00 : f32
    %1311 = vector.broadcast %cst_181 : f32 to vector<1x384xf32>
    %1312 = arith.addf %1311, %1310 : vector<1x384xf32>
    %1313 = arith.divf %1311, %1312 : vector<1x384xf32>
    %1314 = arith.mulf %1308, %1313 : vector<1x384xf32>
    %c0_182 = arith.constant 0 : index
    %c25_183 = arith.constant 25 : index
    %1315 = vector.load %arg8[%c0_182, %c25_183] : memref<1x32xf32, #tpu.memory_space<vmem>>, vector<1x1xf32>
    %1316 = arith.mulf %1314, %2 : vector<1x384xf32>
    %cst_184 = arith.constant dense<0.000000e+00> : vector<1xf32>
    %1317 = vector.multi_reduction <add>, %1316, %cst_184 [1] : vector<1x384xf32> to vector<1xf32>
    %1318 = vector.shape_cast %1317 : vector<1xf32> to vector<1x1xf32>
    %1319 = arith.addf %1315, %1318 : vector<1x1xf32>
    %c0_185 = arith.constant 0 : index
    %c25_186 = arith.constant 25 : index
    %1320 = vector.load %arg8[%c0_185, %c25_186] : memref<1x32xf32, #tpu.memory_space<vmem>>, vector<1x1xf32>
    tpu.vector_store %arg8[%c0_185, %c25_186], %1319 {strides = array<i32>} : memref<1x32xf32, #tpu.memory_space<vmem>>, vector<1x1xf32>,
    %c260 = arith.constant 260 : index
    %1321 = memref.load %arg3[%c260] : memref<320xf32, #tpu.memory_space<smem>>
    %1322 = vector.broadcast %1321 : f32 to vector<1x384xf32>
    %1323 = arith.mulf %4, %1322 : vector<1x384xf32>
    %c261 = arith.constant 261 : index
    %1324 = memref.load %arg3[%c261] : memref<320xf32, #tpu.memory_space<smem>>
    %1325 = vector.broadcast %1324 : f32 to vector<1x384xf32>
    %1326 = arith.mulf %6, %1325 : vector<1x384xf32>
    %1327 = arith.addf %1323, %1326 : vector<1x384xf32>
    %c262 = arith.constant 262 : index
    %1328 = memref.load %arg3[%c262] : memref<320xf32, #tpu.memory_space<smem>>
    %1329 = vector.broadcast %1328 : f32 to vector<1x384xf32>
    %1330 = arith.mulf %8, %1329 : vector<1x384xf32>
    %1331 = arith.addf %1327, %1330 : vector<1x384xf32>
    %c263 = arith.constant 263 : index
    %1332 = memref.load %arg3[%c263] : memref<320xf32, #tpu.memory_space<smem>>
    %1333 = vector.broadcast %1332 : f32 to vector<1x384xf32>
    %1334 = arith.mulf %10, %1333 : vector<1x384xf32>
    %1335 = arith.addf %1331, %1334 : vector<1x384xf32>
    %c264 = arith.constant 264 : index
    %1336 = memref.load %arg3[%c264] : memref<320xf32, #tpu.memory_space<smem>>
    %1337 = vector.broadcast %1336 : f32 to vector<1x384xf32>
    %1338 = arith.mulf %12, %1337 : vector<1x384xf32>
    %1339 = arith.addf %1335, %1338 : vector<1x384xf32>
    %c265 = arith.constant 265 : index
    %1340 = memref.load %arg3[%c265] : memref<320xf32, #tpu.memory_space<smem>>
    %1341 = vector.broadcast %1340 : f32 to vector<1x384xf32>
    %1342 = arith.mulf %14, %1341 : vector<1x384xf32>
    %1343 = arith.addf %1339, %1342 : vector<1x384xf32>
    %c266 = arith.constant 266 : index
    %1344 = memref.load %arg3[%c266] : memref<320xf32, #tpu.memory_space<smem>>
    %1345 = vector.broadcast %1344 : f32 to vector<1x384xf32>
    %1346 = arith.mulf %16, %1345 : vector<1x384xf32>
    %1347 = arith.addf %1343, %1346 : vector<1x384xf32>
    %c267 = arith.constant 267 : index
    %1348 = memref.load %arg3[%c267] : memref<320xf32, #tpu.memory_space<smem>>
    %1349 = vector.broadcast %1348 : f32 to vector<1x384xf32>
    %1350 = arith.mulf %18, %1349 : vector<1x384xf32>
    %1351 = arith.addf %1347, %1350 : vector<1x384xf32>
    %c268 = arith.constant 268 : index
    %1352 = memref.load %arg3[%c268] : memref<320xf32, #tpu.memory_space<smem>>
    %1353 = vector.broadcast %1352 : f32 to vector<1x384xf32>
    %1354 = arith.mulf %20, %1353 : vector<1x384xf32>
    %1355 = arith.addf %1351, %1354 : vector<1x384xf32>
    %c269 = arith.constant 269 : index
    %1356 = memref.load %arg3[%c269] : memref<320xf32, #tpu.memory_space<smem>>
    %1357 = vector.broadcast %1356 : f32 to vector<1x384xf32>
    %1358 = arith.addf %1355, %1357 : vector<1x384xf32>
    %1359 = arith.negf %1358 : vector<1x384xf32>
    %1360 = math.exp %1359 : vector<1x384xf32>
    %cst_187 = arith.constant 1.000000e+00 : f32
    %1361 = vector.broadcast %cst_187 : f32 to vector<1x384xf32>
    %1362 = arith.addf %1361, %1360 : vector<1x384xf32>
    %1363 = arith.divf %1361, %1362 : vector<1x384xf32>
    %1364 = arith.mulf %1358, %1363 : vector<1x384xf32>
    %c0_188 = arith.constant 0 : index
    %c26_189 = arith.constant 26 : index
    %1365 = vector.load %arg8[%c0_188, %c26_189] : memref<1x32xf32, #tpu.memory_space<vmem>>, vector<1x1xf32>
    %1366 = arith.mulf %1364, %2 : vector<1x384xf32>
    %cst_190 = arith.constant dense<0.000000e+00> : vector<1xf32>
    %1367 = vector.multi_reduction <add>, %1366, %cst_190 [1] : vector<1x384xf32> to vector<1xf32>
    %1368 = vector.shape_cast %1367 : vector<1xf32> to vector<1x1xf32>
    %1369 = arith.addf %1365, %1368 : vector<1x1xf32>
    %c0_191 = arith.constant 0 : index
    %c26_192 = arith.constant 26 : index
    %1370 = vector.load %arg8[%c0_191, %c26_192] : memref<1x32xf32, #tpu.memory_space<vmem>>, vector<1x1xf32>
    tpu.vector_store %arg8[%c0_191, %c26_192], %1369 {strides = array<i32>} : memref<1x32xf32, #tpu.memory_space<vmem>>, vector<1x1xf32>,
    %c270 = arith.constant 270 : index
    %1371 = memref.load %arg3[%c270] : memref<320xf32, #tpu.memory_space<smem>>
    %1372 = vector.broadcast %1371 : f32 to vector<1x384xf32>
    %1373 = arith.mulf %4, %1372 : vector<1x384xf32>
    %c271 = arith.constant 271 : index
    %1374 = memref.load %arg3[%c271] : memref<320xf32, #tpu.memory_space<smem>>
    %1375 = vector.broadcast %1374 : f32 to vector<1x384xf32>
    %1376 = arith.mulf %6, %1375 : vector<1x384xf32>
    %1377 = arith.addf %1373, %1376 : vector<1x384xf32>
    %c272 = arith.constant 272 : index
    %1378 = memref.load %arg3[%c272] : memref<320xf32, #tpu.memory_space<smem>>
    %1379 = vector.broadcast %1378 : f32 to vector<1x384xf32>
    %1380 = arith.mulf %8, %1379 : vector<1x384xf32>
    %1381 = arith.addf %1377, %1380 : vector<1x384xf32>
    %c273 = arith.constant 273 : index
    %1382 = memref.load %arg3[%c273] : memref<320xf32, #tpu.memory_space<smem>>
    %1383 = vector.broadcast %1382 : f32 to vector<1x384xf32>
    %1384 = arith.mulf %10, %1383 : vector<1x384xf32>
    %1385 = arith.addf %1381, %1384 : vector<1x384xf32>
    %c274 = arith.constant 274 : index
    %1386 = memref.load %arg3[%c274] : memref<320xf32, #tpu.memory_space<smem>>
    %1387 = vector.broadcast %1386 : f32 to vector<1x384xf32>
    %1388 = arith.mulf %12, %1387 : vector<1x384xf32>
    %1389 = arith.addf %1385, %1388 : vector<1x384xf32>
    %c275 = arith.constant 275 : index
    %1390 = memref.load %arg3[%c275] : memref<320xf32, #tpu.memory_space<smem>>
    %1391 = vector.broadcast %1390 : f32 to vector<1x384xf32>
    %1392 = arith.mulf %14, %1391 : vector<1x384xf32>
    %1393 = arith.addf %1389, %1392 : vector<1x384xf32>
    %c276 = arith.constant 276 : index
    %1394 = memref.load %arg3[%c276] : memref<320xf32, #tpu.memory_space<smem>>
    %1395 = vector.broadcast %1394 : f32 to vector<1x384xf32>
    %1396 = arith.mulf %16, %1395 : vector<1x384xf32>
    %1397 = arith.addf %1393, %1396 : vector<1x384xf32>
    %c277 = arith.constant 277 : index
    %1398 = memref.load %arg3[%c277] : memref<320xf32, #tpu.memory_space<smem>>
    %1399 = vector.broadcast %1398 : f32 to vector<1x384xf32>
    %1400 = arith.mulf %18, %1399 : vector<1x384xf32>
    %1401 = arith.addf %1397, %1400 : vector<1x384xf32>
    %c278 = arith.constant 278 : index
    %1402 = memref.load %arg3[%c278] : memref<320xf32, #tpu.memory_space<smem>>
    %1403 = vector.broadcast %1402 : f32 to vector<1x384xf32>
    %1404 = arith.mulf %20, %1403 : vector<1x384xf32>
    %1405 = arith.addf %1401, %1404 : vector<1x384xf32>
    %c279 = arith.constant 279 : index
    %1406 = memref.load %arg3[%c279] : memref<320xf32, #tpu.memory_space<smem>>
    %1407 = vector.broadcast %1406 : f32 to vector<1x384xf32>
    %1408 = arith.addf %1405, %1407 : vector<1x384xf32>
    %1409 = arith.negf %1408 : vector<1x384xf32>
    %1410 = math.exp %1409 : vector<1x384xf32>
    %cst_193 = arith.constant 1.000000e+00 : f32
    %1411 = vector.broadcast %cst_193 : f32 to vector<1x384xf32>
    %1412 = arith.addf %1411, %1410 : vector<1x384xf32>
    %1413 = arith.divf %1411, %1412 : vector<1x384xf32>
    %1414 = arith.mulf %1408, %1413 : vector<1x384xf32>
    %c0_194 = arith.constant 0 : index
    %c27_195 = arith.constant 27 : index
    %1415 = vector.load %arg8[%c0_194, %c27_195] : memref<1x32xf32, #tpu.memory_space<vmem>>, vector<1x1xf32>
    %1416 = arith.mulf %1414, %2 : vector<1x384xf32>
    %cst_196 = arith.constant dense<0.000000e+00> : vector<1xf32>
    %1417 = vector.multi_reduction <add>, %1416, %cst_196 [1] : vector<1x384xf32> to vector<1xf32>
    %1418 = vector.shape_cast %1417 : vector<1xf32> to vector<1x1xf32>
    %1419 = arith.addf %1415, %1418 : vector<1x1xf32>
    %c0_197 = arith.constant 0 : index
    %c27_198 = arith.constant 27 : index
    %1420 = vector.load %arg8[%c0_197, %c27_198] : memref<1x32xf32, #tpu.memory_space<vmem>>, vector<1x1xf32>
    tpu.vector_store %arg8[%c0_197, %c27_198], %1419 {strides = array<i32>} : memref<1x32xf32, #tpu.memory_space<vmem>>, vector<1x1xf32>,
    %c280 = arith.constant 280 : index
    %1421 = memref.load %arg3[%c280] : memref<320xf32, #tpu.memory_space<smem>>
    %1422 = vector.broadcast %1421 : f32 to vector<1x384xf32>
    %1423 = arith.mulf %4, %1422 : vector<1x384xf32>
    %c281 = arith.constant 281 : index
    %1424 = memref.load %arg3[%c281] : memref<320xf32, #tpu.memory_space<smem>>
    %1425 = vector.broadcast %1424 : f32 to vector<1x384xf32>
    %1426 = arith.mulf %6, %1425 : vector<1x384xf32>
    %1427 = arith.addf %1423, %1426 : vector<1x384xf32>
    %c282 = arith.constant 282 : index
    %1428 = memref.load %arg3[%c282] : memref<320xf32, #tpu.memory_space<smem>>
    %1429 = vector.broadcast %1428 : f32 to vector<1x384xf32>
    %1430 = arith.mulf %8, %1429 : vector<1x384xf32>
    %1431 = arith.addf %1427, %1430 : vector<1x384xf32>
    %c283 = arith.constant 283 : index
    %1432 = memref.load %arg3[%c283] : memref<320xf32, #tpu.memory_space<smem>>
    %1433 = vector.broadcast %1432 : f32 to vector<1x384xf32>
    %1434 = arith.mulf %10, %1433 : vector<1x384xf32>
    %1435 = arith.addf %1431, %1434 : vector<1x384xf32>
    %c284 = arith.constant 284 : index
    %1436 = memref.load %arg3[%c284] : memref<320xf32, #tpu.memory_space<smem>>
    %1437 = vector.broadcast %1436 : f32 to vector<1x384xf32>
    %1438 = arith.mulf %12, %1437 : vector<1x384xf32>
    %1439 = arith.addf %1435, %1438 : vector<1x384xf32>
    %c285 = arith.constant 285 : index
    %1440 = memref.load %arg3[%c285] : memref<320xf32, #tpu.memory_space<smem>>
    %1441 = vector.broadcast %1440 : f32 to vector<1x384xf32>
    %1442 = arith.mulf %14, %1441 : vector<1x384xf32>
    %1443 = arith.addf %1439, %1442 : vector<1x384xf32>
    %c286 = arith.constant 286 : index
    %1444 = memref.load %arg3[%c286] : memref<320xf32, #tpu.memory_space<smem>>
    %1445 = vector.broadcast %1444 : f32 to vector<1x384xf32>
    %1446 = arith.mulf %16, %1445 : vector<1x384xf32>
    %1447 = arith.addf %1443, %1446 : vector<1x384xf32>
    %c287 = arith.constant 287 : index
    %1448 = memref.load %arg3[%c287] : memref<320xf32, #tpu.memory_space<smem>>
    %1449 = vector.broadcast %1448 : f32 to vector<1x384xf32>
    %1450 = arith.mulf %18, %1449 : vector<1x384xf32>
    %1451 = arith.addf %1447, %1450 : vector<1x384xf32>
    %c288 = arith.constant 288 : index
    %1452 = memref.load %arg3[%c288] : memref<320xf32, #tpu.memory_space<smem>>
    %1453 = vector.broadcast %1452 : f32 to vector<1x384xf32>
    %1454 = arith.mulf %20, %1453 : vector<1x384xf32>
    %1455 = arith.addf %1451, %1454 : vector<1x384xf32>
    %c289 = arith.constant 289 : index
    %1456 = memref.load %arg3[%c289] : memref<320xf32, #tpu.memory_space<smem>>
    %1457 = vector.broadcast %1456 : f32 to vector<1x384xf32>
    %1458 = arith.addf %1455, %1457 : vector<1x384xf32>
    %1459 = arith.negf %1458 : vector<1x384xf32>
    %1460 = math.exp %1459 : vector<1x384xf32>
    %cst_199 = arith.constant 1.000000e+00 : f32
    %1461 = vector.broadcast %cst_199 : f32 to vector<1x384xf32>
    %1462 = arith.addf %1461, %1460 : vector<1x384xf32>
    %1463 = arith.divf %1461, %1462 : vector<1x384xf32>
    %1464 = arith.mulf %1458, %1463 : vector<1x384xf32>
    %c0_200 = arith.constant 0 : index
    %c28_201 = arith.constant 28 : index
    %1465 = vector.load %arg8[%c0_200, %c28_201] : memref<1x32xf32, #tpu.memory_space<vmem>>, vector<1x1xf32>
    %1466 = arith.mulf %1464, %2 : vector<1x384xf32>
    %cst_202 = arith.constant dense<0.000000e+00> : vector<1xf32>
    %1467 = vector.multi_reduction <add>, %1466, %cst_202 [1] : vector<1x384xf32> to vector<1xf32>
    %1468 = vector.shape_cast %1467 : vector<1xf32> to vector<1x1xf32>
    %1469 = arith.addf %1465, %1468 : vector<1x1xf32>
    %c0_203 = arith.constant 0 : index
    %c28_204 = arith.constant 28 : index
    %1470 = vector.load %arg8[%c0_203, %c28_204] : memref<1x32xf32, #tpu.memory_space<vmem>>, vector<1x1xf32>
    tpu.vector_store %arg8[%c0_203, %c28_204], %1469 {strides = array<i32>} : memref<1x32xf32, #tpu.memory_space<vmem>>, vector<1x1xf32>,
    %c290 = arith.constant 290 : index
    %1471 = memref.load %arg3[%c290] : memref<320xf32, #tpu.memory_space<smem>>
    %1472 = vector.broadcast %1471 : f32 to vector<1x384xf32>
    %1473 = arith.mulf %4, %1472 : vector<1x384xf32>
    %c291 = arith.constant 291 : index
    %1474 = memref.load %arg3[%c291] : memref<320xf32, #tpu.memory_space<smem>>
    %1475 = vector.broadcast %1474 : f32 to vector<1x384xf32>
    %1476 = arith.mulf %6, %1475 : vector<1x384xf32>
    %1477 = arith.addf %1473, %1476 : vector<1x384xf32>
    %c292 = arith.constant 292 : index
    %1478 = memref.load %arg3[%c292] : memref<320xf32, #tpu.memory_space<smem>>
    %1479 = vector.broadcast %1478 : f32 to vector<1x384xf32>
    %1480 = arith.mulf %8, %1479 : vector<1x384xf32>
    %1481 = arith.addf %1477, %1480 : vector<1x384xf32>
    %c293 = arith.constant 293 : index
    %1482 = memref.load %arg3[%c293] : memref<320xf32, #tpu.memory_space<smem>>
    %1483 = vector.broadcast %1482 : f32 to vector<1x384xf32>
    %1484 = arith.mulf %10, %1483 : vector<1x384xf32>
    %1485 = arith.addf %1481, %1484 : vector<1x384xf32>
    %c294 = arith.constant 294 : index
    %1486 = memref.load %arg3[%c294] : memref<320xf32, #tpu.memory_space<smem>>
    %1487 = vector.broadcast %1486 : f32 to vector<1x384xf32>
    %1488 = arith.mulf %12, %1487 : vector<1x384xf32>
    %1489 = arith.addf %1485, %1488 : vector<1x384xf32>
    %c295 = arith.constant 295 : index
    %1490 = memref.load %arg3[%c295] : memref<320xf32, #tpu.memory_space<smem>>
    %1491 = vector.broadcast %1490 : f32 to vector<1x384xf32>
    %1492 = arith.mulf %14, %1491 : vector<1x384xf32>
    %1493 = arith.addf %1489, %1492 : vector<1x384xf32>
    %c296 = arith.constant 296 : index
    %1494 = memref.load %arg3[%c296] : memref<320xf32, #tpu.memory_space<smem>>
    %1495 = vector.broadcast %1494 : f32 to vector<1x384xf32>
    %1496 = arith.mulf %16, %1495 : vector<1x384xf32>
    %1497 = arith.addf %1493, %1496 : vector<1x384xf32>
    %c297 = arith.constant 297 : index
    %1498 = memref.load %arg3[%c297] : memref<320xf32, #tpu.memory_space<smem>>
    %1499 = vector.broadcast %1498 : f32 to vector<1x384xf32>
    %1500 = arith.mulf %18, %1499 : vector<1x384xf32>
    %1501 = arith.addf %1497, %1500 : vector<1x384xf32>
    %c298 = arith.constant 298 : index
    %1502 = memref.load %arg3[%c298] : memref<320xf32, #tpu.memory_space<smem>>
    %1503 = vector.broadcast %1502 : f32 to vector<1x384xf32>
    %1504 = arith.mulf %20, %1503 : vector<1x384xf32>
    %1505 = arith.addf %1501, %1504 : vector<1x384xf32>
    %c299 = arith.constant 299 : index
    %1506 = memref.load %arg3[%c299] : memref<320xf32, #tpu.memory_space<smem>>
    %1507 = vector.broadcast %1506 : f32 to vector<1x384xf32>
    %1508 = arith.addf %1505, %1507 : vector<1x384xf32>
    %1509 = arith.negf %1508 : vector<1x384xf32>
    %1510 = math.exp %1509 : vector<1x384xf32>
    %cst_205 = arith.constant 1.000000e+00 : f32
    %1511 = vector.broadcast %cst_205 : f32 to vector<1x384xf32>
    %1512 = arith.addf %1511, %1510 : vector<1x384xf32>
    %1513 = arith.divf %1511, %1512 : vector<1x384xf32>
    %1514 = arith.mulf %1508, %1513 : vector<1x384xf32>
    %c0_206 = arith.constant 0 : index
    %c29_207 = arith.constant 29 : index
    %1515 = vector.load %arg8[%c0_206, %c29_207] : memref<1x32xf32, #tpu.memory_space<vmem>>, vector<1x1xf32>
    %1516 = arith.mulf %1514, %2 : vector<1x384xf32>
    %cst_208 = arith.constant dense<0.000000e+00> : vector<1xf32>
    %1517 = vector.multi_reduction <add>, %1516, %cst_208 [1] : vector<1x384xf32> to vector<1xf32>
    %1518 = vector.shape_cast %1517 : vector<1xf32> to vector<1x1xf32>
    %1519 = arith.addf %1515, %1518 : vector<1x1xf32>
    %c0_209 = arith.constant 0 : index
    %c29_210 = arith.constant 29 : index
    %1520 = vector.load %arg8[%c0_209, %c29_210] : memref<1x32xf32, #tpu.memory_space<vmem>>, vector<1x1xf32>
    tpu.vector_store %arg8[%c0_209, %c29_210], %1519 {strides = array<i32>} : memref<1x32xf32, #tpu.memory_space<vmem>>, vector<1x1xf32>,
    %c300 = arith.constant 300 : index
    %1521 = memref.load %arg3[%c300] : memref<320xf32, #tpu.memory_space<smem>>
    %1522 = vector.broadcast %1521 : f32 to vector<1x384xf32>
    %1523 = arith.mulf %4, %1522 : vector<1x384xf32>
    %c301 = arith.constant 301 : index
    %1524 = memref.load %arg3[%c301] : memref<320xf32, #tpu.memory_space<smem>>
    %1525 = vector.broadcast %1524 : f32 to vector<1x384xf32>
    %1526 = arith.mulf %6, %1525 : vector<1x384xf32>
    %1527 = arith.addf %1523, %1526 : vector<1x384xf32>
    %c302 = arith.constant 302 : index
    %1528 = memref.load %arg3[%c302] : memref<320xf32, #tpu.memory_space<smem>>
    %1529 = vector.broadcast %1528 : f32 to vector<1x384xf32>
    %1530 = arith.mulf %8, %1529 : vector<1x384xf32>
    %1531 = arith.addf %1527, %1530 : vector<1x384xf32>
    %c303 = arith.constant 303 : index
    %1532 = memref.load %arg3[%c303] : memref<320xf32, #tpu.memory_space<smem>>
    %1533 = vector.broadcast %1532 : f32 to vector<1x384xf32>
    %1534 = arith.mulf %10, %1533 : vector<1x384xf32>
    %1535 = arith.addf %1531, %1534 : vector<1x384xf32>
    %c304 = arith.constant 304 : index
    %1536 = memref.load %arg3[%c304] : memref<320xf32, #tpu.memory_space<smem>>
    %1537 = vector.broadcast %1536 : f32 to vector<1x384xf32>
    %1538 = arith.mulf %12, %1537 : vector<1x384xf32>
    %1539 = arith.addf %1535, %1538 : vector<1x384xf32>
    %c305 = arith.constant 305 : index
    %1540 = memref.load %arg3[%c305] : memref<320xf32, #tpu.memory_space<smem>>
    %1541 = vector.broadcast %1540 : f32 to vector<1x384xf32>
    %1542 = arith.mulf %14, %1541 : vector<1x384xf32>
    %1543 = arith.addf %1539, %1542 : vector<1x384xf32>
    %c306 = arith.constant 306 : index
    %1544 = memref.load %arg3[%c306] : memref<320xf32, #tpu.memory_space<smem>>
    %1545 = vector.broadcast %1544 : f32 to vector<1x384xf32>
    %1546 = arith.mulf %16, %1545 : vector<1x384xf32>
    %1547 = arith.addf %1543, %1546 : vector<1x384xf32>
    %c307 = arith.constant 307 : index
    %1548 = memref.load %arg3[%c307] : memref<320xf32, #tpu.memory_space<smem>>
    %1549 = vector.broadcast %1548 : f32 to vector<1x384xf32>
    %1550 = arith.mulf %18, %1549 : vector<1x384xf32>
    %1551 = arith.addf %1547, %1550 : vector<1x384xf32>
    %c308 = arith.constant 308 : index
    %1552 = memref.load %arg3[%c308] : memref<320xf32, #tpu.memory_space<smem>>
    %1553 = vector.broadcast %1552 : f32 to vector<1x384xf32>
    %1554 = arith.mulf %20, %1553 : vector<1x384xf32>
    %1555 = arith.addf %1551, %1554 : vector<1x384xf32>
    %c309 = arith.constant 309 : index
    %1556 = memref.load %arg3[%c309] : memref<320xf32, #tpu.memory_space<smem>>
    %1557 = vector.broadcast %1556 : f32 to vector<1x384xf32>
    %1558 = arith.addf %1555, %1557 : vector<1x384xf32>
    %1559 = arith.negf %1558 : vector<1x384xf32>
    %1560 = math.exp %1559 : vector<1x384xf32>
    %cst_211 = arith.constant 1.000000e+00 : f32
    %1561 = vector.broadcast %cst_211 : f32 to vector<1x384xf32>
    %1562 = arith.addf %1561, %1560 : vector<1x384xf32>
    %1563 = arith.divf %1561, %1562 : vector<1x384xf32>
    %1564 = arith.mulf %1558, %1563 : vector<1x384xf32>
    %c0_212 = arith.constant 0 : index
    %c30_213 = arith.constant 30 : index
    %1565 = vector.load %arg8[%c0_212, %c30_213] : memref<1x32xf32, #tpu.memory_space<vmem>>, vector<1x1xf32>
    %1566 = arith.mulf %1564, %2 : vector<1x384xf32>
    %cst_214 = arith.constant dense<0.000000e+00> : vector<1xf32>
    %1567 = vector.multi_reduction <add>, %1566, %cst_214 [1] : vector<1x384xf32> to vector<1xf32>
    %1568 = vector.shape_cast %1567 : vector<1xf32> to vector<1x1xf32>
    %1569 = arith.addf %1565, %1568 : vector<1x1xf32>
    %c0_215 = arith.constant 0 : index
    %c30_216 = arith.constant 30 : index
    %1570 = vector.load %arg8[%c0_215, %c30_216] : memref<1x32xf32, #tpu.memory_space<vmem>>, vector<1x1xf32>
    tpu.vector_store %arg8[%c0_215, %c30_216], %1569 {strides = array<i32>} : memref<1x32xf32, #tpu.memory_space<vmem>>, vector<1x1xf32>,
    %c310 = arith.constant 310 : index
    %1571 = memref.load %arg3[%c310] : memref<320xf32, #tpu.memory_space<smem>>
    %1572 = vector.broadcast %1571 : f32 to vector<1x384xf32>
    %1573 = arith.mulf %4, %1572 : vector<1x384xf32>
    %c311 = arith.constant 311 : index
    %1574 = memref.load %arg3[%c311] : memref<320xf32, #tpu.memory_space<smem>>
    %1575 = vector.broadcast %1574 : f32 to vector<1x384xf32>
    %1576 = arith.mulf %6, %1575 : vector<1x384xf32>
    %1577 = arith.addf %1573, %1576 : vector<1x384xf32>
    %c312 = arith.constant 312 : index
    %1578 = memref.load %arg3[%c312] : memref<320xf32, #tpu.memory_space<smem>>
    %1579 = vector.broadcast %1578 : f32 to vector<1x384xf32>
    %1580 = arith.mulf %8, %1579 : vector<1x384xf32>
    %1581 = arith.addf %1577, %1580 : vector<1x384xf32>
    %c313 = arith.constant 313 : index
    %1582 = memref.load %arg3[%c313] : memref<320xf32, #tpu.memory_space<smem>>
    %1583 = vector.broadcast %1582 : f32 to vector<1x384xf32>
    %1584 = arith.mulf %10, %1583 : vector<1x384xf32>
    %1585 = arith.addf %1581, %1584 : vector<1x384xf32>
    %c314 = arith.constant 314 : index
    %1586 = memref.load %arg3[%c314] : memref<320xf32, #tpu.memory_space<smem>>
    %1587 = vector.broadcast %1586 : f32 to vector<1x384xf32>
    %1588 = arith.mulf %12, %1587 : vector<1x384xf32>
    %1589 = arith.addf %1585, %1588 : vector<1x384xf32>
    %c315 = arith.constant 315 : index
    %1590 = memref.load %arg3[%c315] : memref<320xf32, #tpu.memory_space<smem>>
    %1591 = vector.broadcast %1590 : f32 to vector<1x384xf32>
    %1592 = arith.mulf %14, %1591 : vector<1x384xf32>
    %1593 = arith.addf %1589, %1592 : vector<1x384xf32>
    %c316 = arith.constant 316 : index
    %1594 = memref.load %arg3[%c316] : memref<320xf32, #tpu.memory_space<smem>>
    %1595 = vector.broadcast %1594 : f32 to vector<1x384xf32>
    %1596 = arith.mulf %16, %1595 : vector<1x384xf32>
    %1597 = arith.addf %1593, %1596 : vector<1x384xf32>
    %c317 = arith.constant 317 : index
    %1598 = memref.load %arg3[%c317] : memref<320xf32, #tpu.memory_space<smem>>
    %1599 = vector.broadcast %1598 : f32 to vector<1x384xf32>
    %1600 = arith.mulf %18, %1599 : vector<1x384xf32>
    %1601 = arith.addf %1597, %1600 : vector<1x384xf32>
    %c318 = arith.constant 318 : index
    %1602 = memref.load %arg3[%c318] : memref<320xf32, #tpu.memory_space<smem>>
    %1603 = vector.broadcast %1602 : f32 to vector<1x384xf32>
    %1604 = arith.mulf %20, %1603 : vector<1x384xf32>
    %1605 = arith.addf %1601, %1604 : vector<1x384xf32>
    %c319 = arith.constant 319 : index
    %1606 = memref.load %arg3[%c319] : memref<320xf32, #tpu.memory_space<smem>>
    %1607 = vector.broadcast %1606 : f32 to vector<1x384xf32>
    %1608 = arith.addf %1605, %1607 : vector<1x384xf32>
    %1609 = arith.negf %1608 : vector<1x384xf32>
    %1610 = math.exp %1609 : vector<1x384xf32>
    %cst_217 = arith.constant 1.000000e+00 : f32
    %1611 = vector.broadcast %cst_217 : f32 to vector<1x384xf32>
    %1612 = arith.addf %1611, %1610 : vector<1x384xf32>
    %1613 = arith.divf %1611, %1612 : vector<1x384xf32>
    %1614 = arith.mulf %1608, %1613 : vector<1x384xf32>
    %c0_218 = arith.constant 0 : index
    %c31_219 = arith.constant 31 : index
    %1615 = vector.load %arg8[%c0_218, %c31_219] : memref<1x32xf32, #tpu.memory_space<vmem>>, vector<1x1xf32>
    %1616 = arith.mulf %1614, %2 : vector<1x384xf32>
    %cst_220 = arith.constant dense<0.000000e+00> : vector<1xf32>
    %1617 = vector.multi_reduction <add>, %1616, %cst_220 [1] : vector<1x384xf32> to vector<1xf32>
    %1618 = vector.shape_cast %1617 : vector<1xf32> to vector<1x1xf32>
    %1619 = arith.addf %1615, %1618 : vector<1x1xf32>
    %c0_221 = arith.constant 0 : index
    %c31_222 = arith.constant 31 : index
    %1620 = vector.load %arg8[%c0_221, %c31_222] : memref<1x32xf32, #tpu.memory_space<vmem>>, vector<1x1xf32>
    tpu.vector_store %arg8[%c0_221, %c31_222], %1619 {strides = array<i32>} : memref<1x32xf32, #tpu.memory_space<vmem>>, vector<1x1xf32>,
    %c0_223 = arith.constant 0 : index
    %c0_224 = arith.constant 0 : index
    %1621 = vector.load %arg8[%c0_223, %c0_224] : memref<1x32xf32, #tpu.memory_space<vmem>>, vector<1x32xf32>
    %c0_225 = arith.constant 0 : index
    %c0_226 = arith.constant 0 : index
    %1622 = vector.load %arg6[%c0_225, %c0_226] : memref<1x384xf32, #tpu.memory_space<vmem>>, vector<1x256xf32>
    %c0_227 = arith.constant 0 : index
    %c256_228 = arith.constant 256 : index
    %1623 = vector.load %arg6[%c0_227, %c256_228] : memref<1x384xf32, #tpu.memory_space<vmem>>, vector<1x128xf32>
    %c0_229 = arith.constant 0 : index
    %c0_230 = arith.constant 0 : index
    %1624 = vector.load %arg4[%c0_229, %c0_230] : memref<32x256xf32, #tpu.memory_space<vmem>>, vector<32x256xf32>
    %cst_231 = arith.constant dense<0.000000e+00> : vector<1x256xf32>
    %1625 = tpu.matmul %1621, %1624, %cst_231 {dimension_numbers = #tpu.dot_dimension_numbers<[1], [0], [0], [1], [0, 0, 1, 1], [], []>} : vector<1x32xf32>, vector<32x256xf32>, vector<1x256xf32> -> vector<1x256xf32>
    %1626 = arith.addf %1625, %1622 : vector<1x256xf32>
    %c0_232 = arith.constant 0 : index
    %c0_233 = arith.constant 0 : index
    %1627 = vector.load %arg5[%c0_232, %c0_233] : memref<256x128xf32, #tpu.memory_space<vmem>>, vector<256x128xf32>
    %cst_234 = arith.constant dense<0.000000e+00> : vector<1x128xf32>
    %1628 = tpu.matmul %1626, %1627, %cst_234 {dimension_numbers = #tpu.dot_dimension_numbers<[1], [0], [0], [1], [0, 0, 1, 1], [], []>} : vector<1x256xf32>, vector<256x128xf32>, vector<1x128xf32> -> vector<1x128xf32>
    %1629 = arith.addf %1628, %1623 : vector<1x128xf32>
    %c0_235 = arith.constant 0 : index
    %c0_236 = arith.constant 0 : index
    %c0_237 = arith.constant 0 : index
    %1630 = vector.load %arg7[%c0_235, %c0_236, %c0_237] : memref<1x1x128xf32, #tpu.memory_space<vmem>>, vector<1x1x128xf32>
    %1631 = vector.shape_cast %1630 : vector<1x1x128xf32> to vector<1x128xf32>
    %1632 = vector.shape_cast %1629 : vector<1x128xf32> to vector<1x1x128xf32>
    tpu.vector_store %arg7[%c0_235, %c0_236, %c0_237], %1632 {strides = array<i32>} : memref<1x1x128xf32, #tpu.memory_space<vmem>>, vector<1x1x128xf32>,
    return
  }
  func.func @transform_0(%arg0: i32) -> (i32, i32, i32) {
    %c0_i32 = arith.constant 0 : i32
    %c0_i32_0 = arith.constant 0 : i32
    %c0_i32_1 = arith.constant 0 : i32
    return %arg0, %c0_i32, %c0_i32_0 : i32, i32, i32
  }
  func.func @transform_1(%arg0: i32) -> (i32, i32) {
    %c0_i32 = arith.constant 0 : i32
    %c0_i32_0 = arith.constant 0 : i32
    %c0_i32_1 = arith.constant 0 : i32
    return %c0_i32, %c0_i32_0 : i32, i32
  }
  func.func @transform_2(%arg0: i32) -> i32 {
    %c0_i32 = arith.constant 0 : i32
    %c0_i32_0 = arith.constant 0 : i32
    return %c0_i32 : i32
  }
  func.func @transform_3(%arg0: i32) -> (i32, i32) {
    %c0_i32 = arith.constant 0 : i32
    %c0_i32_0 = arith.constant 0 : i32
    %c0_i32_1 = arith.constant 0 : i32
    return %c0_i32, %c0_i32_0 : i32, i32
  }
  func.func @transform_4(%arg0: i32) -> (i32, i32) {
    %c0_i32 = arith.constant 0 : i32
    %c0_i32_0 = arith.constant 0 : i32
    %c0_i32_1 = arith.constant 0 : i32
    return %c0_i32, %c0_i32_0 : i32, i32
  }
  func.func @transform_5(%arg0: i32) -> (i32, i32) {
    %c0_i32 = arith.constant 0 : i32
    %c0_i32_0 = arith.constant 0 : i32
    %c0_i32_1 = arith.constant 0 : i32
    return %c0_i32, %c0_i32_0 : i32, i32
  }
  func.func @transform_6(%arg0: i32) -> (i32, i32, i32) {
    %c0_i32 = arith.constant 0 : i32
    %c0_i32_0 = arith.constant 0 : i32
    %c0_i32_1 = arith.constant 0 : i32
    return %arg0, %c0_i32, %c0_i32_0 : i32, i32, i32
  }
}

</mosaic_0001>

<bundles_post_ra>
// kernel: tpu_custom_call.1
= control target key start
LH: loop header
LB: loop body
LE: loop exit
PB: predicated region body
PF: predicated region fallthrough
CT: control target
= control target key end

     0   :  { %s7751_s0 = inlined_call_operand.hbm [shape: f32[2,1,640], index: 0, kind: input, shape index: {}]   ;;  %s7752_s1 = inlined_call_operand.hbm [shape: f32[1,384], index: 1, kind: input, shape index: {}]   ;;  %s7753_s2 = inlined_call_operand.hbm [shape: f32[320], index: 2, kind: input, shape index: {}]   ;;  %s7754_s3 = inlined_call_operand.hbm [shape: f32[32,256], index: 3, kind: input, shape index: {}]   ;;  %s7755_s4 = inlined_call_operand.hbm [shape: f32[256,128], index: 4, kind: input, shape index: {}]   ;;  %s7756_s5 = inlined_call_operand.vmem [shape: f32[1,384], index: 5, kind: input, shape index: {}]   ;;  %s7757_s6 = inlined_call_operand.hbm [shape: f32[2,1,128], index: 6, kind: output, shape index: {}]  }
   0x1   :  { %7764 = sst [smem:[#allocation20_spill]] %s7752_s1 }
   0x2   :  { %7765 = sst [smem:[#allocation21_spill]] %s7753_s2 }
   0x3   :  { %11 = vsyncpa [#allocation4], 0 }
   0x4   :  { %13 = vsyncpa [#allocation4 + $0x1], 0 }
   0x5   :  { %14 = vsyncpa [#allocation8], 0 }
   0x6   :  { %15 = vsyncpa [#allocation6], 0 }
   0x7   :  { %16 = vsyncpa [#allocation12], 0 }
   0x8   :  { %17 = vsyncpa [#allocation5], 0 }
   0x9   :  { %19 = vsyncpa [#allocation5 + $0x1], 0  ;;  %s5876_s21 = smov 0   ;;  %s5878_s22 = smov 0  }
   0xa   :  { %s5880_s23 = smov 0   ;;  %s5882_s24 = smov 0  }
   0xb LB: > { %s7766_s1 = sld [smem:[#allocation20_spill]]  ;;  %s5900_s28 = sadd.s32 4294967295, %s5821_s24   ;;  %s5821_s24 = sphi %s5882_s24, %s7783_s24   ;;  %s5817_s23 = sphi %s5880_s23, %s7782_s23   ;;  %s5813_s22 = sphi %s5878_s22, %s7781_s22   ;;  %s5809_s21 = sphi %s5876_s21, %s7780_s21  }
   0xc   : > { %p4990_p0 = scmp.ge.s32.totalorder %s5821_s24, 1  ;;  %p46_p1 = scmp.eq.s32.totalorder %s5900_s28, 0 }
   0xd   : > { %p187_p2 = scmp.lt.s32.totalorder %s5821_s24, 3  ;;  %s5823_s30 = smov [#allocation7]  }
   0xe   : > { %s201_s7 = sshll.u32 %s5823_s30, 4  ;;  %s7768_s2 = sld [smem:[#allocation21_spill]]  ;;  %s202_s7 = int_to_ptr.vmem [resolvable:$true] %s201_s7 }
   0xf   : > { %p5905_p3 = pnand %p4990_p0, %p187_p2  ;;  %s220_s14 = sshll.u32 %s7754_s3, 4  ;;  %s221_s14 = int_to_ptr.hbm [resolvable:$true] %s220_s14 }
  0x10   : > { %s5824_s15 = smov [#allocation10]   ;;  %s5825_s17 = smov [#allocation9]  }
  0x11   : > { %s199_s27 = sshll.u32 %s7766_s1, 4  ;;  %p5379_p5 = pneg %p5905_p3  ;;  %s200_s27 = int_to_ptr.hbm [resolvable:$true] %s199_s27 }
  0x12   : > { %s222_s16 = sshll.u32 %s5824_s15, 4  ;;  %s234_s20 = sshll.u32 %s7755_s4, 4  ;;  %s223_s16 = int_to_ptr.vmem [resolvable:$true] %s222_s16  ;;  %s235_s20 = int_to_ptr.hbm [resolvable:$true] %s234_s20 }
  0x13   : > { %p5917_p6 = pnand %p5379_p5, %p46_p1  ;;  %s5826_s25 = smov 256  }
  0x14   : > { %s211_s10 = sshll.u32 %s7768_s2, 4  ;;  %s5827_s26 = smov 16   ;;  %s212_s10 = int_to_ptr.hbm [resolvable:$true] %s211_s10 }
  0x15   : > { %5382 = dma.hbm_to_vmem [thread:$0]  (!%p5917_p6), %s200_s27, 48, %s202_s7, [#allocation8]  }
  0x16   : > { %5385 = dma.hbm_to_smem (!%p5917_p6), %s212_s10, 48, %s5825_s17, [#allocation6]  }
  0x17   : > { %5388 = dma.hbm_to_vmem [thread:$0]  (!%p5917_p6), %s221_s14, 1024, %s223_s16, [#allocation8], %s5826_s25, %s5826_s25, %s5827_s26  }
  0x18   : > { %s5828_s27 = smov [#allocation11]   ;;  %s5829_s7 = smov 128  }
  0x19   : > { %s236_s30 = sshll.u32 %s5828_s27, 4  ;;  %s5830_s8 = smov 8   ;;  %s237_s30 = int_to_ptr.vmem [resolvable:$true] %s236_s30 }
  0x1a   : > { %5391 = dma.hbm_to_vmem [thread:$0]  (!%p5917_p6), %s235_s20, 4096, %s237_s30, [#allocation12], %s5829_s7, %s5829_s7, %s5830_s8  }
  0x1b   : > { %s4989_s9 = sadd.s32 4294967294, %s5821_s24   ;;  %s5937_s10 = sadd.s32 1, %s5821_s24  }
  0x1c   : > { %s29_s12 = ssub.s32 %s5821_s24, %s5937_s10  ;;  %s32_s13 = sadd.s32 1, %s5817_s23 }
  0x1d   : > { %p30_p7 = scmp.eq.s32.totalorder %s29_s12, 0  ;;  %p39_p8 = scmp.ne.s32.totalorder %s5817_s23, %s5813_s22 }
  0x1e   : > { %p40_p9 = scmp.eq.s32.totalorder %s5821_s24, 0  ;;  %p45_p10 = scmp.ne.s32.totalorder %s5813_s22, %s5809_s21 }
  0x1f   : > { %s5948_s14 = scalar_select %p30_p7, %s5817_s23, %s32_s13  }
  0x20   : > { %p41_p11 = por %p40_p9, %p39_p8  ;;  %p5952_p12 = por %p46_p1, %p45_p10 }
  0x21   : > { %p174_p13 = scmp.eq.s32.totalorder %s5900_s28, 1  ;;  %p180_p0 = scmp.eq.s32.totalorder %s4989_s9, 1 }
  0x22   : > { %p5404_p2 = scmp.lt.s32.totalorder %s5821_s24, 2  ;;  %s253_s11 = sand.u32 1, %s5817_s23  }
  0x23   : > { %p5959_p5 = por %p174_p13, %p39_p8  ;;  %p5963_p6 = por %p180_p0, %p45_p10 }
  0x24   : > { %s5356_s18 = smul.u32 5, %s253_s11  ;;  %p5968_p7 = pnand %p5404_p2, %p41_p11 }
  0x25   : > { %s5357_s19 = smul.u32 5, %s5821_s24  ;;  %s254_s9 = scalar_lea.sflag [#allocation4], %s253_s11 }
  0x26   : > { %s257_s30 = scalar_lea.vmem [#allocation3], %s5356_s18  ;;  %p5713_p9 = pneg %p5968_p7 }
  0x27   : > { %s261_s27 = scalar_lea.hbm %s7751_s0, %s5357_s19  ;;  %s265_s7 = sshll.u32 %s257_s30, 4  ;;  %s266_s7 = int_to_ptr.vmem [resolvable:$true] %s265_s7 }
  0x28   : > { %s263_s8 = sshll.u32 %s261_s27, 4  ;;  %s5716_s25 = scalar_lea.hbm %s7751_s0, 10  ;;  %s264_s8 = int_to_ptr.hbm [resolvable:$true] %s263_s8 }
  0x29   : > { %s5709_s12 = sshra.s32 %s264_s8, 4  ;;  %s5710_s12 = int_to_ptr.hbm [resolvable:$true] %s5709_s12 }
  0x2a   : > { %s5711_s13 = scalar_lea.hbm %s5710_s12, 5  ;;  %p5717_p13 = scmp.lt.s32.totalorder %s5710_s12, %s7751_s0 }
  0x2b   : > { %p5712_p8 = scmp.ne.s32.totalorder %s5710_s12, %s5711_s13  ;;  %p5718_p0 = scmp.lt.s32.totalorder %s5716_s25, %s5711_s13 }
  0x2d   : > { %p5714_p10 = pnand %p5713_p9, %p5712_p8  ;;  %p5719_p2 = por %p5718_p0, %p5717_p13 }
  0x2f   : > { %p5715_p11 = pneg %p5714_p10 }
  0x31   : > { %p5720_p4 = pnand %p5719_p2, %p5715_p11 }
  0x33   : > { %5723 = shalt.err (!%p5720_p4)
}
  0x34   : > { %5395 = dma.hbm_to_vmem [thread:$0]  (!%p5968_p7), %s264_s8, 80, %s266_s7, %s254_s9  }
  0x35   : > { %274 = sbr.rel (%p5905_p3) target bundleno = 4933 (0x1345), region = 44  ;;  %s5988_s11 = sand.u32 (!%p5905_p3), 1, %s5813_s22  }
  0x36   : > { %s5358_s1 = smul.u32 (!%p5905_p3), 5, %s5988_s11  ;;  %s277_s2 = scalar_lea.sflag (!%p5905_p3), [#allocation4], %s5988_s11 }
  0x38   : > { %s5992_s18 = scalar_lea.vmem (!%p5905_p3), [#allocation3], %s5358_s1 }
  0x3a   : > { %5784 = dma.done.wait (%p5952_p12), %s277_s2, 80  }
  0x3b   : > { %5786 = vsyncadd (%p5952_p12), %s277_s2, 4294967216 }
  0x3c   : > { %5788 = dma.done.wait (%p46_p1), [#allocation8], 48  }
  0x3d   : > { %5790 = vsyncadd (%p46_p1), [#allocation8], 4294967248 }
  0x3e   : > { %5792 = dma.done.wait (%p46_p1), [#allocation6], 48  }
  0x3f   : > { %5794 = vsyncadd (%p46_p1), [#allocation6], 4294967248 }
  0x40   : > { %5796 = dma.done.wait (%p46_p1), [#allocation8], 1024  }
  0x41   : > { %5798 = vsyncadd (%p46_p1), [#allocation8], 4294966272 }
  0x42   : > { %5800 = dma.done.wait (%p46_p1), [#allocation12], 4096  }
  0x43   : > { %5802 = vsyncadd (%p46_p1), [#allocation12], 4294963200 }
  0x44   : > { %306 = sfence }
  0x45   : > { %s5005_s29 = sld [smem:[#allocation9 + $0x5]]  ;;  %v6015_v0 = vld [vmem:[%s5992_s18 + $0x1] sm:$0xf]  ;;  %s5831_s8 = smov 108   ;;  %v332_v18 = vld [vmem:[#allocation7] sm:$0x7] }
  0x46   : > { %s5001_s15 = sld [smem:[#allocation9 + $0x1]]  ;;  %v6018_v1 = vld [vmem:[%s5992_s18] sm:$0xf]  ;;  %s7762_s9 = smov 127   ;;  %vm346_vm0 = vcmask 1039360   ;;  %vm357_vm1 = vcmask 1031168  }
  0x47   : > { %s5003_s20 = sld [smem:[#allocation9 + $0x3]]  ;;  %s5833_s12 = smov 110   ;;  %v6027_v10 = vld [vmem:[%s5992_s18 + $0x1] sm:$0x7]  ;;  %vm368_vm2 = vcmask 900096   ;;  %vm379_vm3 = vcmask 891904  }
  0x48   : > { %s5006_s27 = sld [smem:[#allocation9 + $0x6]]  ;;  %s7760_s26 = smov 92   ;;  %vm390_vm4 = vcmask 883712   ;;  %vm401_vm5 = vcmask 752640   ;;  %vm412_vm6 = vcmask 744448   ;;  %vm423_vm7 = vcmask 736256  }
  0x49   : > { %s5002_s30 = sld [smem:[#allocation9 + $0x2]]  ;;  %s5835_s19 = smov 126  }
  0x4a   : > { %s5004_s7 = sld [smem:[#allocation9 + $0x4]]  ;;  %s5836_s2 = smov 109  }
  0x4b   : > { %v384_v2 = vstv %s5005_s29  ;;  %s5007_s13 = sld [smem:[#allocation9 + $0x7]] }
  0x4c   : > { %v385_v3 = vmul.f32 %v384_v2, %v6015_v0  ;;  %v340_v4 = vstv %s5001_s15  ;;  %s5008_s25 = sld [smem:[#allocation9 + $0x8]] }
  0x4d   : > { %v341_v5 = vmul.f32 %v340_v4, %v6018_v1  ;;  %v362_v6 = vstv %s5003_s20  ;;  %s5012_s1 = sld [smem:[#allocation9 + $0xb]]  ;;  %s5837_s20 = smov 91  }
  0x4e   : > { %387 = vrot.lane.b32.xlu2 %v385_v3, %s5831_s8  ;;  %v363_v7 = vmul.f32 %v362_v6, %v6018_v1  ;;  %v395_v8 = vstv %s5006_s27  ;;  %s5013_s29 = sld [smem:[#allocation9 + $0xc]] }
  0x4f   : > { %343 = vrot.lane.b32.xlu0 %v341_v5, %s7762_s9  ;;  %v351_v9 = vstv %s5002_s30  ;;  %v396_v12 = vmul.f32 %v395_v8, %v6015_v0  ;;  %s5026_s15 = sld [smem:[#allocation9 + $0x18]]  ;;  %s5838_s30 = smov 90  }
  0x50   : > { %365 = vrot.lane.b32.xlu1 %v363_v7, %s5833_s12  ;;  %v373_v11 = vstv %s5004_s7  ;;  %v352_v13 = vmul.f32 %v351_v9, %v6018_v1  ;;  %s5014_s27 = sld [smem:[#allocation9 + $0xd]] }
  0x51   : > { %v374_v14 = vmul.f32 %v373_v11, %v6027_v10  ;;  %v406_v15 = vstv %s5007_s13  ;;  %s5015_s7 = sld [smem:[#allocation9 + $0xe]] }
  0x52   : > { %v417_v16 = vstv %s5008_s25  ;;  %v407_v17 = vmul.f32 %v406_v15, %v6015_v0  ;;  %s5028_s13 = sld [smem:[#allocation9 + $0x1a]] }
  0x53   : > { %v418_v19 = vmul.f32 %v417_v16, %v6015_v0  ;;  %v493_v20 = vstv %s5012_s1  ;;  %s5016_s25 = sld [smem:[#allocation9 + $0xf]] }
  0x54   : > { %v503_v21 = vstv %s5013_s29  ;;  %v494_v23 = vmul.f32 %v493_v20, %v6018_v1  ;;  %s5017_s1 = sld [smem:[#allocation9 + $0x10]] }
  0x55   : > { %v660_v22 = vstv %s5026_s15  ;;  %v504_v24 = vmul.f32 %v503_v21, %v6018_v1  ;;  %s5030_s29 = sld [smem:[#allocation9 + $0x1c]] }
  0x56   : > { %398 = vrot.lane.b32.xlu2 %v396_v12, %s7760_s26  ;;  %v661_v25 = vmul.f32 %v660_v22, %v6027_v10  ;;  %v513_v26 = vstv %s5014_s27  ;;  %s5018_s15 = sld [smem:[#allocation9 + $0x11]] }
  0x57   : > { %354 = vrot.lane.b32.xlu0 %v352_v13, %s5835_s19  ;;  %v523_v27 = vstv %s5015_s7  ;;  %v514_v29 = vmul.f32 %v513_v26, %v6018_v1  ;;  %s5019_s27 = sld [smem:[#allocation9 + $0x12]] }
  0x58   : > { %376 = vrot.lane.b32.xlu1 %v374_v14, %s5836_s2  ;;  %v680_v28 = vstv %s5028_s13  ;;  %v524_v30 = vmul.f32 %v523_v27, %v6027_v10  ;;  %s5023_s7 = sld [smem:[#allocation9 + $0x15]] }
  0x59   : > { %v681_v31 = vmul.f32 %v680_v28, %v6015_v0  ;;  %v533_v32 = vstv %s5016_s25  ;;  %s5035_s13 = sld [smem:[#allocation9 + $0x20]] }
  0x5a   : > { %v543_v33 = vstv %s5017_s1  ;;  %v534_v35 = vmul.f32 %v533_v32, %v6015_v0  ;;  %s5024_s25 = sld [smem:[#allocation9 + $0x16]] }
  0x5b   : > { %v700_v34 = vstv %s5030_s29  ;;  %v544_v36 = vmul.f32 %v543_v33, %v6015_v0  ;;  %s5037_s1 = sld [smem:[#allocation9 + $0x22]] }
  0x5c   : > { %v701_v37 = vmul.f32 %v700_v34, %v6015_v0  ;;  %v553_v38 = vstv %s5018_s15  ;;  %s5025_s29 = sld [smem:[#allocation9 + $0x17]] }
  0x5d   : > { %v563_v39 = vstv %s5019_s27  ;;  %v554_v40 = vmul.f32 %v553_v38, %v6015_v0  ;;  %s5039_s15 = sld [smem:[#allocation9 + $0x24]] }
  0x5e   : > { %452 = vrot.lane.b32.xlu2 %v332_v18, %s5836_s2  ;;  %v564_v41 = vmul.f32 %v563_v39, %v6015_v0  ;;  %v630_v42 = vstv %s5023_s7  ;;  %s5027_s27 = sld [smem:[#allocation9 + $0x19]] }
  0x5f   : > { %409 = vrot.lane.b32.xlu0 %v407_v17, %s5837_s20  ;;  %v777_v43 = vstv %s5035_s13  ;;  %v631_v44 = vmul.f32 %v630_v42, %v6018_v1  ;;  %s5041_s7 = sld [smem:[#allocation9 + $0x26]] }
  0x60   : > { %420 = vrot.lane.b32.xlu1 %v418_v19, %s5838_s30  ;;  %v778_v45 = vmul.f32 %v777_v43, %v6018_v1  ;;  %v640_v46 = vstv %s5024_s25  ;;  %s5029_s13 = sld [smem:[#allocation9 + $0x1b]] }
  0x61   : > { %v797_v47 = vstv %s5037_s1  ;;  %v641_v48 = vmul.f32 %v640_v46, %v6018_v1  ;;  %s5034_s25 = sld [smem:[#allocation9 + $0x1f]] }
  0x62   : > { %v798_v49 = vmul.f32 %v797_v47, %v6027_v10  ;;  %v650_v50 = vstv %s5025_s29  ;;  %s5036_s1 = sld [smem:[#allocation9 + $0x21]] }
  0x63   : > { %v817_v51 = vstv %s5039_s15  ;;  %v651_v52 = vmul.f32 %v650_v50, %v6018_v1  ;;  %s5038_s29 = sld [smem:[#allocation9 + $0x23]] }
  0x64   : > { %v818_v53 = vmul.f32 %v817_v51, %v6015_v0  ;;  %v670_v54 = vstv %s5027_s27  ;;  %s5040_s15 = sld [smem:[#allocation9 + $0x25]] }
  0x65   : > { %v837_v55 = vstv %s5041_s7  ;;  %v671_v56 = vmul.f32 %v670_v54, %v6015_v0  ;;  %s336_s27 = sld [smem:[#allocation9]] }
  0x66   : > { %496 = vrot.lane.b32.xlu2 %v494_v23, %s7762_s9  ;;  %v838_v57 = vmul.f32 %v837_v55, %v6015_v0  ;;  %v690_v58 = vstv %s5029_s13  ;;  %s5009_s7 = sld [smem:[#allocation9 + $0x9]] }
  0x67   : > { %506 = vrot.lane.b32.xlu0 %v504_v24, %s5835_s19  ;;  %v691_v59 = vmul.f32 %v690_v58, %v6015_v0  ;;  %v767_v60 = vstv %s5034_s25  ;;  %s5011_s13 = sld [smem:[#allocation9 + $0xa]] }
  0x68   : > { %663 = vrot.lane.b32.xlu1 %v661_v25, %s5836_s2  ;;  %v768_v62 = vmul.f32 %v767_v60, %v6018_v1  ;;  %v787_v63 = vstv %s5036_s1  ;;  %s5022_s25 = sld [smem:[#allocation9 + $0x14]] }
  0x69   : > { %v788_v3 = vmul.f32 %v787_v63, %v6018_v1  ;;  %v807_v4 = vstv %s5038_s29  ;;  %s6109_s1 = sld [smem:[#allocation9 + $0x13]] }
  0x6a   : > { %v808_v6 = vmul.f32 %v807_v4, %v6015_v0  ;;  %v827_v7 = vstv %s5040_s15  ;;  %s5031_s29 = sld [smem:[#allocation9 + $0x1d]]  ;;  %s7758_s15 = smov 19  }
  0x6b   : > { %v337_v11 = vstv %s336_s27  ;;  %v828_v14 = vmul.f32 %v827_v7, %v6015_v0  ;;  %s5033_s27 = sld [smem:[#allocation9 + $0x1e]] }
  0x6c   : > { %v338_v15 = vmul.f32 %v337_v11, %v6018_v1 }
  0x6e   : > { %516 = vrot.lane.b32.xlu2 %v514_v29, %s5833_s12 }
  0x6f   : > { %526 = vrot.lane.b32.xlu0 %v524_v30, %s5836_s2 }
  0x70   : > { %683 = vrot.lane.b32.xlu1 %v681_v31, %s7760_s26 }
  0x76   : > { %536 = vrot.lane.b32.xlu2 %v534_v35, %s5831_s8 }
  0x77   : > { %546 = vrot.lane.b32.xlu0 %v544_v36, %s7760_s26 }
  0x78   : > { %703 = vrot.lane.b32.xlu1 %v701_v37, %s5838_s30 }
  0x7e   : > { %556 = vrot.lane.b32.xlu2 %v554_v40, %s5837_s20 }
  0x7f   : > { %566 = vrot.lane.b32.xlu0 %v564_v41, %s5838_s30 }
  0x86   : > { %633 = vrot.lane.b32.xlu2 %v631_v44, %s7762_s9  ;;  %v428_v44 = vstv %s5009_s7  ;;  %s5042_s7 = sld [smem:[#allocation9 + $0x27]] }
  0x87   : > { %780 = vrot.lane.b32.xlu0 %v778_v45, %s5835_s19 }
  0x8e   : > { %643 = vrot.lane.b32.xlu2 %v641_v48, %s5835_s19  ;;  %v490_v48 = vstv %s5011_s13  ;;  %s5047_s13 = sld [smem:[#allocation9 + $0x2b]] }
  0x8f   : > { %800 = vrot.lane.b32.xlu0 %v798_v49, %s5836_s2 }
  0x96   : > { %653 = vrot.lane.b32.xlu2 %v651_v52, %s5833_s12  ;;  %v491_v52 = vmul.f32 %v490_v48, %v6018_v1 }
  0x97   : > { %820 = vrot.lane.b32.xlu0 %v818_v53, %s7760_s26 }
  0x9e   : > { %673 = vrot.lane.b32.xlu2 %v671_v56, %s5831_s8 }
  0x9f   : > { %840 = vrot.lane.b32.xlu0 %v838_v57, %s5838_s30 }
  0xa6   : > { %693 = vrot.lane.b32.xlu2 %v691_v59, %s5837_s20 }
  0xa8   : > { %v388_v61 = vpop.permute.xlu2 %387 }
  0xa9   : > { %v389_v27 = vrot.slane %v388_v61, 7 }
  0xab   : > { %v391_v34 = vsel %vm390_vm4, %v389_v27, %v388_v61 }
  0xae   : > { %770 = vrot.lane.b32.xlu2 %v768_v62, %s7762_s9 }
  0xb0   : > { %v399_v2 = vpop.permute.xlu2 %398 }
  0xb1   : > { %v400_v30 = vrot.slane %v399_v2, 7 }
  0xb3   : > { %v402_v39 = vsel %vm401_vm5, %v400_v30, %v399_v2 }
  0xb6   : > { %790 = vrot.lane.b32.xlu2 %v788_v3, %s5833_s12 }
  0xb8   : > { %v6084_v5 = vpop.permute.xlu2 %452 }
  0xbe   : > { %810 = vrot.lane.b32.xlu2 %v808_v6, %s5831_s8 }
  0xc0   : > { %v497_v8 = vpop.permute.xlu2 %496 }
  0xc1   : > { %v344_v9 = vpop.permute.xlu0 %343  ;;  %v498_v49 = vrot.slane %v497_v8, 1 }
  0xc2   : > { %v345_v12 = vrot.slane %v344_v9, 1  ;;  %v366_v13 = vpop.permute.xlu1 %365 }
  0xc3   : > { %v367_v17 = vrot.slane %v366_v13, 1  ;;  %v499_v54 = vsel %vm346_vm0, %v497_v8, %v498_v49 }
  0xc4   : > { %v347_v16 = vsel %vm346_vm0, %v344_v9, %v345_v12  ;;  %v501_v57 = vadd.f32 %v499_v54, %v491_v52 }
  0xc5   : > { %v349_v19 = vadd.f32 %v347_v16, %v338_v15  ;;  %v369_v24 = vsel %vm368_vm2, %v366_v13, %v367_v17 }
  0xc6   : > { %830 = vrot.lane.b32.xlu2 %v828_v14, %s5837_s20 }
  0xc8   : > { %v517_v18 = vpop.permute.xlu2 %516 }
  0xc9   : > { %v355_v20 = vpop.permute.xlu0 %354  ;;  %v518_v59 = vrot.slane %v517_v18, 1 }
  0xca   : > { %v356_v21 = vrot.slane %v355_v20, 1  ;;  %v377_v22 = vpop.permute.xlu1 %376 }
  0xcb   : > { %v378_v23 = vrot.slane %v377_v22, 7  ;;  %v519_v63 = vsel %vm368_vm2, %v517_v18, %v518_v59  ;;  %v627_v18 = vstv %s5022_s25  ;;  %s5049_s25 = sld [smem:[#allocation9 + $0x2d]] }
  0xcc   : > { %v358_v25 = vsel %vm357_vm1, %v355_v20, %v356_v21 }
  0xcd   : > { %v360_v26 = vadd.f32 %v358_v25, %v349_v19  ;;  %v380_v28 = vsel %vm379_vm3, %v378_v23, %v377_v22 }
  0xcf   : > { %v371_v29 = vadd.f32 %v369_v24, %v360_v26  ;;  %v628_v26 = vmul.f32 %v627_v18, %v6018_v1 }
  0xd0   : > { %v537_v31 = vpop.permute.xlu2 %536 }
  0xd1   : > { %v382_v32 = vadd.f32 %v380_v28, %v371_v29  ;;  %v410_v33 = vpop.permute.xlu0 %409  ;;  %v538_v6 = vrot.slane %v537_v31, 7 }
  0xd2   : > { %v411_v35 = vrot.slane %v410_v33, 7  ;;  %v421_v36 = vpop.permute.xlu1 %420 }
  0xd3   : > { %v393_v37 = vadd.f32 %v391_v34, %v382_v32  ;;  %v422_v38 = vrot.slane %v421_v36, 7  ;;  %v539_v13 = vsel %vm390_vm4, %v538_v6, %v537_v31 }
  0xd4   : > { %v413_v40 = vsel %vm412_vm6, %v411_v35, %v410_v33 }
  0xd5   : > { %v404_v41 = vadd.f32 %v402_v39, %v393_v37  ;;  %v424_v42 = vsel %vm423_vm7, %v422_v38, %v421_v36  ;;  %v573_v37 = vstv %s6109_s1  ;;  %s5045_s1 = sld [smem:[#allocation9 + $0x29]] }
  0xd7   : > { %v415_v43 = vadd.f32 %v413_v40, %v404_v41 }
  0xd8   : > { %v557_v45 = vpop.permute.xlu2 %556 }
  0xd9   : > { %v426_v46 = vadd.f32 %v424_v42, %v415_v43  ;;  %v507_v47 = vpop.permute.xlu0 %506  ;;  %v558_v15 = vrot.slane %v557_v45, 7  ;;  %v454_v42 = vrot.slane %v6084_v5, 7 }
  0xda   : > { %v508_v51 = vrot.slane %v507_v47, 1  ;;  %v664_v11 = vpop.permute.xlu1 %663 }
  0xdb   : > { %v6099_v50 = vadd.f32 %v428_v44, %v426_v46  ;;  %v559_v25 = vsel %vm412_vm6, %v558_v15, %v557_v45  ;;  %v665_v45 = vrot.slane %v664_v11, 7 }
  0xdc   : > { %v509_v55 = vsel %vm357_vm1, %v507_v47, %v508_v51 }
  0xdd   : > { %v5010_v53 = vmul.f32 -1.442695, %v6099_v50  ;;  %v511_v61 = vadd.f32 %v509_v55, %v501_v57  ;;  %v666_v57 = vsel %vm379_vm3, %v665_v45, %v664_v11 }
  0xdf   : > { %5460 = vpow2.f32 %v5010_v53  ;;  %v521_v4 = vadd.f32 %v519_v63, %v511_v61 }
  0xe0   : > { %v634_v56 = vpop.permute.xlu2 %633 }
  0xe1   : > { %v527_v58 = vpop.permute.xlu0 %526  ;;  %v635_v19 = vrot.slane %v634_v56, 1 }
  0xe2   : > { %v528_v60 = vrot.slane %v527_v58, 7  ;;  %v684_v35 = vpop.permute.xlu1 %683 }
  0xe3   : > { %v636_v29 = vsel %vm346_vm0, %v634_v56, %v635_v19  ;;  %v6125_v56 = vsel %vm379_vm3, %v454_v42, %v6084_v5 }
  0xe4   : > { %v529_v3 = vsel %vm379_vm3, %v528_v60, %v527_v58  ;;  %v638_v40 = vadd.f32 %v636_v29, %v628_v26  ;;  %v685_v60 = vrot.slane %v684_v35, 7 }
  0xe5   : > { %v5461_v62 = vpop.eup %5460  ;;  %v531_v8 = vadd.f32 %v529_v3, %v521_v4 }
  0xe6   : > { %v433_v2 = vadd.f32 1.0, %v5461_v62  ;;  %v686_v4 = vsel %vm401_vm5, %v685_v60, %v684_v35 }
  0xe7   : > { %v541_v16 = vadd.f32 %v539_v13, %v531_v8 }
  0xe8   : > { %5462 = vrcp.f32 %v433_v2  ;;  %v644_v7 = vpop.permute.xlu2 %643  ;;  %v445_v28 = vand.u32 2147483648, %v433_v2  ;;  %v443_v33 = vand.u32 2147483647, %v433_v2  ;;  %vm439_vm9 = vweird.f32 %v433_v2 }
  0xe9   : > { %v547_v9 = vpop.permute.xlu0 %546  ;;  %v645_v22 = vrot.slane %v644_v7, 1 }
  0xea   : > { %v548_v12 = vrot.slane %v547_v9, 7  ;;  %v446_v43 = vor.u32 1.1754944e-38, %v445_v28  ;;  %vm444_vm11 = vcmp.eq.f32.partialorder %v443_v33, 8.507059e+37 }
  0xeb   : > { %v646_v36 = vsel %vm357_vm1, %v644_v7, %v645_v22 }
  0xec   : > { %v549_v14 = vsel %vm401_vm5, %v548_v12, %v547_v9  ;;  %v648_v47 = vadd.f32 %v646_v36, %v638_v40 }
  0xed   : > { %v551_v21 = vadd.f32 %v549_v14, %v541_v16  ;;  %v710_v16 = vstv %s5031_s29  ;;  %s5051_s29 = sld [smem:[#allocation9 + $0x2f]] }
  0xee   : > { %v5463_v17 = vpop.eup %5462 }
  0xef   : > { %v435_v20 = vmul.f32 %v5463_v17, %v433_v2  ;;  %vm440_vm8 = vweird.f32 %v5463_v17  ;;  %v561_v34 = vadd.f32 %v559_v25, %v551_v21  ;;  %v704_v2 = vpop.permute.xlu1 %703  ;;  %v764_v25 = vstv %s5033_s27  ;;  %s5046_s27 = sld [smem:[#allocation9 + $0x2a]] }
  0xf0   : > { %v654_v23 = vpop.permute.xlu2 %653  ;;  %vm441_vm10 = vmor %vm439_vm9, %vm440_vm8  ;;  %v705_v7 = vrot.slane %v704_v2, 7  ;;  %v765_v29 = vmul.f32 %v764_v25, %v6018_v1 }
  0xf1   : > { %v436_v24 = vsub.f32 1.0, %v435_v20  ;;  %v567_v27 = vpop.permute.xlu0 %566  ;;  %v655_v31 = vrot.slane %v654_v23, 1 }
  0xf2   : > { %v568_v30 = vrot.slane %v567_v27, 7  ;;  %v706_v14 = vsel %vm423_vm7, %v705_v7, %v704_v2 }
  0xf3   : > { %v437_v32 = vmul.f32 %v5463_v17, %v436_v24  ;;  %v656_v44 = vsel %vm368_vm2, %v654_v23, %v655_v31 }
  0xf4   : > { %v569_v38 = vsel %vm423_vm7, %v568_v30, %v567_v27  ;;  %v658_v54 = vadd.f32 %v656_v44, %v648_v47 }
  0xf5   : > { %v438_v39 = vadd.f32 %v5463_v17, %v437_v32  ;;  %v571_v41 = vadd.f32 %v569_v38, %v561_v34 }
  0xf6   : > { %v668_v61 = vadd.f32 %v666_v57, %v658_v54 }
  0xf7   : > { %v442_v46 = vsel %vm441_vm10, %v5463_v17, %v438_v39  ;;  %v6119_v48 = vadd.f32 %v573_v37, %v571_v41 }
  0xf8   : > { %v447_v49 = vsel %vm444_vm11, %v446_v43, %v442_v46  ;;  %v674_v51 = vpop.permute.xlu2 %673 }
  0xf9   : > { %v449_v52 = vmul.f32 %v447_v49, %v6099_v50  ;;  %v5021_v53 = vmul.f32 -1.442695, %v6119_v48  ;;  %v675_v55 = vrot.slane %v674_v51, 7  ;;  %v781_v5 = vpop.permute.xlu0 %780 }
  0xfa   : > { %v782_v35 = vrot.slane %v781_v5, 1 }
  0xfb   : > { %v457_v58 = vmul.f32 %v6125_v56, %v449_v52  ;;  %5464 = vpow2.f32 %v5021_v53  ;;  %v676_v59 = vsel %vm390_vm4, %v675_v55, %v674_v51 }
  0xfc   : > { %v678_v3 = vadd.f32 %v676_v59, %v668_v61  ;;  %v783_v45 = vsel %vm357_vm1, %v781_v5, %v782_v35 }
  0xfd   : > { %v461_v62 = vperm.slane %v457_v58, 2  ;;  %v460_v63 = vperm.slane %v457_v58, 1  ;;  %v459_v50 = vperm.slane %v457_v58, 0  ;;  %v462_v17 = vperm.slane %v457_v58, 3 }
  0xfe   : > { %v688_v12 = vadd.f32 %v686_v4, %v678_v3 }
  0xff   : > { %467 = vrot.lane.b32.xlu2 %v461_v62, %s7758_s15  ;;  %465 = vrot.lane.b32.xlu1 %v460_v63, %s7758_s15 }
 0x100   : > { %463 = vrot.lane.b32.xlu0 %v459_v50, %s7758_s15  ;;  %v694_v6 = vpop.permute.xlu2 %693 }
 0x101   : > { %v5465_v8 = vpop.eup %5464  ;;  %v695_v9 = vrot.slane %v694_v6, 7  ;;  %v801_v21 = vpop.permute.xlu0 %800 }
 0x102   : > { %v578_v11 = vadd.f32 1.0, %v5465_v8  ;;  %v802_v51 = vrot.slane %v801_v21, 7 }
 0x103   : > { %v696_v13 = vsel %vm412_vm6, %v695_v9, %v694_v6 }
 0x104   : > { %5466 = vrcp.f32 %v578_v11  ;;  %v698_v15 = vadd.f32 %v696_v13, %v688_v12  ;;  %v590_v28 = vand.u32 2147483648, %v578_v11  ;;  %v588_v31 = vand.u32 2147483647, %v578_v11 }
 0x105   : > { %vm584_vm13 = vweird.f32 %v578_v11  ;;  %v803_v59 = vsel %vm379_vm3, %v802_v51, %v801_v21  ;;  %v847_v21 = vstv %s5042_s7  ;;  %s5048_s7 = sld [smem:[#allocation9 + $0x2c]] }
 0x106   : > { %v708_v18 = vadd.f32 %v706_v14, %v698_v15  ;;  %v591_v37 = vor.u32 1.1754944e-38, %v590_v28  ;;  %vm589_vm15 = vcmp.eq.f32.partialorder %v588_v31, 8.507059e+37 }
 0x108   : > { %469 = vrot.lane.b32.xlu0 %v462_v17, %s7758_s15  ;;  %v771_v19 = vpop.permute.xlu2 %770  ;;  %v6137_v20 = vadd.f32 %v710_v16, %v708_v18 }
 0x109   : > { %v772_v26 = vrot.slane %v771_v19, 1  ;;  %v821_v41 = vpop.permute.xlu0 %820 }
 0x10a   : > { %v5467_v22 = vpop.eup %5466  ;;  %v5032_v24 = vmul.f32 -1.442695, %v6137_v20  ;;  %v822_v61 = vrot.slane %v821_v41, 7 }
 0x10b   : > { %v580_v23 = vmul.f32 %v5467_v22, %v578_v11  ;;  %vm585_vm12 = vweird.f32 %v5467_v22  ;;  %v773_v32 = vsel %vm346_vm0, %v771_v19, %v772_v26 }
 0x10c   : > { %5468 = vpow2.f32 %v5032_v24  ;;  %vm586_vm14 = vmor %vm584_vm13, %vm585_vm12  ;;  %v775_v38 = vadd.f32 %v773_v32, %v765_v29  ;;  %v823_v4 = vsel %vm401_vm5, %v822_v61, %v821_v41  ;;  %v934_v61 = vstv %s5048_s7  ;;  %s5056_s7 = sld [smem:[#allocation9 + $0x33]] }
 0x10d   : > { %v581_v27 = vsub.f32 1.0, %v580_v23 }
 0x10e   : > { %v785_v47 = vadd.f32 %v783_v45, %v775_v38 }
 0x10f   : > { %v582_v30 = vmul.f32 %v5467_v22, %v581_v27 }
 0x110   : > { %v791_v33 = vpop.permute.xlu2 %790 }
 0x111   : > { %v583_v34 = vadd.f32 %v5467_v22, %v582_v30  ;;  %v792_v36 = vrot.slane %v791_v33, 1  ;;  %v841_v50 = vpop.permute.xlu0 %840 }
 0x112   : > { %v5469_v39 = vpop.eup %5468  ;;  %v842_v6 = vrot.slane %v841_v50, 7 }
 0x113   : > { %v587_v40 = vsel %vm586_vm14, %v5467_v22, %v583_v34  ;;  %v715_v43 = vadd.f32 1.0, %v5469_v39  ;;  %v793_v46 = vsel %vm368_vm2, %v791_v33, %v792_v36 }
 0x114   : > { %v592_v42 = vsel %vm589_vm15, %v591_v37, %v587_v40  ;;  %v795_v52 = vadd.f32 %v793_v46, %v785_v47  ;;  %v843_v19 = vsel %vm423_vm7, %v842_v6, %v841_v50 }
 0x115   : > { %v594_v44 = vmul.f32 %v592_v42, %v6119_v48  ;;  %5470 = vrcp.f32 %v715_v43  ;;  %v727_v5 = vand.u32 2147483648, %v715_v43  ;;  %v725_v9 = vand.u32 2147483647, %v715_v43 }
 0x116   : > { %v805_v62 = vadd.f32 %v803_v59, %v795_v52  ;;  %vm721_vm9 = vweird.f32 %v715_v43  ;;  %v914_v59 = vstv %s5046_s27  ;;  %s5057_s27 = sld [smem:[#allocation9 + $0x34]] }
 0x117   : > { %v596_v49 = vmul.f32 %v594_v44, %v6125_v56  ;;  %v728_v16 = vor.u32 1.1754944e-38, %v727_v5  ;;  %vm726_vm11 = vcmp.eq.f32.partialorder %v725_v9, 8.507059e+37 }
 0x118   : > { %v811_v53 = vpop.permute.xlu2 %810 }
 0x119   : > { %v812_v54 = vrot.slane %v811_v53, 7  ;;  %v601_v55 = vperm.slane %v596_v49, 3  ;;  %v599_v57 = vperm.slane %v596_v49, 1  ;;  %v598_v58 = vperm.slane %v596_v49, 0 }
 0x11a   : > { %v600_v13 = vperm.slane %v596_v49, 2  ;;  %v924_v49 = vstv %s5047_s13  ;;  %s5050_s13 = sld [smem:[#allocation9 + $0x2e]] }
 0x11b   : > { %v813_v60 = vsel %vm390_vm4, %v812_v54, %v811_v53  ;;  %608 = vrot.lane.b32.xlu1 %v601_v55, %s7758_s15  ;;  %604 = vrot.lane.b32.xlu0 %v599_v57, %s7758_s15  ;;  %v5471_v48 = vpop.eup %5470  ;;  %v925_v51 = vmul.f32 %v924_v49, %v6018_v1  ;;  %v944_v53 = vstv %s5049_s25  ;;  %v904_v54 = vstv %s5045_s1  ;;  %s5052_s25 = sld [smem:[#allocation9 + $0x30]] }
 0x11c   : > { %602 = vrot.lane.b32.xlu2 %v598_v58, %s7758_s15  ;;  %v717_v63 = vmul.f32 %v5471_v48, %v715_v43  ;;  %v815_v2 = vadd.f32 %v813_v60, %v805_v62  ;;  %vm722_vm8 = vweird.f32 %v5471_v48  ;;  %v945_v55 = vmul.f32 %v944_v53, %v6015_v0  ;;  %s5044_s1 = sld [smem:[#allocation9 + $0x28]] }
 0x11d   : > { %vm723_vm10 = vmor %vm721_vm9, %vm722_vm8  ;;  %v905_v57 = vmul.f32 %v904_v54, %v6018_v1  ;;  %v964_v58 = vstv %s5051_s29  ;;  %v935_v62 = vmul.f32 %v934_v61, %v6027_v10  ;;  %s5053_s29 = sld [smem:[#allocation9 + $0x31]] }
 0x11e   : > { %v718_v3 = vsub.f32 1.0, %v717_v63  ;;  %v825_v12 = vadd.f32 %v823_v4, %v815_v2  ;;  %v965_v60 = vmul.f32 %v964_v58, %v6015_v0 }
 0x120   : > { %v831_v7 = vpop.permute.xlu2 %830  ;;  %v719_v8 = vmul.f32 %v5471_v48, %v718_v3  ;;  %v954_v63 = vstv %s5050_s13  ;;  %s5059_s13 = sld [smem:[#allocation9 + $0x36]] }
 0x121   : > { %v832_v11 = vrot.slane %v831_v7, 7  ;;  %v955_v50 = vmul.f32 %v954_v63, %v6015_v0  ;;  %v974_v2 = vstv %s5052_s25  ;;  %s5058_s25 = sld [smem:[#allocation9 + $0x35]] }
 0x122   : > { %v720_v14 = vadd.f32 %v5471_v48, %v719_v8  ;;  %v975_v3 = vmul.f32 %v974_v2, %v6015_v0 }
 0x123   : > { %v833_v15 = vsel %vm412_vm6, %v832_v11, %v831_v7 }
 0x124   : > { %v835_v17 = vadd.f32 %v833_v15, %v825_v12  ;;  %606 = vrot.lane.b32.xlu2 %v600_v13, %s7758_s15  ;;  %v724_v18 = vsel %vm723_vm10, %v5471_v48, %v720_v14  ;;  %v915_v48 = vmul.f32 %v914_v59, %v6018_v1 }
 0x125   : > { %v729_v22 = vsel %vm726_vm11, %v728_v16, %v724_v18  ;;  %v901_v16 = vstv %s5044_s1  ;;  %s5061_s1 = sld [smem:[#allocation9 + $0x38]] }
 0x126   : > { %v845_v23 = vadd.f32 %v843_v19, %v835_v17  ;;  %v731_v24 = vmul.f32 %v729_v22, %v6137_v20  ;;  %v902_v19 = vmul.f32 %v901_v16, %v6018_v1  ;;  %v1051_v16 = vstv %s5057_s27  ;;  %s5063_s27 = sld [smem:[#allocation9 + $0x3a]] }
 0x128   : > { %v848_v25 = vadd.f32 %v847_v21, %v845_v23  ;;  %v733_v26 = vmul.f32 %v731_v24, %v6125_v56 }
 0x12a   : > { %v5043_v27 = vmul.f32 -1.442695, %v848_v25  ;;  %v737_v28 = vperm.slane %v733_v26, 2  ;;  %v736_v29 = vperm.slane %v733_v26, 1  ;;  %v735_v30 = vperm.slane %v733_v26, 0 }
 0x12b   : > { %v738_v33 = vperm.slane %v733_v26, 3 }
 0x12c   : > { %5472 = vpow2.f32 %v5043_v27  ;;  %743 = vrot.lane.b32.xlu1 %v737_v28, %s7758_s15  ;;  %741 = vrot.lane.b32.xlu0 %v736_v29, %s7758_s15 }
 0x12d   : > { %739 = vrot.lane.b32.xlu2 %v735_v30, %s7758_s15 }
 0x132   : > { %v5473_v31 = vpop.eup %5472 }
 0x133   : > { %v852_v32 = vadd.f32 1.0, %v5473_v31 }
 0x135   : > { %5474 = vrcp.f32 %v852_v32  ;;  %745 = vrot.lane.b32.xlu2 %v738_v33, %s7758_s15  ;;  %v864_v36 = vand.u32 2147483648, %v852_v32  ;;  %v862_v38 = vand.u32 2147483647, %v852_v32  ;;  %vm858_vm13 = vweird.f32 %v852_v32 }
 0x137   : > { %v865_v40 = vor.u32 1.1754944e-38, %v864_v36  ;;  %vm863_vm15 = vcmp.eq.f32.partialorder %v862_v38, 8.507059e+37 }
 0x13b   : > { %v5475_v20 = vpop.eup %5474 }
 0x13c   : > { %v854_v34 = vmul.f32 %v5475_v20, %v852_v32  ;;  %vm859_vm12 = vweird.f32 %v5475_v20 }
 0x13d   : > { %vm860_vm14 = vmor %vm858_vm13, %vm859_vm12 }
 0x13e   : > { %v855_v35 = vsub.f32 1.0, %v854_v34 }
 0x140   : > { %v856_v37 = vmul.f32 %v5475_v20, %v855_v35 }
 0x142   : > { %v857_v39 = vadd.f32 %v5475_v20, %v856_v37 }
 0x144   : > { %v861_v41 = vsel %vm860_vm14, %v5475_v20, %v857_v39 }
 0x145   : > { %v866_v42 = vsel %vm863_vm15, %v865_v40, %v861_v41 }
 0x146   : > { %v868_v43 = vmul.f32 %v866_v42, %v848_v25 }
 0x148   : > { %v870_v44 = vmul.f32 %v868_v43, %v6125_v56 }
 0x14a   : > { %v874_v45 = vperm.slane %v870_v44, 2  ;;  %v873_v46 = vperm.slane %v870_v44, 1  ;;  %v872_v47 = vperm.slane %v870_v44, 0  ;;  %v875_v52 = vperm.slane %v870_v44, 3 }
 0x14c   : > { %880 = vrot.lane.b32.xlu0 %v874_v45, %s7758_s15  ;;  %878 = vrot.lane.b32.xlu1 %v873_v46, %s7758_s15  ;;  %v984_v45 = vstv %s5053_s29  ;;  %s5060_s29 = sld [smem:[#allocation9 + $0x37]] }
 0x14d   : > { %876 = vrot.lane.b32.xlu2 %v872_v47, %s7758_s15 }
 0x154   : > { %927 = vrot.lane.b32.xlu1 %v925_v51, %s5833_s12 }
 0x155   : > { %882 = vrot.lane.b32.xlu2 %v875_v52, %s7758_s15 }
 0x159   : > { %v6181_v5 = vpop.permute.xlu2 %467 }
 0x15c   : > { %947 = vrot.lane.b32.xlu1 %v945_v55, %s5831_s8 }
 0x15d   : > { %907 = vrot.lane.b32.xlu2 %v905_v57, %s7762_s9 }
 0x164   : > { %967 = vrot.lane.b32.xlu1 %v965_v60, %s5837_s20 }
 0x165   : > { %917 = vrot.lane.b32.xlu2 %v915_v48, %s5835_s19 }
 0x16d   : > { %937 = vrot.lane.b32.xlu2 %v935_v62, %s5836_s2 }
 0x171   : > { %v6192_v8 = vpop.permute.xlu1 %465 }
 0x175   : > { %957 = vrot.lane.b32.xlu2 %v955_v50, %s7760_s26 }
 0x176   : > { %v6184_v4 = vpop.permute.xlu2 %602 }
 0x17d   : > { %977 = vrot.lane.b32.xlu2 %v975_v3, %s5838_s30 }
 0x17e   : > { %v6186_v6 = vpop.permute.xlu2 %606 }
 0x187   : > { %v6188_v10 = vpop.permute.xlu2 %739 }
 0x18d   : > { %v6196_v11 = vpop.permute.xlu1 %608 }
 0x18f   : > { %v6190_v7 = vpop.permute.xlu2 %745 }
 0x19e   : > { %v6200_v0 = vpop.permute.xlu1 %743 }
 0x1a7   : > { %v6194_v9 = vpop.permute.xlu2 %876 }
 0x1af   : > { %v6198_v12 = vpop.permute.xlu2 %882 }
 0x1b7   : > { %v908_v13 = vpop.permute.xlu2 %907 }
 0x1b8   : > { %v909_v17 = vrot.slane %v908_v13, 1 }
 0x1ba   : > { %v910_v22 = vsel %vm346_vm0, %v908_v13, %v909_v17  ;;  %v1041_v17 = vstv %s5056_s7  ;;  %s5062_s7 = sld [smem:[#allocation9 + $0x39]] }
 0x1bb   : > { %v912_v26 = vadd.f32 %v910_v22, %v902_v19  ;;  %v1071_v22 = vstv %s5059_s13  ;;  %s5055_s13 = sld [smem:[#allocation9 + $0x32]] }
 0x1be   : > { %v6202_v14 = vpop.permute.xlu1 %878 }
 0x1bf   : > { %v918_v15 = vpop.permute.xlu2 %917 }
 0x1c0   : > { %v919_v18 = vrot.slane %v918_v15, 1 }
 0x1c2   : > { %v920_v25 = vsel %vm357_vm1, %v918_v15, %v919_v18  ;;  %v6218_v18 = vld [vmem:[%s5992_s18] sm:$0xf] }
 0x1c3   : > { %v922_v28 = vadd.f32 %v920_v25, %v912_v26  ;;  %v1052_v19 = vmul.f32 %v6218_v18, %v1051_v16 }
 0x1c6   : > { %v928_v21 = vpop.permute.xlu1 %927 }
 0x1c7   : > { %v929_v23 = vrot.slane %v928_v21, 1  ;;  %v938_v24 = vpop.permute.xlu2 %937 }
 0x1c8   : > { %v939_v29 = vrot.slane %v938_v24, 7 }
 0x1c9   : > { %v930_v27 = vsel %vm368_vm2, %v928_v21, %v929_v23  ;;  %v1042_v21 = vmul.f32 %v6218_v18, %v1041_v17  ;;  %v1061_v23 = vstv %s5058_s25  ;;  %s5064_s25 = sld [smem:[#allocation9 + $0x3b]] }
 0x1ca   : > { %v932_v30 = vadd.f32 %v930_v27, %v922_v28  ;;  %v940_v20 = vsel %vm379_vm3, %v939_v29, %v938_v24  ;;  %v6225_v24 = vld [vmem:[%s5992_s18 + $0x1] sm:$0x7]  ;;  %v1062_v26 = vmul.f32 %v6218_v18, %v1061_v23  ;;  %v1091_v27 = vstv %s5061_s1  ;;  %s5067_s1 = sld [smem:[#allocation9 + $0x3d]] }
 0x1cb   : > { %v1072_v25 = vmul.f32 %v6225_v24, %v1071_v22  ;;  %v1081_v28 = vstv %s5060_s29  ;;  %v6232_v29 = vld [vmem:[%s5992_s18 + $0x1] sm:$0xf]  ;;  %s5069_s29 = sld [smem:[#allocation9 + $0x3f]] }
 0x1cc   : > { %v942_v34 = vadd.f32 %v940_v20, %v932_v30  ;;  %v1092_v30 = vmul.f32 %v6232_v29, %v1091_v27 }
 0x1ce   : > { %v948_v31 = vpop.permute.xlu1 %947 }
 0x1cf   : > { %v949_v32 = vrot.slane %v948_v31, 7  ;;  %v958_v33 = vpop.permute.xlu2 %957  ;;  %v1121_v27 = vstv %s5064_s25  ;;  %s5073_s25 = sld [smem:[#allocation9 + $0x43]] }
 0x1d0   : > { %v959_v35 = vrot.slane %v958_v33, 7 }
 0x1d1   : > { %v950_v1 = vsel %vm390_vm4, %v949_v32, %v948_v31  ;;  %v1082_v31 = vmul.f32 %v6232_v29, %v1081_v28  ;;  %v1111_v32 = vstv %s5063_s27  ;;  %s5068_s27 = sld [smem:[#allocation9 + $0x3e]] }
 0x1d2   : > { %v952_v36 = vadd.f32 %v950_v1, %v942_v34  ;;  %v960_v38 = vsel %vm401_vm5, %v959_v35, %v958_v33  ;;  %v1101_v33 = vstv %s5062_s7  ;;  %v1112_v20 = vmul.f32 %v6232_v29, %v1111_v32  ;;  %v6243_v35 = vpop.permute.xlu0 %463  ;;  %s5071_s7 = sld [smem:[#allocation9 + $0x41]] }
 0x1d3   : > { %v1102_v1 = vmul.f32 %v6232_v29, %v1101_v33 }
 0x1d4   : > { %v962_v41 = vadd.f32 %v960_v38, %v952_v36 }
 0x1d6   : > { %v968_v37 = vpop.permute.xlu1 %967 }
 0x1d7   : > { %v969_v39 = vrot.slane %v968_v37, 7  ;;  %v978_v40 = vpop.permute.xlu2 %977 }
 0x1d8   : > { %v979_v42 = vrot.slane %v978_v40, 7 }
 0x1d9   : > { %v970_v43 = vsel %vm412_vm6, %v969_v39, %v968_v37 }
 0x1da   : > { %v972_v44 = vadd.f32 %v970_v43, %v962_v41  ;;  %v980_v46 = vsel %vm423_vm7, %v979_v42, %v978_v40  ;;  %v6245_v36 = vpop.permute.xlu0 %469 }
 0x1dc   : > { %v982_v47 = vadd.f32 %v980_v46, %v972_v44  ;;  %v1038_v44 = vstv %s5055_s13  ;;  %s5070_s13 = sld [smem:[#allocation9 + $0x40]] }
 0x1dd   : > { %v1039_v46 = vmul.f32 %v6218_v18, %v1038_v44 }
 0x1de   : > { %v985_v49 = vadd.f32 %v984_v45, %v982_v47 }
 0x1e0   : > { %v5054_v51 = vmul.f32 -1.442695, %v985_v49 }
 0x1e2   : > { %5476 = vpow2.f32 %v5054_v51  ;;  %v6247_v37 = vpop.permute.xlu0 %604 }
 0x1e8   : > { %v5477_v52 = vpop.eup %5476 }
 0x1e9   : > { %v989_v53 = vadd.f32 1.0, %v5477_v52 }
 0x1ea   : > { %v6249_v38 = vpop.permute.xlu0 %741 }
 0x1eb   : > { %5478 = vrcp.f32 %v989_v53  ;;  %v1001_v58 = vand.u32 2147483648, %v989_v53  ;;  %v999_v60 = vand.u32 2147483647, %v989_v53  ;;  %vm995_vm9 = vweird.f32 %v989_v53 }
 0x1ed   : > { %v1002_v61 = vor.u32 1.1754944e-38, %v1001_v58  ;;  %vm1000_vm11 = vcmp.eq.f32.partialorder %v999_v60, 8.507059e+37 }
 0x1f1   : > { %v5479_v54 = vpop.eup %5478 }
 0x1f2   : > { %v991_v55 = vmul.f32 %v5479_v54, %v989_v53  ;;  %vm996_vm8 = vweird.f32 %v5479_v54  ;;  %v6251_v39 = vpop.permute.xlu0 %880 }
 0x1f3   : > { %vm997_vm10 = vmor %vm995_vm9, %vm996_vm8  ;;  %vm471_vm8 = vcmask 154624   ;;  %vm478_vm9 = vcmask 1040384  }
 0x1f4   : > { %v992_v57 = vsub.f32 1.0, %v991_v55 }
 0x1f6   : > { %v993_v59 = vmul.f32 %v5479_v54, %v992_v57 }
 0x1f8   : > { %v994_v48 = vadd.f32 %v5479_v54, %v993_v59 }
 0x1fa   : > { %v998_v62 = vsel %vm997_vm10, %v5479_v54, %v994_v48  ;;  %vm330_vm10 = vcmask 253952  }
 0x1fb   : > { %v1003_v63 = vsel %vm1000_vm11, %v1002_v61, %v998_v62  ;;  %vm487_vm11 = vcmask 0  }
 0x1fc   : > { %v1005_v50 = vmul.f32 %v1003_v63, %v985_v49 }
 0x1fe   : > { %v1007_v2 = vmul.f32 %v1005_v50, %v6125_v56 }
 0x200   : > { %v1011_v3 = vperm.slane %v1007_v2, 2  ;;  %v1010_v13 = vperm.slane %v1007_v2, 1  ;;  %v1009_v15 = vperm.slane %v1007_v2, 0  ;;  %v1012_v34 = vperm.slane %v1007_v2, 3 }
 0x202   : > { %1017 = vrot.lane.b32.xlu2 %v1011_v3, %s7758_s15  ;;  %1015 = vrot.lane.b32.xlu0 %v1010_v13, %s7758_s15 }
 0x203   : > { %1013 = vrot.lane.b32.xlu1 %v1009_v15, %s7758_s15 }
 0x20a   : > { %1054 = vrot.lane.b32.xlu0 %v1052_v19, %s5835_s19 }
 0x20b   : > { %1044 = vrot.lane.b32.xlu1 %v1042_v21, %s7762_s9 }
 0x212   : > { %1074 = vrot.lane.b32.xlu0 %v1072_v25, %s5836_s2 }
 0x213   : > { %1064 = vrot.lane.b32.xlu1 %v1062_v26, %s5833_s12 }
 0x21a   : > { %1094 = vrot.lane.b32.xlu0 %v1092_v30, %s7760_s26 }
 0x21b   : > { %1084 = vrot.lane.b32.xlu1 %v1082_v31, %s5831_s8 }
 0x222   : > { %1114 = vrot.lane.b32.xlu0 %v1112_v20, %s5838_s30 }
 0x223   : > { %1104 = vrot.lane.b32.xlu1 %v1102_v1, %s5837_s20 }
 0x22b   : > { %1019 = vrot.lane.b32.xlu1 %v1012_v34, %s7758_s15 }
 0x274   : > { %v6253_v40 = vpop.permute.xlu0 %1015 }
 0x275   : > { %v6255_v41 = vpop.permute.xlu1 %1013 }
 0x27c   : > { %v1055_v42 = vpop.permute.xlu0 %1054 }
 0x27d   : > { %v1045_v43 = vpop.permute.xlu1 %1044  ;;  %v1056_v52 = vrot.slane %v1055_v42, 1 }
 0x27e   : > { %v1046_v45 = vrot.slane %v1045_v43, 1 }
 0x27f   : > { %v1057_v55 = vsel %vm357_vm1, %v1055_v42, %v1056_v52 }
 0x280   : > { %v1047_v47 = vsel %vm346_vm0, %v1045_v43, %v1046_v45 }
 0x281   : > { %v1049_v54 = vadd.f32 %v1047_v47, %v1039_v46 }
 0x283   : > { %v1059_v58 = vadd.f32 %v1057_v55, %v1049_v54 }
 0x284   : > { %v1075_v49 = vpop.permute.xlu0 %1074 }
 0x285   : > { %v1065_v51 = vpop.permute.xlu1 %1064  ;;  %v1076_v59 = vrot.slane %v1075_v49, 7 }
 0x286   : > { %v1066_v53 = vrot.slane %v1065_v51, 1 }
 0x287   : > { %v1077_v63 = vsel %vm379_vm3, %v1076_v59, %v1075_v49  ;;  %v611_v59 = vsel %vm471_vm8, %v6247_v37, %v6186_v6 }
 0x288   : > { %v1067_v57 = vsel %vm368_vm2, %v1065_v51, %v1066_v53 }
 0x289   : > { %v1069_v48 = vadd.f32 %v1067_v57, %v1059_v58  ;;  %v610_v58 = vsel %vm471_vm8, %v6184_v4, %v6247_v37  ;;  %v617_v4 = vsel %vm478_vm9, %v611_v59, 0.0 }
 0x28b   : > { %v1079_v2 = vadd.f32 %v1077_v63, %v1069_v48 }
 0x28c   : > { %v1095_v60 = vpop.permute.xlu0 %1094 }
 0x28d   : > { %v1085_v61 = vpop.permute.xlu1 %1084  ;;  %v1096_v3 = vrot.slane %v1095_v60, 7 }
 0x28e   : > { %v1086_v62 = vrot.slane %v1085_v61, 7 }
 0x28f   : > { %v1097_v17 = vsel %vm401_vm5, %v1096_v3, %v1095_v60  ;;  %v1018_v60 = vpop.permute.xlu2 %1017  ;;  %v612_v3 = vsel %vm471_vm8, %v6186_v6, %v6196_v11  ;;  %v473_v6 = vsel %vm471_vm8, %v6192_v8, %v6181_v5  ;;  %v472_v11 = vsel %vm471_vm8, %v6243_v35, %v6192_v8 }
 0x290   : > { %v1087_v50 = vsel %vm390_vm4, %v1086_v62, %v1085_v61  ;;  %v1022_v61 = vsel %vm471_vm8, %v6253_v40, %v1018_v60  ;;  %v1021_v62 = vsel %vm471_vm8, %v6255_v41, %v6253_v40  ;;  %v884_v40 = vsel %vm471_vm8, %v6194_v9, %v6202_v14 }
 0x291   : > { %v1089_v13 = vadd.f32 %v1087_v50, %v1079_v2  ;;  %v616_v50 = vsel %vm478_vm9, %v610_v58, 0.0  ;;  %v1027_v2 = vsel %vm478_vm9, %v1021_v62, 0.0  ;;  %v1028_v37 = vsel %vm478_vm9, %v1022_v61, 0.0 }
 0x292   : > { %v885_v41 = vsel %vm471_vm8, %v6202_v14, %v6251_v39  ;;  %v474_v14 = vsel %vm471_vm8, %v6181_v5, %v6245_v36  ;;  %v747_v35 = vsel %vm471_vm8, %v6188_v10, %v6249_v38 }
 0x293   : > { %v1099_v22 = vadd.f32 %v1097_v17, %v1089_v13  ;;  %v891_v9 = vsel %vm478_vm9, %v885_v41, 0.0  ;;  %v482_v8 = vsel %vm478_vm9, %v474_v14, 0.0 }
 0x294   : > { %v1115_v15 = vpop.permute.xlu0 %1114 }
 0x295   : > { %v1105_v16 = vpop.permute.xlu1 %1104  ;;  %v1116_v19 = vrot.slane %v1115_v15, 7 }
 0x296   : > { %v1106_v21 = vrot.slane %v1105_v16, 7 }
 0x297   : > { %v1117_v26 = vsel %vm423_vm7, %v1116_v19, %v1115_v15  ;;  %v618_v15 = vadd.f32 %v617_v4, %v616_v50  ;;  %v619_v19 = vsel %vm478_vm9, %v612_v3, 0.0 }
 0x298   : > { %v1107_v23 = vsel %vm412_vm6, %v1106_v21, %v1105_v16  ;;  %v1029_v16 = vadd.f32 %v1028_v37, %v1027_v2  ;;  %v5840_v37 = vmov 0.0  }
 0x299   : > { %v1109_v25 = vadd.f32 %v1107_v23, %v1099_v22  ;;  %v620_v21 = vadd.f32 %v619_v19, %v618_v15  ;;  %v890_v22 = vsel %vm478_vm9, %v884_v40, 0.0  ;;  %v479_v23 = vsel %vm478_vm9, %v472_v11, 0.0  ;;  %331 = vst.msk [vmem:[#allocation2] sm:$0x1] %vm330_vm10, %v5840_v37 }
 0x29a   : > { %vm1172_vm10 = vcmask 41000  }
 0x29b   : > { %v1119_v28 = vadd.f32 %v1117_v26, %v1109_v25  ;;  %v886_v25 = vsel %vm471_vm8, %v6251_v39, %v6198_v12  ;;  %v892_v26 = vadd.f32 %v891_v9, %v890_v22  ;;  %v753_v12 = vsel %vm478_vm9, %v747_v35, 0.0 }
 0x29c   : > { %v893_v5 = vsel %vm478_vm9, %v886_v25, 0.0 }
 0x29d   : > { %v1122_v30 = vadd.f32 %v1121_v27, %v1119_v28  ;;  %v1020_v48 = vpop.permute.xlu1 %1019  ;;  %v480_v27 = vsel %vm478_vm9, %v473_v6, 0.0  ;;  %v748_v28 = vsel %vm471_vm8, %v6249_v38, %v6200_v0  ;;  %v1178_v38 = vstv %s5067_s1  ;;  %s5072_s1 = sld [smem:[#allocation9 + $0x42]] }
 0x29e   : > { %v1023_v63 = vsel %vm471_vm8, %v1018_v60, %v1020_v48  ;;  %v481_v36 = vadd.f32 %v480_v27, %v479_v23  ;;  %v754_v39 = vsel %vm478_vm9, %v748_v28, 0.0 }
 0x29f   : > { %v5065_v31 = vmul.f32 -1.442695, %v1122_v30  ;;  %v1030_v13 = vsel %vm478_vm9, %v1023_v63, 0.0  ;;  %v755_v10 = vadd.f32 %v754_v39, %v753_v12 }
 0x2a0   : > { %v1031_v17 = vadd.f32 %v1030_v13, %v1029_v16  ;;  %v450_v3 = vld [vmem:[#allocation2] sm:$0x1] }
 0x2a1   : > { %5480 = vpow2.f32 %v5065_v31  ;;  %v483_v31 = vadd.f32 %v482_v8, %v481_v36 }
 0x2a7   : > { %v5481_v32 = vpop.eup %5480 }
 0x2a8   : > { %v1126_v33 = vadd.f32 1.0, %v5481_v32  ;;  %v749_v32 = vsel %vm471_vm8, %v6200_v0, %v6190_v7  ;;  %v1218_v0 = vstv %s5071_s7  ;;  %s5075_s7 = sld [smem:[#allocation9 + $0x45]] }
 0x2aa   : > { %5482 = vrcp.f32 %v1126_v33  ;;  %v1138_v42 = vand.u32 2147483648, %v1126_v33  ;;  %v1136_v44 = vand.u32 2147483647, %v1126_v33  ;;  %vm1132_vm13 = vweird.f32 %v1126_v33 }
 0x2ac   : > { %v1139_v46 = vor.u32 1.1754944e-38, %v1138_v42  ;;  %vm1137_vm15 = vcmp.eq.f32.partialorder %v1136_v44, 8.507059e+37  ;;  %v1219_v44 = vmul.f32 %v6232_v29, %v1218_v0 }
 0x2b0   : > { %v5483_v20 = vpop.eup %5482 }
 0x2b1   : > { %v1128_v1 = vmul.f32 %v5483_v20, %v1126_v33  ;;  %vm1133_vm12 = vweird.f32 %v5483_v20  ;;  %v756_v33 = vsel %vm478_vm9, %v749_v32, 0.0 }
 0x2b2   : > { %vm1134_vm14 = vmor %vm1132_vm13, %vm1133_vm12  ;;  %vm624_vm12 = vcmask 8200   ;;  %vm761_vm13 = vcmask 16400  }
 0x2b3   : > { %v1129_v34 = vsub.f32 1.0, %v1128_v1  ;;  %v1179_v1 = vmul.f32 %v6218_v18, %v1178_v38 }
 0x2b5   : > { %v1130_v43 = vmul.f32 %v5483_v20, %v1129_v34  ;;  %v1198_v34 = vstv %s5069_s29  ;;  %s5074_s29 = sld [smem:[#allocation9 + $0x44]] }
 0x2b6   : > { %v1199_v42 = vmul.f32 %v6218_v18, %v1198_v34 }
 0x2b7   : > { %v1131_v45 = vadd.f32 %v5483_v20, %v1130_v43  ;;  %v1188_v43 = vstv %s5068_s27  ;;  %s5066_s27 = sld [smem:[#allocation9 + $0x3c]] }
 0x2b8   : > { %v1189_v7 = vmul.f32 %v6218_v18, %v1188_v43 }
 0x2b9   : > { %v1135_v47 = vsel %vm1134_vm14, %v5483_v20, %v1131_v45  ;;  %v757_v20 = vadd.f32 %v756_v33, %v755_v10  ;;  %v1208_v45 = vstv %s5070_s13  ;;  %vm898_vm14 = vcmask 24600   ;;  %s5080_s13 = sld [smem:[#allocation9 + $0x49]] }
 0x2ba   : > { %v1140_v49 = vsel %vm1137_vm15, %v1139_v46, %v1135_v47  ;;  %v1209_v46 = vmul.f32 %v6225_v24, %v1208_v45  ;;  %v1238_v47 = vstv %s5073_s25  ;;  %vm1035_vm15 = vcmask 32800   ;;  %s5082_s25 = sld [smem:[#allocation9 + $0x4b]] }
 0x2bb   : > { %v1142_v51 = vmul.f32 %v1140_v49, %v1122_v30  ;;  %v894_v30 = vadd.f32 %v893_v5, %v892_v26  ;;  %v1239_v49 = vmul.f32 %v6232_v29, %v1238_v47 }
 0x2bd   : > { %v1144_v52 = vmul.f32 %v1142_v51, %v6125_v56  ;;  %v1228_v51 = vstv %s5072_s1  ;;  %v1175_v8 = vstv %s5066_s27  ;;  %s5078_s1 = sld [smem:[#allocation9 + $0x47]] }
 0x2be   : > { %v1176_v5 = vmul.f32 %v6218_v18, %v1175_v8  ;;  %s5079_s27 = sld [smem:[#allocation9 + $0x48]] }
 0x2bf   : > { %v1148_v53 = vperm.slane %v1144_v52, 2  ;;  %v1147_v54 = vperm.slane %v1144_v52, 1  ;;  %v1146_v55 = vperm.slane %v1144_v52, 0  ;;  %v1149_v57 = vperm.slane %v1144_v52, 3 }
 0x2c0   : > { %v1229_v52 = vmul.f32 %v6232_v29, %v1228_v51 }
 0x2c1   : > { %1154 = vrot.lane.b32.xlu0 %v1148_v53, %s7758_s15  ;;  %1152 = vrot.lane.b32.xlu2 %v1147_v54, %s7758_s15  ;;  %v1248_v53 = vstv %s5074_s29  ;;  %s5084_s29 = sld [smem:[#allocation9 + $0x4d]] }
 0x2c2   : > { %1150 = vrot.lane.b32.xlu1 %v1146_v55, %s7758_s15  ;;  %v1249_v54 = vmul.f32 %v6232_v29, %v1248_v53 }
 0x2ca   : > { %1156 = vrot.lane.b32.xlu1 %v1149_v57, %s7758_s15 }
 0x2ea   : > { %1032 = vadd.xlane.f32.xlu2 %v1031_v17 }
 0x2eb   : > { %621 = vadd.xlane.f32.xlu0 %v620_v21 }
 0x2f3   : > { %895 = vadd.xlane.f32.xlu0 %v894_v30 }
 0x2f4   : > { %484 = vadd.xlane.f32.xlu1 %v483_v31 }
 0x2fc   : > { %758 = vadd.xlane.f32.xlu1 %v757_v20 }
 0x302   : > { %1201 = vrot.lane.b32.xlu2 %v1199_v42, %s5833_s12 }
 0x30a   : > { %1221 = vrot.lane.b32.xlu2 %v1219_v44, %s5831_s8 }
 0x312   : > { %1241 = vrot.lane.b32.xlu2 %v1239_v49, %s5837_s20 }
 0x315   : > { %1181 = vrot.lane.b32.xlu1 %v1179_v1, %s7762_s9 }
 0x31b   : > { %v1153_v58 = vpop.permute.xlu2 %1152 }
 0x31d   : > { %1191 = vrot.lane.b32.xlu1 %v1189_v7, %s5835_s19 }
 0x325   : > { %1211 = vrot.lane.b32.xlu1 %v1209_v46, %s5836_s2 }
 0x32d   : > { %1231 = vrot.lane.b32.xlu1 %v1229_v52, %s7760_s26 }
 0x333   : > { %v1155_v55 = vpop.permute.xlu0 %1154 }
 0x334   : > { %v1151_v57 = vpop.permute.xlu1 %1150  ;;  %v1159_v59 = vsel %vm471_vm8, %v1153_v58, %v1155_v55 }
 0x335   : > { %1251 = vrot.lane.b32.xlu1 %v1249_v54, %s5838_s30  ;;  %v1158_v60 = vsel %vm471_vm8, %v1151_v57, %v1153_v58  ;;  %v1165_v61 = vsel %vm478_vm9, %v1159_v59, 0.0 }
 0x336   : > { %v1164_v48 = vsel %vm478_vm9, %v1158_v60, 0.0 }
 0x337   : > { %v1166_v50 = vadd.f32 %v1165_v61, %v1164_v48 }
 0x33c   : > { %v1157_v62 = vpop.permute.xlu1 %1156 }
 0x33d   : > { %v1160_v63 = vsel %vm471_vm8, %v1155_v55, %v1157_v62  ;;  %v1258_v55 = vstv %s5075_s7  ;;  %s5081_s7 = sld [smem:[#allocation9 + $0x4a]] }
 0x33e   : > { %v1167_v4 = vsel %vm478_vm9, %v1160_v63, 0.0 }
 0x33f   : > { %v1168_v2 = vadd.f32 %v1167_v4, %v1166_v50 }
 0x341   : > { %1169 = vadd.xlane.f32.xlu0 %v1168_v2 }
 0x35d   : > { %v1033_v6 = vpop.xlane.xlu2 %1032 }
 0x35e   : > { %v622_v16 = vpop.xlane.xlu0 %621 }
 0x365   : > { %v1202_v23 = vpop.permute.xlu2 %1201 }
 0x366   : > { %v896_v11 = vpop.xlane.xlu0 %895  ;;  %v1203_v12 = vrot.slane %v1202_v23, 1 }
 0x367   : > { %v485_v13 = vpop.xlane.xlu1 %484 }
 0x368   : > { %v486_v15 = vadd.f32 %v485_v13, %v450_v3  ;;  %v1204_v20 = vsel %vm368_vm2, %v1202_v23, %v1203_v12 }
 0x36a   : > { %488 = vst.msk [vmem:[#allocation2] sm:$0x1] %vm487_vm11, %v486_v15 }
 0x36d   : > { %v1222_v30 = vpop.permute.xlu2 %1221 }
 0x36e   : > { %v1223_v1 = vrot.slane %v1222_v30, 7 }
 0x36f   : > { %v759_v19 = vpop.xlane.xlu1 %758 }
 0x370   : > { %v1224_v0 = vsel %vm390_vm4, %v1223_v1, %v1222_v30  ;;  %v1345_v30 = vstv %s5081_s7  ;;  %s5093_s7 = sld [smem:[#allocation9 + $0x55]] }
 0x371   : > { %v595_v40 = vld [vmem:[#allocation2] sm:$0x1] }
 0x372   : > { %v623_v41 = vadd.f32 %v622_v16, %v595_v40 }
 0x374   : > { %625 = vst.msk [vmem:[#allocation2] sm:$0x1] %vm624_vm12, %v623_v41 }
 0x375   : > { %v1242_v7 = vpop.permute.xlu2 %1241 }
 0x376   : > { %v1243_v46 = vrot.slane %v1242_v7, 7 }
 0x378   : > { %v1244_v51 = vsel %vm412_vm6, %v1243_v46, %v1242_v7 }
 0x37b   : > { %v732_v17 = vld [vmem:[#allocation2] sm:$0x1] }
 0x37c   : > { %v760_v21 = vadd.f32 %v759_v19, %v732_v17 }
 0x37e   : > { %762 = vst.msk [vmem:[#allocation2] sm:$0x1] %vm761_vm13, %v760_v21 }
 0x385   : > { %v869_v22 = vld [vmem:[#allocation2] sm:$0x1] }
 0x386   : > { %v897_v9 = vadd.f32 %v896_v11, %v869_v22 }
 0x387   : > { %v1182_v14 = vpop.permute.xlu1 %1181 }
 0x388   : > { %899 = vst.msk [vmem:[#allocation2] sm:$0x1] %vm898_vm14, %v897_v9  ;;  %v1183_v35 = vrot.slane %v1182_v14, 1  ;;  %v1335_v9 = vstv %s5080_s13  ;;  %s5083_s13 = sld [smem:[#allocation9 + $0x4c]] }
 0x38a   : > { %v1184_v36 = vsel %vm346_vm0, %v1182_v14, %v1183_v35  ;;  %v1336_v14 = vmul.f32 %v6218_v18, %v1335_v9  ;;  %v1375_v35 = vstv %s5084_s29  ;;  %s5086_s29 = sld [smem:[#allocation9 + $0x4f]] }
 0x38b   : > { %v1186_v39 = vadd.f32 %v1184_v36, %v1176_v5  ;;  %v1376_v5 = vmul.f32 %v6232_v29, %v1375_v35 }
 0x38e   : > { %v1365_v12 = vstv %s5083_s13  ;;  %s5089_s13 = sld [smem:[#allocation9 + $0x51]] }
 0x38f   : > { %v1006_v25 = vld [vmem:[#allocation2] sm:$0x1]  ;;  %v1192_v26 = vpop.permute.xlu1 %1191 }
 0x390   : > { %v1034_v27 = vadd.f32 %v1033_v6, %v1006_v25  ;;  %v1193_v28 = vrot.slane %v1192_v26, 1  ;;  %v1355_v25 = vstv %s5082_s25  ;;  %s5085_s25 = sld [smem:[#allocation9 + $0x4e]] }
 0x392   : > { %1036 = vst.msk [vmem:[#allocation2] sm:$0x1] %vm1035_vm15, %v1034_v27  ;;  %v1194_v31 = vsel %vm357_vm1, %v1192_v26, %v1193_v28  ;;  %v1315_v26 = vstv %s5078_s1  ;;  %v1356_v27 = vmul.f32 %v6232_v29, %v1355_v25  ;;  %v1325_v28 = vstv %s5079_s27  ;;  %s5077_s1 = sld [smem:[#allocation9 + $0x46]] }
 0x393   : > { %v1196_v33 = vadd.f32 %v1194_v31, %v1186_v39  ;;  %v1316_v8 = vmul.f32 %v6218_v18, %v1315_v26  ;;  %v1326_v36 = vmul.f32 %v6218_v18, %v1325_v28  ;;  %v1346_v31 = vmul.f32 %v6225_v24, %v1345_v30  ;;  %s5091_s27 = sld [smem:[#allocation9 + $0x53]] }
 0x394   : > { %v1366_v39 = vmul.f32 %v6232_v29, %v1365_v12 }
 0x395   : > { %v1206_v34 = vadd.f32 %v1204_v20, %v1196_v33 }
 0x397   : > { %v1212_v32 = vpop.permute.xlu1 %1211 }
 0x398   : > { %v1213_v10 = vrot.slane %v1212_v32, 7 }
 0x399   : > { %v1143_v48 = vld [vmem:[#allocation2] sm:$0x1] }
 0x39a   : > { %v1214_v38 = vsel %vm379_vm3, %v1213_v10, %v1212_v32  ;;  %v1385_v32 = vstv %s5085_s25  ;;  %s5095_s25 = sld [smem:[#allocation9 + $0x57]] }
 0x39b   : > { %v1216_v42 = vadd.f32 %v1214_v38, %v1206_v34  ;;  %v1386_v10 = vmul.f32 %v6232_v29, %v1385_v32 }
 0x39d   : > { %v1226_v47 = vadd.f32 %v1224_v0, %v1216_v42 }
 0x39f   : > { %v1232_v43 = vpop.permute.xlu1 %1231 }
 0x3a0   : > { %v1233_v44 = vrot.slane %v1232_v43, 7 }
 0x3a2   : > { %v1234_v45 = vsel %vm401_vm5, %v1233_v44, %v1232_v43 }
 0x3a3   : > { %v1236_v49 = vadd.f32 %v1234_v45, %v1226_v47 }
 0x3a5   : > { %v1246_v54 = vadd.f32 %v1244_v51, %v1236_v49  ;;  %v1312_v49 = vstv %s5077_s1  ;;  %s5090_s1 = sld [smem:[#allocation9 + $0x52]] }
 0x3a7   : > { %v1252_v52 = vpop.permute.xlu1 %1251 }
 0x3a8   : > { %v1253_v53 = vrot.slane %v1252_v52, 7 }
 0x3aa   : > { %v1254_v57 = vsel %vm423_vm7, %v1253_v53, %v1252_v52 }
 0x3ab   : > { %v1256_v58 = vadd.f32 %v1254_v57, %v1246_v54  ;;  %v1313_v54 = vmul.f32 %v6218_v18, %v1312_v49  ;;  %v1512_v49 = vstv %s5095_s25  ;;  %s5097_s25 = sld [smem:[#allocation9 + $0x59]] }
 0x3ad   : > { %v1259_v59 = vadd.f32 %v1258_v55, %v1256_v58 }
 0x3af   : > { %v5076_v60 = vmul.f32 -1.442695, %v1259_v59 }
 0x3b1   : > { %5484 = vpow2.f32 %v5076_v60 }
 0x3b4   : > { %v1170_v61 = vpop.xlane.xlu0 %1169 }
 0x3b5   : > { %v1171_v62 = vadd.f32 %v1170_v61, %v1143_v48 }
 0x3b7   : > { %v5485_v63 = vpop.eup %5484  ;;  %1173 = vst.msk [vmem:[#allocation2] sm:$0x1] %vm1172_vm10, %v1171_v62 }
 0x3b8   : > { %v1263_v50 = vadd.f32 1.0, %v5485_v63 }
 0x3ba   : > { %5486 = vrcp.f32 %v1263_v50  ;;  %v1275_v3 = vand.u32 2147483648, %v1263_v50  ;;  %v1273_v15 = vand.u32 2147483647, %v1263_v50  ;;  %vm1269_vm12 = vweird.f32 %v1263_v50 }
 0x3bc   : > { %v1276_v40 = vor.u32 1.1754944e-38, %v1275_v3  ;;  %vm1274_vm14 = vcmp.eq.f32.partialorder %v1273_v15, 8.507059e+37 }
 0x3c0   : > { %v5487_v4 = vpop.eup %5486 }
 0x3c1   : > { %v1265_v2 = vmul.f32 %v5487_v4, %v1263_v50  ;;  %vm1270_vm11 = vweird.f32 %v5487_v4 }
 0x3c2   : > { %vm1271_vm13 = vmor %vm1269_vm12, %vm1270_vm11 }
 0x3c3   : > { %v1266_v37 = vsub.f32 1.0, %v1265_v2 }
 0x3c5   : > { %v1267_v13 = vmul.f32 %v5487_v4, %v1266_v37 }
 0x3c7   : > { %v1268_v16 = vadd.f32 %v5487_v4, %v1267_v13 }
 0x3c9   : > { %v1272_v41 = vsel %vm1271_vm13, %v5487_v4, %v1268_v16  ;;  %vm1309_vm13 = vcmask 49200  }
 0x3ca   : > { %v1277_v17 = vsel %vm1274_vm14, %v1276_v40, %v1272_v41 }
 0x3cb   : > { %v1279_v19 = vmul.f32 %v1277_v17, %v1259_v59 }
 0x3cd   : > { %v1281_v21 = vmul.f32 %v1279_v19, %v6125_v56 }
 0x3cf   : > { %v1285_v6 = vperm.slane %v1281_v21, 2  ;;  %v1284_v11 = vperm.slane %v1281_v21, 1  ;;  %v1283_v22 = vperm.slane %v1281_v21, 0  ;;  %v1286_v23 = vperm.slane %v1281_v21, 3 }
 0x3d1   : > { %1291 = vrot.lane.b32.xlu1 %v1285_v6, %s7758_s15  ;;  %1289 = vrot.lane.b32.xlu0 %v1284_v11, %s7758_s15 }
 0x3d2   : > { %1287 = vrot.lane.b32.xlu2 %v1283_v22, %s7758_s15 }
 0x3d9   : > { %1338 = vrot.lane.b32.xlu0 %v1336_v14, %s5833_s12  ;;  %v1395_v14 = vstv %s5086_s29  ;;  %s5092_s29 = sld [smem:[#allocation9 + $0x54]] }
 0x3da   : > { %1293 = vrot.lane.b32.xlu2 %v1286_v23, %s7758_s15 }
 0x3e1   : > { %1358 = vrot.lane.b32.xlu0 %v1356_v27, %s5831_s8 }
 0x3e2   : > { %1318 = vrot.lane.b32.xlu2 %v1316_v8, %s7762_s9 }
 0x3e9   : > { %1378 = vrot.lane.b32.xlu0 %v1376_v5, %s5837_s20 }
 0x3ea   : > { %1328 = vrot.lane.b32.xlu2 %v1326_v36, %s5835_s19 }
 0x3f2   : > { %1348 = vrot.lane.b32.xlu2 %v1346_v31, %s5836_s2 }
 0x3fa   : > { %1368 = vrot.lane.b32.xlu2 %v1366_v39, %s7760_s26 }
 0x402   : > { %1388 = vrot.lane.b32.xlu2 %v1386_v10, %s5838_s30 }
 0x42c   : > { %v1288_v33 = vpop.permute.xlu2 %1287 }
 0x434   : > { %v1294_v20 = vpop.permute.xlu2 %1293 }
 0x43c   : > { %v1319_v38 = vpop.permute.xlu2 %1318 }
 0x43d   : > { %v1320_v51 = vrot.slane %v1319_v38, 1 }
 0x43f   : > { %v1321_v57 = vsel %vm346_vm0, %v1319_v38, %v1320_v51  ;;  %v1462_v51 = vstv %s5090_s1  ;;  %s5100_s1 = sld [smem:[#allocation9 + $0x5b]] }
 0x440   : > { %v1323_v48 = vadd.f32 %v1321_v57, %v1313_v54  ;;  %v1482_v54 = vstv %s5092_s29  ;;  %s5102_s29 = sld [smem:[#allocation9 + $0x5d]] }
 0x443   : > { %v1292_v1 = vpop.permute.xlu1 %1291  ;;  %v1290_v34 = vpop.permute.xlu0 %1289 }
 0x444   : > { %v1295_v42 = vsel %vm471_vm8, %v1288_v33, %v1290_v34  ;;  %v1296_v43 = vsel %vm471_vm8, %v1290_v34, %v1292_v1  ;;  %v1329_v7 = vpop.permute.xlu2 %1328  ;;  %v1297_v0 = vsel %vm471_vm8, %v1292_v1, %v1294_v20 }
 0x445   : > { %v1301_v44 = vsel %vm478_vm9, %v1295_v42, 0.0  ;;  %v1302_v45 = vsel %vm478_vm9, %v1296_v43, 0.0  ;;  %v1304_v47 = vsel %vm478_vm9, %v1297_v0, 0.0  ;;  %v1330_v53 = vrot.slane %v1329_v7, 1 }
 0x446   : > { %v1303_v46 = vadd.f32 %v1302_v45, %v1301_v44  ;;  %v1472_v43 = vstv %s5091_s27  ;;  %v1492_v44 = vstv %s5093_s7  ;;  %v1452_v45 = vstv %s5089_s13  ;;  %s5094_s27 = sld [smem:[#allocation9 + $0x56]] }
 0x447   : > { %v1331_v60 = vsel %vm357_vm1, %v1329_v7, %v1330_v53  ;;  %v1473_v7 = vmul.f32 %v6218_v18, %v1472_v43  ;;  %v1463_v53 = vmul.f32 %v6218_v18, %v1462_v51  ;;  %s5096_s7 = sld [smem:[#allocation9 + $0x58]] }
 0x448   : > { %v1305_v52 = vadd.f32 %v1304_v47, %v1303_v46  ;;  %v1333_v62 = vadd.f32 %v1331_v60, %v1323_v48  ;;  %v1493_v46 = vmul.f32 %v6232_v29, %v1492_v44  ;;  %v1453_v47 = vmul.f32 %v6218_v18, %v1452_v45  ;;  %v1280_v48 = vld [vmem:[#allocation2] sm:$0x1]  ;;  %s5088_s13 = sld [smem:[#allocation9 + $0x50]] }
 0x44a   : > { %1306 = vadd.xlane.f32.xlu1 %v1305_v52  ;;  %v1513_v52 = vmul.f32 %v6232_v29, %v1512_v49 }
 0x44b   : > { %v1339_v55 = vpop.permute.xlu0 %1338 }
 0x44c   : > { %v1340_v58 = vrot.slane %v1339_v55, 1  ;;  %v1349_v59 = vpop.permute.xlu2 %1348  ;;  %v1502_v57 = vstv %s5094_s27  ;;  %s5101_s27 = sld [smem:[#allocation9 + $0x5c]] }
 0x44d   : > { %v1350_v63 = vrot.slane %v1349_v59, 7 }
 0x44e   : > { %v1341_v61 = vsel %vm368_vm2, %v1339_v55, %v1340_v58  ;;  %v1483_v55 = vmul.f32 %v6225_v24, %v1482_v54  ;;  %v1503_v58 = vmul.f32 %v6232_v29, %v1502_v57 }
 0x44f   : > { %v1343_v50 = vadd.f32 %v1341_v61, %v1333_v62  ;;  %v1351_v3 = vsel %vm379_vm3, %v1350_v63, %v1349_v59  ;;  %v1522_v59 = vstv %s5096_s7  ;;  %s5104_s7 = sld [smem:[#allocation9 + $0x5f]] }
 0x450   : > { %v1523_v60 = vmul.f32 %v6232_v29, %v1522_v59 }
 0x451   : > { %v1353_v15 = vadd.f32 %v1351_v3, %v1343_v50 }
 0x453   : > { %v1359_v4 = vpop.permute.xlu0 %1358 }
 0x454   : > { %v1360_v2 = vrot.slane %v1359_v4, 7  ;;  %v1369_v37 = vpop.permute.xlu2 %1368 }
 0x455   : > { %v1370_v16 = vrot.slane %v1369_v37, 7 }
 0x456   : > { %v1361_v13 = vsel %vm390_vm4, %v1360_v2, %v1359_v4 }
 0x457   : > { %v1363_v40 = vadd.f32 %v1361_v13, %v1353_v15  ;;  %v1371_v17 = vsel %vm401_vm5, %v1370_v16, %v1369_v37 }
 0x459   : > { %v1373_v6 = vadd.f32 %v1371_v17, %v1363_v40 }
 0x45b   : > { %v1379_v41 = vpop.permute.xlu0 %1378 }
 0x45c   : > { %v1380_v19 = vrot.slane %v1379_v41, 7  ;;  %v1389_v21 = vpop.permute.xlu2 %1388 }
 0x45d   : > { %v1390_v11 = vrot.slane %v1389_v21, 7 }
 0x45e   : > { %v1381_v22 = vsel %vm412_vm6, %v1380_v19, %v1379_v41 }
 0x45f   : > { %v1383_v9 = vadd.f32 %v1381_v22, %v1373_v6  ;;  %v1391_v23 = vsel %vm423_vm7, %v1390_v11, %v1389_v21  ;;  %v1449_v21 = vstv %s5088_s13  ;;  %s5103_s13 = sld [smem:[#allocation9 + $0x5e]] }
 0x460   : > { %v1450_v22 = vmul.f32 %v6218_v18, %v1449_v21 }
 0x461   : > { %v1393_v25 = vadd.f32 %v1391_v23, %v1383_v9 }
 0x463   : > { %v1396_v26 = vadd.f32 %v1395_v14, %v1393_v25 }
 0x465   : > { %v5087_v27 = vmul.f32 -1.442695, %v1396_v26 }
 0x467   : > { %5488 = vpow2.f32 %v5087_v27 }
 0x46d   : > { %v5489_v8 = vpop.eup %5488 }
 0x46e   : > { %v1400_v35 = vadd.f32 1.0, %v5489_v8 }
 0x470   : > { %5490 = vrcp.f32 %v1400_v35  ;;  %v1412_v30 = vand.u32 2147483648, %v1400_v35  ;;  %v1410_v12 = vand.u32 2147483647, %v1400_v35  ;;  %vm1406_vm10 = vweird.f32 %v1400_v35 }
 0x472   : > { %v1413_v32 = vor.u32 1.1754944e-38, %v1412_v30  ;;  %vm1411_vm12 = vcmp.eq.f32.partialorder %v1410_v12, 8.507059e+37 }
 0x476   : > { %v5491_v28 = vpop.eup %5490 }
 0x477   : > { %v1402_v5 = vmul.f32 %v5491_v28, %v1400_v35  ;;  %vm1407_vm15 = vweird.f32 %v5491_v28 }
 0x478   : > { %vm1408_vm11 = vmor %vm1406_vm10, %vm1407_vm15 }
 0x479   : > { %v1403_v36 = vsub.f32 1.0, %v1402_v5 }
 0x47b   : > { %v1404_v31 = vmul.f32 %v5491_v28, %v1403_v36 }
 0x47d   : > { %v1405_v39 = vadd.f32 %v5491_v28, %v1404_v31 }
 0x47f   : > { %v1409_v10 = vsel %vm1408_vm11, %v5491_v28, %v1405_v39 }
 0x480   : > { %v1414_v33 = vsel %vm1411_vm12, %v1413_v32, %v1409_v10  ;;  %vm1446_vm12 = vcmask 57400  }
 0x481   : > { %v1416_v20 = vmul.f32 %v1414_v33, %v1396_v26 }
 0x483   : > { %v1418_v38 = vmul.f32 %v1416_v20, %v6125_v56 }
 0x485   : > { %v1422_v1 = vperm.slane %v1418_v38, 2  ;;  %v1421_v34 = vperm.slane %v1418_v38, 1  ;;  %v1420_v42 = vperm.slane %v1418_v38, 0  ;;  %v1423_v0 = vperm.slane %v1418_v38, 3 }
 0x487   : > { %1428 = vrot.lane.b32.xlu2 %v1422_v1, %s7758_s15  ;;  %1426 = vrot.lane.b32.xlu1 %v1421_v34, %s7758_s15 }
 0x488   : > { %1424 = vrot.lane.b32.xlu0 %v1420_v42, %s7758_s15 }
 0x48f   : > { %1475 = vrot.lane.b32.xlu1 %v1473_v7, %s5833_s12  ;;  %v1532_v7 = vstv %s5097_s25  ;;  %s5106_s25 = sld [smem:[#allocation9 + $0x61]] }
 0x490   : > { %1430 = vrot.lane.b32.xlu0 %v1423_v0, %s7758_s15 }
 0x495   : > { %v1649_v21 = vstv %s5106_s25  ;;  %s5114_s25 = sld [smem:[#allocation9 + $0x68]] }
 0x497   : > { %1495 = vrot.lane.b32.xlu1 %v1493_v46, %s5831_s8 }
 0x498   : > { %1455 = vrot.lane.b32.xlu0 %v1453_v47, %s7762_s9 }
 0x49f   : > { %1515 = vrot.lane.b32.xlu1 %v1513_v52, %s5837_s20 }
 0x4a0   : > { %1465 = vrot.lane.b32.xlu0 %v1463_v53, %s5835_s19 }
 0x4a8   : > { %1485 = vrot.lane.b32.xlu0 %v1483_v55, %s5836_s2 }
 0x4b0   : > { %1505 = vrot.lane.b32.xlu0 %v1503_v58, %s7760_s26 }
 0x4b8   : > { %1525 = vrot.lane.b32.xlu0 %v1523_v60, %s5838_s30 }
 0x4bd   : > { %v1307_v61 = vpop.xlane.xlu1 %1306 }
 0x4be   : > { %v1308_v62 = vadd.f32 %v1307_v61, %v1280_v48 }
 0x4c0   : > { %1310 = vst.msk [vmem:[#allocation2] sm:$0x1] %vm1309_vm13, %v1308_v62 }
 0x4e1   : > { %v1429_v50 = vpop.permute.xlu2 %1428 }
 0x4f9   : > { %v1427_v63 = vpop.permute.xlu1 %1426 }
 0x4fa   : > { %v1425_v24 = vpop.permute.xlu0 %1424  ;;  %v1433_v4 = vsel %vm471_vm8, %v1427_v63, %v1429_v50 }
 0x4fb   : > { %v1432_v2 = vsel %vm471_vm8, %v1425_v24, %v1427_v63  ;;  %v1439_v3 = vsel %vm478_vm9, %v1433_v4, 0.0 }
 0x4fc   : > { %v1438_v37 = vsel %vm478_vm9, %v1432_v2, 0.0  ;;  %v1589_v2 = vstv %s5100_s1  ;;  %s5105_s1 = sld [smem:[#allocation9 + $0x60]] }
 0x4fd   : > { %v1440_v15 = vadd.f32 %v1439_v3, %v1438_v37  ;;  %v6437_v37 = vld [vmem:[%s5992_s18] sm:$0xf] }
 0x4fe   : > { %v1590_v3 = vmul.f32 %v6437_v37, %v1589_v2 }
 0x501   : > { %v1476_v17 = vpop.permute.xlu1 %1475 }
 0x502   : > { %v1431_v13 = vpop.permute.xlu0 %1430  ;;  %v1477_v25 = vrot.slane %v1476_v17, 1 }
 0x503   : > { %v1434_v29 = vsel %vm471_vm8, %v1429_v50, %v1431_v13  ;;  %v1609_v13 = vstv %s5102_s29  ;;  %s5107_s29 = sld [smem:[#allocation9 + $0x62]] }
 0x504   : > { %v1441_v16 = vsel %vm478_vm9, %v1434_v29, 0.0  ;;  %v1478_v28 = vsel %vm368_vm2, %v1476_v17, %v1477_v25  ;;  %v1610_v29 = vmul.f32 %v6437_v37, %v1609_v13 }
 0x505   : > { %v1442_v40 = vadd.f32 %v1441_v16, %v1440_v15  ;;  %v1599_v15 = vstv %s5101_s27  ;;  %v1629_v16 = vstv %s5104_s7  ;;  %s5099_s27 = sld [smem:[#allocation9 + $0x5a]] }
 0x506   : > { %s5108_s7 = sld [smem:[#allocation9 + $0x63]] }
 0x507   : > { %1443 = vadd.xlane.f32.xlu2 %v1442_v40  ;;  %v1600_v40 = vmul.f32 %v6437_v37, %v1599_v15 }
 0x509   : > { %v1496_v14 = vpop.permute.xlu1 %1495 }
 0x50a   : > { %v1456_v41 = vpop.permute.xlu0 %1455  ;;  %v1497_v36 = vrot.slane %v1496_v14, 7 }
 0x50b   : > { %v1457_v6 = vrot.slane %v1456_v41, 1 }
 0x50c   : > { %v1498_v18 = vsel %vm390_vm4, %v1497_v36, %v1496_v14 }
 0x50d   : > { %v1458_v9 = vsel %vm346_vm0, %v1456_v41, %v1457_v6  ;;  %v6445_v41 = vld [vmem:[%s5992_s18 + $0x1] sm:$0xf] }
 0x50e   : > { %v1460_v26 = vadd.f32 %v1458_v9, %v1450_v22  ;;  %v1630_v17 = vmul.f32 %v6445_v41, %v1629_v16  ;;  %v6451_v6 = vld [vmem:[%s5992_s18 + $0x1] sm:$0x7]  ;;  %v1650_v22 = vmul.f32 %v6445_v41, %v1649_v21  ;;  %v1639_v9 = vstv %s5105_s1  ;;  %s5111_s1 = sld [smem:[#allocation9 + $0x65]] }
 0x50f   : > { %v1640_v14 = vmul.f32 %v6445_v41, %v1639_v9 }
 0x511   : > { %v1516_v39 = vpop.permute.xlu1 %1515 }
 0x512   : > { %v1466_v19 = vpop.permute.xlu0 %1465  ;;  %v1517_v33 = vrot.slane %v1516_v39, 7 }
 0x513   : > { %v1467_v11 = vrot.slane %v1466_v19, 1 }
 0x514   : > { %v1518_v1 = vsel %vm412_vm6, %v1517_v33, %v1516_v39 }
 0x515   : > { %v1468_v23 = vsel %vm357_vm1, %v1466_v19, %v1467_v11  ;;  %v1619_v19 = vstv %s5103_s13  ;;  %s5112_s13 = sld [smem:[#allocation9 + $0x66]] }
 0x516   : > { %v1470_v35 = vadd.f32 %v1468_v23, %v1460_v26  ;;  %v1620_v11 = vmul.f32 %v6451_v6, %v1619_v19  ;;  %v1417_v23 = vld [vmem:[#allocation2] sm:$0x1] }
 0x518   : > { %v1480_v30 = vadd.f32 %v1478_v28, %v1470_v35 }
 0x51a   : > { %v1486_v27 = vpop.permute.xlu0 %1485 }
 0x51b   : > { %v1487_v8 = vrot.slane %v1486_v27, 7 }
 0x51d   : > { %v1488_v5 = vsel %vm379_vm3, %v1487_v8, %v1486_v27  ;;  %v1659_v27 = vstv %s5107_s29  ;;  %s5116_s29 = sld [smem:[#allocation9 + $0x6a]] }
 0x51e   : > { %v1490_v31 = vadd.f32 %v1488_v5, %v1480_v30  ;;  %v1660_v8 = vmul.f32 %v6445_v41, %v1659_v27 }
 0x520   : > { %v1500_v20 = vadd.f32 %v1498_v18, %v1490_v31 }
 0x522   : > { %v1506_v12 = vpop.permute.xlu0 %1505 }
 0x523   : > { %v1507_v32 = vrot.slane %v1506_v12, 7 }
 0x525   : > { %v1508_v10 = vsel %vm401_vm5, %v1507_v32, %v1506_v12 }
 0x526   : > { %v1510_v38 = vadd.f32 %v1508_v10, %v1500_v20 }
 0x528   : > { %v1520_v43 = vadd.f32 %v1518_v1, %v1510_v38 }
 0x52a   : > { %v1526_v34 = vpop.permute.xlu0 %1525 }
 0x52b   : > { %v1527_v42 = vrot.slane %v1526_v34, 7 }
 0x52d   : > { %v1528_v0 = vsel %vm423_vm7, %v1527_v42, %v1526_v34  ;;  %v1586_v34 = vstv %s5099_s27  ;;  %s5113_s27 = sld [smem:[#allocation9 + $0x67]] }
 0x52e   : > { %v1530_v44 = vadd.f32 %v1528_v0, %v1520_v43 }
 0x530   : > { %v1533_v45 = vadd.f32 %v1532_v7, %v1530_v44  ;;  %v1587_v7 = vmul.f32 %v6437_v37, %v1586_v34 }
 0x532   : > { %v5098_v46 = vmul.f32 -1.442695, %v1533_v45 }
 0x534   : > { %5492 = vpow2.f32 %v5098_v46 }
 0x53a   : > { %v5493_v47 = vpop.eup %5492 }
 0x53b   : > { %v1537_v49 = vadd.f32 1.0, %v5493_v47 }
 0x53d   : > { %5494 = vrcp.f32 %v1537_v49  ;;  %v1549_v54 = vand.u32 2147483648, %v1537_v49  ;;  %v1547_v57 = vand.u32 2147483647, %v1537_v49  ;;  %vm1543_vm15 = vweird.f32 %v1537_v49 }
 0x53f   : > { %v1550_v59 = vor.u32 1.1754944e-38, %v1549_v54  ;;  %vm1548_vm11 = vcmp.eq.f32.partialorder %v1547_v57, 8.507059e+37 }
 0x543   : > { %v5495_v51 = vpop.eup %5494 }
 0x544   : > { %v1539_v52 = vmul.f32 %v5495_v51, %v1537_v49  ;;  %vm1544_vm14 = vweird.f32 %v5495_v51 }
 0x545   : > { %vm1545_vm10 = vmor %vm1543_vm15, %vm1544_vm14 }
 0x546   : > { %v1540_v53 = vsub.f32 1.0, %v1539_v52 }
 0x548   : > { %v1541_v55 = vmul.f32 %v5495_v51, %v1540_v53 }
 0x54a   : > { %v1542_v58 = vadd.f32 %v5495_v51, %v1541_v55 }
 0x54c   : > { %v1546_v60 = vsel %vm1545_vm10, %v5495_v51, %v1542_v58 }
 0x54d   : > { %v1551_v48 = vsel %vm1548_vm11, %v1550_v59, %v1546_v60  ;;  %vm1583_vm11 = vcmask 65600  }
 0x54e   : > { %v1553_v61 = vmul.f32 %v1551_v48, %v1533_v45 }
 0x550   : > { %v1555_v62 = vmul.f32 %v1553_v61, %v6125_v56 }
 0x552   : > { %v1559_v63 = vperm.slane %v1555_v62, 2  ;;  %v1558_v24 = vperm.slane %v1555_v62, 1  ;;  %v1557_v50 = vperm.slane %v1555_v62, 0  ;;  %v1560_v4 = vperm.slane %v1555_v62, 3 }
 0x554   : > { %1565 = vrot.lane.b32.xlu2 %v1559_v63, %s7758_s15  ;;  %1563 = vrot.lane.b32.xlu0 %v1558_v24, %s7758_s15 }
 0x555   : > { %1561 = vrot.lane.b32.xlu1 %v1557_v50, %s7758_s15 }
 0x55c   : > { %1612 = vrot.lane.b32.xlu2 %v1610_v29, %s5833_s12  ;;  %v1669_v29 = vstv %s5108_s7  ;;  %s5118_s7 = sld [smem:[#allocation9 + $0x6c]] }
 0x55d   : > { %1567 = vrot.lane.b32.xlu1 %v1560_v4, %s7758_s15 }
 0x564   : > { %1632 = vrot.lane.b32.xlu2 %v1630_v17, %s5831_s8 }
 0x565   : > { %1592 = vrot.lane.b32.xlu1 %v1590_v3, %s7762_s9 }
 0x56c   : > { %1652 = vrot.lane.b32.xlu2 %v1650_v22, %s5837_s20 }
 0x56d   : > { %1602 = vrot.lane.b32.xlu1 %v1600_v40, %s5835_s19 }
 0x575   : > { %1622 = vrot.lane.b32.xlu1 %v1620_v11, %s5836_s2 }
 0x57a   : > { %v1444_v25 = vpop.xlane.xlu2 %1443 }
 0x57b   : > { %v1445_v26 = vadd.f32 %v1444_v25, %v1417_v23 }
 0x57d   : > { %1447 = vst.msk [vmem:[#allocation2] sm:$0x1] %vm1446_vm12, %v1445_v26  ;;  %1642 = vrot.lane.b32.xlu1 %v1640_v14, %s7760_s26 }
 0x585   : > { %1662 = vrot.lane.b32.xlu1 %v1660_v8, %s5838_s30 }
 0x5ae   : > { %v1566_v5 = vpop.permute.xlu2 %1565 }
 0x5b6   : > { %v1613_v38 = vpop.permute.xlu2 %1612 }
 0x5b7   : > { %v1614_v46 = vrot.slane %v1613_v38, 1 }
 0x5b9   : > { %v1615_v53 = vsel %vm368_vm2, %v1613_v38, %v1614_v46  ;;  %v1776_v38 = vstv %s5116_s29  ;;  %s5119_s29 = sld [smem:[#allocation9 + $0x6d]] }
 0x5ba   : > { %v1777_v34 = vmul.f32 %v6445_v41, %v1776_v38 }
 0x5be   : > { %v1633_v44 = vpop.permute.xlu2 %1632 }
 0x5bf   : > { %v1634_v55 = vrot.slane %v1633_v44, 7 }
 0x5c1   : > { %v1635_v48 = vsel %vm390_vm4, %v1634_v55, %v1633_v44 }
 0x5c6   : > { %v1564_v35 = vpop.permute.xlu0 %1563  ;;  %v1653_v60 = vpop.permute.xlu2 %1652 }
 0x5c7   : > { %v1562_v28 = vpop.permute.xlu1 %1561  ;;  %v1570_v36 = vsel %vm471_vm8, %v1564_v35, %v1566_v5  ;;  %v1654_v63 = vrot.slane %v1653_v60, 7 }
 0x5c8   : > { %v1569_v30 = vsel %vm471_vm8, %v1562_v28, %v1564_v35  ;;  %v1576_v12 = vsel %vm478_vm9, %v1570_v36, 0.0 }
 0x5c9   : > { %v1575_v31 = vsel %vm478_vm9, %v1569_v30, 0.0  ;;  %v1655_v4 = vsel %vm412_vm6, %v1654_v63, %v1653_v60 }
 0x5ca   : > { %v1577_v32 = vadd.f32 %v1576_v12, %v1575_v31  ;;  %v1736_v12 = vstv %s5112_s13  ;;  %s5115_s13 = sld [smem:[#allocation9 + $0x69]] }
 0x5cf   : > { %v1568_v39 = vpop.permute.xlu1 %1567 }
 0x5d0   : > { %v1571_v18 = vsel %vm471_vm8, %v1566_v5, %v1568_v39  ;;  %v1737_v39 = vmul.f32 %v6437_v37, %v1736_v12 }
 0x5d1   : > { %v1578_v10 = vsel %vm478_vm9, %v1571_v18, 0.0 }
 0x5d2   : > { %v1579_v33 = vadd.f32 %v1578_v10, %v1577_v32  ;;  %v1756_v32 = vstv %s5114_s25  ;;  %v1726_v10 = vstv %s5111_s1  ;;  %s5117_s25 = sld [smem:[#allocation9 + $0x6b]] }
 0x5d3   : > { %s5110_s1 = sld [smem:[#allocation9 + $0x64]] }
 0x5d4   : > { %1580 = vadd.xlane.f32.xlu0 %v1579_v33  ;;  %v1757_v33 = vmul.f32 %v6451_v6, %v1756_v32 }
 0x5d7   : > { %v1593_v20 = vpop.permute.xlu1 %1592 }
 0x5d8   : > { %v1594_v42 = vrot.slane %v1593_v20, 1 }
 0x5da   : > { %v1595_v0 = vsel %vm346_vm0, %v1593_v20, %v1594_v42  ;;  %v1727_v20 = vmul.f32 %v6437_v37, %v1726_v10  ;;  %v1806_v10 = vstv %s5119_s29  ;;  %s5124_s29 = sld [smem:[#allocation9 + $0x71]] }
 0x5db   : > { %v1597_v47 = vadd.f32 %v1595_v0, %v1587_v7  ;;  %v1766_v7 = vstv %s5115_s13  ;;  %s5122_s13 = sld [smem:[#allocation9 + $0x6f]] }
 0x5dc   : > { %v1767_v44 = vmul.f32 %v6445_v41, %v1766_v7 }
 0x5df   : > { %v1603_v1 = vpop.permute.xlu1 %1602 }
 0x5e0   : > { %v1604_v43 = vrot.slane %v1603_v1, 1 }
 0x5e2   : > { %v1605_v45 = vsel %vm357_vm1, %v1603_v1, %v1604_v43  ;;  %v1746_v1 = vstv %s5113_s27  ;;  %v1796_v43 = vstv %s5118_s7  ;;  %s5125_s27 = sld [smem:[#allocation9 + $0x72]] }
 0x5e3   : > { %v1607_v52 = vadd.f32 %v1605_v45, %v1597_v47  ;;  %v1747_v42 = vmul.f32 %v6437_v37, %v1746_v1  ;;  %v1797_v0 = vmul.f32 %v6445_v41, %v1796_v43  ;;  %v1786_v45 = vstv %s5117_s25  ;;  %v1554_v47 = vld [vmem:[#allocation2] sm:$0x1]  ;;  %s5127_s7 = sld [smem:[#allocation9 + $0x74]] }
 0x5e4   : > { %v1787_v46 = vmul.f32 %v6445_v41, %v1786_v45  ;;  %s5129_s25 = sld [smem:[#allocation9 + $0x76]] }
 0x5e5   : > { %v1617_v57 = vadd.f32 %v1615_v53, %v1607_v52 }
 0x5e7   : > { %v1623_v49 = vpop.permute.xlu1 %1622 }
 0x5e8   : > { %v1624_v51 = vrot.slane %v1623_v49, 7 }
 0x5ea   : > { %v1625_v54 = vsel %vm379_vm3, %v1624_v51, %v1623_v49 }
 0x5eb   : > { %v1627_v58 = vadd.f32 %v1625_v54, %v1617_v57 }
 0x5ed   : > { %v1637_v24 = vadd.f32 %v1635_v48, %v1627_v58 }
 0x5ef   : > { %v1643_v59 = vpop.permute.xlu1 %1642 }
 0x5f0   : > { %v1644_v61 = vrot.slane %v1643_v59, 7 }
 0x5f2   : > { %v1645_v62 = vsel %vm401_vm5, %v1644_v61, %v1643_v59 }
 0x5f3   : > { %v1647_v50 = vadd.f32 %v1645_v62, %v1637_v24 }
 0x5f5   : > { %v1657_v13 = vadd.f32 %v1655_v4, %v1647_v50 }
 0x5f7   : > { %v1663_v2 = vpop.permute.xlu1 %1662 }
 0x5f8   : > { %v1664_v3 = vrot.slane %v1663_v2, 7 }
 0x5fa   : > { %v1665_v15 = vsel %vm423_vm7, %v1664_v3, %v1663_v2  ;;  %v1723_v2 = vstv %s5110_s1  ;;  %s5123_s1 = sld [smem:[#allocation9 + $0x70]] }
 0x5fb   : > { %v1667_v16 = vadd.f32 %v1665_v15, %v1657_v13 }
 0x5fd   : > { %v1670_v40 = vadd.f32 %v1669_v29, %v1667_v16  ;;  %v1724_v29 = vmul.f32 %v6437_v37, %v1723_v2 }
 0x5ff   : > { %v5109_v17 = vmul.f32 -1.442695, %v1670_v40 }
 0x601   : > { %5496 = vpow2.f32 %v5109_v17 }
 0x607   : > { %v5497_v19 = vpop.eup %5496 }
 0x608   : > { %v1674_v21 = vadd.f32 1.0, %v5497_v19 }
 0x60a   : > { %5498 = vrcp.f32 %v1674_v21  ;;  %v1686_v14 = vand.u32 2147483648, %v1674_v21  ;;  %v1684_v25 = vand.u32 2147483647, %v1674_v21  ;;  %vm1680_vm14 = vweird.f32 %v1674_v21 }
 0x60c   : > { %v1687_v27 = vor.u32 1.1754944e-38, %v1686_v14  ;;  %vm1685_vm10 = vcmp.eq.f32.partialorder %v1684_v25, 8.507059e+37 }
 0x610   : > { %v5499_v11 = vpop.eup %5498 }
 0x611   : > { %v1676_v22 = vmul.f32 %v5499_v11, %v1674_v21  ;;  %vm1681_vm13 = vweird.f32 %v5499_v11 }
 0x612   : > { %vm1682_vm15 = vmor %vm1680_vm14, %vm1681_vm13 }
 0x613   : > { %v1677_v9 = vsub.f32 1.0, %v1676_v22 }
 0x615   : > { %v1678_v23 = vmul.f32 %v5499_v11, %v1677_v9 }
 0x617   : > { %v1679_v26 = vadd.f32 %v5499_v11, %v1678_v23 }
 0x619   : > { %v1683_v8 = vsel %vm1682_vm15, %v5499_v11, %v1679_v26 }
 0x61a   : > { %v1688_v35 = vsel %vm1685_vm10, %v1687_v27, %v1683_v8  ;;  %vm1720_vm10 = vcmask 73800  }
 0x61b   : > { %v1690_v28 = vmul.f32 %v1688_v35, %v1670_v40 }
 0x61d   : > { %v1692_v5 = vmul.f32 %v1690_v28, %v6125_v56 }
 0x61f   : > { %v1696_v36 = vperm.slane %v1692_v5, 2  ;;  %v1695_v30 = vperm.slane %v1692_v5, 1  ;;  %v1694_v31 = vperm.slane %v1692_v5, 0  ;;  %v1697_v18 = vperm.slane %v1692_v5, 3 }
 0x621   : > { %1702 = vrot.lane.b32.xlu1 %v1696_v36, %s7758_s15  ;;  %1700 = vrot.lane.b32.xlu0 %v1695_v30, %s7758_s15 }
 0x622   : > { %1698 = vrot.lane.b32.xlu2 %v1694_v31, %s7758_s15 }
 0x629   : > { %1739 = vrot.lane.b32.xlu0 %v1737_v39, %s5835_s19 }
 0x62a   : > { %1704 = vrot.lane.b32.xlu2 %v1697_v18, %s7758_s15 }
 0x631   : > { %1759 = vrot.lane.b32.xlu0 %v1757_v33, %s5836_s2 }
 0x632   : > { %1729 = vrot.lane.b32.xlu2 %v1727_v20, %s7762_s9 }
 0x639   : > { %1779 = vrot.lane.b32.xlu0 %v1777_v34, %s7760_s26 }
 0x63a   : > { %1749 = vrot.lane.b32.xlu2 %v1747_v42, %s5833_s12 }
 0x641   : > { %1799 = vrot.lane.b32.xlu0 %v1797_v0, %s5838_s30 }
 0x642   : > { %1769 = vrot.lane.b32.xlu2 %v1767_v44, %s5831_s8 }
 0x647   : > { %v1581_v49 = vpop.xlane.xlu0 %1580 }
 0x648   : > { %v1582_v51 = vadd.f32 %v1581_v49, %v1554_v47 }
 0x64a   : > { %1584 = vst.msk [vmem:[#allocation2] sm:$0x1] %vm1583_vm11, %v1582_v51  ;;  %1789 = vrot.lane.b32.xlu2 %v1787_v46, %s5837_s20 }
 0x67c   : > { %v1699_v52 = vpop.permute.xlu2 %1698 }
 0x684   : > { %v1705_v53 = vpop.permute.xlu2 %1704 }
 0x68c   : > { %v1730_v54 = vpop.permute.xlu2 %1729 }
 0x68d   : > { %v1731_v3 = vrot.slane %v1730_v54, 1 }
 0x68f   : > { %v1732_v15 = vsel %vm346_vm0, %v1730_v54, %v1731_v3 }
 0x690   : > { %v1734_v19 = vadd.f32 %v1732_v15, %v1724_v29 }
 0x693   : > { %v1703_v55 = vpop.permute.xlu1 %1702  ;;  %v1701_v57 = vpop.permute.xlu0 %1700 }
 0x694   : > { %v1706_v58 = vsel %vm471_vm8, %v1699_v52, %v1701_v57  ;;  %v1707_v59 = vsel %vm471_vm8, %v1701_v57, %v1703_v55  ;;  %v1708_v60 = vsel %vm471_vm8, %v1703_v55, %v1705_v53  ;;  %v1750_v24 = vpop.permute.xlu2 %1749 }
 0x695   : > { %v1712_v48 = vsel %vm478_vm9, %v1706_v58, 0.0  ;;  %v1713_v61 = vsel %vm478_vm9, %v1707_v59, 0.0  ;;  %v1715_v63 = vsel %vm478_vm9, %v1708_v60, 0.0  ;;  %v1751_v17 = vrot.slane %v1750_v24, 1 }
 0x696   : > { %v1714_v62 = vadd.f32 %v1713_v61, %v1712_v48  ;;  %v1893_v59 = vstv %s5125_s27  ;;  %v1913_v61 = vstv %s5127_s7  ;;  %s5126_s27 = sld [smem:[#allocation9 + $0x73]] }
 0x697   : > { %v1752_v9 = vsel %vm368_vm2, %v1750_v24, %v1751_v17  ;;  %v1894_v60 = vmul.f32 %v6451_v6, %v1893_v59  ;;  %s5128_s7 = sld [smem:[#allocation9 + $0x75]] }
 0x698   : > { %v1716_v50 = vadd.f32 %v1715_v63, %v1714_v62  ;;  %v1863_v62 = vstv %s5122_s13  ;;  %v1914_v63 = vmul.f32 %v6445_v41, %v1913_v61  ;;  %s5121_s13 = sld [smem:[#allocation9 + $0x6e]] }
 0x699   : > { %v1864_v24 = vmul.f32 %v6437_v37, %v1863_v62 }
 0x69a   : > { %1717 = vadd.xlane.f32.xlu1 %v1716_v50  ;;  %v1933_v50 = vstv %s5129_s25  ;;  %s5130_s25 = sld [smem:[#allocation9 + $0x77]] }
 0x69b   : > { %v1740_v4 = vpop.permute.xlu0 %1739  ;;  %v1934_v2 = vmul.f32 %v6445_v41, %v1933_v50 }
 0x69c   : > { %v1741_v13 = vrot.slane %v1740_v4, 1  ;;  %v1770_v16 = vpop.permute.xlu2 %1769  ;;  %v1903_v15 = vstv %s5126_s27  ;;  %s5136_s27 = sld [smem:[#allocation9 + $0x7c]] }
 0x69d   : > { %v1771_v23 = vrot.slane %v1770_v16, 7 }
 0x69e   : > { %v1742_v40 = vsel %vm357_vm1, %v1740_v4, %v1741_v13  ;;  %v1873_v4 = vstv %s5123_s1  ;;  %v1883_v13 = vstv %s5124_s29  ;;  %s5134_s1 = sld [smem:[#allocation9 + $0x7a]] }
 0x69f   : > { %v1744_v22 = vadd.f32 %v1742_v40, %v1734_v19  ;;  %v1772_v35 = vsel %vm390_vm4, %v1771_v23, %v1770_v16  ;;  %v1874_v3 = vmul.f32 %v6437_v37, %v1873_v4  ;;  %v1884_v29 = vmul.f32 %v6437_v37, %v1883_v13  ;;  %v1691_v19 = vld [vmem:[#allocation2] sm:$0x1]  ;;  %s5133_s29 = sld [smem:[#allocation9 + $0x79]] }
 0x6a0   : > { %v1904_v16 = vmul.f32 %v6445_v41, %v1903_v15  ;;  %v1923_v40 = vstv %s5128_s7  ;;  %s5135_s7 = sld [smem:[#allocation9 + $0x7b]] }
 0x6a1   : > { %v1754_v25 = vadd.f32 %v1752_v9, %v1744_v22  ;;  %v1924_v17 = vmul.f32 %v6445_v41, %v1923_v40 }
 0x6a3   : > { %v1760_v21 = vpop.permute.xlu0 %1759 }
 0x6a4   : > { %v1761_v11 = vrot.slane %v1760_v21, 7  ;;  %v1790_v8 = vpop.permute.xlu2 %1789 }
 0x6a5   : > { %v1791_v36 = vrot.slane %v1790_v8, 7 }
 0x6a6   : > { %v1762_v14 = vsel %vm379_vm3, %v1761_v11, %v1760_v21 }
 0x6a7   : > { %v1764_v26 = vadd.f32 %v1762_v14, %v1754_v25  ;;  %v1792_v12 = vsel %vm412_vm6, %v1791_v36, %v1790_v8 }
 0x6a9   : > { %v1774_v30 = vadd.f32 %v1772_v35, %v1764_v26 }
 0x6ab   : > { %v1780_v27 = vpop.permute.xlu0 %1779 }
 0x6ac   : > { %v1781_v28 = vrot.slane %v1780_v27, 7 }
 0x6ae   : > { %v1782_v5 = vsel %vm401_vm5, %v1781_v28, %v1780_v27 }
 0x6af   : > { %v1784_v31 = vadd.f32 %v1782_v5, %v1774_v30 }
 0x6b1   : > { %v1794_v32 = vadd.f32 %v1792_v12, %v1784_v31  ;;  %v1860_v12 = vstv %s5121_s13  ;;  %s5138_s13 = sld [smem:[#allocation9 + $0x7e]] }
 0x6b3   : > { %v1800_v39 = vpop.permute.xlu0 %1799 }
 0x6b4   : > { %v1801_v18 = vrot.slane %v1800_v39, 7 }
 0x6b6   : > { %v1802_v33 = vsel %vm423_vm7, %v1801_v18, %v1800_v39 }
 0x6b7   : > { %v1804_v20 = vadd.f32 %v1802_v33, %v1794_v32 }
 0x6b9   : > { %v1807_v38 = vadd.f32 %v1806_v10, %v1804_v20  ;;  %v1861_v10 = vmul.f32 %v6437_v37, %v1860_v12  ;;  %v2050_v12 = vstv %s5138_s13  ;;  %s5146_s13 = sld [smem:[#allocation9 + $0x85]] }
 0x6bb   : > { %v5120_v1 = vmul.f32 -1.442695, %v1807_v38 }
 0x6bd   : > { %5500 = vpow2.f32 %v5120_v1 }
 0x6c3   : > { %v5501_v34 = vpop.eup %5500 }
 0x6c4   : > { %v1811_v42 = vadd.f32 1.0, %v5501_v34 }
 0x6c6   : > { %5502 = vrcp.f32 %v1811_v42  ;;  %v1823_v44 = vand.u32 2147483648, %v1811_v42  ;;  %v1821_v46 = vand.u32 2147483647, %v1811_v42  ;;  %vm1817_vm13 = vweird.f32 %v1811_v42 }
 0x6c8   : > { %v1824_v49 = vor.u32 1.1754944e-38, %v1823_v44  ;;  %vm1822_vm15 = vcmp.eq.f32.partialorder %v1821_v46, 8.507059e+37 }
 0x6cc   : > { %v5503_v43 = vpop.eup %5502 }
 0x6cd   : > { %v1813_v7 = vmul.f32 %v5503_v43, %v1811_v42  ;;  %vm1818_vm12 = vweird.f32 %v5503_v43 }
 0x6ce   : > { %vm1819_vm14 = vmor %vm1817_vm13, %vm1818_vm12 }
 0x6cf   : > { %v1814_v0 = vsub.f32 1.0, %v1813_v7 }
 0x6d1   : > { %v1815_v45 = vmul.f32 %v5503_v43, %v1814_v0 }
 0x6d3   : > { %v1816_v47 = vadd.f32 %v5503_v43, %v1815_v45 }
 0x6d5   : > { %v1820_v51 = vsel %vm1819_vm14, %v5503_v43, %v1816_v47 }
 0x6d6   : > { %v1825_v52 = vsel %vm1822_vm15, %v1824_v49, %v1820_v51  ;;  %vm1857_vm15 = vcmask 82000  }
 0x6d7   : > { %v1827_v53 = vmul.f32 %v1825_v52, %v1807_v38 }
 0x6d9   : > { %v1829_v54 = vmul.f32 %v1827_v53, %v6125_v56 }
 0x6db   : > { %v1834_v55 = vperm.slane %v1829_v54, 3  ;;  %v1832_v57 = vperm.slane %v1829_v54, 1  ;;  %v1831_v58 = vperm.slane %v1829_v54, 0  ;;  %v1833_v48 = vperm.slane %v1829_v54, 2 }
 0x6dd   : > { %1841 = vrot.lane.b32.xlu1 %v1834_v55, %s7758_s15  ;;  %1837 = vrot.lane.b32.xlu0 %v1832_v57, %s7758_s15 }
 0x6de   : > { %1835 = vrot.lane.b32.xlu2 %v1831_v58, %s7758_s15 }
 0x6e5   : > { %1896 = vrot.lane.b32.xlu1 %v1894_v60, %s5836_s2 }
 0x6e6   : > { %1839 = vrot.lane.b32.xlu2 %v1833_v48, %s7758_s15 }
 0x6ed   : > { %1916 = vrot.lane.b32.xlu1 %v1914_v63, %s7760_s26  ;;  %v1943_v63 = vstv %s5130_s25  ;;  %s5137_s25 = sld [smem:[#allocation9 + $0x7d]] }
 0x6ee   : > { %1866 = vrot.lane.b32.xlu2 %v1864_v24, %s7762_s9 }
 0x6f5   : > { %1936 = vrot.lane.b32.xlu1 %v1934_v2, %s5838_s30 }
 0x6f6   : > { %1876 = vrot.lane.b32.xlu2 %v1874_v3, %s5835_s19 }
 0x6fe   : > { %1886 = vrot.lane.b32.xlu2 %v1884_v29, %s5833_s12 }
 0x706   : > { %1906 = vrot.lane.b32.xlu2 %v1904_v16, %s5831_s8 }
 0x70d   : > { %v1718_v21 = vpop.xlane.xlu1 %1717 }
 0x70e   : > { %v1719_v11 = vadd.f32 %v1718_v21, %v1691_v19  ;;  %1926 = vrot.lane.b32.xlu2 %v1924_v17, %s5837_s20 }
 0x710   : > { %1721 = vst.msk [vmem:[#allocation2] sm:$0x1] %vm1720_vm10, %v1719_v11 }
 0x738   : > { %v1836_v22 = vpop.permute.xlu2 %1835 }
 0x740   : > { %v1840_v9 = vpop.permute.xlu2 %1839 }
 0x748   : > { %v1867_v14 = vpop.permute.xlu2 %1866 }
 0x749   : > { %v1868_v39 = vrot.slane %v1867_v14, 1 }
 0x74b   : > { %v1869_v20 = vsel %vm346_vm0, %v1867_v14, %v1868_v39 }
 0x74c   : > { %v1871_v34 = vadd.f32 %v1869_v20, %v1861_v10 }
 0x74f   : > { %v1842_v23 = vpop.permute.xlu1 %1841  ;;  %v1838_v25 = vpop.permute.xlu0 %1837 }
 0x750   : > { %v1845_v26 = vsel %vm471_vm8, %v1840_v9, %v1842_v23  ;;  %v1843_v27 = vsel %vm471_vm8, %v1836_v22, %v1838_v25  ;;  %v1844_v8 = vsel %vm471_vm8, %v1838_v25, %v1840_v9  ;;  %v1877_v35 = vpop.permute.xlu2 %1876 }
 0x751   : > { %v1849_v28 = vsel %vm478_vm9, %v1843_v27, 0.0  ;;  %v1850_v5 = vsel %vm478_vm9, %v1844_v8, 0.0  ;;  %v1852_v30 = vsel %vm478_vm9, %v1845_v26, 0.0  ;;  %v1878_v18 = vrot.slane %v1877_v35, 1 }
 0x752   : > { %v1851_v36 = vadd.f32 %v1850_v5, %v1849_v28  ;;  %v2010_v27 = vstv %s5134_s1  ;;  %v2000_v28 = vstv %s5133_s29  ;;  %v2030_v5 = vstv %s5136_s27  ;;  %s5140_s1 = sld [smem:[#allocation9 + $0x80]] }
 0x753   : > { %v1879_v1 = vsel %vm357_vm1, %v1877_v35, %v1878_v18  ;;  %v2011_v8 = vmul.f32 %v6437_v37, %v2010_v27  ;;  %v2051_v18 = vmul.f32 %v6445_v41, %v2050_v12  ;;  %s5139_s29 = sld [smem:[#allocation9 + $0x7f]] }
 0x754   : > { %v1853_v31 = vadd.f32 %v1852_v30, %v1851_v36  ;;  %v1881_v43 = vadd.f32 %v1879_v1, %v1871_v34  ;;  %v2001_v36 = vmul.f32 %v6437_v37, %v2000_v28  ;;  %v2031_v30 = vmul.f32 %v6451_v6, %v2030_v5  ;;  %v1828_v34 = vld [vmem:[#allocation2] sm:$0x1]  ;;  %s5132_s27 = sld [smem:[#allocation9 + $0x78]] }
 0x756   : > { %1854 = vadd.xlane.f32.xlu0 %v1853_v31  ;;  %v2020_v31 = vstv %s5135_s7  ;;  %s5141_s7 = sld [smem:[#allocation9 + $0x81]] }
 0x757   : > { %v1897_v32 = vpop.permute.xlu1 %1896  ;;  %v2021_v39 = vmul.f32 %v6437_v37, %v2020_v31 }
 0x758   : > { %v1887_v33 = vpop.permute.xlu2 %1886  ;;  %v1898_v7 = vrot.slane %v1897_v32, 7  ;;  %v2070_v10 = vstv %s5140_s1  ;;  %s5144_s1 = sld [smem:[#allocation9 + $0x83]] }
 0x759   : > { %v1888_v38 = vrot.slane %v1887_v33, 1  ;;  %v2071_v20 = vmul.f32 %v6445_v41, %v2070_v10 }
 0x75a   : > { %v1899_v47 = vsel %vm379_vm3, %v1898_v7, %v1897_v32  ;;  %v2040_v32 = vstv %s5137_s25  ;;  %s5148_s25 = sld [smem:[#allocation9 + $0x87]] }
 0x75b   : > { %v1889_v42 = vsel %vm368_vm2, %v1887_v33, %v1888_v38  ;;  %v2041_v33 = vmul.f32 %v6445_v41, %v2040_v32  ;;  %v2060_v38 = vstv %s5139_s29  ;;  %s5150_s29 = sld [smem:[#allocation9 + $0x89]] }
 0x75c   : > { %v1891_v44 = vadd.f32 %v1889_v42, %v1881_v43  ;;  %v2061_v1 = vmul.f32 %v6445_v41, %v2060_v38  ;;  %v2080_v5 = vstv %s5141_s7  ;;  %s5147_s7 = sld [smem:[#allocation9 + $0x86]] }
 0x75e   : > { %v1901_v51 = vadd.f32 %v1899_v47, %v1891_v44 }
 0x75f   : > { %v1917_v0 = vpop.permute.xlu1 %1916 }
 0x760   : > { %v1907_v45 = vpop.permute.xlu2 %1906  ;;  %v1918_v52 = vrot.slane %v1917_v0, 7 }
 0x761   : > { %v1908_v46 = vrot.slane %v1907_v45, 7 }
 0x762   : > { %v1919_v57 = vsel %vm401_vm5, %v1918_v52, %v1917_v0 }
 0x763   : > { %v1909_v49 = vsel %vm390_vm4, %v1908_v46, %v1907_v45 }
 0x764   : > { %v1911_v53 = vadd.f32 %v1909_v49, %v1901_v51 }
 0x766   : > { %v1921_v60 = vadd.f32 %v1919_v57, %v1911_v53 }
 0x767   : > { %v1937_v54 = vpop.permute.xlu1 %1936 }
 0x768   : > { %v1927_v55 = vpop.permute.xlu2 %1926  ;;  %v1938_v58 = vrot.slane %v1937_v54, 7 }
 0x769   : > { %v1928_v59 = vrot.slane %v1927_v55, 7 }
 0x76a   : > { %v1939_v62 = vsel %vm423_vm7, %v1938_v58, %v1937_v54 }
 0x76b   : > { %v1929_v48 = vsel %vm412_vm6, %v1928_v59, %v1927_v55 }
 0x76c   : > { %v1931_v61 = vadd.f32 %v1929_v48, %v1921_v60  ;;  %v1997_v60 = vstv %s5132_s27  ;;  %s5145_s27 = sld [smem:[#allocation9 + $0x84]] }
 0x76e   : > { %v1941_v24 = vadd.f32 %v1939_v62, %v1931_v61  ;;  %v1998_v62 = vmul.f32 %v6437_v37, %v1997_v60 }
 0x770   : > { %v1944_v50 = vadd.f32 %v1943_v63, %v1941_v24 }
 0x772   : > { %v5131_v4 = vmul.f32 -1.442695, %v1944_v50 }
 0x774   : > { %5504 = vpow2.f32 %v5131_v4 }
 0x77a   : > { %v5505_v2 = vpop.eup %5504 }
 0x77b   : > { %v1948_v3 = vadd.f32 1.0, %v5505_v2 }
 0x77d   : > { %5506 = vrcp.f32 %v1948_v3  ;;  %v1960_v16 = vand.u32 2147483648, %v1948_v3  ;;  %v1958_v17 = vand.u32 2147483647, %v1948_v3  ;;  %vm1954_vm12 = vweird.f32 %v1948_v3 }
 0x77f   : > { %v1961_v21 = vor.u32 1.1754944e-38, %v1960_v16  ;;  %vm1959_vm14 = vcmp.eq.f32.partialorder %v1958_v17, 8.507059e+37 }
 0x783   : > { %v5507_v13 = vpop.eup %5506 }
 0x784   : > { %v1950_v29 = vmul.f32 %v5507_v13, %v1948_v3  ;;  %vm1955_vm11 = vweird.f32 %v5507_v13 }
 0x785   : > { %vm1956_vm13 = vmor %vm1954_vm12, %vm1955_vm11 }
 0x786   : > { %v1951_v15 = vsub.f32 1.0, %v1950_v29 }
 0x788   : > { %v1952_v40 = vmul.f32 %v5507_v13, %v1951_v15 }
 0x78a   : > { %v1953_v19 = vadd.f32 %v5507_v13, %v1952_v40 }
 0x78c   : > { %v1957_v11 = vsel %vm1956_vm13, %v5507_v13, %v1953_v19 }
 0x78d   : > { %v1962_v22 = vsel %vm1959_vm14, %v1961_v21, %v1957_v11  ;;  %vm1994_vm14 = vcmask 90200  }
 0x78e   : > { %v1964_v9 = vmul.f32 %v1962_v22, %v1944_v50 }
 0x790   : > { %v1966_v14 = vmul.f32 %v1964_v9, %v6125_v56 }
 0x792   : > { %v1970_v23 = vperm.slane %v1966_v14, 2  ;;  %v1969_v25 = vperm.slane %v1966_v14, 1  ;;  %v1968_v26 = vperm.slane %v1966_v14, 0  ;;  %v1971_v35 = vperm.slane %v1966_v14, 3 }
 0x794   : > { %1976 = vrot.lane.b32.xlu1 %v1970_v23, %s7758_s15  ;;  %1974 = vrot.lane.b32.xlu2 %v1969_v25, %s7758_s15 }
 0x795   : > { %1972 = vrot.lane.b32.xlu0 %v1968_v26, %s7758_s15 }
 0x79c   : > { %1978 = vrot.lane.b32.xlu2 %v1971_v35, %s7758_s15 }
 0x79d   : > { %2013 = vrot.lane.b32.xlu0 %v2011_v8, %s5835_s19 }
 0x7a4   : > { %2003 = vrot.lane.b32.xlu2 %v2001_v36, %s7762_s9 }
 0x7a5   : > { %2033 = vrot.lane.b32.xlu0 %v2031_v30, %s5836_s2 }
 0x7ac   : > { %2023 = vrot.lane.b32.xlu2 %v2021_v39, %s5833_s12 }
 0x7ad   : > { %2053 = vrot.lane.b32.xlu0 %v2051_v18, %s7760_s26 }
 0x7b4   : > { %2043 = vrot.lane.b32.xlu2 %v2041_v33, %s5831_s8 }
 0x7b5   : > { %2073 = vrot.lane.b32.xlu0 %v2071_v20, %s5838_s30 }
 0x7bc   : > { %2063 = vrot.lane.b32.xlu2 %v2061_v1, %s5837_s20 }
 0x7c9   : > { %v1855_v42 = vpop.xlane.xlu0 %1854 }
 0x7ca   : > { %v1856_v43 = vadd.f32 %v1855_v42, %v1828_v34 }
 0x7cc   : > { %1858 = vst.msk [vmem:[#allocation2] sm:$0x1] %vm1857_vm15, %v1856_v43 }
 0x7ee   : > { %v1975_v7 = vpop.permute.xlu2 %1974 }
 0x7f6   : > { %v1979_v0 = vpop.permute.xlu2 %1978 }
 0x7fe   : > { %v2004_v44 = vpop.permute.xlu2 %2003 }
 0x7ff   : > { %v2005_v48 = vrot.slane %v2004_v44, 1 }
 0x801   : > { %v2006_v63 = vsel %vm346_vm0, %v2004_v44, %v2005_v48 }
 0x802   : > { %v2008_v2 = vadd.f32 %v2006_v63, %v1998_v62 }
 0x806   : > { %v1977_v45 = vpop.permute.xlu1 %1976  ;;  %v2024_v57 = vpop.permute.xlu2 %2023 }
 0x807   : > { %v1981_v46 = vsel %vm471_vm8, %v1975_v7, %v1977_v45  ;;  %v1973_v47 = vpop.permute.xlu0 %1972  ;;  %v1982_v51 = vsel %vm471_vm8, %v1977_v45, %v1979_v0  ;;  %v2025_v4 = vrot.slane %v2024_v57, 1 }
 0x808   : > { %v1980_v49 = vsel %vm471_vm8, %v1973_v47, %v1975_v7  ;;  %v1987_v52 = vsel %vm478_vm9, %v1981_v46, 0.0  ;;  %v1989_v55 = vsel %vm478_vm9, %v1982_v51, 0.0 }
 0x809   : > { %v1986_v53 = vsel %vm478_vm9, %v1980_v49, 0.0  ;;  %v2026_v15 = vsel %vm368_vm2, %v2024_v57, %v2025_v4  ;;  %v2157_v49 = vstv %s5146_s13  ;;  %s5149_s13 = sld [smem:[#allocation9 + $0x88]] }
 0x80a   : > { %v1988_v54 = vadd.f32 %v1987_v52, %v1986_v53  ;;  %v2158_v51 = vmul.f32 %v6437_v37, %v2157_v49  ;;  %v2177_v53 = vstv %s5148_s25  ;;  %s5151_s25 = sld [smem:[#allocation9 + $0x8a]] }
 0x80c   : > { %v1990_v58 = vadd.f32 %v1989_v55, %v1988_v54  ;;  %v2137_v54 = vstv %s5144_s1  ;;  %v2178_v55 = vmul.f32 %v6445_v41, %v2177_v53  ;;  %s5143_s1 = sld [smem:[#allocation9 + $0x82]] }
 0x80d   : > { %v2138_v57 = vmul.f32 %v6437_v37, %v2137_v54 }
 0x80e   : > { %1991 = vadd.xlane.f32.xlu1 %v1990_v58  ;;  %v2044_v24 = vpop.permute.xlu2 %2043  ;;  %v2197_v58 = vstv %s5150_s29  ;;  %s5152_s29 = sld [smem:[#allocation9 + $0x8b]] }
 0x80f   : > { %v2014_v59 = vpop.permute.xlu0 %2013  ;;  %v2045_v40 = vrot.slane %v2044_v24, 7  ;;  %v2198_v60 = vmul.f32 %v6445_v41, %v2197_v58  ;;  %v2187_v63 = vstv %s5149_s13  ;;  %s5155_s13 = sld [smem:[#allocation9 + $0x8d]] }
 0x810   : > { %v2015_v61 = vrot.slane %v2014_v59, 1 }
 0x811   : > { %v2046_v22 = vsel %vm390_vm4, %v2045_v40, %v2044_v24  ;;  %v2188_v24 = vmul.f32 %v6445_v41, %v2187_v63 }
 0x812   : > { %v2016_v50 = vsel %vm357_vm1, %v2014_v59, %v2015_v61  ;;  %v2147_v59 = vstv %s5145_s27  ;;  %v2167_v61 = vstv %s5147_s7  ;;  %s5156_s27 = sld [smem:[#allocation9 + $0x8e]] }
 0x813   : > { %v2018_v29 = vadd.f32 %v2016_v50, %v2008_v2  ;;  %v2148_v48 = vmul.f32 %v6437_v37, %v2147_v59  ;;  %v2168_v62 = vmul.f32 %v6451_v6, %v2167_v61  ;;  %v2207_v50 = vstv %s5151_s25  ;;  %v1965_v2 = vld [vmem:[#allocation2] sm:$0x1]  ;;  %s5158_s7 = sld [smem:[#allocation9 + $0x90]] }
 0x814   : > { %v2208_v4 = vmul.f32 %v6445_v41, %v2207_v50  ;;  %s5160_s25 = sld [smem:[#allocation9 + $0x92]] }
 0x815   : > { %v2028_v17 = vadd.f32 %v2026_v15, %v2018_v29 }
 0x816   : > { %v2064_v11 = vpop.permute.xlu2 %2063 }
 0x817   : > { %v2034_v3 = vpop.permute.xlu0 %2033  ;;  %v2065_v23 = vrot.slane %v2064_v11, 7 }
 0x818   : > { %v2035_v13 = vrot.slane %v2034_v3, 7 }
 0x819   : > { %v2066_v27 = vsel %vm412_vm6, %v2065_v23, %v2064_v11 }
 0x81a   : > { %v2036_v16 = vsel %vm379_vm3, %v2035_v13, %v2034_v3 }
 0x81b   : > { %v2038_v19 = vadd.f32 %v2036_v16, %v2028_v17 }
 0x81d   : > { %v2048_v25 = vadd.f32 %v2046_v22, %v2038_v19 }
 0x81f   : > { %v2054_v21 = vpop.permute.xlu0 %2053 }
 0x820   : > { %v2055_v9 = vrot.slane %v2054_v21, 7 }
 0x822   : > { %v2056_v14 = vsel %vm401_vm5, %v2055_v9, %v2054_v21 }
 0x823   : > { %v2058_v26 = vadd.f32 %v2056_v14, %v2048_v25  ;;  %v2134_v14 = vstv %s5143_s1  ;;  %s5157_s1 = sld [smem:[#allocation9 + $0x8f]] }
 0x825   : > { %v2068_v28 = vadd.f32 %v2066_v27, %v2058_v26  ;;  %v6612_v27 = vld [vmem:[%s5992_s18] sm:$0xf] }
 0x827   : > { %v2074_v8 = vpop.permute.xlu0 %2073 }
 0x828   : > { %v2075_v35 = vrot.slane %v2074_v8, 7 }
 0x82a   : > { %v2076_v36 = vsel %vm423_vm7, %v2075_v35, %v2074_v8  ;;  %v2135_v8 = vmul.f32 %v6612_v27, %v2134_v14  ;;  %v2294_v14 = vstv %s5157_s1  ;;  %s5166_s1 = sld [smem:[#allocation9 + $0x97]] }
 0x82b   : > { %v2078_v30 = vadd.f32 %v2076_v36, %v2068_v28 }
 0x82d   : > { %v2081_v31 = vadd.f32 %v2080_v5, %v2078_v30 }
 0x82f   : > { %v5142_v12 = vmul.f32 -1.442695, %v2081_v31 }
 0x831   : > { %5508 = vpow2.f32 %v5142_v12 }
 0x837   : > { %v5509_v39 = vpop.eup %5508 }
 0x838   : > { %v2085_v18 = vadd.f32 1.0, %v5509_v39 }
 0x83a   : > { %5510 = vrcp.f32 %v2085_v18  ;;  %v2097_v20 = vand.u32 2147483648, %v2085_v18  ;;  %v2095_v1 = vand.u32 2147483647, %v2085_v18  ;;  %vm2091_vm11 = vweird.f32 %v2085_v18 }
 0x83c   : > { %v2098_v42 = vor.u32 1.1754944e-38, %v2097_v20  ;;  %vm2096_vm13 = vcmp.eq.f32.partialorder %v2095_v1, 8.507059e+37 }
 0x840   : > { %v5511_v32 = vpop.eup %5510 }
 0x841   : > { %v2087_v10 = vmul.f32 %v5511_v32, %v2085_v18  ;;  %vm2092_vm10 = vweird.f32 %v5511_v32 }
 0x842   : > { %vm2093_vm12 = vmor %vm2091_vm11, %vm2092_vm10 }
 0x843   : > { %v2088_v33 = vsub.f32 1.0, %v2087_v10 }
 0x845   : > { %v2089_v38 = vmul.f32 %v5511_v32, %v2088_v33 }
 0x847   : > { %v2090_v34 = vadd.f32 %v5511_v32, %v2089_v38 }
 0x849   : > { %v2094_v43 = vsel %vm2093_vm12, %v5511_v32, %v2090_v34 }
 0x84a   : > { %v2099_v7 = vsel %vm2096_vm13, %v2098_v42, %v2094_v43  ;;  %vm2131_vm13 = vcmask 98400  }
 0x84b   : > { %v2101_v0 = vmul.f32 %v2099_v7, %v2081_v31 }
 0x84d   : > { %v2103_v44 = vmul.f32 %v2101_v0, %v6125_v56 }
 0x84f   : > { %v2107_v45 = vperm.slane %v2103_v44, 2  ;;  %v2106_v46 = vperm.slane %v2103_v44, 1  ;;  %v2105_v47 = vperm.slane %v2103_v44, 0  ;;  %v2108_v52 = vperm.slane %v2103_v44, 3 }
 0x851   : > { %2113 = vrot.lane.b32.xlu1 %v2107_v45, %s7758_s15  ;;  %2111 = vrot.lane.b32.xlu0 %v2106_v46, %s7758_s15 }
 0x852   : > { %2109 = vrot.lane.b32.xlu2 %v2105_v47, %s7758_s15 }
 0x859   : > { %2160 = vrot.lane.b32.xlu1 %v2158_v51, %s5833_s12 }
 0x85a   : > { %2115 = vrot.lane.b32.xlu2 %v2108_v52, %s7758_s15  ;;  %v2217_v52 = vstv %s5152_s29  ;;  %s5162_s29 = sld [smem:[#allocation9 + $0x94]] }
 0x861   : > { %2180 = vrot.lane.b32.xlu1 %v2178_v55, %s5831_s8 }
 0x862   : > { %2140 = vrot.lane.b32.xlu2 %v2138_v57, %s7762_s9 }
 0x869   : > { %2200 = vrot.lane.b32.xlu1 %v2198_v60, %s5837_s20 }
 0x86a   : > { %2150 = vrot.lane.b32.xlu2 %v2148_v48, %s5835_s19 }
 0x872   : > { %2170 = vrot.lane.b32.xlu2 %v2168_v62, %s5836_s2 }
 0x87a   : > { %2190 = vrot.lane.b32.xlu2 %v2188_v24, %s7760_s26 }
 0x881   : > { %v1992_v37 = vpop.xlane.xlu1 %1991 }
 0x882   : > { %v1993_v3 = vadd.f32 %v1992_v37, %v1965_v2  ;;  %2210 = vrot.lane.b32.xlu2 %v2208_v4, %s5838_s30 }
 0x884   : > { %1995 = vst.msk [vmem:[#allocation2] sm:$0x1] %vm1994_vm14, %v1993_v3 }
 0x8ac   : > { %v2110_v13 = vpop.permute.xlu2 %2109 }
 0x8b4   : > { %v2116_v6 = vpop.permute.xlu2 %2115 }
 0x8bc   : > { %v2141_v29 = vpop.permute.xlu2 %2140 }
 0x8bd   : > { %v2142_v23 = vrot.slane %v2141_v29, 1 }
 0x8bf   : > { %v2143_v28 = vsel %vm346_vm0, %v2141_v29, %v2142_v23  ;;  %v6638_v23 = vld [vmem:[%s5992_s18 + $0x1] sm:$0xf] }
 0x8c0   : > { %v2145_v31 = vadd.f32 %v2143_v28, %v2135_v8  ;;  %v2344_v8 = vstv %s5162_s29  ;;  %s5168_s29 = sld [smem:[#allocation9 + $0x99]] }
 0x8c1   : > { %v2345_v28 = vmul.f32 %v6638_v23, %v2344_v8 }
 0x8c3   : > { %v2114_v15 = vpop.permute.xlu1 %2113  ;;  %v2112_v16 = vpop.permute.xlu0 %2111 }
 0x8c4   : > { %v2119_v40 = vsel %vm471_vm8, %v2114_v15, %v2116_v6  ;;  %v2117_v17 = vsel %vm471_vm8, %v2110_v13, %v2112_v16  ;;  %v2118_v41 = vsel %vm471_vm8, %v2112_v16, %v2114_v15  ;;  %v2151_v19 = vpop.permute.xlu2 %2150  ;;  %v2284_v16 = vstv %s5156_s27  ;;  %s5159_s27 = sld [smem:[#allocation9 + $0x91]] }
 0x8c5   : > { %v2123_v21 = vsel %vm478_vm9, %v2117_v17, 0.0  ;;  %v2124_v11 = vsel %vm478_vm9, %v2118_v41, 0.0  ;;  %v2126_v9 = vsel %vm478_vm9, %v2119_v40, 0.0  ;;  %v2152_v26 = vrot.slane %v2151_v19, 1 }
 0x8c6   : > { %v2125_v22 = vadd.f32 %v2124_v11, %v2123_v21  ;;  %v2285_v40 = vmul.f32 %v6612_v27, %v2284_v16  ;;  %v2304_v41 = vstv %s5158_s7  ;;  %v6631_v21 = vld [vmem:[%s5992_s18 + $0x1] sm:$0x7]  ;;  %s5161_s7 = sld [smem:[#allocation9 + $0x93]] }
 0x8c7   : > { %v2153_v30 = vsel %vm357_vm1, %v2151_v19, %v2152_v26  ;;  %v2274_v19 = vstv %s5155_s13  ;;  %v2305_v11 = vmul.f32 %v6631_v21, %v2304_v41  ;;  %v2295_v26 = vmul.f32 %v6612_v27, %v2294_v14  ;;  %s5154_s13 = sld [smem:[#allocation9 + $0x8c]] }
 0x8c8   : > { %v2127_v25 = vadd.f32 %v2126_v9, %v2125_v22  ;;  %v2155_v39 = vadd.f32 %v2153_v30, %v2145_v31  ;;  %v2275_v22 = vmul.f32 %v6612_v27, %v2274_v19  ;;  %v2324_v9 = vstv %s5160_s25  ;;  %s5163_s25 = sld [smem:[#allocation9 + $0x95]] }
 0x8ca   : > { %2128 = vadd.xlane.f32.xlu0 %v2127_v25  ;;  %v2325_v25 = vmul.f32 %v6638_v23, %v2324_v9 }
 0x8cb   : > { %v2161_v35 = vpop.permute.xlu1 %2160 }
 0x8cc   : > { %v2162_v5 = vrot.slane %v2161_v35, 1  ;;  %v2171_v36 = vpop.permute.xlu2 %2170 }
 0x8cd   : > { %v2172_v18 = vrot.slane %v2171_v36, 7 }
 0x8ce   : > { %v2163_v12 = vsel %vm368_vm2, %v2161_v35, %v2162_v5  ;;  %v2314_v35 = vstv %s5159_s27  ;;  %s5167_s27 = sld [smem:[#allocation9 + $0x98]] }
 0x8cf   : > { %v2165_v32 = vadd.f32 %v2163_v12, %v2155_v39  ;;  %v2173_v38 = vsel %vm379_vm3, %v2172_v18, %v2171_v36  ;;  %v2315_v5 = vmul.f32 %v6638_v23, %v2314_v35  ;;  %v2334_v36 = vstv %s5161_s7  ;;  %v2102_v12 = vld [vmem:[#allocation2] sm:$0x1]  ;;  %s5170_s7 = sld [smem:[#allocation9 + $0x9b]] }
 0x8d0   : > { %v2335_v30 = vmul.f32 %v6638_v23, %v2334_v36 }
 0x8d1   : > { %v2175_v34 = vadd.f32 %v2173_v38, %v2165_v32 }
 0x8d3   : > { %v2181_v10 = vpop.permute.xlu1 %2180 }
 0x8d4   : > { %v2182_v33 = vrot.slane %v2181_v10, 7  ;;  %v2191_v20 = vpop.permute.xlu2 %2190 }
 0x8d5   : > { %v2192_v42 = vrot.slane %v2191_v20, 7 }
 0x8d6   : > { %v2183_v1 = vsel %vm390_vm4, %v2182_v33, %v2181_v10 }
 0x8d7   : > { %v2185_v43 = vadd.f32 %v2183_v1, %v2175_v34  ;;  %v2193_v0 = vsel %vm401_vm5, %v2192_v42, %v2191_v20 }
 0x8d9   : > { %v2195_v46 = vadd.f32 %v2193_v0, %v2185_v43 }
 0x8db   : > { %v2201_v7 = vpop.permute.xlu1 %2200 }
 0x8dc   : > { %v2202_v44 = vrot.slane %v2201_v7, 7  ;;  %v2211_v45 = vpop.permute.xlu2 %2210 }
 0x8dd   : > { %v2212_v47 = vrot.slane %v2211_v45, 7 }
 0x8de   : > { %v2203_v49 = vsel %vm412_vm6, %v2202_v44, %v2201_v7 }
 0x8df   : > { %v2205_v51 = vadd.f32 %v2203_v49, %v2195_v46  ;;  %v2213_v53 = vsel %vm423_vm7, %v2212_v47, %v2211_v45  ;;  %v2271_v47 = vstv %s5154_s13  ;;  %s5169_s13 = sld [smem:[#allocation9 + $0x9a]] }
 0x8e1   : > { %v2215_v54 = vadd.f32 %v2213_v53, %v2205_v51  ;;  %v2272_v51 = vmul.f32 %v6612_v27, %v2271_v47 }
 0x8e3   : > { %v2218_v55 = vadd.f32 %v2217_v52, %v2215_v54 }
 0x8e5   : > { %v5153_v57 = vmul.f32 -1.442695, %v2218_v55  ;;  %v2441_v47 = vstv %s5169_s13  ;;  %s5178_s13 = sld [smem:[#allocation9 + $0xa2]] }
 0x8e7   : > { %5512 = vpow2.f32 %v5153_v57 }
 0x8ed   : > { %v5513_v58 = vpop.eup %5512 }
 0x8ee   : > { %v2222_v59 = vadd.f32 1.0, %v5513_v58 }
 0x8f0   : > { %5514 = vrcp.f32 %v2222_v59  ;;  %v2234_v62 = vand.u32 2147483648, %v2222_v59  ;;  %v2232_v24 = vand.u32 2147483647, %v2222_v59  ;;  %vm2228_vm10 = vweird.f32 %v2222_v59 }
 0x8f2   : > { %v2235_v4 = vor.u32 1.1754944e-38, %v2234_v62  ;;  %vm2233_vm12 = vcmp.eq.f32.partialorder %v2232_v24, 8.507059e+37 }
 0x8f6   : > { %v5515_v60 = vpop.eup %5514 }
 0x8f7   : > { %v2224_v48 = vmul.f32 %v5515_v60, %v2222_v59  ;;  %vm2229_vm15 = vweird.f32 %v5515_v60 }
 0x8f8   : > { %vm2230_vm11 = vmor %vm2228_vm10, %vm2229_vm15 }
 0x8f9   : > { %v2225_v61 = vsub.f32 1.0, %v2224_v48 }
 0x8fb   : > { %v2226_v63 = vmul.f32 %v5515_v60, %v2225_v61 }
 0x8fd   : > { %v2227_v50 = vadd.f32 %v5515_v60, %v2226_v63 }
 0x8ff   : > { %v2231_v37 = vsel %vm2230_vm11, %v5515_v60, %v2227_v50 }
 0x900   : > { %v2236_v2 = vsel %vm2233_vm12, %v2235_v4, %v2231_v37  ;;  %vm2268_vm12 = vcmask 106600  }
 0x901   : > { %v2238_v3 = vmul.f32 %v2236_v2, %v2218_v55 }
 0x903   : > { %v2240_v13 = vmul.f32 %v2238_v3, %v6125_v56 }
 0x905   : > { %v2244_v6 = vperm.slane %v2240_v13, 2  ;;  %v2243_v29 = vperm.slane %v2240_v13, 1  ;;  %v2242_v15 = vperm.slane %v2240_v13, 0  ;;  %v2245_v17 = vperm.slane %v2240_v13, 3 }
 0x907   : > { %2250 = vrot.lane.b32.xlu2 %v2244_v6, %s7758_s15  ;;  %2248 = vrot.lane.b32.xlu0 %v2243_v29, %s7758_s15 }
 0x908   : > { %2246 = vrot.lane.b32.xlu1 %v2242_v15, %s7758_s15 }
 0x90f   : > { %2287 = vrot.lane.b32.xlu0 %v2285_v40, %s5835_s19 }
 0x910   : > { %2252 = vrot.lane.b32.xlu1 %v2245_v17, %s7758_s15 }
 0x917   : > { %2307 = vrot.lane.b32.xlu0 %v2305_v11, %s5836_s2  ;;  %v2354_v11 = vstv %s5163_s25  ;;  %s5172_s25 = sld [smem:[#allocation9 + $0x9d]] }
 0x918   : > { %2277 = vrot.lane.b32.xlu1 %v2275_v22, %s7762_s9 }
 0x91f   : > { %2327 = vrot.lane.b32.xlu0 %v2325_v25, %s7760_s26 }
 0x920   : > { %2297 = vrot.lane.b32.xlu1 %v2295_v26, %s5833_s12 }
 0x927   : > { %2347 = vrot.lane.b32.xlu0 %v2345_v28, %s5838_s30 }
 0x928   : > { %2317 = vrot.lane.b32.xlu1 %v2315_v5, %s5831_s8 }
 0x930   : > { %2337 = vrot.lane.b32.xlu1 %v2335_v30, %s5837_s20 }
 0x93d   : > { %v2129_v31 = vpop.xlane.xlu0 %2128 }
 0x93e   : > { %v2130_v39 = vadd.f32 %v2129_v31, %v2102_v12 }
 0x940   : > { %2132 = vst.msk [vmem:[#allocation2] sm:$0x1] %vm2131_vm13, %v2130_v39 }
 0x961   : > { %v2251_v10 = vpop.permute.xlu2 %2250 }
 0x979   : > { %v2249_v18 = vpop.permute.xlu0 %2248 }
 0x97a   : > { %v2247_v32 = vpop.permute.xlu1 %2246  ;;  %v2255_v33 = vsel %vm471_vm8, %v2249_v18, %v2251_v10 }
 0x97b   : > { %v2254_v20 = vsel %vm471_vm8, %v2247_v32, %v2249_v18  ;;  %v2261_v38 = vsel %vm478_vm9, %v2255_v33, 0.0 }
 0x97c   : > { %v2260_v1 = vsel %vm478_vm9, %v2254_v20, 0.0 }
 0x97d   : > { %v2262_v43 = vadd.f32 %v2261_v38, %v2260_v1 }
 0x981   : > { %v2288_v42 = vpop.permute.xlu0 %2287 }
 0x982   : > { %v2253_v34 = vpop.permute.xlu1 %2252  ;;  %v2289_v54 = vrot.slane %v2288_v42, 1 }
 0x983   : > { %v2256_v7 = vsel %vm471_vm8, %v2251_v10, %v2253_v34  ;;  %v2411_v34 = vstv %s5166_s1  ;;  %s5171_s1 = sld [smem:[#allocation9 + $0x9c]] }
 0x984   : > { %v2263_v0 = vsel %vm478_vm9, %v2256_v7, 0.0  ;;  %v2290_v59 = vsel %vm357_vm1, %v2288_v42, %v2289_v54  ;;  %v2412_v42 = vmul.f32 %v6612_v27, %v2411_v34 }
 0x985   : > { %v2264_v44 = vadd.f32 %v2263_v0, %v2262_v43  ;;  %v2431_v43 = vstv %s5168_s29  ;;  %v2421_v0 = vstv %s5167_s27  ;;  %s5173_s29 = sld [smem:[#allocation9 + $0x9e]] }
 0x986   : > { %v2432_v7 = vmul.f32 %v6612_v27, %v2431_v43  ;;  %s5165_s27 = sld [smem:[#allocation9 + $0x96]] }
 0x987   : > { %2265 = vadd.xlane.f32.xlu2 %v2264_v44  ;;  %v2451_v44 = vstv %s5170_s7  ;;  %s5174_s7 = sld [smem:[#allocation9 + $0x9f]] }
 0x989   : > { %v2308_v46 = vpop.permute.xlu0 %2307 }
 0x98a   : > { %v2278_v45 = vpop.permute.xlu1 %2277  ;;  %v2309_v61 = vrot.slane %v2308_v46, 7 }
 0x98b   : > { %v2279_v49 = vrot.slane %v2278_v45, 1 }
 0x98c   : > { %v2310_v50 = vsel %vm379_vm3, %v2309_v61, %v2308_v46  ;;  %v2452_v46 = vmul.f32 %v6638_v23, %v2451_v44 }
 0x98d   : > { %v2280_v52 = vsel %vm346_vm0, %v2278_v45, %v2279_v49  ;;  %v2422_v45 = vmul.f32 %v6612_v27, %v2421_v0  ;;  %v2471_v49 = vstv %s5172_s25  ;;  %s5180_s25 = sld [smem:[#allocation9 + $0xa4]] }
 0x98e   : > { %v2282_v57 = vadd.f32 %v2280_v52, %v2272_v51  ;;  %v2442_v51 = vmul.f32 %v6631_v21, %v2441_v47  ;;  %v2472_v52 = vmul.f32 %v6638_v23, %v2471_v49 }
 0x990   : > { %v2292_v48 = vadd.f32 %v2290_v59, %v2282_v57 }
 0x991   : > { %v2328_v58 = vpop.permute.xlu0 %2327 }
 0x992   : > { %v2298_v53 = vpop.permute.xlu1 %2297  ;;  %v2329_v2 = vrot.slane %v2328_v58, 7 }
 0x993   : > { %v2299_v55 = vrot.slane %v2298_v53, 1 }
 0x994   : > { %v2330_v29 = vsel %vm401_vm5, %v2329_v2, %v2328_v58  ;;  %v2239_v58 = vld [vmem:[#allocation2] sm:$0x1] }
 0x995   : > { %v2300_v60 = vsel %vm368_vm2, %v2298_v53, %v2299_v55  ;;  %v2461_v53 = vstv %s5171_s1  ;;  %v2481_v55 = vstv %s5173_s29  ;;  %s5177_s1 = sld [smem:[#allocation9 + $0xa1]] }
 0x996   : > { %v2302_v62 = vadd.f32 %v2300_v60, %v2292_v48  ;;  %v2462_v54 = vmul.f32 %v6638_v23, %v2461_v53  ;;  %v2482_v60 = vmul.f32 %v6638_v23, %v2481_v55  ;;  %s5182_s29 = sld [smem:[#allocation9 + $0xa6]] }
 0x998   : > { %v2312_v37 = vadd.f32 %v2310_v50, %v2302_v62 }
 0x999   : > { %v2348_v13 = vpop.permute.xlu0 %2347 }
 0x99a   : > { %v2318_v63 = vpop.permute.xlu1 %2317  ;;  %v2349_v15 = vrot.slane %v2348_v13, 7 }
 0x99b   : > { %v2319_v24 = vrot.slane %v2318_v63, 7 }
 0x99c   : > { %v2350_v19 = vsel %vm423_vm7, %v2349_v15, %v2348_v13 }
 0x99d   : > { %v2320_v4 = vsel %vm390_vm4, %v2319_v24, %v2318_v63 }
 0x99e   : > { %v2322_v3 = vadd.f32 %v2320_v4, %v2312_v37 }
 0x9a0   : > { %v2332_v40 = vadd.f32 %v2330_v29, %v2322_v3 }
 0x9a2   : > { %v2338_v6 = vpop.permute.xlu1 %2337 }
 0x9a3   : > { %v2339_v16 = vrot.slane %v2338_v6, 7 }
 0x9a5   : > { %v2340_v17 = vsel %vm412_vm6, %v2339_v16, %v2338_v6 }
 0x9a6   : > { %v2342_v41 = vadd.f32 %v2340_v17, %v2332_v40  ;;  %v2408_v40 = vstv %s5165_s27  ;;  %s5179_s27 = sld [smem:[#allocation9 + $0xa3]] }
 0x9a8   : > { %v2352_v22 = vadd.f32 %v2350_v19, %v2342_v41  ;;  %v2409_v19 = vmul.f32 %v6612_v27, %v2408_v40 }
 0x9aa   : > { %v2355_v9 = vadd.f32 %v2354_v11, %v2352_v22 }
 0x9ac   : > { %v5164_v14 = vmul.f32 -1.442695, %v2355_v9 }
 0x9ae   : > { %5516 = vpow2.f32 %v5164_v14 }
 0x9b4   : > { %v5517_v25 = vpop.eup %5516 }
 0x9b5   : > { %v2359_v26 = vadd.f32 1.0, %v5517_v25 }
 0x9b7   : > { %5518 = vrcp.f32 %v2359_v26  ;;  %v2371_v5 = vand.u32 2147483648, %v2359_v26  ;;  %v2369_v30 = vand.u32 2147483647, %v2359_v26  ;;  %vm2365_vm15 = vweird.f32 %v2359_v26 }
 0x9b9   : > { %v2372_v12 = vor.u32 1.1754944e-38, %v2371_v5  ;;  %vm2370_vm11 = vcmp.eq.f32.partialorder %v2369_v30, 8.507059e+37 }
 0x9bd   : > { %v5519_v8 = vpop.eup %5518 }
 0x9be   : > { %v2361_v35 = vmul.f32 %v5519_v8, %v2359_v26  ;;  %vm2366_vm14 = vweird.f32 %v5519_v8 }
 0x9bf   : > { %vm2367_vm10 = vmor %vm2365_vm15, %vm2366_vm14 }
 0x9c0   : > { %v2362_v28 = vsub.f32 1.0, %v2361_v35 }
 0x9c2   : > { %v2363_v36 = vmul.f32 %v5519_v8, %v2362_v28 }
 0x9c4   : > { %v2364_v31 = vadd.f32 %v5519_v8, %v2363_v36 }
 0x9c6   : > { %v2368_v39 = vsel %vm2367_vm10, %v5519_v8, %v2364_v31 }
 0x9c7   : > { %v2373_v18 = vsel %vm2370_vm11, %v2372_v12, %v2368_v39  ;;  %vm2405_vm11 = vcmask 114800  }
 0x9c8   : > { %v2375_v32 = vmul.f32 %v2373_v18, %v2355_v9 }
 0x9ca   : > { %v2377_v10 = vmul.f32 %v2375_v32, %v6125_v56 }
 0x9cc   : > { %v2381_v33 = vperm.slane %v2377_v10, 2  ;;  %v2380_v20 = vperm.slane %v2377_v10, 1  ;;  %v2379_v38 = vperm.slane %v2377_v10, 0  ;;  %v2382_v1 = vperm.slane %v2377_v10, 3 }
 0x9ce   : > { %2387 = vrot.lane.b32.xlu0 %v2381_v33, %s7758_s15  ;;  %2385 = vrot.lane.b32.xlu2 %v2380_v20, %s7758_s15 }
 0x9cf   : > { %2383 = vrot.lane.b32.xlu1 %v2379_v38, %s7758_s15 }
 0x9d6   : > { %2434 = vrot.lane.b32.xlu2 %v2432_v7, %s5833_s12  ;;  %v2491_v7 = vstv %s5174_s7  ;;  %s5184_s7 = sld [smem:[#allocation9 + $0xa8]] }
 0x9d7   : > { %2389 = vrot.lane.b32.xlu1 %v2382_v1, %s7758_s15 }
 0x9de   : > { %2454 = vrot.lane.b32.xlu2 %v2452_v46, %s5831_s8 }
 0x9df   : > { %2414 = vrot.lane.b32.xlu1 %v2412_v42, %s7762_s9 }
 0x9e6   : > { %2474 = vrot.lane.b32.xlu2 %v2472_v52, %s5837_s20 }
 0x9e7   : > { %2424 = vrot.lane.b32.xlu1 %v2422_v45, %s5835_s19 }
 0x9ef   : > { %2444 = vrot.lane.b32.xlu1 %v2442_v51, %s5836_s2 }
 0x9f7   : > { %2464 = vrot.lane.b32.xlu1 %v2462_v54, %s7760_s26 }
 0x9fa   : > { %v2266_v57 = vpop.xlane.xlu2 %2265 }
 0x9fb   : > { %v2267_v59 = vadd.f32 %v2266_v57, %v2239_v58 }
 0x9fd   : > { %2269 = vst.msk [vmem:[#allocation2] sm:$0x1] %vm2268_vm12, %v2267_v59 }
 0x9ff   : > { %2484 = vrot.lane.b32.xlu1 %v2482_v60, %s5838_s30 }
 0xa28   : > { %v2386_v62 = vpop.permute.xlu2 %2385 }
 0xa30   : > { %v2435_v15 = vpop.permute.xlu2 %2434 }
 0xa31   : > { %v2436_v14 = vrot.slane %v2435_v15, 1 }
 0xa33   : > { %v2437_v28 = vsel %vm368_vm2, %v2435_v15, %v2436_v14  ;;  %v2598_v15 = vstv %s5182_s29  ;;  %s5185_s29 = sld [smem:[#allocation9 + $0xa9]] }
 0xa34   : > { %v2599_v40 = vmul.f32 %v6638_v23, %v2598_v15 }
 0xa38   : > { %v2455_v22 = vpop.permute.xlu2 %2454 }
 0xa39   : > { %v2456_v36 = vrot.slane %v2455_v22, 7 }
 0xa3b   : > { %v2457_v18 = vsel %vm390_vm4, %v2456_v36, %v2455_v22 }
 0xa40   : > { %v2388_v48 = vpop.permute.xlu0 %2387  ;;  %v2475_v39 = vpop.permute.xlu2 %2474 }
 0xa41   : > { %v2384_v61 = vpop.permute.xlu1 %2383  ;;  %v2392_v63 = vsel %vm471_vm8, %v2386_v62, %v2388_v48  ;;  %v2476_v33 = vrot.slane %v2475_v39, 7 }
 0xa42   : > { %v2391_v24 = vsel %vm471_vm8, %v2384_v61, %v2386_v62  ;;  %v2398_v50 = vsel %vm478_vm9, %v2392_v63, 0.0 }
 0xa43   : > { %v2397_v4 = vsel %vm478_vm9, %v2391_v24, 0.0  ;;  %v2477_v1 = vsel %vm412_vm6, %v2476_v33, %v2475_v39 }
 0xa44   : > { %v2399_v2 = vadd.f32 %v2398_v50, %v2397_v4  ;;  %v2558_v4 = vstv %s5178_s13  ;;  %s5181_s13 = sld [smem:[#allocation9 + $0xa5]] }
 0xa49   : > { %v2390_v37 = vpop.permute.xlu1 %2389 }
 0xa4a   : > { %v2393_v3 = vsel %vm471_vm8, %v2388_v48, %v2390_v37  ;;  %v2559_v37 = vmul.f32 %v6612_v27, %v2558_v4 }
 0xa4b   : > { %v2400_v13 = vsel %vm478_vm9, %v2393_v3, 0.0  ;;  %v2578_v3 = vstv %s5180_s25  ;;  %s5183_s25 = sld [smem:[#allocation9 + $0xa7]] }
 0xa4c   : > { %v2401_v6 = vadd.f32 %v2400_v13, %v2399_v2  ;;  %v2548_v13 = vstv %s5177_s1  ;;  %s5176_s1 = sld [smem:[#allocation9 + $0xa0]] }
 0xa4e   : > { %2402 = vadd.xlane.f32.xlu0 %v2401_v6  ;;  %v2579_v6 = vmul.f32 %v6631_v21, %v2578_v3 }
 0xa51   : > { %v2415_v29 = vpop.permute.xlu1 %2414 }
 0xa52   : > { %v2416_v17 = vrot.slane %v2415_v29, 1 }
 0xa54   : > { %v2417_v11 = vsel %vm346_vm0, %v2415_v29, %v2416_v17  ;;  %v2549_v29 = vmul.f32 %v6612_v27, %v2548_v13  ;;  %v2628_v13 = vstv %s5185_s29  ;;  %s5191_s29 = sld [smem:[#allocation9 + $0xae]] }
 0xa55   : > { %v2419_v25 = vadd.f32 %v2417_v11, %v2409_v19  ;;  %v2588_v19 = vstv %s5181_s13  ;;  %s5188_s13 = sld [smem:[#allocation9 + $0xab]] }
 0xa56   : > { %v2589_v22 = vmul.f32 %v6638_v23, %v2588_v19 }
 0xa59   : > { %v2425_v16 = vpop.permute.xlu1 %2424 }
 0xa5a   : > { %v2426_v41 = vrot.slane %v2425_v16, 1 }
 0xa5c   : > { %v2427_v9 = vsel %vm357_vm1, %v2425_v16, %v2426_v41  ;;  %v2568_v16 = vstv %s5179_s27  ;;  %v2618_v41 = vstv %s5184_s7  ;;  %s5190_s27 = sld [smem:[#allocation9 + $0xad]] }
 0xa5d   : > { %v2429_v35 = vadd.f32 %v2427_v9, %v2419_v25  ;;  %v2569_v17 = vmul.f32 %v6612_v27, %v2568_v16  ;;  %v2619_v11 = vmul.f32 %v6638_v23, %v2618_v41  ;;  %v2608_v9 = vstv %s5183_s25  ;;  %s5192_s7 = sld [smem:[#allocation9 + $0xaf]] }
 0xa5e   : > { %v2609_v14 = vmul.f32 %v6638_v23, %v2608_v9  ;;  %s5194_s25 = sld [smem:[#allocation9 + $0xb1]] }
 0xa5f   : > { %v2439_v30 = vadd.f32 %v2437_v28, %v2429_v35 }
 0xa61   : > { %v2445_v26 = vpop.permute.xlu1 %2444 }
 0xa62   : > { %v2446_v8 = vrot.slane %v2445_v26, 7 }
 0xa64   : > { %v2447_v5 = vsel %vm379_vm3, %v2446_v8, %v2445_v26  ;;  %v2376_v26 = vld [vmem:[#allocation2] sm:$0x1] }
 0xa65   : > { %v2449_v31 = vadd.f32 %v2447_v5, %v2439_v30 }
 0xa67   : > { %v2459_v20 = vadd.f32 %v2457_v18, %v2449_v31 }
 0xa69   : > { %v2465_v12 = vpop.permute.xlu1 %2464 }
 0xa6a   : > { %v2466_v32 = vrot.slane %v2465_v12, 7 }
 0xa6c   : > { %v2467_v10 = vsel %vm401_vm5, %v2466_v32, %v2465_v12 }
 0xa6d   : > { %v2469_v38 = vadd.f32 %v2467_v10, %v2459_v20 }
 0xa6f   : > { %v2479_v43 = vadd.f32 %v2477_v1, %v2469_v38 }
 0xa71   : > { %v2485_v34 = vpop.permute.xlu1 %2484 }
 0xa72   : > { %v2486_v42 = vrot.slane %v2485_v34, 7 }
 0xa74   : > { %v2487_v0 = vsel %vm423_vm7, %v2486_v42, %v2485_v34  ;;  %v2545_v34 = vstv %s5176_s1  ;;  %s5189_s1 = sld [smem:[#allocation9 + $0xac]] }
 0xa75   : > { %v2489_v44 = vadd.f32 %v2487_v0, %v2479_v43 }
 0xa77   : > { %v2492_v45 = vadd.f32 %v2491_v7, %v2489_v44  ;;  %v2546_v7 = vmul.f32 %v6612_v27, %v2545_v34 }
 0xa79   : > { %v5175_v46 = vmul.f32 -1.442695, %v2492_v45 }
 0xa7b   : > { %5520 = vpow2.f32 %v5175_v46 }
 0xa81   : > { %v5521_v47 = vpop.eup %5520 }
 0xa82   : > { %v2496_v49 = vadd.f32 1.0, %v5521_v47 }
 0xa84   : > { %5522 = vrcp.f32 %v2496_v49  ;;  %v2508_v54 = vand.u32 2147483648, %v2496_v49  ;;  %v2506_v57 = vand.u32 2147483647, %v2496_v49  ;;  %vm2502_vm14 = vweird.f32 %v2496_v49 }
 0xa86   : > { %v2509_v59 = vor.u32 1.1754944e-38, %v2508_v54  ;;  %vm2507_vm10 = vcmp.eq.f32.partialorder %v2506_v57, 8.507059e+37 }
 0xa8a   : > { %v5523_v51 = vpop.eup %5522 }
 0xa8b   : > { %v2498_v52 = vmul.f32 %v5523_v51, %v2496_v49  ;;  %vm2503_vm13 = vweird.f32 %v5523_v51 }
 0xa8c   : > { %vm2504_vm15 = vmor %vm2502_vm14, %vm2503_vm13 }
 0xa8d   : > { %v2499_v53 = vsub.f32 1.0, %v2498_v52 }
 0xa8f   : > { %v2500_v55 = vmul.f32 %v5523_v51, %v2499_v53 }
 0xa91   : > { %v2501_v58 = vadd.f32 %v5523_v51, %v2500_v55 }
 0xa93   : > { %v2505_v60 = vsel %vm2504_vm15, %v5523_v51, %v2501_v58 }
 0xa94   : > { %v2510_v48 = vsel %vm2507_vm10, %v2509_v59, %v2505_v60  ;;  %vm2542_vm10 = vcmask 123000  }
 0xa95   : > { %v2512_v61 = vmul.f32 %v2510_v48, %v2492_v45 }
 0xa97   : > { %v2514_v62 = vmul.f32 %v2512_v61, %v6125_v56 }
 0xa99   : > { %v2518_v63 = vperm.slane %v2514_v62, 2  ;;  %v2517_v24 = vperm.slane %v2514_v62, 1  ;;  %v2516_v50 = vperm.slane %v2514_v62, 0  ;;  %v2519_v2 = vperm.slane %v2514_v62, 3 }
 0xa9b   : > { %2524 = vrot.lane.b32.xlu1 %v2518_v63, %s7758_s15  ;;  %2522 = vrot.lane.b32.xlu0 %v2517_v24, %s7758_s15 }
 0xa9c   : > { %2520 = vrot.lane.b32.xlu2 %v2516_v50, %s7758_s15 }
 0xaa3   : > { %2561 = vrot.lane.b32.xlu0 %v2559_v37, %s5835_s19 }
 0xaa4   : > { %2526 = vrot.lane.b32.xlu2 %v2519_v2, %s7758_s15 }
 0xaab   : > { %2581 = vrot.lane.b32.xlu0 %v2579_v6, %s5836_s2 }
 0xaac   : > { %2551 = vrot.lane.b32.xlu2 %v2549_v29, %s7762_s9 }
 0xab3   : > { %2601 = vrot.lane.b32.xlu0 %v2599_v40, %s7760_s26 }
 0xab4   : > { %2571 = vrot.lane.b32.xlu2 %v2569_v17, %s5833_s12 }
 0xabb   : > { %2621 = vrot.lane.b32.xlu0 %v2619_v11, %s5838_s30 }
 0xabc   : > { %2591 = vrot.lane.b32.xlu2 %v2589_v22, %s5831_s8 }
 0xac1   : > { %v2403_v25 = vpop.xlane.xlu0 %2402 }
 0xac2   : > { %v2404_v8 = vadd.f32 %v2403_v25, %v2376_v26 }
 0xac4   : > { %2406 = vst.msk [vmem:[#allocation2] sm:$0x1] %vm2405_vm11, %v2404_v8  ;;  %2611 = vrot.lane.b32.xlu2 %v2609_v14, %s5837_s20 }
 0xaf6   : > { %v2521_v35 = vpop.permute.xlu2 %2520 }
 0xafe   : > { %v2527_v28 = vpop.permute.xlu2 %2526 }
 0xb06   : > { %v2552_v5 = vpop.permute.xlu2 %2551 }
 0xb07   : > { %v2553_v42 = vrot.slane %v2552_v5, 1 }
 0xb09   : > { %v2554_v0 = vsel %vm346_vm0, %v2552_v5, %v2553_v42 }
 0xb0a   : > { %v2556_v47 = vadd.f32 %v2554_v0, %v2546_v7 }
 0xb0d   : > { %v2525_v36 = vpop.permute.xlu1 %2524  ;;  %v2523_v30 = vpop.permute.xlu0 %2522 }
 0xb0e   : > { %v2530_v31 = vsel %vm471_vm8, %v2525_v36, %v2527_v28  ;;  %v2528_v12 = vsel %vm471_vm8, %v2521_v35, %v2523_v30  ;;  %v2529_v39 = vsel %vm471_vm8, %v2523_v30, %v2525_v36  ;;  %v2572_v20 = vpop.permute.xlu2 %2571 }
 0xb0f   : > { %v2534_v18 = vsel %vm478_vm9, %v2528_v12, 0.0  ;;  %v2535_v32 = vsel %vm478_vm9, %v2529_v39, 0.0  ;;  %v2537_v33 = vsel %vm478_vm9, %v2530_v31, 0.0  ;;  %v2573_v46 = vrot.slane %v2572_v20, 1 }
 0xb10   : > { %v2536_v10 = vadd.f32 %v2535_v32, %v2534_v18  ;;  %v2705_v12 = vstv %s5190_s27  ;;  %v2725_v32 = vstv %s5192_s7  ;;  %s5193_s27 = sld [smem:[#allocation9 + $0xb0]] }
 0xb11   : > { %v2574_v53 = vsel %vm368_vm2, %v2572_v20, %v2573_v46  ;;  %v2706_v39 = vmul.f32 %v6612_v27, %v2705_v12  ;;  %s5195_s7 = sld [smem:[#allocation9 + $0xb2]] }
 0xb12   : > { %v2538_v38 = vadd.f32 %v2537_v33, %v2536_v10  ;;  %v2685_v10 = vstv %s5188_s13  ;;  %v2726_v33 = vmul.f32 %v6638_v23, %v2725_v32  ;;  %s5187_s13 = sld [smem:[#allocation9 + $0xaa]] }
 0xb13   : > { %v2686_v20 = vmul.f32 %v6612_v27, %v2685_v10 }
 0xb14   : > { %2539 = vadd.xlane.f32.xlu1 %v2538_v38  ;;  %v2745_v38 = vstv %s5194_s25  ;;  %s5196_s25 = sld [smem:[#allocation9 + $0xb3]] }
 0xb15   : > { %v2562_v1 = vpop.permute.xlu0 %2561  ;;  %v2746_v34 = vmul.f32 %v6638_v23, %v2745_v38 }
 0xb16   : > { %v2563_v43 = vrot.slane %v2562_v1, 1  ;;  %v2592_v44 = vpop.permute.xlu2 %2591  ;;  %v2735_v0 = vstv %s5193_s27  ;;  %s5199_s27 = sld [smem:[#allocation9 + $0xb5]] }
 0xb17   : > { %v2593_v55 = vrot.slane %v2592_v44, 7 }
 0xb18   : > { %v2564_v45 = vsel %vm357_vm1, %v2562_v1, %v2563_v43  ;;  %v2695_v1 = vstv %s5189_s1  ;;  %v2715_v43 = vstv %s5191_s29  ;;  %s5200_s1 = sld [smem:[#allocation9 + $0xb6]] }
 0xb19   : > { %v2566_v52 = vadd.f32 %v2564_v45, %v2556_v47  ;;  %v2594_v48 = vsel %vm390_vm4, %v2593_v55, %v2592_v44  ;;  %v2696_v42 = vmul.f32 %v6612_v27, %v2695_v1  ;;  %v2716_v7 = vmul.f32 %v6631_v21, %v2715_v43  ;;  %s5202_s29 = sld [smem:[#allocation9 + $0xb8]] }
 0xb1a   : > { %v2736_v44 = vmul.f32 %v6638_v23, %v2735_v0  ;;  %v2755_v45 = vstv %s5195_s7  ;;  %v2765_v32 = vstv %s5196_s25  ;;  %s5204_s7 = sld [smem:[#allocation9 + $0xba]] }
 0xb1b   : > { %v2576_v57 = vadd.f32 %v2574_v53, %v2566_v52  ;;  %v2756_v46 = vmul.f32 %v6638_v23, %v2755_v45  ;;  %s5206_s25 = sld [smem:[#allocation9 + $0xbc]] }
 0xb1d   : > { %v2582_v49 = vpop.permute.xlu0 %2581 }
 0xb1e   : > { %v2583_v51 = vrot.slane %v2582_v49, 7  ;;  %v2612_v60 = vpop.permute.xlu2 %2611 }
 0xb1f   : > { %v2613_v63 = vrot.slane %v2612_v60, 7 }
 0xb20   : > { %v2584_v54 = vsel %vm379_vm3, %v2583_v51, %v2582_v49  ;;  %v2513_v49 = vld [vmem:[#allocation2] sm:$0x1] }
 0xb21   : > { %v2586_v58 = vadd.f32 %v2584_v54, %v2576_v57  ;;  %v2614_v4 = vsel %vm412_vm6, %v2613_v63, %v2612_v60 }
 0xb23   : > { %v2596_v24 = vadd.f32 %v2594_v48, %v2586_v58 }
 0xb25   : > { %v2602_v59 = vpop.permute.xlu0 %2601 }
 0xb26   : > { %v2603_v61 = vrot.slane %v2602_v59, 7 }
 0xb28   : > { %v2604_v62 = vsel %vm401_vm5, %v2603_v61, %v2602_v59 }
 0xb29   : > { %v2606_v50 = vadd.f32 %v2604_v62, %v2596_v24 }
 0xb2b   : > { %v2616_v3 = vadd.f32 %v2614_v4, %v2606_v50  ;;  %v2682_v50 = vstv %s5187_s13  ;;  %s5201_s13 = sld [smem:[#allocation9 + $0xb7]] }
 0xb2d   : > { %v2622_v37 = vpop.permute.xlu0 %2621 }
 0xb2e   : > { %v2623_v2 = vrot.slane %v2622_v37, 7 }
 0xb30   : > { %v2624_v6 = vsel %vm423_vm7, %v2623_v2, %v2622_v37 }
 0xb31   : > { %v2626_v29 = vadd.f32 %v2624_v6, %v2616_v3  ;;  %v2683_v3 = vmul.f32 %v6612_v27, %v2682_v50  ;;  %v2872_v50 = vstv %s5204_s7  ;;  %s5207_s7 = sld [smem:[#allocation9 + $0xbd]] }
 0xb33   : > { %v2629_v15 = vadd.f32 %v2628_v13, %v2626_v29 }
 0xb35   : > { %v5186_v16 = vmul.f32 -1.442695, %v2629_v15 }
 0xb37   : > { %5524 = vpow2.f32 %v5186_v16 }
 0xb3d   : > { %v5525_v40 = vpop.eup %5524 }
 0xb3e   : > { %v2633_v17 = vadd.f32 1.0, %v5525_v40 }
 0xb40   : > { %5526 = vrcp.f32 %v2633_v17  ;;  %v2645_v22 = vand.u32 2147483648, %v2633_v17  ;;  %v2643_v14 = vand.u32 2147483647, %v2633_v17  ;;  %vm2639_vm13 = vweird.f32 %v2633_v17 }
 0xb42   : > { %v2646_v26 = vor.u32 1.1754944e-38, %v2645_v22  ;;  %vm2644_vm15 = vcmp.eq.f32.partialorder %v2643_v14, 8.507059e+37 }
 0xb46   : > { %v5527_v41 = vpop.eup %5526 }
 0xb47   : > { %v2635_v19 = vmul.f32 %v5527_v41, %v2633_v17  ;;  %vm2640_vm12 = vweird.f32 %v5527_v41 }
 0xb48   : > { %vm2641_vm14 = vmor %vm2639_vm13, %vm2640_vm12 }
 0xb49   : > { %v2636_v11 = vsub.f32 1.0, %v2635_v19 }
 0xb4b   : > { %v2637_v9 = vmul.f32 %v5527_v41, %v2636_v11 }
 0xb4d   : > { %v2638_v25 = vadd.f32 %v5527_v41, %v2637_v9 }
 0xb4f   : > { %v2642_v8 = vsel %vm2641_vm14, %v5527_v41, %v2638_v25 }
 0xb50   : > { %v2647_v35 = vsel %vm2644_vm15, %v2646_v26, %v2642_v8  ;;  %vm2679_vm15 = vcmask 131200  }
 0xb51   : > { %v2649_v28 = vmul.f32 %v2647_v35, %v2629_v15 }
 0xb53   : > { %v2651_v5 = vmul.f32 %v2649_v28, %v6125_v56 }
 0xb55   : > { %v2655_v36 = vperm.slane %v2651_v5, 2  ;;  %v2654_v30 = vperm.slane %v2651_v5, 1  ;;  %v2653_v31 = vperm.slane %v2651_v5, 0  ;;  %v2656_v18 = vperm.slane %v2651_v5, 3 }
 0xb57   : > { %2661 = vrot.lane.b32.xlu0 %v2655_v36, %s7758_s15  ;;  %2659 = vrot.lane.b32.xlu1 %v2654_v30, %s7758_s15 }
 0xb58   : > { %2657 = vrot.lane.b32.xlu2 %v2653_v31, %s7758_s15 }
 0xb5f   : > { %2708 = vrot.lane.b32.xlu1 %v2706_v39, %s5833_s12 }
 0xb60   : > { %2663 = vrot.lane.b32.xlu2 %v2656_v18, %s7758_s15 }
 0xb67   : > { %2728 = vrot.lane.b32.xlu1 %v2726_v33, %s5831_s8 }
 0xb68   : > { %2688 = vrot.lane.b32.xlu2 %v2686_v20, %s7762_s9 }
 0xb6f   : > { %2748 = vrot.lane.b32.xlu1 %v2746_v34, %s5837_s20 }
 0xb70   : > { %2698 = vrot.lane.b32.xlu2 %v2696_v42, %s5835_s19 }
 0xb78   : > { %2718 = vrot.lane.b32.xlu2 %v2716_v7, %s5836_s2 }
 0xb80   : > { %2738 = vrot.lane.b32.xlu2 %v2736_v44, %s7760_s26 }
 0xb87   : > { %v2540_v47 = vpop.xlane.xlu1 %2539 }
 0xb88   : > { %v2541_v51 = vadd.f32 %v2540_v47, %v2513_v49  ;;  %2758 = vrot.lane.b32.xlu2 %v2756_v46, %s5838_s30 }
 0xb8a   : > { %2543 = vst.msk [vmem:[#allocation2] sm:$0x1] %vm2542_vm10, %v2541_v51 }
 0xbb2   : > { %v2658_v52 = vpop.permute.xlu2 %2657 }
 0xbba   : > { %v2664_v53 = vpop.permute.xlu2 %2663 }
 0xbc2   : > { %v2689_v54 = vpop.permute.xlu2 %2688 }
 0xbc3   : > { %v2690_v4 = vrot.slane %v2689_v54, 1 }
 0xbc5   : > { %v2691_v6 = vsel %vm346_vm0, %v2689_v54, %v2690_v4  ;;  %v2842_v4 = vstv %s5201_s13  ;;  %s5210_s13 = sld [smem:[#allocation9 + $0xbf]] }
 0xbc6   : > { %v2693_v40 = vadd.f32 %v2691_v6, %v2683_v3  ;;  %v2892_v3 = vstv %s5206_s25  ;;  %s5212_s25 = sld [smem:[#allocation9 + $0xc1]] }
 0xbc9   : > { %v2662_v55 = vpop.permute.xlu0 %2661  ;;  %v2660_v57 = vpop.permute.xlu1 %2659 }
 0xbca   : > { %v2667_v58 = vsel %vm471_vm8, %v2662_v55, %v2664_v53  ;;  %v2665_v59 = vsel %vm471_vm8, %v2658_v52, %v2660_v57  ;;  %v2666_v60 = vsel %vm471_vm8, %v2660_v57, %v2662_v55  ;;  %v2699_v48 = vpop.permute.xlu2 %2698 }
 0xbcb   : > { %v2671_v61 = vsel %vm478_vm9, %v2665_v59, 0.0  ;;  %v2672_v62 = vsel %vm478_vm9, %v2666_v60, 0.0  ;;  %v2674_v24 = vsel %vm478_vm9, %v2667_v58, 0.0  ;;  %v2700_v2 = vrot.slane %v2699_v48, 1  ;;  %v6778_v59 = vld [vmem:[%s5992_s18] sm:$0xf] }
 0xbcc   : > { %v2673_v63 = vadd.f32 %v2672_v62, %v2671_v61  ;;  %v2832_v58 = vstv %s5200_s1  ;;  %v2852_v61 = vstv %s5202_s29  ;;  %v2822_v62 = vstv %s5199_s27  ;;  %s5203_s1 = sld [smem:[#allocation9 + $0xb9]] }
 0xbcd   : > { %v2701_v16 = vsel %vm357_vm1, %v2699_v48, %v2700_v2  ;;  %v2833_v60 = vmul.f32 %v6778_v59, %v2832_v58  ;;  %v2843_v2 = vmul.f32 %v6778_v59, %v2842_v4  ;;  %s5205_s29 = sld [smem:[#allocation9 + $0xbb]] }
 0xbce   : > { %v2675_v37 = vadd.f32 %v2674_v24, %v2673_v63  ;;  %v2703_v41 = vadd.f32 %v2701_v16, %v2693_v40  ;;  %v2853_v63 = vmul.f32 %v6631_v21, %v2852_v61  ;;  %v2823_v24 = vmul.f32 %v6778_v59, %v2822_v62  ;;  %v2650_v40 = vld [vmem:[#allocation2] sm:$0x1]  ;;  %s5198_s27 = sld [smem:[#allocation9 + $0xb4]] }
 0xbcf   : > { %v2902_v61 = vstv %s5207_s7  ;;  %s5216_s7 = sld [smem:[#allocation9 + $0xc5]] }
 0xbd0   : > { %2676 = vadd.xlane.f32.xlu0 %v2675_v37  ;;  %v2873_v37 = vmul.f32 %v6638_v23, %v2872_v50 }
 0xbd1   : > { %v2709_v13 = vpop.permute.xlu1 %2708 }
 0xbd2   : > { %v2710_v29 = vrot.slane %v2709_v13, 1  ;;  %v2719_v15 = vpop.permute.xlu2 %2718  ;;  %v2862_v21 = vstv %s5203_s1  ;;  %s5211_s1 = sld [smem:[#allocation9 + $0xc0]] }
 0xbd3   : > { %v2720_v19 = vrot.slane %v2719_v15, 7  ;;  %v2863_v6 = vmul.f32 %v6638_v23, %v2862_v21 }
 0xbd4   : > { %v2711_v17 = vsel %vm368_vm2, %v2709_v13, %v2710_v29  ;;  %v2893_v13 = vmul.f32 %v6638_v23, %v2892_v3  ;;  %v2882_v29 = vstv %s5205_s29  ;;  %s5214_s29 = sld [smem:[#allocation9 + $0xc3]] }
 0xbd5   : > { %v2713_v11 = vadd.f32 %v2711_v17, %v2703_v41  ;;  %v2721_v25 = vsel %vm379_vm3, %v2720_v19, %v2719_v15  ;;  %v2883_v15 = vmul.f32 %v6638_v23, %v2882_v29 }
 0xbd7   : > { %v2723_v26 = vadd.f32 %v2721_v25, %v2713_v11 }
 0xbd9   : > { %v2729_v22 = vpop.permute.xlu1 %2728 }
 0xbda   : > { %v2730_v9 = vrot.slane %v2729_v22, 7  ;;  %v2739_v14 = vpop.permute.xlu2 %2738 }
 0xbdb   : > { %v2740_v8 = vrot.slane %v2739_v14, 7 }
 0xbdc   : > { %v2731_v27 = vsel %vm390_vm4, %v2730_v9, %v2729_v22 }
 0xbdd   : > { %v2733_v35 = vadd.f32 %v2731_v27, %v2723_v26  ;;  %v2741_v5 = vsel %vm401_vm5, %v2740_v8, %v2739_v14 }
 0xbdf   : > { %v2743_v31 = vadd.f32 %v2741_v5, %v2733_v35 }
 0xbe1   : > { %v2749_v28 = vpop.permute.xlu1 %2748 }
 0xbe2   : > { %v2750_v36 = vrot.slane %v2749_v28, 7  ;;  %v2759_v30 = vpop.permute.xlu2 %2758 }
 0xbe3   : > { %v2760_v12 = vrot.slane %v2759_v30, 7 }
 0xbe4   : > { %v2751_v39 = vsel %vm412_vm6, %v2750_v36, %v2749_v28 }
 0xbe5   : > { %v2753_v18 = vadd.f32 %v2751_v39, %v2743_v31  ;;  %v2761_v10 = vsel %vm423_vm7, %v2760_v12, %v2759_v30  ;;  %v2819_v30 = vstv %s5198_s27  ;;  %s5213_s27 = sld [smem:[#allocation9 + $0xc2]] }
 0xbe6   : > { %v2820_v12 = vmul.f32 %v6778_v59, %v2819_v30  ;;  %v3019_v30 = vstv %s5216_s7  ;;  %s5225_s7 = sld [smem:[#allocation9 + $0xcd]] }
 0xbe7   : > { %v2763_v33 = vadd.f32 %v2761_v10, %v2753_v18 }
 0xbe9   : > { %v2766_v20 = vadd.f32 %v2765_v32, %v2763_v33 }
 0xbeb   : > { %v5197_v38 = vmul.f32 -1.442695, %v2766_v20 }
 0xbed   : > { %5528 = vpow2.f32 %v5197_v38 }
 0xbf3   : > { %v5529_v1 = vpop.eup %5528 }
 0xbf4   : > { %v2770_v34 = vadd.f32 1.0, %v5529_v1 }
 0xbf6   : > { %5530 = vrcp.f32 %v2770_v34  ;;  %v2782_v0 = vand.u32 2147483648, %v2770_v34  ;;  %v2780_v45 = vand.u32 2147483647, %v2770_v34  ;;  %vm2776_vm12 = vweird.f32 %v2770_v34 }
 0xbf8   : > { %v2783_v47 = vor.u32 1.1754944e-38, %v2782_v0  ;;  %vm2781_vm14 = vcmp.eq.f32.partialorder %v2780_v45, 8.507059e+37 }
 0xbfc   : > { %v5531_v42 = vpop.eup %5530 }
 0xbfd   : > { %v2772_v43 = vmul.f32 %v5531_v42, %v2770_v34  ;;  %vm2777_vm11 = vweird.f32 %v5531_v42 }
 0xbfe   : > { %vm2778_vm13 = vmor %vm2776_vm12, %vm2777_vm11 }
 0xbff   : > { %v2773_v7 = vsub.f32 1.0, %v2772_v43 }
 0xc01   : > { %v2774_v44 = vmul.f32 %v5531_v42, %v2773_v7 }
 0xc03   : > { %v2775_v46 = vadd.f32 %v5531_v42, %v2774_v44 }
 0xc05   : > { %v2779_v49 = vsel %vm2778_vm13, %v5531_v42, %v2775_v46 }
 0xc06   : > { %v2784_v51 = vsel %vm2781_vm14, %v2783_v47, %v2779_v49  ;;  %vm2816_vm14 = vcmask 139400  }
 0xc07   : > { %v2786_v52 = vmul.f32 %v2784_v51, %v2766_v20 }
 0xc09   : > { %v2788_v53 = vmul.f32 %v2786_v52, %v6125_v56 }
 0xc0b   : > { %v2792_v54 = vperm.slane %v2788_v53, 2  ;;  %v2791_v55 = vperm.slane %v2788_v53, 1  ;;  %v2790_v57 = vperm.slane %v2788_v53, 0  ;;  %v2793_v48 = vperm.slane %v2788_v53, 3 }
 0xc0d   : > { %2798 = vrot.lane.b32.xlu0 %v2792_v54, %s7758_s15  ;;  %2796 = vrot.lane.b32.xlu2 %v2791_v55, %s7758_s15 }
 0xc0e   : > { %2794 = vrot.lane.b32.xlu1 %v2790_v57, %s7758_s15 }
 0xc15   : > { %2835 = vrot.lane.b32.xlu0 %v2833_v60, %s5835_s19 }
 0xc16   : > { %2800 = vrot.lane.b32.xlu1 %v2793_v48, %s7758_s15 }
 0xc1d   : > { %2855 = vrot.lane.b32.xlu0 %v2853_v63, %s5836_s2 }
 0xc1e   : > { %2825 = vrot.lane.b32.xlu1 %v2823_v24, %s7762_s9 }
 0xc25   : > { %2875 = vrot.lane.b32.xlu0 %v2873_v37, %s7760_s26 }
 0xc26   : > { %2845 = vrot.lane.b32.xlu1 %v2843_v2, %s5833_s12 }
 0xc2d   : > { %2895 = vrot.lane.b32.xlu0 %v2893_v13, %s5838_s30 }
 0xc2e   : > { %2865 = vrot.lane.b32.xlu1 %v2863_v6, %s5831_s8 }
 0xc36   : > { %2885 = vrot.lane.b32.xlu1 %v2883_v15, %s5837_s20 }
 0xc43   : > { %v2677_v16 = vpop.xlane.xlu0 %2676 }
 0xc44   : > { %v2678_v17 = vadd.f32 %v2677_v16, %v2650_v40 }
 0xc46   : > { %2680 = vst.msk [vmem:[#allocation2] sm:$0x1] %vm2679_vm15, %v2678_v17 }
 0xc67   : > { %v2797_v11 = vpop.permute.xlu2 %2796 }
 0xc7f   : > { %v2799_v41 = vpop.permute.xlu0 %2798 }
 0xc80   : > { %v2795_v19 = vpop.permute.xlu1 %2794  ;;  %v2803_v22 = vsel %vm471_vm8, %v2797_v11, %v2799_v41 }
 0xc81   : > { %v2802_v9 = vsel %vm471_vm8, %v2795_v19, %v2797_v11  ;;  %v2809_v14 = vsel %vm478_vm9, %v2803_v22, 0.0 }
 0xc82   : > { %v2808_v25 = vsel %vm478_vm9, %v2802_v9, 0.0 }
 0xc83   : > { %v2810_v26 = vadd.f32 %v2809_v14, %v2808_v25  ;;  %v2959_v14 = vstv %s5210_s13  ;;  %s5215_s13 = sld [smem:[#allocation9 + $0xc4]] }
 0xc84   : > { %v2960_v25 = vmul.f32 %v6778_v59, %v2959_v14 }
 0xc87   : > { %v2836_v23 = vpop.permute.xlu0 %2835 }
 0xc88   : > { %v2801_v27 = vpop.permute.xlu1 %2800  ;;  %v2837_v32 = vrot.slane %v2836_v23, 1 }
 0xc89   : > { %v2804_v8 = vsel %vm471_vm8, %v2799_v41, %v2801_v27  ;;  %v2979_v27 = vstv %s5212_s25  ;;  %s5217_s25 = sld [smem:[#allocation9 + $0xc6]] }
 0xc8a   : > { %v2811_v35 = vsel %vm478_vm9, %v2804_v8, 0.0  ;;  %v2838_v38 = vsel %vm357_vm1, %v2836_v23, %v2837_v32  ;;  %v2980_v23 = vmul.f32 %v6778_v59, %v2979_v27  ;;  %v2999_v8 = vstv %s5214_s29  ;;  %s5218_s29 = sld [smem:[#allocation9 + $0xc7]] }
 0xc8b   : > { %v2812_v28 = vadd.f32 %v2811_v35, %v2810_v26  ;;  %v2969_v26 = vstv %s5211_s1  ;;  %s5209_s1 = sld [smem:[#allocation9 + $0xbe]] }
 0xc8c   : > { %v2970_v35 = vmul.f32 %v6778_v59, %v2969_v26 }
 0xc8d   : > { %2813 = vadd.xlane.f32.xlu2 %v2812_v28  ;;  %v6823_v28 = vld [vmem:[%s5992_s18 + $0x1] sm:$0xf] }
 0xc8f   : > { %v2856_v36 = vpop.permute.xlu0 %2855 }
 0xc90   : > { %v2826_v5 = vpop.permute.xlu1 %2825  ;;  %v2857_v42 = vrot.slane %v2856_v36, 7 }
 0xc91   : > { %v2827_v31 = vrot.slane %v2826_v5, 1 }
 0xc92   : > { %v2858_v44 = vsel %vm379_vm3, %v2857_v42, %v2856_v36  ;;  %v2989_v36 = vstv %s5213_s27  ;;  %s5223_s27 = sld [smem:[#allocation9 + $0xcb]] }
 0xc93   : > { %v2828_v39 = vsel %vm346_vm0, %v2826_v5, %v2827_v31  ;;  %v3000_v5 = vmul.f32 %v6823_v28, %v2999_v8  ;;  %v6829_v31 = vld [vmem:[%s5992_s18 + $0x1] sm:$0x7] }
 0xc94   : > { %v2830_v33 = vadd.f32 %v2828_v39, %v2820_v12  ;;  %v2990_v12 = vmul.f32 %v6829_v31, %v2989_v36  ;;  %v3020_v39 = vmul.f32 %v6823_v28, %v3019_v30 }
 0xc96   : > { %v2840_v34 = vadd.f32 %v2838_v38, %v2830_v33 }
 0xc97   : > { %v2876_v20 = vpop.permute.xlu0 %2875 }
 0xc98   : > { %v2846_v18 = vpop.permute.xlu1 %2845  ;;  %v2877_v47 = vrot.slane %v2876_v20, 7 }
 0xc99   : > { %v2847_v10 = vrot.slane %v2846_v18, 1 }
 0xc9a   : > { %v2878_v53 = vsel %vm401_vm5, %v2877_v47, %v2876_v20  ;;  %v2787_v20 = vld [vmem:[#allocation2] sm:$0x1] }
 0xc9b   : > { %v2848_v1 = vsel %vm368_vm2, %v2846_v18, %v2847_v10  ;;  %v3009_v18 = vstv %s5215_s13  ;;  %v3029_v10 = vstv %s5217_s25  ;;  %s5221_s13 = sld [smem:[#allocation9 + $0xc9]] }
 0xc9c   : > { %v2850_v43 = vadd.f32 %v2848_v1, %v2840_v34  ;;  %v3010_v32 = vmul.f32 %v6823_v28, %v3009_v18  ;;  %v3030_v1 = vmul.f32 %v6823_v28, %v3029_v10  ;;  %s5227_s25 = sld [smem:[#allocation9 + $0xcf]] }
 0xc9e   : > { %v2860_v46 = vadd.f32 %v2858_v44, %v2850_v43 }
 0xc9f   : > { %v2896_v51 = vpop.permute.xlu0 %2895 }
 0xca0   : > { %v2866_v7 = vpop.permute.xlu1 %2865  ;;  %v2897_v54 = vrot.slane %v2896_v51, 7 }
 0xca1   : > { %v2867_v0 = vrot.slane %v2866_v7, 7 }
 0xca2   : > { %v2898_v48 = vsel %vm423_vm7, %v2897_v54, %v2896_v51 }
 0xca3   : > { %v2868_v45 = vsel %vm390_vm4, %v2867_v0, %v2866_v7 }
 0xca4   : > { %v2870_v49 = vadd.f32 %v2868_v45, %v2860_v46 }
 0xca6   : > { %v2880_v57 = vadd.f32 %v2878_v53, %v2870_v49 }
 0xca8   : > { %v2886_v52 = vpop.permute.xlu1 %2885 }
 0xca9   : > { %v2887_v55 = vrot.slane %v2886_v52, 7 }
 0xcab   : > { %v2888_v58 = vsel %vm412_vm6, %v2887_v55, %v2886_v52 }
 0xcac   : > { %v2890_v60 = vadd.f32 %v2888_v58, %v2880_v57  ;;  %v2956_v57 = vstv %s5209_s1  ;;  %s5222_s1 = sld [smem:[#allocation9 + $0xca]] }
 0xcae   : > { %v2900_v62 = vadd.f32 %v2898_v48, %v2890_v60  ;;  %v2957_v48 = vmul.f32 %v6778_v59, %v2956_v57 }
 0xcb0   : > { %v2903_v63 = vadd.f32 %v2902_v61, %v2900_v62 }
 0xcb2   : > { %v5208_v24 = vmul.f32 -1.442695, %v2903_v63 }
 0xcb4   : > { %5532 = vpow2.f32 %v5208_v24 }
 0xcba   : > { %v5533_v50 = vpop.eup %5532 }
 0xcbb   : > { %v2907_v4 = vadd.f32 1.0, %v5533_v50 }
 0xcbd   : > { %5534 = vrcp.f32 %v2907_v4  ;;  %v2919_v21 = vand.u32 2147483648, %v2907_v4  ;;  %v2917_v6 = vand.u32 2147483647, %v2907_v4  ;;  %vm2913_vm11 = vweird.f32 %v2907_v4 }
 0xcbf   : > { %v2920_v15 = vor.u32 1.1754944e-38, %v2919_v21  ;;  %vm2918_vm13 = vcmp.eq.f32.partialorder %v2917_v6, 8.507059e+37 }
 0xcc3   : > { %v5535_v37 = vpop.eup %5534 }
 0xcc4   : > { %v2909_v2 = vmul.f32 %v5535_v37, %v2907_v4  ;;  %vm2914_vm10 = vweird.f32 %v5535_v37 }
 0xcc5   : > { %vm2915_vm12 = vmor %vm2913_vm11, %vm2914_vm10 }
 0xcc6   : > { %v2910_v3 = vsub.f32 1.0, %v2909_v2 }
 0xcc8   : > { %v2911_v13 = vmul.f32 %v5535_v37, %v2910_v3 }
 0xcca   : > { %v2912_v29 = vadd.f32 %v5535_v37, %v2911_v13 }
 0xccc   : > { %v2916_v16 = vsel %vm2915_vm12, %v5535_v37, %v2912_v29 }
 0xccd   : > { %v2921_v40 = vsel %vm2918_vm13, %v2920_v15, %v2916_v16  ;;  %vm2953_vm13 = vcmask 147600  }
 0xcce   : > { %v2923_v17 = vmul.f32 %v2921_v40, %v2903_v63 }
 0xcd0   : > { %v2925_v41 = vmul.f32 %v2923_v17, %v6125_v56 }
 0xcd2   : > { %v2929_v19 = vperm.slane %v2925_v41, 2  ;;  %v2928_v11 = vperm.slane %v2925_v41, 1  ;;  %v2927_v22 = vperm.slane %v2925_v41, 0  ;;  %v2930_v9 = vperm.slane %v2925_v41, 3 }
 0xcd4   : > { %2935 = vrot.lane.b32.xlu0 %v2929_v19, %s7758_s15  ;;  %2933 = vrot.lane.b32.xlu2 %v2928_v11, %s7758_s15 }
 0xcd5   : > { %2931 = vrot.lane.b32.xlu1 %v2927_v22, %s7758_s15 }
 0xcdc   : > { %2982 = vrot.lane.b32.xlu2 %v2980_v23, %s5833_s12  ;;  %v3039_v23 = vstv %s5218_s29  ;;  %s5224_s29 = sld [smem:[#allocation9 + $0xcc]] }
 0xcdd   : > { %2937 = vrot.lane.b32.xlu1 %v2930_v9, %s7758_s15 }
 0xce4   : > { %3002 = vrot.lane.b32.xlu2 %v3000_v5, %s5831_s8 }
 0xce5   : > { %2962 = vrot.lane.b32.xlu1 %v2960_v25, %s7762_s9 }
 0xcec   : > { %3022 = vrot.lane.b32.xlu2 %v3020_v39, %s5837_s20 }
 0xced   : > { %2972 = vrot.lane.b32.xlu1 %v2970_v35, %s5835_s19 }
 0xcf5   : > { %2992 = vrot.lane.b32.xlu1 %v2990_v12, %s5836_s2 }
 0xcfd   : > { %3012 = vrot.lane.b32.xlu1 %v3010_v32, %s7760_s26 }
 0xd00   : > { %v2814_v33 = vpop.xlane.xlu2 %2813 }
 0xd01   : > { %v2815_v38 = vadd.f32 %v2814_v33, %v2787_v20 }
 0xd03   : > { %2817 = vst.msk [vmem:[#allocation2] sm:$0x1] %vm2816_vm14, %v2815_v38 }
 0xd05   : > { %3032 = vrot.lane.b32.xlu1 %v3030_v1, %s5838_s30 }
 0xd2e   : > { %v2934_v43 = vpop.permute.xlu2 %2933 }
 0xd36   : > { %v2983_v54 = vpop.permute.xlu2 %2982 }
 0xd37   : > { %v2984_v24 = vrot.slane %v2983_v54, 1 }
 0xd39   : > { %v2985_v3 = vsel %vm368_vm2, %v2983_v54, %v2984_v24  ;;  %v3156_v54 = vstv %s5227_s25  ;;  %v2924_v24 = vld [vmem:[#allocation2] sm:$0x1]  ;;  %s5229_s25 = sld [smem:[#allocation9 + $0xd1]] }
 0xd3a   : > { %v3157_v57 = vmul.f32 %v6823_v28, %v3156_v54 }
 0xd3e   : > { %v3003_v62 = vpop.permute.xlu2 %3002 }
 0xd3f   : > { %v3004_v13 = vrot.slane %v3003_v62, 7 }
 0xd41   : > { %v3005_v40 = vsel %vm390_vm4, %v3004_v13, %v3003_v62 }
 0xd46   : > { %v2936_v34 = vpop.permute.xlu0 %2935  ;;  %v3023_v16 = vpop.permute.xlu2 %3022 }
 0xd47   : > { %v2932_v42 = vpop.permute.xlu1 %2931  ;;  %v2940_v7 = vsel %vm471_vm8, %v2934_v43, %v2936_v34  ;;  %v3024_v19 = vrot.slane %v3023_v16, 7 }
 0xd48   : > { %v2939_v0 = vsel %vm471_vm8, %v2932_v42, %v2934_v43  ;;  %v2946_v44 = vsel %vm478_vm9, %v2940_v7, 0.0 }
 0xd49   : > { %v2945_v45 = vsel %vm478_vm9, %v2939_v0, 0.0  ;;  %v3025_v9 = vsel %vm412_vm6, %v3024_v19, %v3023_v16 }
 0xd4a   : > { %v2947_v47 = vadd.f32 %v2946_v44, %v2945_v45  ;;  %v3116_v45 = vstv %s5223_s27  ;;  %s5226_s27 = sld [smem:[#allocation9 + $0xce]] }
 0xd4f   : > { %v2938_v46 = vpop.permute.xlu1 %2937 }
 0xd50   : > { %v2941_v49 = vsel %vm471_vm8, %v2936_v34, %v2938_v46  ;;  %v3117_v46 = vmul.f32 %v6778_v59, %v3116_v45 }
 0xd51   : > { %v2948_v51 = vsel %vm478_vm9, %v2941_v49, 0.0  ;;  %v3136_v49 = vstv %s5225_s7  ;;  %s5228_s7 = sld [smem:[#allocation9 + $0xd0]] }
 0xd52   : > { %v2949_v52 = vadd.f32 %v2948_v51, %v2947_v47  ;;  %v3096_v51 = vstv %s5221_s13  ;;  %s5220_s13 = sld [smem:[#allocation9 + $0xc8]] }
 0xd54   : > { %2950 = vadd.xlane.f32.xlu0 %v2949_v52  ;;  %v3137_v52 = vmul.f32 %v6823_v28, %v3136_v49 }
 0xd57   : > { %v2963_v53 = vpop.permute.xlu1 %2962 }
 0xd58   : > { %v2964_v58 = vrot.slane %v2963_v53, 1 }
 0xd5a   : > { %v2965_v61 = vsel %vm346_vm0, %v2963_v53, %v2964_v58  ;;  %v3097_v53 = vmul.f32 %v6778_v59, %v3096_v51  ;;  %v3176_v51 = vstv %s5229_s25  ;;  %s5235_s25 = sld [smem:[#allocation9 + $0xd6]] }
 0xd5b   : > { %v2967_v50 = vadd.f32 %v2965_v61, %v2957_v48  ;;  %v3146_v61 = vstv %s5226_s27  ;;  %s5232_s27 = sld [smem:[#allocation9 + $0xd3]] }
 0xd5c   : > { %v3147_v62 = vmul.f32 %v6823_v28, %v3146_v61 }
 0xd5f   : > { %v2973_v55 = vpop.permute.xlu1 %2972 }
 0xd60   : > { %v2974_v60 = vrot.slane %v2973_v55, 1 }
 0xd62   : > { %v2975_v63 = vsel %vm357_vm1, %v2973_v55, %v2974_v60  ;;  %v3106_v55 = vstv %s5222_s1  ;;  %v3126_v60 = vstv %s5224_s29  ;;  %s5234_s1 = sld [smem:[#allocation9 + $0xd5]] }
 0xd63   : > { %v2977_v2 = vadd.f32 %v2975_v63, %v2967_v50  ;;  %v3107_v58 = vmul.f32 %v6778_v59, %v3106_v55  ;;  %v3127_v48 = vmul.f32 %v6829_v31, %v3126_v60  ;;  %s5236_s29 = sld [smem:[#allocation9 + $0xd7]] }
 0xd65   : > { %v2987_v6 = vadd.f32 %v2985_v3, %v2977_v2 }
 0xd67   : > { %v2993_v4 = vpop.permute.xlu1 %2992 }
 0xd68   : > { %v2994_v37 = vrot.slane %v2993_v4, 7 }
 0xd6a   : > { %v2995_v21 = vsel %vm379_vm3, %v2994_v37, %v2993_v4  ;;  %v3166_v4 = vstv %s5228_s7  ;;  %s5238_s7 = sld [smem:[#allocation9 + $0xd9]] }
 0xd6b   : > { %v2997_v29 = vadd.f32 %v2995_v21, %v2987_v6  ;;  %v3167_v37 = vmul.f32 %v6823_v28, %v3166_v4 }
 0xd6d   : > { %v3007_v11 = vadd.f32 %v3005_v40, %v2997_v29 }
 0xd6f   : > { %v3013_v15 = vpop.permute.xlu1 %3012 }
 0xd70   : > { %v3014_v17 = vrot.slane %v3013_v15, 7 }
 0xd72   : > { %v3015_v41 = vsel %vm401_vm5, %v3014_v17, %v3013_v15 }
 0xd73   : > { %v3017_v22 = vadd.f32 %v3015_v41, %v3007_v11 }
 0xd75   : > { %v3027_v27 = vadd.f32 %v3025_v9, %v3017_v22  ;;  %v3093_v22 = vstv %s5220_s13  ;;  %s5233_s13 = sld [smem:[#allocation9 + $0xd4]] }
 0xd77   : > { %v3033_v14 = vpop.permute.xlu1 %3032 }
 0xd78   : > { %v3034_v25 = vrot.slane %v3033_v14, 7 }
 0xd7a   : > { %v3035_v26 = vsel %vm423_vm7, %v3034_v25, %v3033_v14 }
 0xd7b   : > { %v3037_v8 = vadd.f32 %v3035_v26, %v3027_v27  ;;  %v3094_v27 = vmul.f32 %v6778_v59, %v3093_v22  ;;  %v3293_v22 = vstv %s5238_s7  ;;  %s5240_s7 = sld [smem:[#allocation9 + $0xdb]] }
 0xd7d   : > { %v3040_v35 = vadd.f32 %v3039_v23, %v3037_v8 }
 0xd7f   : > { %v5219_v5 = vmul.f32 -1.442695, %v3040_v35 }
 0xd81   : > { %5536 = vpow2.f32 %v5219_v5 }
 0xd87   : > { %v5537_v36 = vpop.eup %5536 }
 0xd88   : > { %v3044_v30 = vadd.f32 1.0, %v5537_v36 }
 0xd8a   : > { %5538 = vrcp.f32 %v3044_v30  ;;  %v3056_v32 = vand.u32 2147483648, %v3044_v30  ;;  %v3054_v33 = vand.u32 2147483647, %v3044_v30  ;;  %vm3050_vm10 = vweird.f32 %v3044_v30 }
 0xd8c   : > { %v3057_v38 = vor.u32 1.1754944e-38, %v3056_v32  ;;  %vm3055_vm12 = vcmp.eq.f32.partialorder %v3054_v33, 8.507059e+37 }
 0xd90   : > { %v5539_v12 = vpop.eup %5538 }
 0xd91   : > { %v3046_v39 = vmul.f32 %v5539_v12, %v3044_v30  ;;  %vm3051_vm15 = vweird.f32 %v5539_v12 }
 0xd92   : > { %vm3052_vm11 = vmor %vm3050_vm10, %vm3051_vm15 }
 0xd93   : > { %v3047_v18 = vsub.f32 1.0, %v3046_v39 }
 0xd95   : > { %v3048_v10 = vmul.f32 %v5539_v12, %v3047_v18 }
 0xd97   : > { %v3049_v20 = vadd.f32 %v5539_v12, %v3048_v10 }
 0xd99   : > { %v3053_v1 = vsel %vm3052_vm11, %v5539_v12, %v3049_v20 }
 0xd9a   : > { %v3058_v34 = vsel %vm3055_vm12, %v3057_v38, %v3053_v1  ;;  %vm3090_vm12 = vcmask 155800  }
 0xd9b   : > { %v3060_v42 = vmul.f32 %v3058_v34, %v3040_v35 }
 0xd9d   : > { %v3062_v43 = vmul.f32 %v3060_v42, %v6125_v56 }
 0xd9f   : > { %v3066_v7 = vperm.slane %v3062_v43, 2  ;;  %v3065_v0 = vperm.slane %v3062_v43, 1  ;;  %v3064_v44 = vperm.slane %v3062_v43, 0  ;;  %v3067_v47 = vperm.slane %v3062_v43, 3 }
 0xda1   : > { %3072 = vrot.lane.b32.xlu1 %v3066_v7, %s7758_s15  ;;  %3070 = vrot.lane.b32.xlu0 %v3065_v0, %s7758_s15 }
 0xda2   : > { %3068 = vrot.lane.b32.xlu2 %v3064_v44, %s7758_s15 }
 0xda9   : > { %3119 = vrot.lane.b32.xlu0 %v3117_v46, %s5833_s12 }
 0xdaa   : > { %3074 = vrot.lane.b32.xlu2 %v3067_v47, %s7758_s15 }
 0xdb1   : > { %3139 = vrot.lane.b32.xlu0 %v3137_v52, %s5831_s8 }
 0xdb2   : > { %3099 = vrot.lane.b32.xlu2 %v3097_v53, %s7762_s9 }
 0xdb9   : > { %3159 = vrot.lane.b32.xlu0 %v3157_v57, %s5837_s20 }
 0xdba   : > { %3109 = vrot.lane.b32.xlu2 %v3107_v58, %s5835_s19 }
 0xdc2   : > { %3129 = vrot.lane.b32.xlu2 %v3127_v48, %s5836_s2 }
 0xdc7   : > { %v2951_v63 = vpop.xlane.xlu0 %2950 }
 0xdc8   : > { %v2952_v50 = vadd.f32 %v2951_v63, %v2924_v24 }
 0xdca   : > { %2954 = vst.msk [vmem:[#allocation2] sm:$0x1] %vm2953_vm13, %v2952_v50  ;;  %3149 = vrot.lane.b32.xlu2 %v3147_v62, %s7760_s26 }
 0xdd2   : > { %3169 = vrot.lane.b32.xlu2 %v3167_v37, %s5838_s30 }
 0xdfc   : > { %v3069_v2 = vpop.permute.xlu2 %3068 }
 0xe04   : > { %v3075_v3 = vpop.permute.xlu2 %3074 }
 0xe0c   : > { %v3100_v21 = vpop.permute.xlu2 %3099 }
 0xe0d   : > { %v3101_v9 = vrot.slane %v3100_v21, 1 }
 0xe0f   : > { %v3102_v26 = vsel %vm346_vm0, %v3100_v21, %v3101_v9  ;;  %v3243_v9 = vstv %s5233_s13  ;;  %s5243_s13 = sld [smem:[#allocation9 + $0xdd]] }
 0xe10   : > { %v3104_v36 = vadd.f32 %v3102_v26, %v3094_v27  ;;  %v3263_v27 = vstv %s5235_s25  ;;  %s5244_s25 = sld [smem:[#allocation9 + $0xde]] }
 0xe13   : > { %v3073_v13 = vpop.permute.xlu1 %3072  ;;  %v3071_v6 = vpop.permute.xlu0 %3070 }
 0xe14   : > { %v3078_v29 = vsel %vm471_vm8, %v3073_v13, %v3075_v3  ;;  %v3076_v15 = vsel %vm471_vm8, %v3069_v2, %v3071_v6  ;;  %v3077_v16 = vsel %vm471_vm8, %v3071_v6, %v3073_v13  ;;  %v3110_v40 = vpop.permute.xlu2 %3109 }
 0xe15   : > { %v3082_v17 = vsel %vm478_vm9, %v3076_v15, 0.0  ;;  %v3083_v41 = vsel %vm478_vm9, %v3077_v16, 0.0  ;;  %v3085_v11 = vsel %vm478_vm9, %v3078_v29, 0.0  ;;  %v3111_v25 = vrot.slane %v3110_v40, 1 }
 0xe16   : > { %v3084_v19 = vadd.f32 %v3083_v41, %v3082_v17  ;;  %v3253_v15 = vstv %s5234_s1  ;;  %v3273_v17 = vstv %s5236_s29  ;;  %v3233_v41 = vstv %s5232_s27  ;;  %s5237_s1 = sld [smem:[#allocation9 + $0xd8]] }
 0xe17   : > { %v3112_v5 = vsel %vm357_vm1, %v3110_v40, %v3111_v25  ;;  %v3254_v16 = vmul.f32 %v6778_v59, %v3253_v15  ;;  %v3244_v25 = vmul.f32 %v6778_v59, %v3243_v9  ;;  %s5239_s29 = sld [smem:[#allocation9 + $0xda]] }
 0xe18   : > { %v3086_v14 = vadd.f32 %v3085_v11, %v3084_v19  ;;  %v3114_v12 = vadd.f32 %v3112_v5, %v3104_v36  ;;  %v3274_v19 = vmul.f32 %v6823_v28, %v3273_v17  ;;  %v3234_v11 = vmul.f32 %v6778_v59, %v3233_v41  ;;  %s5231_s27 = sld [smem:[#allocation9 + $0xd2]] }
 0xe19   : > { %v3313_v41 = vstv %s5240_s7  ;;  %s5249_s7 = sld [smem:[#allocation9 + $0xe3]] }
 0xe1a   : > { %3087 = vadd.xlane.f32.xlu1 %v3086_v14  ;;  %v3294_v14 = vmul.f32 %v6823_v28, %v3293_v22 }
 0xe1b   : > { %v3120_v23 = vpop.permute.xlu0 %3119 }
 0xe1c   : > { %v3121_v8 = vrot.slane %v3120_v23, 1  ;;  %v3130_v35 = vpop.permute.xlu2 %3129  ;;  %v3283_v26 = vstv %s5237_s1  ;;  %s5246_s1 = sld [smem:[#allocation9 + $0xe0]] }
 0xe1d   : > { %v3131_v39 = vrot.slane %v3130_v35, 7 }
 0xe1e   : > { %v3122_v30 = vsel %vm368_vm2, %v3120_v23, %v3121_v8  ;;  %v3264_v23 = vmul.f32 %v6829_v31, %v3263_v27  ;;  %v3284_v8 = vmul.f32 %v6823_v28, %v3283_v26 }
 0xe1f   : > { %v3124_v18 = vadd.f32 %v3122_v30, %v3114_v12  ;;  %v3132_v20 = vsel %vm379_vm3, %v3131_v39, %v3130_v35  ;;  %v3303_v35 = vstv %s5239_s29  ;;  %v3061_v30 = vld [vmem:[#allocation2] sm:$0x1]  ;;  %s5248_s29 = sld [smem:[#allocation9 + $0xe2]] }
 0xe20   : > { %v3304_v5 = vmul.f32 %v6823_v28, %v3303_v35 }
 0xe21   : > { %v3134_v1 = vadd.f32 %v3132_v20, %v3124_v18 }
 0xe23   : > { %v3140_v32 = vpop.permute.xlu0 %3139 }
 0xe24   : > { %v3141_v10 = vrot.slane %v3140_v32, 7  ;;  %v3150_v33 = vpop.permute.xlu2 %3149 }
 0xe25   : > { %v3151_v34 = vrot.slane %v3150_v33, 7 }
 0xe26   : > { %v3142_v38 = vsel %vm390_vm4, %v3141_v10, %v3140_v32 }
 0xe27   : > { %v3144_v42 = vadd.f32 %v3142_v38, %v3134_v1  ;;  %v3152_v7 = vsel %vm401_vm5, %v3151_v34, %v3150_v33 }
 0xe29   : > { %v3154_v45 = vadd.f32 %v3152_v7, %v3144_v42 }
 0xe2b   : > { %v3160_v43 = vpop.permute.xlu0 %3159 }
 0xe2c   : > { %v3161_v0 = vrot.slane %v3160_v43, 7  ;;  %v3170_v44 = vpop.permute.xlu2 %3169 }
 0xe2d   : > { %v3171_v46 = vrot.slane %v3170_v44, 7 }
 0xe2e   : > { %v3162_v47 = vsel %vm412_vm6, %v3161_v0, %v3160_v43 }
 0xe2f   : > { %v3164_v49 = vadd.f32 %v3162_v47, %v3154_v45  ;;  %v3172_v52 = vsel %vm423_vm7, %v3171_v46, %v3170_v44  ;;  %v3230_v46 = vstv %s5231_s27  ;;  %s5245_s27 = sld [smem:[#allocation9 + $0xdf]] }
 0xe31   : > { %v3174_v53 = vadd.f32 %v3172_v52, %v3164_v49 }
 0xe33   : > { %v3177_v54 = vadd.f32 %v3176_v51, %v3174_v53  ;;  %v3231_v51 = vmul.f32 %v6778_v59, %v3230_v46 }
 0xe35   : > { %v5230_v55 = vmul.f32 -1.442695, %v3177_v54 }
 0xe37   : > { %5540 = vpow2.f32 %v5230_v55 }
 0xe3d   : > { %v5541_v57 = vpop.eup %5540 }
 0xe3e   : > { %v3181_v58 = vadd.f32 1.0, %v5541_v57 }
 0xe40   : > { %5542 = vrcp.f32 %v3181_v58  ;;  %v3193_v62 = vand.u32 2147483648, %v3181_v58  ;;  %v3191_v24 = vand.u32 2147483647, %v3181_v58  ;;  %vm3187_vm15 = vweird.f32 %v3181_v58 }
 0xe42   : > { %v3194_v4 = vor.u32 1.1754944e-38, %v3193_v62  ;;  %vm3192_vm11 = vcmp.eq.f32.partialorder %v3191_v24, 8.507059e+37 }
 0xe46   : > { %v5543_v60 = vpop.eup %5542 }
 0xe47   : > { %v3183_v48 = vmul.f32 %v5543_v60, %v3181_v58  ;;  %vm3188_vm14 = vweird.f32 %v5543_v60 }
 0xe48   : > { %vm3189_vm10 = vmor %vm3187_vm15, %vm3188_vm14 }
 0xe49   : > { %v3184_v61 = vsub.f32 1.0, %v3183_v48 }
 0xe4b   : > { %v3185_v63 = vmul.f32 %v5543_v60, %v3184_v61 }
 0xe4d   : > { %v3186_v50 = vadd.f32 %v5543_v60, %v3185_v63 }
 0xe4f   : > { %v3190_v37 = vsel %vm3189_vm10, %v5543_v60, %v3186_v50 }
 0xe50   : > { %v3195_v2 = vsel %vm3192_vm11, %v3194_v4, %v3190_v37  ;;  %vm3227_vm11 = vcmask 164000  }
 0xe51   : > { %v3197_v3 = vmul.f32 %v3195_v2, %v3177_v54 }
 0xe53   : > { %v3199_v21 = vmul.f32 %v3197_v3, %v6125_v56 }
 0xe55   : > { %v3203_v13 = vperm.slane %v3199_v21, 2  ;;  %v3202_v6 = vperm.slane %v3199_v21, 1  ;;  %v3201_v29 = vperm.slane %v3199_v21, 0  ;;  %v3204_v40 = vperm.slane %v3199_v21, 3 }
 0xe57   : > { %3209 = vrot.lane.b32.xlu2 %v3203_v13, %s7758_s15  ;;  %3207 = vrot.lane.b32.xlu1 %v3202_v6, %s7758_s15 }
 0xe58   : > { %3205 = vrot.lane.b32.xlu0 %v3201_v29, %s7758_s15 }
 0xe5f   : > { %3256 = vrot.lane.b32.xlu1 %v3254_v16, %s5833_s12 }
 0xe60   : > { %3211 = vrot.lane.b32.xlu0 %v3204_v40, %s7758_s15 }
 0xe67   : > { %3276 = vrot.lane.b32.xlu1 %v3274_v19, %s5831_s8 }
 0xe68   : > { %3236 = vrot.lane.b32.xlu0 %v3234_v11, %s7762_s9 }
 0xe6f   : > { %3296 = vrot.lane.b32.xlu1 %v3294_v14, %s5837_s20 }
 0xe70   : > { %3246 = vrot.lane.b32.xlu0 %v3244_v25, %s5835_s19 }
 0xe78   : > { %3266 = vrot.lane.b32.xlu0 %v3264_v23, %s5836_s2 }
 0xe80   : > { %3286 = vrot.lane.b32.xlu0 %v3284_v8, %s7760_s26 }
 0xe88   : > { %3306 = vrot.lane.b32.xlu0 %v3304_v5, %s5838_s30 }
 0xe8d   : > { %v3088_v36 = vpop.xlane.xlu1 %3087 }
 0xe8e   : > { %v3089_v12 = vadd.f32 %v3088_v36, %v3061_v30 }
 0xe90   : > { %3091 = vst.msk [vmem:[#allocation2] sm:$0x1] %vm3090_vm12, %v3089_v12  ;;  %vm3364_vm12 = vcmask 172200  }
 0xeb1   : > { %v3210_v32 = vpop.permute.xlu2 %3209 }
 0xec9   : > { %v3208_v39 = vpop.permute.xlu1 %3207 }
 0xeca   : > { %v3206_v18 = vpop.permute.xlu0 %3205  ;;  %v3214_v10 = vsel %vm471_vm8, %v3208_v39, %v3210_v32 }
 0xecb   : > { %v3213_v33 = vsel %vm471_vm8, %v3206_v18, %v3208_v39  ;;  %v3220_v20 = vsel %vm478_vm9, %v3214_v10, 0.0 }
 0xecc   : > { %v3219_v38 = vsel %vm478_vm9, %v3213_v33, 0.0 }
 0xecd   : > { %v3221_v34 = vadd.f32 %v3220_v20, %v3219_v38 }
 0xed1   : > { %v3257_v44 = vpop.permute.xlu1 %3256 }
 0xed2   : > { %v3212_v1 = vpop.permute.xlu0 %3211  ;;  %v3258_v55 = vrot.slane %v3257_v44, 1 }
 0xed3   : > { %v3215_v42 = vsel %vm471_vm8, %v3210_v32, %v3212_v1  ;;  %v3370_v1 = vstv %s5243_s13  ;;  %s5247_s13 = sld [smem:[#allocation9 + $0xe1]] }
 0xed4   : > { %v3222_v43 = vsel %vm478_vm9, %v3215_v42, 0.0  ;;  %v3259_v61 = vsel %vm368_vm2, %v3257_v44, %v3258_v55  ;;  %v3380_v42 = vstv %s5244_s25  ;;  %s5256_s25 = sld [smem:[#allocation9 + $0xe9]] }
 0xed5   : > { %v3223_v7 = vadd.f32 %v3222_v43, %v3221_v34  ;;  %v3371_v34 = vmul.f32 %v6778_v59, %v3370_v1  ;;  %v3381_v43 = vmul.f32 %v6778_v59, %v3380_v42 }
 0xed7   : > { %3224 = vadd.xlane.f32.xlu2 %v3223_v7  ;;  %v3400_v7 = vstv %s5246_s1  ;;  %s5254_s1 = sld [smem:[#allocation9 + $0xe7]] }
 0xed9   : > { %v3277_v53 = vpop.permute.xlu1 %3276 }
 0xeda   : > { %v3237_v0 = vpop.permute.xlu0 %3236  ;;  %v3278_v63 = vrot.slane %v3277_v53, 7 }
 0xedb   : > { %v3238_v47 = vrot.slane %v3237_v0, 1 }
 0xedc   : > { %v3279_v2 = vsel %vm390_vm4, %v3278_v63, %v3277_v53  ;;  %v3430_v53 = vstv %s5249_s7  ;;  %s5260_s7 = sld [smem:[#allocation9 + $0xed]] }
 0xedd   : > { %v3239_v52 = vsel %vm346_vm0, %v3237_v0, %v3238_v47  ;;  %v3401_v0 = vmul.f32 %v6829_v31, %v3400_v7  ;;  %v3420_v47 = vstv %s5248_s29  ;;  %v3431_v55 = vmul.f32 %v6823_v28, %v3430_v53  ;;  %s5258_s29 = sld [smem:[#allocation9 + $0xeb]] }
 0xede   : > { %v3241_v57 = vadd.f32 %v3239_v52, %v3231_v51  ;;  %v3421_v51 = vmul.f32 %v6823_v28, %v3420_v47 }
 0xee1   : > { %v3297_v37 = vpop.permute.xlu1 %3296 }
 0xee2   : > { %v3247_v45 = vpop.permute.xlu0 %3246  ;;  %v3298_v13 = vrot.slane %v3297_v37, 7 }
 0xee3   : > { %v3248_v49 = vrot.slane %v3247_v45, 1 }
 0xee4   : > { %v3299_v15 = vsel %vm412_vm6, %v3298_v13, %v3297_v37  ;;  %v3567_v37 = vstv %s5260_s7  ;;  %s5270_s7 = sld [smem:[#allocation9 + $0xf6]] }
 0xee5   : > { %v3249_v54 = vsel %vm357_vm1, %v3247_v45, %v3248_v49  ;;  %v3198_v45 = vld [vmem:[#allocation2] sm:$0x1]  ;;  %v3390_v49 = vstv %s5245_s27  ;;  %s5255_s27 = sld [smem:[#allocation9 + $0xe8]] }
 0xee6   : > { %v3251_v48 = vadd.f32 %v3249_v54, %v3241_v57  ;;  %v3391_v52 = vmul.f32 %v6778_v59, %v3390_v49  ;;  %v3410_v54 = vstv %s5247_s13  ;;  %s5257_s13 = sld [smem:[#allocation9 + $0xea]] }
 0xee7   : > { %v3411_v57 = vmul.f32 %v6823_v28, %v3410_v54 }
 0xee8   : > { %v3261_v24 = vadd.f32 %v3259_v61, %v3251_v48  ;;  %v3507_v48 = vstv %s5254_s1  ;;  %s5266_s1 = sld [smem:[#allocation9 + $0xf2]] }
 0xee9   : > { %v3508_v61 = vmul.f32 %v6778_v59, %v3507_v48 }
 0xeea   : > { %v3267_v58 = vpop.permute.xlu0 %3266 }
 0xeeb   : > { %v3268_v60 = vrot.slane %v3267_v58, 7 }
 0xeed   : > { %v3269_v62 = vsel %vm379_vm3, %v3268_v60, %v3267_v58  ;;  %v3527_v58 = vstv %s5256_s25  ;;  %s5259_s25 = sld [smem:[#allocation9 + $0xec]] }
 0xeee   : > { %v3271_v50 = vadd.f32 %v3269_v62, %v3261_v24  ;;  %v3528_v60 = vmul.f32 %v6778_v59, %v3527_v58  ;;  %v3547_v62 = vstv %s5258_s29  ;;  %v3517_v24 = vstv %s5255_s27  ;;  %s5267_s29 = sld [smem:[#allocation9 + $0xf3]] }
 0xeef   : > { %v3548_v63 = vmul.f32 %v6823_v28, %v3547_v62  ;;  %v3568_v59 = vmul.f32 %v6823_v28, %v3567_v37  ;;  %s5268_s27 = sld [smem:[#allocation9 + $0xf4]] }
 0xef0   : > { %v3281_v6 = vadd.f32 %v3279_v2, %v3271_v50  ;;  %v6952_v50 = vld [vmem:[%s5992_s18] sm:$0xf]  ;;  %v3537_v2 = vstv %s5257_s13  ;;  %s5276_s13 = sld [smem:[#allocation9 + $0xfb]] }
 0xef2   : > { %v3287_v4 = vpop.permute.xlu0 %3286 }
 0xef3   : > { %v3288_v3 = vrot.slane %v3287_v4, 7 }
 0xef5   : > { %v3289_v21 = vsel %vm401_vm5, %v3288_v3, %v3287_v4  ;;  %v3518_v4 = vmul.f32 %v6952_v50, %v3517_v24  ;;  %v3538_v3 = vmul.f32 %v6829_v31, %v3537_v2 }
 0xef6   : > { %v3291_v29 = vadd.f32 %v3289_v21, %v3281_v6  ;;  %v3557_v21 = vstv %s5259_s25  ;;  %s5277_s25 = sld [smem:[#allocation9 + $0xfc]] }
 0xef7   : > { %v3558_v13 = vmul.f32 %v6823_v28, %v3557_v21 }
 0xef8   : > { %v3301_v17 = vadd.f32 %v3299_v15, %v3291_v29  ;;  %v3654_v15 = vstv %s5266_s1  ;;  %s5272_s1 = sld [smem:[#allocation9 + $0xf8]] }
 0xefa   : > { %v3307_v16 = vpop.permute.xlu0 %3306 }
 0xefb   : > { %v3308_v40 = vrot.slane %v3307_v16, 7 }
 0xefd   : > { %v3309_v19 = vsel %vm423_vm7, %v3308_v40, %v3307_v16  ;;  %v3664_v16 = vstv %s5267_s29  ;;  %s5279_s29 = sld [smem:[#allocation9 + $0xfe]] }
 0xefe   : > { %v3311_v11 = vadd.f32 %v3309_v19, %v3301_v17  ;;  %v3655_v17 = vmul.f32 %v6952_v50, %v3654_v15 }
 0xf00   : > { %v3314_v22 = vadd.f32 %v3313_v41, %v3311_v11  ;;  %v3665_v41 = vmul.f32 %v6952_v50, %v3664_v16 }
 0xf02   : > { %v5241_v9 = vmul.f32 -1.442695, %v3314_v22 }
 0xf04   : > { %5544 = vpow2.f32 %v5241_v9 }
 0xf0a   : > { %v5545_v14 = vpop.eup %5544 }
 0xf0b   : > { %v3318_v25 = vadd.f32 1.0, %v5545_v14 }
 0xf0d   : > { %5546 = vrcp.f32 %v3318_v25  ;;  %v3330_v8 = vand.u32 2147483648, %v3318_v25  ;;  %v3328_v5 = vand.u32 2147483647, %v3318_v25  ;;  %vm3324_vm14 = vweird.f32 %v3318_v25 }
 0xf0f   : > { %v3331_v30 = vor.u32 1.1754944e-38, %v3330_v8  ;;  %vm3329_vm10 = vcmp.eq.f32.partialorder %v3328_v5, 8.507059e+37 }
 0xf13   : > { %v5547_v27 = vpop.eup %5546 }
 0xf14   : > { %v3320_v23 = vmul.f32 %v5547_v27, %v3318_v25  ;;  %vm3325_vm13 = vweird.f32 %v5547_v27 }
 0xf15   : > { %vm3326_vm15 = vmor %vm3324_vm14, %vm3325_vm13 }
 0xf16   : > { %v3321_v26 = vsub.f32 1.0, %v3320_v23  ;;  %v3674_v23 = vstv %s5268_s27  ;;  %s5280_s27 = sld [smem:[#allocation9 + $0xff]] }
 0xf18   : > { %v3322_v35 = vmul.f32 %v5547_v27, %v3321_v26  ;;  %v3694_v26 = vstv %s5270_s7  ;;  %s5287_s7 = sld [smem:[#allocation9 + $0x105]] }
 0xf19   : > { %v3695_v5 = vmul.f32 %v6823_v28, %v3694_v26 }
 0xf1a   : > { %v3323_v36 = vadd.f32 %v5547_v27, %v3322_v35  ;;  %v3675_v35 = vmul.f32 %v6829_v31, %v3674_v23 }
 0xf1c   : > { %v3327_v12 = vsel %vm3326_vm15, %v5547_v27, %v3323_v36 }
 0xf1d   : > { %v3332_v39 = vsel %vm3329_vm10, %v3331_v30, %v3327_v12  ;;  %v3781_v30 = vstv %s5276_s13  ;;  %v3791_v12 = vstv %s5277_s25  ;;  %s5282_s13 = sld [smem:[#allocation9 + $0x101]] }
 0xf1e   : > { %v3334_v18 = vmul.f32 %v3332_v39, %v3314_v22  ;;  %v3782_v39 = vmul.f32 %v6952_v50, %v3781_v30  ;;  %v3918_v42 = vstv %s5287_s7  ;;  %s5283_s25 = sld [smem:[#allocation9 + $0x102]] }
 0xf1f   : > { %s5293_s7 = sld [smem:[#allocation9 + $0x10b]] }
 0xf20   : > { %v3336_v32 = vmul.f32 %v3334_v18, %v6125_v56  ;;  %v3792_v18 = vmul.f32 %v6952_v50, %v3791_v12 }
 0xf22   : > { %v3340_v10 = vperm.slane %v3336_v32, 2  ;;  %v3339_v33 = vperm.slane %v3336_v32, 1  ;;  %v3338_v20 = vperm.slane %v3336_v32, 0  ;;  %v3341_v38 = vperm.slane %v3336_v32, 3 }
 0xf23   : > { %v3714_v32 = vstv %s5272_s1  ;;  %s5261_s1 = sld [smem:[#allocation9 + $0xee]] }
 0xf24   : > { %3346 = vrot.lane.b32.xlu0 %v3340_v10, %s7758_s15  ;;  %3344 = vrot.lane.b32.xlu2 %v3339_v33, %s7758_s15  ;;  %v3811_v10 = vstv %s5279_s29  ;;  %s5291_s29 = sld [smem:[#allocation9 + $0x109]] }
 0xf25   : > { %3342 = vrot.lane.b32.xlu1 %v3338_v20, %s7758_s15  ;;  %v3715_v20 = vmul.f32 %v6823_v28, %v3714_v32  ;;  %v3978_v24 = vstv %s5293_s7  ;;  %s5281_s7 = sld [smem:[#allocation9 + $0x100]] }
 0xf26   : > { %v3979_v2 = vmul.f32 %v6823_v28, %v3978_v24 }
 0xf2c   : > { %3393 = vrot.lane.b32.xlu2 %v3391_v52, %s5833_s12 }
 0xf2d   : > { %3348 = vrot.lane.b32.xlu1 %v3341_v38, %s7758_s15  ;;  %s5250_s15 = sld [smem:[#allocation9 + $0xe4]]  ;;  %v3812_v38 = vmul.f32 %v6829_v31, %v3811_v10 }
 0xf33   : > { %v3440_v33 = vstv %s5250_s15  ;;  %s5289_s15 = sld [smem:[#allocation9 + $0x107]] }
 0xf34   : > { %3413 = vrot.lane.b32.xlu2 %v3411_v57, %s5831_s8  ;;  %v3441_v1 = vmul.f32 %v6823_v28, %v3440_v33 }
 0xf35   : > { %3373 = vrot.lane.b32.xlu1 %v3371_v34, %s7762_s9  ;;  %v3821_v34 = vstv %s5280_s27  ;;  %s5269_s27 = sld [smem:[#allocation9 + $0xf5]] }
 0xf36   : > { %v3822_v7 = vmul.f32 %v6823_v28, %v3821_v34 }
 0xf39   : > { %v3938_v54 = vstv %s5289_s15  ;;  %s5278_s15 = sld [smem:[#allocation9 + $0xfd]] }
 0xf3a   : > { %v3939_v58 = vmul.f32 %v6952_v50, %v3938_v54 }
 0xf3b   : > { %v3684_v57 = vstv %s5269_s27  ;;  %s5301_s27 = sld [smem:[#allocation9 + $0x112]] }
 0xf3c   : > { %3510 = vrot.lane.b32.xlu2 %v3508_v61, %s7762_s9  ;;  %v3685_v48 = vmul.f32 %v6823_v28, %v3684_v57 }
 0xf3d   : > { %3383 = vrot.lane.b32.xlu1 %v3381_v43, %s5835_s19 }
 0xf44   : > { %3520 = vrot.lane.b32.xlu2 %v3518_v4, %s5835_s19 }
 0xf45   : > { %3403 = vrot.lane.b32.xlu1 %v3401_v0, %s5836_s2  ;;  %v3919_v0 = vmul.f32 %v6952_v50, %v3918_v42 }
 0xf4a   : > { %v3225_v44 = vpop.xlane.xlu2 %3224 }
 0xf4b   : > { %v3226_v46 = vadd.f32 %v3225_v44, %v3198_v45  ;;  %v3841_v44 = vstv %s5282_s13  ;;  %v3851_v45 = vstv %s5283_s25  ;;  %s5271_s13 = sld [smem:[#allocation9 + $0xf7]] }
 0xf4c   : > { %3540 = vrot.lane.b32.xlu2 %v3538_v3, %s5836_s2  ;;  %v3842_v47 = vmul.f32 %v6823_v28, %v3841_v44  ;;  %v3852_v49 = vmul.f32 %v6823_v28, %v3851_v45  ;;  %s5299_s25 = sld [smem:[#allocation9 + $0x110]] }
 0xf4d   : > { %3228 = vst.msk [vmem:[#allocation2] sm:$0x1] %vm3227_vm11, %v3226_v46  ;;  %3423 = vrot.lane.b32.xlu1 %v3421_v51, %s7760_s26  ;;  %v3577_v46 = vstv %s5261_s1  ;;  %s5300_s1 = sld [smem:[#allocation9 + $0x111]] }
 0xf4e   : > { %v3578_v52 = vmul.f32 %v6823_v28, %v3577_v46 }
 0xf51   : > { %v3704_v4 = vstv %s5271_s13  ;;  %s5309_s13 = sld [smem:[#allocation9 + $0x119]] }
 0xf54   : > { %3560 = vrot.lane.b32.xlu2 %v3558_v13, %s7760_s26  ;;  %v4065_v13 = vstv %s5299_s25  ;;  %s5310_s25 = sld [smem:[#allocation9 + $0x11a]] }
 0xf55   : > { %3433 = vrot.lane.b32.xlu1 %v3431_v55, %s5837_s20  ;;  %v3958_v55 = vstv %s5291_s29  ;;  %s7774_s29 = smov 92   ;;  %v4066_v15 = vmul.f32 %v6952_v50, %v4065_v13 }
 0xf57   : > { %v4192_v23 = vstv %s5309_s13  ;;  %s5320_s13 = sld [smem:[#allocation9 + $0x123]] }
 0xf5a   : > { %v4202_v26 = vstv %s5310_s25  ;;  %s5298_s25 = sld [smem:[#allocation9 + $0x10f]] }
 0xf5c   : > { %3657 = vrot.lane.b32.xlu2 %v3655_v17, %s5835_s19  ;;  %v4085_v17 = vstv %s5301_s27  ;;  %s5312_s27 = sld [smem:[#allocation9 + $0x11c]] }
 0xf5d   : > { %3530 = vrot.lane.b32.xlu1 %v3528_v60, %s5833_s12  ;;  %v3959_v60 = vmul.f32 %v6823_v28, %v3958_v55  ;;  %v4329_v42 = vstv %s5320_s13  ;;  %s5324_s13 = sld [smem:[#allocation9 + $0x127]] }
 0xf64   : > { %3677 = vrot.lane.b32.xlu2 %v3675_v35, %s5836_s2  ;;  %v4193_v35 = vmul.f32 %v6952_v50, %v4192_v23 }
 0xf65   : > { %3550 = vrot.lane.b32.xlu1 %v3548_v63, %s5831_s8 }
 0xf6c   : > { %3784 = vrot.lane.b32.xlu2 %v3782_v39, %s7762_s9 }
 0xf6d   : > { %3570 = vrot.lane.b32.xlu1 %v3568_v59, %s5837_s20  ;;  %v3705_v59 = vmul.f32 %v6823_v28, %v3704_v4 }
 0xf74   : > { %3717 = vrot.lane.b32.xlu2 %v3715_v20, %s5838_s30 }
 0xf75   : > { %3667 = vrot.lane.b32.xlu1 %v3665_v41, %s5833_s12 }
 0xf7c   : > { %3824 = vrot.lane.b32.xlu2 %v3822_v7, %s5831_s8 }
 0xf7d   : > { %3697 = vrot.lane.b32.xlu1 %v3695_v5, %s7760_s26  ;;  %s5265_s26 = sld [smem:[#allocation9 + $0xf1]]  ;;  %v4203_v5 = vmul.f32 %v6952_v50, %v4202_v26 }
 0xf7e   : > { %v3345_v40 = vpop.permute.xlu2 %3344 }
 0xf83   : > { %v3644_v43 = vstv %s5265_s26  ;;  %s5292_s26 = sld [smem:[#allocation9 + $0x10a]] }
 0xf84   : > { %v3645_v31 = vmul.f32 %v6952_v50, %v3644_v43  ;;  %3844 = vrot.lane.b32.xlu2 %v3842_v47, %s5837_s20  ;;  %v4055_v43 = vstv %s5298_s25  ;;  %s5242_s25 = sld [smem:[#allocation9 + $0xdc]] }
 0xf85   : > { %3794 = vrot.lane.b32.xlu1 %v3792_v18, %s5835_s19  ;;  %v4222_v18 = vstv %s5312_s27  ;;  %s5294_s27 = sld [smem:[#allocation9 + $0x10c]] }
 0xf86   : > { %v6999_v53 = vpop.permute.xlu2 %3393 }
 0xf89   : > { %v3968_v63 = vstv %s5292_s26  ;;  %s5303_s26 = sld [smem:[#allocation9 + $0x114]] }
 0xf8a   : > { %v3969_v37 = vmul.f32 %v6823_v28, %v3968_v63 }
 0xf8c   : > { %3941 = vrot.lane.b32.xlu2 %v3939_v58, %s5833_s12 }
 0xf8d   : > { %3814 = vrot.lane.b32.xlu1 %v3812_v38, %s5836_s2 }
 0xf8e   : > { %v7009_v62 = vpop.permute.xlu2 %3413 }
 0xf8f   : > { %v4105_v41 = vstv %s5303_s26  ;;  %s5290_s26 = sld [smem:[#allocation9 + $0x108]] }
 0xf94   : > { %3971 = vrot.lane.b32.xlu2 %v3969_v37, %s7774_s29 }
 0xf95   : > { %3921 = vrot.lane.b32.xlu1 %v3919_v0, %s7762_s9  ;;  %v3948_v32 = vstv %s5290_s26  ;;  %v4330_v0 = vmul.f32 %v6952_v50, %v4329_v42  ;;  %s5302_s26 = sld [smem:[#allocation9 + $0x113]] }
 0xf96   : > { %v3347_v6 = vpop.permute.xlu0 %3346  ;;  %v7020_v21 = vpop.permute.xlu2 %3510 }
 0xf97   : > { %v3343_v29 = vpop.permute.xlu1 %3342  ;;  %v3351_v19 = vsel %vm471_vm8, %v3345_v40, %v3347_v6 }
 0xf98   : > { %v3350_v11 = vsel %vm471_vm8, %v3343_v29, %v3345_v40  ;;  %v3357_v22 = vsel %vm478_vm9, %v3351_v19, 0.0  ;;  %v3801_v29 = vstv %s5278_s15  ;;  %v3831_v19 = vstv %s5281_s7  ;;  %s5305_s15 = sld [smem:[#allocation9 + $0x116]] }
 0xf99   : > { %v3356_v9 = vsel %vm478_vm9, %v3350_v11, 0.0  ;;  %v3802_v16 = vmul.f32 %v6952_v50, %v3801_v29  ;;  %v7031_v11 = vld [vmem:[%s5992_s18 + $0x1] sm:$0x7]  ;;  %s5313_s7 = sld [smem:[#allocation9 + $0x11d]] }
 0xf9a   : > { %v3358_v25 = vadd.f32 %v3357_v22, %v3356_v9  ;;  %v4086_v22 = vmul.f32 %v7031_v11, %v4085_v17  ;;  %v7035_v9 = vld [vmem:[%s5992_s18 + $0x1] sm:$0xf]  ;;  %v4223_v33 = vmul.f32 %v7031_v11, %v4222_v18  ;;  %v3949_v38 = vmul.f32 %v7031_v11, %v3948_v32 }
 0xf9b   : > { %v4095_v58 = vstv %s5302_s26  ;;  %s5332_s26 = sld [smem:[#allocation9 + $0x12e]] }
 0xf9c   : > { %4068 = vrot.lane.b32.xlu2 %v4066_v15, %s5835_s19 }
 0xf9d   : > { %3854 = vrot.lane.b32.xlu1 %v3852_v49, %s5838_s30  ;;  %v3988_v49 = vstv %s5294_s27  ;;  %s7097_s27 = sld [smem:[#allocation9 + $0x11b]] }
 0xf9e   : > { %v4125_v39 = vstv %s5305_s15  ;;  %s5316_s15 = sld [smem:[#allocation9 + $0x120]]  ;;  %v3989_v55 = vmul.f32 %v7035_v9, %v3988_v49 }
 0xf9f   : > { %v3349_v14 = vpop.permute.xlu1 %3348  ;;  %v4126_v10 = vmul.f32 %v7035_v9, %v4125_v39  ;;  %v4232_v34 = vstv %s5313_s7  ;;  %s5322_s7 = sld [smem:[#allocation9 + $0x125]] }
 0xfa0   : > { %v3352_v27 = vsel %vm471_vm8, %v3347_v6, %v3349_v14  ;;  %v4075_v6 = vstv %s5300_s1  ;;  %s5288_s1 = sld [smem:[#allocation9 + $0x106]]  ;;  %v4106_v14 = vmul.f32 %v7035_v9, %v4105_v41  ;;  %v4233_v7 = vmul.f32 %v7035_v9, %v4232_v34 }
 0xfa1   : > { %v3359_v8 = vsel %vm478_vm9, %v3352_v27, 0.0  ;;  %v4076_v28 = vmul.f32 %v6952_v50, %v4075_v6  ;;  %v3832_v27 = vmul.f32 %v7035_v9, %v3831_v19 }
 0xfa2   : > { %v3360_v36 = vadd.f32 %v3359_v8, %v3358_v25  ;;  %v7038_v25 = vpop.permute.xlu2 %3520 }
 0xfa3   : > { %v4212_v32 = vstv %s7097_s27  ;;  %s7147_s27 = sld [smem:[#allocation9 + $0x137]] }
 0xfa4   : > { %3361 = vadd.xlane.f32.xlu0 %v3360_v36  ;;  %4088 = vrot.lane.b32.xlu2 %v4086_v22, %s5836_s2  ;;  %v4262_v47 = vstv %s5316_s15  ;;  %s5326_s15 = sld [smem:[#allocation9 + $0x129]] }
 0xfa5   : > { %3961 = vrot.lane.b32.xlu1 %v3959_v60, %s5831_s8  ;;  %v4263_v54 = vmul.f32 %v7035_v9, %v4262_v47  ;;  %v4349_v60 = vstv %s5322_s7  ;;  %s5333_s7 = sld [smem:[#allocation9 + $0x12f]] }
 0xfa6   : > { %v3928_v8 = vstv %s5288_s1  ;;  %s5315_s1 = sld [smem:[#allocation9 + $0x11f]]  ;;  %v4350_v24 = vmul.f32 %v6952_v50, %v4349_v60 }
 0xfa7   : > { %v6994_v51 = vpop.permute.xlu1 %3373  ;;  %v3929_v30 = vmul.f32 %v6952_v50, %v3928_v8 }
 0xfa8   : > { %v3375_v37 = vrot.slane %v6994_v51, 1 }
 0xfaa   : > { %v7050_v12 = vpop.permute.xlu2 %3540  ;;  %v3376_v29 = vsel %vm346_vm0, %v6994_v51, %v3375_v37  ;;  %v4389_v17 = vstv %s5326_s15  ;;  %s7142_s15 = sld [smem:[#allocation9 + $0x124]] }
 0xfab   : > { %v4390_v19 = vmul.f32 %v7035_v9, %v4389_v17 }
 0xfac   : > { %4195 = vrot.lane.b32.xlu2 %v4193_v35, %s7762_s9  ;;  %v4252_v46 = vstv %s5315_s1  ;;  %s5325_s1 = sld [smem:[#allocation9 + $0x128]]  ;;  %v3335_v35 = vld [vmem:[#allocation2] sm:$0x1] }
 0xfad   : > { %3981 = vrot.lane.b32.xlu1 %v3979_v2, %s5837_s20  ;;  %v4096_v2 = vmul.f32 %v7035_v9, %v4095_v58  ;;  %v3522_v58 = vrot.slane %v7038_v25, 1 }
 0xfaf   : > { %v7006_v61 = vpop.permute.xlu1 %3383 }
 0xfb0   : > { %v3385_v15 = vrot.slane %v7006_v61, 1  ;;  %v4339_v17 = vstv %s7142_s15  ;;  %s7209_s15 = sld [smem:[#allocation9 + $0x12a]] }
 0xfb2   : > { %v3386_v23 = vsel %vm357_vm1, %v7006_v61, %v3385_v15  ;;  %v4476_v61 = vstv %s5332_s26  ;;  %s7150_s26 = sld [smem:[#allocation9 + $0x138]] }
 0xfb3   : > { %v4477_v34 = vmul.f32 %v6952_v50, %v4476_v61 }
 0xfb4   : > { %4128 = vrot.lane.b32.xlu2 %v4126_v10, %s5838_s30  ;;  %v4486_v10 = vstv %s5333_s7  ;;  %s7158_s7 = sld [smem:[#allocation9 + $0xe5]] }
 0xfb5   : > { %4078 = vrot.lane.b32.xlu1 %v4076_v28, %s5833_s12  ;;  %v4487_v42 = vmul.f32 %v6952_v50, %v4486_v10 }
 0xfb7   : > { %v7017_v3 = vpop.permute.xlu1 %3403 }
 0xfb8   : > { %3443 = vrot.lane.b32.xlu0 %v3441_v1, %s5838_s30  ;;  %v7061_v1 = vpop.permute.xlu2 %3560  ;;  %v3405_v18 = vrot.slane %v7017_v3, 7 }
 0xfbc   : > { %4235 = vrot.lane.b32.xlu2 %v4233_v7, %s5831_s8 }
 0xfbd   : > { %4108 = vrot.lane.b32.xlu1 %v4106_v14, %s7774_s29 }
 0xfbf   : > { %v7028_v40 = vpop.permute.xlu1 %3423 }
 0xfc0   : > { %3647 = vrot.lane.b32.xlu0 %v3645_v31, %s7762_s9  ;;  %v4056_v31 = vmul.f32 %v6952_v50, %v4055_v43  ;;  %v7072_v45 = vpop.permute.xlu2 %3657  ;;  %v3406_v43 = vsel %vm379_vm3, %v3405_v18, %v7017_v3 }
 0xfc5   : > { %4205 = vrot.lane.b32.xlu1 %v4203_v5, %s5835_s19 }
 0xfc7   : > { %v7046_v36 = vpop.permute.xlu1 %3433 }
 0xfc8   : > { %3580 = vrot.lane.b32.xlu0 %v3578_v52, %s5838_s30  ;;  %v4253_v52 = vmul.f32 %v7035_v9, %v4252_v46  ;;  %v7082_v63 = vpop.permute.xlu2 %3677 }
 0xfca   : > { %4255 = vrot.lane.b32.xlu2 %v4253_v52, %s5837_s20  ;;  %v3425_v52 = vrot.slane %v7028_v40, 7 }
 0xfcd   : > { %4225 = vrot.lane.b32.xlu1 %v4223_v33, %s5836_s2 }
 0xfcf   : > { %v7056_v20 = vpop.permute.xlu1 %3530 }
 0xfd0   : > { %3687 = vrot.lane.b32.xlu0 %v3685_v48, %s5831_s8  ;;  %v4369_v48 = vstv %s5324_s13  ;;  %v7102_v51 = vpop.permute.xlu2 %3784  ;;  %s7118_s13 = sld [smem:[#allocation9 + $0x11e]] }
 0xfd1   : > { %v4370_v4 = vmul.f32 %v7035_v9, %v4369_v48 }
 0xfd2   : > { %4352 = vrot.lane.b32.xlu2 %v4350_v24, %s5833_s12 }
 0xfd5   : > { %4332 = vrot.lane.b32.xlu1 %v4330_v0, %s7762_s9  ;;  %v3512_v0 = vrot.slane %v7020_v21, 1 }
 0xfd7   : > { %v7068_v44 = vpop.permute.xlu1 %3550 }
 0xfd8   : > { %3707 = vrot.lane.b32.xlu0 %v3705_v59, %s5837_s20  ;;  %v3367_v59 = vstv %s5242_s25  ;;  %s7120_s25 = sld [smem:[#allocation9 + $0x130]] }
 0xfd9   : > { %v3368_v6 = vmul.f32 %v6952_v50, %v3367_v59  ;;  %v3435_v59 = vrot.slane %v7046_v36, 7 }
 0xfdb   : > { %v3378_v22 = vadd.f32 %v3376_v29, %v3368_v6  ;;  %v3523_v6 = vsel %vm357_vm1, %v7038_v25, %v3522_v58  ;;  %v3532_v29 = vrot.slane %v7056_v20, 1  ;;  %v3436_v25 = vsel %vm412_vm6, %v3435_v59, %v7046_v36 }
 0xfdd   : > { %4265 = vrot.lane.b32.xlu1 %v4263_v54, %s5838_s30  ;;  %v3388_v5 = vadd.f32 %v3386_v23, %v3378_v22  ;;  %v4242_v54 = vstv %s7118_s13  ;;  %v4613_v23 = vstv %s7150_s26  ;;  %s5264_s13 = sld [smem:[#allocation9 + $0xf0]] }
 0xfde   : > { %v4496_v60 = vstv %s7120_s25  ;;  %v4614_v36 = vmul.f32 %v6952_v50, %v4613_v23  ;;  %s7775_s25 = smov 127   ;;  %s7230_s26 = sld [smem:[#allocation9 + $0x131]] }
 0xfdf   : > { %v7079_v57 = vpop.permute.xlu1 %3570 }
 0xfe0   : > { %3804 = vrot.lane.b32.xlu0 %v3802_v16, %s5833_s12  ;;  %v4379_v16 = vstv %s5325_s1  ;;  %s5336_s1 = sld [smem:[#allocation9 + $0x132]] }
 0xfe1   : > { %v4380_v41 = vmul.f32 %v7035_v9, %v4379_v16 }
 0xfe3   : > { %4382 = vrot.lane.b32.xlu2 %v4380_v41, %s7774_s29  ;;  %v3542_v41 = vrot.slane %v7050_v12, 7 }
 0xfe5   : > { %4372 = vrot.lane.b32.xlu1 %v4370_v4, %s5831_s8  ;;  %v4497_v4 = vmul.f32 %v7031_v11, %v4496_v60 }
 0xfe6   : > { %v4516_v48 = vstv %s5336_s1  ;;  %s5331_s1 = sld [smem:[#allocation9 + $0x12d]] }
 0xfe7   : > { %v7090_v13 = vpop.permute.xlu1 %3667  ;;  %v4517_v37 = vmul.f32 %v7035_v9, %v4516_v48 }
 0xfe8   : > { %3834 = vrot.lane.b32.xlu0 %v3832_v27, %s7774_s29  ;;  %v3395_v27 = vrot.slane %v6999_v53, 1 }
 0xfea   : > { %v3396_v39 = vsel %vm368_vm2, %v6999_v53, %v3395_v27  ;;  %v3415_v53 = vrot.slane %v7009_v62, 7  ;;  %v4603_v27 = vstv %s7147_s27  ;;  %s7223_s27 = sld [smem:[#allocation9 + $0xfa]] }
 0xfeb   : > { %v3398_v33 = vadd.f32 %v3396_v39, %v3388_v5  ;;  %4479 = vrot.lane.b32.xlu2 %v4477_v34, %s5835_s19  ;;  %v4604_v5 = vmul.f32 %v6952_v50, %v4603_v27  ;;  %v3450_v39 = vstv %s7158_s7  ;;  %s7247_s7 = sld [smem:[#allocation9 + $0xf9]] }
 0xfec   : > { %v3416_v49 = vsel %vm390_vm4, %v3415_v53, %v7009_v62  ;;  %v4243_v62 = vmul.f32 %v7035_v9, %v4242_v54  ;;  %v3572_v54 = vrot.slane %v7079_v57, 7  ;;  %v4466_v60 = vstv %s5331_s1  ;;  %s7289_s1 = sld [smem:[#allocation9 + $0x13c]] }
 0xfed   : > { %4392 = vrot.lane.b32.xlu1 %v4390_v19, %s5837_s20  ;;  %v3408_v46 = vadd.f32 %v3406_v43, %v3398_v33  ;;  %v3533_v19 = vsel %vm368_vm2, %v7056_v20, %v3532_v29  ;;  %v3543_v20 = vsel %vm379_vm3, %v3542_v41, %v7050_v12  ;;  %v4467_v59 = vmul.f32 %v6952_v50, %v4466_v60 }
 0xfef   : > { %v7111_v26 = vpop.permute.xlu1 %3697  ;;  %v3418_v24 = vadd.f32 %v3416_v49, %v3408_v46 }
 0xff0   : > { %3931 = vrot.lane.b32.xlu0 %v3929_v30, %s5835_s19 }
 0xff3   : > { %4499 = vrot.lane.b32.xlu2 %v4497_v4, %s5836_s2 }
 0xff5   : > { %4489 = vrot.lane.b32.xlu1 %v4487_v42, %s5833_s12  ;;  %v3562_v42 = vrot.slane %v7061_v1, 7 }
 0xff7   : > { %v7135_v47 = vpop.permute.xlu1 %3794 }
 0xff8   : > { %3951 = vrot.lane.b32.xlu0 %v3949_v38, %s5836_s2  ;;  %v4213_v38 = vmul.f32 %v6952_v50, %v4212_v32  ;;  %v3552_v32 = vrot.slane %v7068_v44, 7 }
 0xffa   : > { %v3553_v12 = vsel %vm390_vm4, %v3552_v32, %v7068_v44 }
 0xffb   : > { %4606 = vrot.lane.b32.xlu2 %v4604_v5, %s7775_s25 }
 0xffd   : > { %4519 = vrot.lane.b32.xlu1 %v4517_v37, %s7774_s29 }
0x1000   : > { %4058 = vrot.lane.b32.xlu0 %v4056_v31, %s7762_s9  ;;  %s5304_s9 = sld [smem:[#allocation9 + $0x115]]  ;;  %v7130_v31 = vpop.permute.xlu2 %3717 }
0x1005   : > { %4616 = vrot.lane.b32.xlu1 %v4614_v36, %s5835_s19 }
0x1006   : > { %v4115_v28 = vstv %s5304_s9  ;;  %s7109_s9 = sld [smem:[#allocation9 + $0xe6]] }
0x1007   : > { %v4116_v14 = vmul.f32 %v7035_v9, %v4115_v28 }
0x1008   : > { %3991 = vrot.lane.b32.xlu0 %v3989_v55, %s5838_s30  ;;  %v3513_v55 = vsel %vm346_vm0, %v7020_v21, %v3512_v0  ;;  %v3426_v21 = vsel %vm401_vm5, %v3425_v52, %v7028_v40  ;;  %v7166_v28 = vpop.permute.xlu2 %3824  ;;  %v7168_v40 = vpop.permute.xlu1 %3814  ;;  %v3641_v0 = vstv %s5264_s13  ;;  %v3563_v52 = vsel %vm401_vm5, %v3562_v42, %v7061_v1  ;;  %s7263_s13 = sld [smem:[#allocation9 + $0x134]] }
0x1009   : > { %v3428_v15 = vadd.f32 %v3426_v21, %v3418_v24  ;;  %v3659_v24 = vrot.slane %v7072_v45, 1  ;;  %v3699_v42 = vrot.slane %v7111_v26, 7 }
0x100c   : > { %v3504_v7 = vstv %s7109_s9  ;;  %s7173_s9 = sld [smem:[#allocation9 + $0x126]] }
0x100d   : > { %v3505_v3 = vmul.f32 %v6952_v50, %v3504_v7 }
0x1010   : > { %4098 = vrot.lane.b32.xlu0 %v4096_v2, %s5831_s8  ;;  %v3515_v2 = vadd.f32 %v3513_v55, %v3505_v3  ;;  %v7193_v33 = vpop.permute.xlu1 %3921  ;;  %v7200_v7 = vpop.permute.xlu2 %3844  ;;  %v3642_v55 = vmul.f32 %v6952_v50, %v3641_v0  ;;  %v4506_v0 = vstv %s7230_s26  ;;  %s7310_s26 = sld [smem:[#allocation9 + $0x103]] }
0x1012   : > { %v3525_v16 = vadd.f32 %v3523_v6, %v3515_v2  ;;  %v4359_v34 = vstv %s7173_s9  ;;  %s7250_s9 = sld [smem:[#allocation9 + $0x133]] }
0x1013   : > { %v4360_v49 = vmul.f32 %v7031_v11, %v4359_v34 }
0x1017   : > { %v3362_v8 = vpop.xlane.xlu0 %3361 }
0x1018   : > { %v3363_v30 = vadd.f32 %v3362_v8, %v3335_v35  ;;  %4118 = vrot.lane.b32.xlu0 %v4116_v14, %s5837_s20  ;;  %v3438_v8 = vadd.f32 %v3436_v25, %v3428_v15  ;;  %v4340_v35 = vmul.f32 %v6952_v50, %v4339_v17  ;;  %v7214_v4 = vpop.permute.xlu1 %3854  ;;  %v7217_v6 = vpop.permute.xlu2 %3941  ;;  %v3660_v15 = vsel %vm357_vm1, %v7072_v45, %v3659_v24 }
0x101a   : > { %3365 = vst.msk [vmem:[#allocation2] sm:$0x1] %vm3364_vm12, %v3363_v30  ;;  %v3535_v30 = vadd.f32 %v3533_v19, %v3525_v16  ;;  %v3669_v16 = vrot.slane %v7090_v13, 1  ;;  %v3679_v19 = vrot.slane %v7082_v63, 7 }
0x101c   : > { %v3670_v45 = vsel %vm368_vm2, %v7090_v13, %v3669_v16  ;;  %v3680_v36 = vsel %vm379_vm3, %v3679_v19, %v7082_v63 }
0x1020   : > { %4215 = vrot.lane.b32.xlu0 %v4213_v38, %s5833_s12  ;;  %v3545_v38 = vadd.f32 %v3543_v20, %v3535_v30  ;;  %v3786_v20 = vrot.slane %v7102_v51, 1 }
0x1022   : > { %v3555_v3 = vadd.f32 %v3553_v12, %v3545_v38  ;;  %v3778_v38 = vstv %s7223_s27  ;;  %s7307_s27 = sld [smem:[#allocation9 + $0x139]] }
0x1024   : > { %v3565_v58 = vadd.f32 %v3563_v52, %v3555_v3 }
0x1028   : > { %4245 = vrot.lane.b32.xlu0 %v4243_v62, %s7774_s29  ;;  %v3573_v62 = vsel %vm412_vm6, %v3572_v54, %v7079_v57 }
0x1029   : > { %v3575_v29 = vadd.f32 %v3573_v62, %v3565_v58  ;;  %v3700_v58 = vsel %vm401_vm5, %v3699_v42, %v7111_v26  ;;  %v4507_v62 = vmul.f32 %v7035_v9, %v4506_v0 }
0x102a   : > { %v3444_v22 = vpop.permute.xlu0 %3443 }
0x102b   : > { %v3445_v14 = vrot.slane %v3444_v22, 7 }
0x102d   : > { %v3446_v18 = vsel %vm423_vm7, %v3445_v14, %v3444_v22  ;;  %v4399_v14 = vstv %s7209_s15  ;;  %s7300_s15 = sld [smem:[#allocation9 + $0x104]] }
0x102e   : > { %v3448_v61 = vadd.f32 %v3446_v18, %v3438_v8  ;;  %v7238_v18 = vpop.permute.xlu1 %3961 }
0x1030   : > { %v7190_v10 = vadd.f32 %v3450_v39, %v3448_v61  ;;  %4342 = vrot.lane.b32.xlu0 %v4340_v35, %s5835_s19  ;;  %s5262_s19 = sld [smem:[#allocation9 + $0xef]]  ;;  %v4400_v39 = vmul.f32 %v7035_v9, %v4399_v14  ;;  %v7242_v61 = vpop.permute.xlu2 %3971 }
0x1032   : > { %v5252_v53 = vmul.f32 -1.442695, %v7190_v10  ;;  %v3648_v43 = vpop.permute.xlu0 %3647 }
0x1033   : > { %v3649_v46 = vrot.slane %v3648_v43, 1 }
0x1034   : > { %5548 = vpow2.f32 %v5252_v53 }
0x1035   : > { %v3650_v44 = vsel %vm346_vm0, %v3648_v43, %v3649_v46  ;;  %v3779_v46 = vmul.f32 %v6952_v50, %v3778_v38 }
0x1036   : > { %v3652_v2 = vadd.f32 %v3650_v44, %v3642_v55  ;;  %v3587_v25 = vstv %s5262_s19  ;;  %v3719_v44 = vrot.slane %v7130_v31, 7  ;;  %v7267_v26 = vpop.permute.xlu1 %3981  ;;  %s7295_s19 = sld [smem:[#allocation9 + $0x13a]] }
0x1038   : > { %4362 = vrot.lane.b32.xlu0 %v4360_v49, %s5836_s2  ;;  %v3662_v17 = vadd.f32 %v3660_v15, %v3652_v2  ;;  %v3787_v49 = vsel %vm346_vm0, %v7102_v51, %v3786_v20  ;;  %v3720_v16 = vsel %vm423_vm7, %v3719_v44, %v7130_v31  ;;  %v3856_v44 = vrot.slane %v7214_v4, 7 }
0x103a   : > { %v5549_v48 = vpop.eup %5548  ;;  %v3581_v1 = vpop.permute.xlu0 %3580  ;;  %v3672_v35 = vadd.f32 %v3670_v45, %v3662_v17 }
0x103b   : > { %v3455_v37 = vadd.f32 1.0, %v5549_v48  ;;  %v3582_v21 = vrot.slane %v3581_v1, 7 }
0x103c   : > { %v3682_v12 = vadd.f32 %v3680_v36, %v3672_v35 }
0x103d   : > { %5550 = vrcp.f32 %v3455_v37  ;;  %v3583_v57 = vsel %vm423_vm7, %v3582_v21, %v3581_v1  ;;  %v3467_v34 = vand.u32 2147483648, %v3455_v37  ;;  %v3465_v53 = vand.u32 2147483647, %v3455_v37 }
0x103e   : > { %v3585_v41 = vadd.f32 %v3583_v57, %v3575_v29  ;;  %vm3461_vm14 = vweird.f32 %v3455_v37  ;;  %v3796_v1 = vrot.slane %v7135_v47, 1  ;;  %v3789_v29 = vadd.f32 %v3787_v49, %v3779_v46  ;;  %v7276_v57 = vpop.permute.xlu2 %4068 }
0x103f   : > { %v3468_v55 = vor.u32 1.1754944e-38, %v3467_v34  ;;  %vm3466_vm10 = vcmp.eq.f32.partialorder %v3465_v53, 8.507059e+37 }
0x1040   : > { %4469 = vrot.lane.b32.xlu0 %v4467_v59, %s7775_s25  ;;  %v7227_v22 = vadd.f32 %v3587_v25, %v3585_v41  ;;  %v3724_v25 = vstv %s7247_s7  ;;  %v4526_v41 = vstv %s7250_s9  ;;  %s7776_s25 = smov 19   ;;  %s7331_s7 = sld [smem:[#allocation9 + $0x13d]] }
0x1041   : > { %s7345_s9 = sld [smem:[#allocation9 + $0x13b]] }
0x1042   : > { %v3688_v27 = vpop.permute.xlu0 %3687  ;;  %v5263_v8 = vmul.f32 -1.442695, %v7227_v22 }
0x1043   : > { %v5551_v23 = vpop.eup %5550  ;;  %v3689_v5 = vrot.slane %v3688_v27, 7 }
0x1044   : > { %v3457_v30 = vmul.f32 %v5551_v23, %v3455_v37  ;;  %5552 = vpow2.f32 %v5263_v8  ;;  %vm3462_vm13 = vweird.f32 %v5551_v23 }
0x1045   : > { %v3690_v13 = vsel %vm390_vm4, %v3689_v5, %v3688_v27  ;;  %vm3463_vm15 = vmor %vm3461_vm14, %vm3462_vm13  ;;  %v3816_v27 = vrot.slane %v7168_v40, 7 }
0x1046   : > { %v3458_v32 = vsub.f32 1.0, %v3457_v30  ;;  %v3692_v43 = vadd.f32 %v3690_v13, %v3682_v12  ;;  %v7304_v12 = vpop.permute.xlu1 %4078  ;;  %v7313_v46 = vpop.permute.xlu2 %4088 }
0x1047   : > { %v3817_v38 = vsel %vm379_vm3, %v3816_v27, %v7168_v40 }
0x1048   : > { %v3459_v63 = vmul.f32 %v5551_v23, %v3458_v32  ;;  %4402 = vrot.lane.b32.xlu0 %v4400_v39, %s5838_s30  ;;  %v3702_v37 = vadd.f32 %v3700_v58, %v3692_v43  ;;  %v4536_v39 = vstv %s7263_s13  ;;  %v3826_v32 = vrot.slane %v7166_v28, 7  ;;  %s7540_s13 = sld [smem:[#allocation9 + $0x12c]] }
0x1049   : > { %v4537_v42 = vmul.f32 %v7035_v9, %v4536_v39 }
0x104a   : > { %v3460_v3 = vadd.f32 %v5551_v23, %v3459_v63  ;;  %v3708_v52 = vpop.permute.xlu0 %3707  ;;  %v5553_v54 = vpop.eup %5552  ;;  %v3827_v49 = vsel %vm390_vm4, %v3826_v32, %v7166_v28 }
0x104b   : > { %v3709_v60 = vrot.slane %v3708_v52, 7  ;;  %v7258_v24 = vadd.f32 1.0, %v5553_v54 }
0x104c   : > { %v3464_v48 = vsel %vm3463_vm15, %v5551_v23, %v3460_v3 }
0x104d   : > { %v3469_v51 = vsel %vm3466_vm10, %v3468_v55, %v3464_v48  ;;  %v3710_v2 = vsel %vm412_vm6, %v3709_v60, %v3708_v52  ;;  %5554 = vrcp.f32 %v7258_v24  ;;  %v3604_v53 = vand.u32 2147483648, %v7258_v24 }
0x104e   : > { %v3471_v21 = vmul.f32 %v3469_v51, %v7190_v10  ;;  %v3712_v59 = vadd.f32 %v3710_v2, %v3702_v37  ;;  %v3797_v10 = vsel %vm357_vm1, %v7135_v47, %v3796_v1  ;;  %v4527_v47 = vmul.f32 %v7035_v9, %v4526_v41 }
0x104f   : > { %v3799_v35 = vadd.f32 %v3797_v10, %v3789_v29  ;;  %v3602_v43 = vand.u32 2147483647, %v7258_v24  ;;  %vm3598_vm12 = vweird.f32 %v7258_v24  ;;  %v3846_v55 = vrot.slane %v7200_v7, 7 }
0x1050   : > { %v7270_v15 = vmul.f32 %v3471_v21, %v6125_v56  ;;  %4509 = vrot.lane.b32.xlu0 %v4507_v62, %s5831_s8  ;;  %v3722_v17 = vadd.f32 %v3720_v16, %v3712_v59  ;;  %v4653_v60 = vstv %s7289_s1  ;;  %v4633_v51 = vstv %s7295_s19  ;;  %s7554_s1 = sld [smem:[#allocation9 + $0x12b]] }
0x1051   : > { %vm3603_vm14 = vcmp.eq.f32.partialorder %v3602_v43, 8.507059e+37  ;;  %v3847_v59 = vsel %vm412_vm6, %v3846_v55, %v7200_v7  ;;  %v4654_v29 = vmul.f32 %v7035_v9, %v4653_v60  ;;  %v4634_v16 = vmul.f32 %v7031_v11, %v4633_v51  ;;  %s5339_s19 = sld [smem:[#allocation9 + $0x135]] }
0x1052   : > { %v3805_v19 = vpop.permute.xlu0 %3804  ;;  %v3477_v14 = vperm.slane %v7270_v15, 2  ;;  %v3475_v45 = vperm.slane %v7270_v15, 0  ;;  %v7284_v23 = vadd.f32 %v3724_v25, %v3722_v17  ;;  %v3478_v0 = vperm.slane %v7270_v15, 3 }
0x1053   : > { %v3806_v31 = vrot.slane %v3805_v19, 1  ;;  %v5555_v8 = vpop.eup %5554  ;;  %v3476_v2 = vperm.slane %v7270_v15, 1  ;;  %v3915_v25 = vstv %s7300_s15  ;;  %v3923_v10 = vrot.slane %v7193_v33, 1  ;;  %s5341_s15 = sld [smem:[#allocation9 + $0x136]] }
0x1054   : > { %3483 = vrot.lane.b32.xlu1 %v3477_v14, %s7776_s25  ;;  %3479 = vrot.lane.b32.xlu2 %v3475_v45, %s7776_s25  ;;  %v3594_v5 = vmul.f32 %v5555_v8, %v7258_v24  ;;  %v5274_v36 = vmul.f32 -1.442695, %v7284_v23  ;;  %vm3599_vm11 = vweird.f32 %v5555_v8  ;;  %v3605_v24 = vor.u32 1.1754944e-38, %v3604_v53  ;;  %v7351_v45 = vpop.permute.xlu1 %4108 }
0x1055   : > { %v3807_v30 = vsel %vm368_vm2, %v3805_v19, %v3806_v31  ;;  %vm7318_vm13 = vmor %vm3598_vm12, %vm3599_vm11  ;;  %v4623_v41 = vstv %s7307_s27  ;;  %v3857_v7 = vsel %vm423_vm7, %v3856_v44, %v7214_v4  ;;  %v3861_v19 = vstv %s7310_s26  ;;  %s5350_s27 = sld [smem:[#allocation9 + $0x13f]] }
0x1056   : > { %v3809_v20 = vadd.f32 %v3807_v30, %v3799_v35  ;;  %v3595_v13 = vsub.f32 1.0, %v3594_v5  ;;  %5556 = vpow2.f32 %v5274_v36  ;;  %v3916_v11 = vmul.f32 %v6952_v50, %v3915_v25 }
0x1057   : > { %v3924_v4 = vsel %vm346_vm0, %v7193_v33, %v3923_v10  ;;  %v3943_v33 = vrot.slane %v7217_v6, 1 }
0x1058   : > { %v3819_v34 = vadd.f32 %v3817_v38, %v3809_v20  ;;  %4529 = vrot.lane.b32.xlu0 %v4527_v47, %s5837_s20  ;;  %v3596_v63 = vmul.f32 %v5555_v8, %v3595_v13  ;;  %v4663_v47 = vstv %s7331_s7  ;;  %v3926_v32 = vadd.f32 %v3924_v4, %v3916_v11 }
0x1059   : > { %v4643_v38 = vstv %s7345_s9 }
0x105a   : > { %v3835_v40 = vpop.permute.xlu0 %3834  ;;  %v3597_v3 = vadd.f32 %v5555_v8, %v3596_v63  ;;  %v3829_v58 = vadd.f32 %v3827_v49, %v3819_v34  ;;  %v4644_v49 = vmul.f32 %v7035_v9, %v4643_v38 }
0x105b   : > { %v3836_v52 = vrot.slane %v3835_v40, 7 }
0x105c   : > { %3485 = vrot.lane.b32.xlu1 %v3478_v0, %s7776_s25  ;;  %4539 = vrot.lane.b32.xlu2 %v4537_v42, %s5838_s30  ;;  %v5557_v48 = vpop.eup %5556  ;;  %v3601_v28 = vsel %vm7318_vm13, %v5555_v8, %v3597_v3  ;;  %v7356_v8 = vpop.permute.xlu2 %4195 }
0x105d   : > { %v3837_v62 = vsel %vm401_vm5, %v3836_v52, %v3835_v40  ;;  %v7333_v1 = vadd.f32 1.0, %v5557_v48  ;;  %v3606_v21 = vsel %vm3603_vm14, %v3605_v24, %v3601_v28  ;;  %v7382_v3 = vpop.permute.xlu1 %4205  ;;  %v3944_v52 = vsel %vm368_vm2, %v7217_v6, %v3943_v33 }
0x105e   : > { %v3839_v37 = vadd.f32 %v3837_v62, %v3829_v58  ;;  %v3608_v15 = vmul.f32 %v3606_v21, %v7227_v22  ;;  %v4624_v22 = vmul.f32 %v6952_v50, %v4623_v41  ;;  %v4664_v50 = vmul.f32 %v7035_v9, %v4663_v47 }
0x105f   : > { %5558 = vrcp.f32 %v7333_v1  ;;  %v3741_v34 = vand.u32 2147483648, %v7333_v1  ;;  %v3739_v40 = vand.u32 2147483647, %v7333_v1  ;;  %vm3735_vm10 = vweird.f32 %v7333_v1 }
0x1060   : > { %3481 = vrot.lane.b32.xlu0 %v3476_v2, %s7776_s25  ;;  %v3849_v17 = vadd.f32 %v3847_v59, %v3839_v37  ;;  %v7365_v36 = vmul.f32 %v3608_v15, %v6125_v56  ;;  %v3963_v24 = vrot.slane %v7238_v18, 7  ;;  %v3973_v59 = vrot.slane %v7242_v61, 7 }
0x1061   : > { %v3742_v44 = vor.u32 1.1754944e-38, %v3741_v34  ;;  %vm3740_vm12 = vcmp.eq.f32.partialorder %v3739_v40, 8.507059e+37  ;;  %v3983_v15 = vrot.slane %v7267_v26, 7 }
0x1062   : > { %v3932_v14 = vpop.permute.xlu0 %3931  ;;  %v3859_v27 = vadd.f32 %v3857_v7, %v3849_v17  ;;  %v3613_v53 = vperm.slane %v7365_v36, 1  ;;  %v3614_v2 = vperm.slane %v7365_v36, 2  ;;  %v3615_v21 = vperm.slane %v7365_v36, 3  ;;  %v7418_v7 = vld [vmem:[%s5992_s18] sm:$0xf]  ;;  %s7449_s18 = sld [smem:[#allocation9 + $0x118]] }
0x1063   : > { %v3933_v31 = vrot.slane %v3932_v14, 1  ;;  %v3612_v17 = vperm.slane %v7365_v36, 0 }
0x1064   : > { %4656 = vrot.lane.b32.xlu1 %v4654_v29, %s7774_s29  ;;  %4636 = vrot.lane.b32.xlu2 %v4634_v16, %s5836_s2  ;;  %v7361_v35 = vadd.f32 %v3861_v19, %v3859_v27  ;;  %v7388_v60 = vpop.permute.xlu2 %4128  ;;  %s7394_s2 = sld [smem:[#allocation9 + $0x13e]]  ;;  %v3964_v29 = vsel %vm390_vm4, %v3963_v24, %v7238_v18  ;;  %v3974_v18 = vsel %vm401_vm5, %v3973_v59, %v7242_v61  ;;  %v4070_v61 = vrot.slane %v7276_v57, 1 }
0x1065   : > { %v5559_v5 = vpop.eup %5558  ;;  %v3934_v20 = vsel %vm357_vm1, %v3932_v14, %v3933_v31  ;;  %v7412_v41 = vpop.permute.xlu1 %4225  ;;  %s7505_s29 = sld [smem:[#allocation9 + $0x121]] }
0x1066   : > { %v3731_v30 = vmul.f32 %v5559_v5, %v7333_v1  ;;  %v5285_v39 = vmul.f32 -1.442695, %v7361_v35  ;;  %v3936_v42 = vadd.f32 %v3934_v20, %v3926_v32  ;;  %vm3736_vm15 = vweird.f32 %v5559_v5 }
0x1067   : > { %vm3737_vm11 = vmor %vm3735_vm10, %vm3736_vm15 }
0x1068   : > { %4626 = vrot.lane.b32.xlu0 %v4624_v22, %s5833_s12  ;;  %v3732_v13 = vsub.f32 1.0, %v3731_v30  ;;  %5560 = vpow2.f32 %v5285_v39  ;;  %s7380_s12 = sld [smem:[#allocation9 + $0x10e]]  ;;  %v3946_v58 = vadd.f32 %v3944_v52, %v3936_v42  ;;  %v3984_v39 = vsel %vm412_vm6, %v3983_v15, %v7267_v26 }
0x1069   : > { %v4071_v26 = vsel %vm357_vm1, %v7276_v57, %v4070_v61 }
0x106a   : > { %v3952_v63 = vpop.permute.xlu0 %3951  ;;  %v3733_v43 = vmul.f32 %v5559_v5, %v3732_v13  ;;  %v4673_v4 = vstv %s7394_s2 }
0x106b   : > { %v3953_v0 = vrot.slane %v3952_v63, 7  ;;  %v4674_v38 = vmul.f32 %v7035_v9, %v4673_v4  ;;  %v4090_v9 = vrot.slane %v7313_v46, 7  ;;  %v4207_v4 = vrot.slane %v7382_v3, 1 }
0x106c   : > { %4666 = vrot.lane.b32.xlu2 %v4664_v50, %s5837_s20  ;;  %3618 = vrot.lane.b32.xlu1 %v3613_v53, %s7776_s25  ;;  %v3734_v54 = vadd.f32 %v5559_v5, %v3733_v43  ;;  %v7422_v31 = vpop.permute.xlu2 %4235  ;;  %v4080_v53 = vrot.slane %v7304_v12, 1  ;;  %s7466_s20 = sld [smem:[#allocation9 + $0x117]] }
0x106d   : > { %v3954_v55 = vsel %vm379_vm3, %v3953_v0, %v3952_v63 }
0x106e   : > { %v5561_v48 = vpop.eup %5560  ;;  %v3738_v28 = vsel %vm3737_vm11, %v5559_v5, %v3734_v54  ;;  %v3956_v6 = vadd.f32 %v3954_v55, %v3946_v58  ;;  %v4052_v25 = vstv %s7380_s12  ;;  %v7447_v54 = vpop.permute.xlu1 %4332  ;;  %s4878_s12 = scalar_lea.hbm %s7757_s6, %s5900_s28 }
0x106f   : > { %v3743_v62 = vsel %vm3740_vm12, %v3742_v44, %v3738_v28  ;;  %v7391_v51 = vadd.f32 1.0, %v5561_v48  ;;  %v4053_v19 = vmul.f32 %v7418_v7, %v4052_v25  ;;  %v4081_v44 = vsel %vm368_vm2, %v7304_v12, %v4080_v53 }
0x1070   : > { %4646 = vrot.lane.b32.xlu0 %v4644_v49, %s5831_s8  ;;  %v3745_v1 = vmul.f32 %v3743_v62, %v7284_v23  ;;  %v3966_v16 = vadd.f32 %v3964_v29, %v3956_v6  ;;  %s7406_s8 = sld [smem:[#allocation9 + $0x10d]]  ;;  %v4110_v29 = vrot.slane %v7351_v45, 7 }
0x1071   : > { %5562 = vrcp.f32 %v7391_v51  ;;  %v3878_v50 = vand.u32 2147483648, %v7391_v51  ;;  %v3876_v42 = vand.u32 2147483647, %v7391_v51  ;;  %vm3872_vm14 = vweird.f32 %v7391_v51 }
0x1072   : > { %v4059_v37 = vpop.permute.xlu0 %4058  ;;  %v7409_v23 = vmul.f32 %v3745_v1, %v6125_v56  ;;  %v3976_v11 = vadd.f32 %v3974_v18, %v3966_v16  ;;  %v4091_v1 = vsel %vm379_vm3, %v4090_v9, %v7313_v46  ;;  %v4197_v46 = vrot.slane %v7356_v8, 1 }
0x1073   : > { %v4060_v10 = vrot.slane %v4059_v37, 1  ;;  %v3879_v49 = vor.u32 1.1754944e-38, %v3878_v50  ;;  %vm3877_vm10 = vcmp.eq.f32.partialorder %v3876_v42, 8.507059e+37 }
0x1074   : > { %3620 = vrot.lane.b32.xlu2 %v3614_v2, %s7776_s25  ;;  %3622 = vrot.lane.b32.xlu1 %v3615_v21, %s7776_s25  ;;  %v3751_v5 = vperm.slane %v7409_v23, 2  ;;  %v3749_v36 = vperm.slane %v7409_v23, 0  ;;  %v3986_v13 = vadd.f32 %v3984_v39, %v3976_v11  ;;  %v7454_v48 = vpop.permute.xlu2 %4255  ;;  %v3752_v24 = vperm.slane %v7409_v23, 3 }
0x1075   : > { %v4061_v27 = vsel %vm346_vm0, %v4059_v37, %v4060_v10  ;;  %v3750_v2 = vperm.slane %v7409_v23, 1 }
0x1076   : > { %v4063_v20 = vadd.f32 %v4061_v27, %v4053_v19  ;;  %v3998_v33 = vstv %s7406_s8  ;;  %v7471_v18 = vpop.permute.xlu1 %4265  ;;  %v4111_v27 = vsel %vm401_vm5, %v4110_v29, %v7351_v45  ;;  %v4135_v45 = vstv %s7466_s20 }
0x1077   : > { %v5563_v14 = vpop.eup %5562 }
0x1078   : > { %3616 = vrot.lane.b32.xlu0 %v3612_v17, %s7776_s25  ;;  %v3868_v22 = vmul.f32 %v5563_v14, %v7391_v51  ;;  %vm3873_vm13 = vweird.f32 %v5563_v14  ;;  %v4073_v0 = vadd.f32 %v4071_v26, %v4063_v20  ;;  %v4208_v20 = vsel %vm357_vm1, %v7382_v3, %v4207_v4 }
0x1079   : > { %vm3874_vm15 = vmor %vm3872_vm14, %vm3873_vm13 }
0x107a   : > { %v3992_v47 = vpop.permute.xlu0 %3991  ;;  %v3869_v30 = vsub.f32 1.0, %v3868_v22  ;;  %v4083_v51 = vadd.f32 %v4081_v44, %v4073_v0  ;;  %v4198_v22 = vsel %vm346_vm0, %v7356_v8, %v4197_v46  ;;  %v4237_v0 = vrot.slane %v7422_v31, 7 }
0x107b   : > { %v3993_v32 = vrot.slane %v3992_v47, 7 }
0x107c   : > { %3757 = vrot.lane.b32.xlu1 %v3751_v5, %s7776_s25  ;;  %3753 = vrot.lane.b32.xlu2 %v3749_v36, %s7776_s25  ;;  %v3870_v34 = vmul.f32 %v5563_v14, %v3869_v30  ;;  %v4093_v21 = vadd.f32 %v4091_v1, %v4083_v51  ;;  %v7477_v11 = vpop.permute.xlu2 %4352 }
0x107d   : > { %v3994_v63 = vsel %vm423_vm7, %v3993_v32, %v3992_v47 }
0x107e   : > { %v3996_v43 = vadd.f32 %v3994_v63, %v3986_v13  ;;  %v3871_v40 = vadd.f32 %v5563_v14, %v3870_v34  ;;  %v7493_v63 = vpop.permute.xlu1 %4372 }
0x1080   : > { %v7444_v52 = vadd.f32 %v3998_v33, %v3996_v43  ;;  %4676 = vrot.lane.b32.xlu0 %v4674_v38, %s5838_s30  ;;  %v3875_v55 = vsel %vm3874_vm15, %v5563_v14, %v3871_v40  ;;  %v4130_v14 = vrot.slane %v7388_v60, 7  ;;  %v4227_v33 = vrot.slane %v7412_v41, 7  ;;  %s7503_s30 = sld [smem:[#allocation9 + $0x122]] }
0x1081   : > { %v3880_v57 = vsel %vm3877_vm10, %v3879_v49, %v3875_v55 }
0x1082   : > { %v5296_v58 = vmul.f32 -1.442695, %v7444_v52  ;;  %v4099_v28 = vpop.permute.xlu0 %4098  ;;  %v3882_v62 = vmul.f32 %v3880_v57, %v7361_v35  ;;  %v4189_v35 = vstv %s7449_s18  ;;  %v4131_v39 = vsel %vm423_vm7, %v4130_v14, %v7388_v60  ;;  %s329_s18 = scalar_lea.vmem [#allocation13], %s5988_s11 }
0x1083   : > { %v4100_v6 = vrot.slane %v4099_v28, 7  ;;  %v4190_v19 = vmul.f32 %v7418_v7, %v4189_v35  ;;  %v4228_v9 = vsel %vm379_vm3, %v4227_v33, %v7412_v41  ;;  %s4880_s20 = sshll.u32 %s329_s18, 4  ;;  %s4881_s20 = int_to_ptr.vmem [resolvable:$true] %s4880_s20 }
0x1084   : > { %5564 = vpow2.f32 %v5296_v58  ;;  %3759 = vrot.lane.b32.xlu2 %v3752_v24, %s7776_s25  ;;  %v3884_v12 = vmul.f32 %v3882_v62, %v6125_v56  ;;  %v7497_v43 = vpop.permute.xlu2 %4382  ;;  %v4238_v24 = vsel %vm390_vm4, %v4237_v0, %v7422_v31 }
0x1085   : > { %v4101_v37 = vsel %vm390_vm4, %v4100_v6, %v4099_v28  ;;  %v4200_v30 = vadd.f32 %v4198_v22, %v4190_v19  ;;  %v4257_v6 = vrot.slane %v7454_v48, 7 }
0x1086   : > { %v3887_v59 = vperm.slane %v3884_v12, 1  ;;  %v4103_v16 = vadd.f32 %v4101_v37, %v4093_v21  ;;  %v3888_v17 = vperm.slane %v3884_v12, 2  ;;  %v3886_v5 = vperm.slane %v3884_v12, 0  ;;  %v7513_v35 = vpop.permute.xlu1 %4392 }
0x1087   : > { %v4210_v42 = vadd.f32 %v4208_v20, %v4200_v30  ;;  %v3889_v40 = vperm.slane %v3884_v12, 3 }
0x1088   : > { %3755 = vrot.lane.b32.xlu0 %v3750_v2, %s7776_s25  ;;  %3892 = vrot.lane.b32.xlu1 %v3887_v59, %s7776_s25  ;;  %v4113_v61 = vadd.f32 %v4111_v27, %v4103_v16  ;;  %v4267_v2 = vrot.slane %v7471_v18, 7  ;;  %v4258_v16 = vsel %vm412_vm6, %v4257_v6, %v7454_v48 }
0x108a   : > { %v5565_v25 = vpop.eup %5564  ;;  %v4119_v10 = vpop.permute.xlu0 %4118 }
0x108b   : > { %v4003_v23 = vadd.f32 1.0, %v5565_v25  ;;  %v4120_v15 = vrot.slane %v4119_v10, 7 }
0x108c   : > { %3894 = vrot.lane.b32.xlu2 %v3888_v17, %s7776_s25  ;;  %v7518_v25 = vpop.permute.xlu2 %4479  ;;  %v4334_v17 = vrot.slane %v7447_v54, 1 }
0x108d   : > { %5566 = vrcp.f32 %v4003_v23  ;;  %v4121_v47 = vsel %vm412_vm6, %v4120_v15, %v4119_v10  ;;  %v4015_v49 = vand.u32 2147483648, %v4003_v23  ;;  %v4013_v57 = vand.u32 2147483647, %v4003_v23 }
0x108e   : > { %v4123_v36 = vadd.f32 %v4121_v47, %v4113_v61  ;;  %vm4009_vm12 = vweird.f32 %v4003_v23  ;;  %v4326_v10 = vstv %s7503_s30  ;;  %v4335_v48 = vsel %vm346_vm0, %v7447_v54, %v4334_v17  ;;  %v7535_v20 = vpop.permute.xlu1 %4489  ;;  %s4882_s30 = sshll.u32 %s4878_s12, 4  ;;  %s4883_s30 = int_to_ptr.hbm [resolvable:$true] %s4882_s30 }
0x108f   : > { %v4016_v62 = vor.u32 1.1754944e-38, %v4015_v49  ;;  %vm4014_vm14 = vcmp.eq.f32.partialorder %v4013_v57, 8.507059e+37  ;;  %v4327_v47 = vmul.f32 %v7418_v7, %v4326_v10  ;;  %v4374_v57 = vrot.slane %v7493_v63, 7 }
0x1090   : > { %3890 = vrot.lane.b32.xlu0 %v3886_v5, %s7776_s25  ;;  %v4133_v32 = vadd.f32 %v4131_v39, %v4123_v36  ;;  %v4481_v17 = vrot.slane %v7518_v25, 1 }
0x1091   : > { %v4375_v6 = vsel %vm390_vm4, %v4374_v57, %v7493_v63 }
0x1092   : > { %v4216_v8 = vpop.permute.xlu0 %4215  ;;  %v7491_v13 = vadd.f32 %v4135_v45, %v4133_v32  ;;  %v4337_v45 = vadd.f32 %v4335_v48, %v4327_v47  ;;  %v4354_v32 = vrot.slane %v7477_v11, 1 }
0x1093   : > { %v5567_v50 = vpop.eup %5566  ;;  %v4217_v38 = vrot.slane %v4216_v8, 1 }
0x1094   : > { %v4005_v34 = vmul.f32 %v5567_v50, %v4003_v23  ;;  %v5307_v60 = vmul.f32 -1.442695, %v7491_v13  ;;  %vm4010_vm11 = vweird.f32 %v5567_v50  ;;  %v4268_v23 = vsel %vm423_vm7, %v4267_v2, %v7471_v18  ;;  %v7538_v54 = vpop.permute.xlu2 %4499 }
0x1095   : > { %v4218_v26 = vsel %vm368_vm2, %v4216_v8, %v4217_v38  ;;  %vm4011_vm13 = vmor %vm4009_vm12, %vm4010_vm11 }
0x1096   : > { %v4006_v53 = vsub.f32 1.0, %v4005_v34  ;;  %v4220_v3 = vadd.f32 %v4218_v26, %v4210_v42  ;;  %5568 = vpow2.f32 %v5307_v60 }
0x1098   : > { %v4007_v55 = vmul.f32 %v5567_v50, %v4006_v53  ;;  %v4230_v44 = vadd.f32 %v4228_v9, %v4220_v3  ;;  %3896 = vrot.lane.b32.xlu0 %v3889_v40, %s7776_s25  ;;  %v4355_v53 = vsel %vm368_vm2, %v7477_v11, %v4354_v32 }
0x109a   : > { %v4008_v58 = vadd.f32 %v5567_v50, %v4007_v55  ;;  %v4246_v28 = vpop.permute.xlu0 %4245  ;;  %v4240_v1 = vadd.f32 %v4238_v24, %v4230_v44 }
0x109b   : > { %v4247_v41 = vrot.slane %v4246_v28, 7 }
0x109c   : > { %v4012_v51 = vsel %vm4011_vm13, %v5567_v50, %v4008_v58  ;;  %v5569_v12 = vpop.eup %5568 }
0x109d   : > { %v4017_v37 = vsel %vm4014_vm14, %v4016_v62, %v4012_v51  ;;  %v4248_v21 = vsel %vm401_vm5, %v4247_v41, %v4246_v28  ;;  %v4140_v29 = vadd.f32 1.0, %v5569_v12  ;;  %v7548_v62 = vpop.permute.xlu1 %4519  ;;  %v4384_v51 = vrot.slane %v7497_v43, 7 }
0x109e   : > { %v4019_v59 = vmul.f32 %v4017_v37, %v7444_v52  ;;  %v4250_v31 = vadd.f32 %v4248_v21, %v4240_v1  ;;  %v4272_v52 = vstv %s7505_s29  ;;  %v7556_v1 = vpop.permute.xlu2 %4606  ;;  %v4463_v37 = vstv %s7540_s13  ;;  %s4870_s29 = scalar_lea.sflag [#allocation5], %s5988_s11  ;;  %s5753_s13 = sshra.s32 %s4883_s30, 4  ;;  %s5754_s13 = int_to_ptr.hbm [resolvable:$true] %s5753_s13 }
0x109f   : > { %5570 = vrcp.f32 %v4140_v29  ;;  %v4150_v50 = vand.u32 2147483647, %v4140_v29  ;;  %v4152_v33 = vand.u32 2147483648, %v4140_v29  ;;  %vm4146_vm10 = vweird.f32 %v4140_v29  ;;  %p5760_p12 = scmp.lt.s32.totalorder %s5754_s13, %s7757_s6 }
0x10a0   : > { %v4021_v46 = vmul.f32 %v4019_v59, %v6125_v56  ;;  %v4260_v15 = vadd.f32 %v4258_v16, %v4250_v31  ;;  %v4394_v59 = vrot.slane %v7513_v35, 7  ;;  %v4464_v31 = vmul.f32 %v7418_v7, %v4463_v37 }
0x10a1   : > { %v4153_v0 = vor.u32 1.1754944e-38, %v4152_v33  ;;  %vm4151_vm12 = vcmp.eq.f32.partialorder %v4150_v50, 8.507059e+37  ;;  %v4501_v33 = vrot.slane %v7538_v54, 7 }
0x10a2   : > { %v4343_v19 = vpop.permute.xlu0 %4342  ;;  %v4025_v14 = vperm.slane %v4021_v46, 2  ;;  %v4024_v27 = vperm.slane %v4021_v46, 1  ;;  %v4023_v22 = vperm.slane %v4021_v46, 0  ;;  %v4270_v4 = vadd.f32 %v4268_v23, %v4260_v15 }
0x10a3   : > { %v4344_v61 = vrot.slane %v4343_v19, 1  ;;  %v4026_v26 = vperm.slane %v4021_v46, 3  ;;  %v4395_v23 = vsel %vm412_vm6, %v4394_v59, %v7513_v35  ;;  %v4546_v59 = vstv %s5339_s19 }
0x10a4   : > { %4031 = vrot.lane.b32.xlu0 %v4025_v14, %s7776_s25  ;;  %4029 = vrot.lane.b32.xlu2 %v4024_v27, %s7776_s25  ;;  %v7530_v5 = vadd.f32 %v4272_v52, %v4270_v4 }
0x10a5   : > { %4027 = vrot.lane.b32.xlu1 %v4023_v22, %s7776_s25  ;;  %v5571_v18 = vpop.eup %5570  ;;  %v4345_v39 = vsel %vm357_vm1, %v4343_v19, %v4344_v61  ;;  %v7570_v47 = vpop.permute.xlu1 %4616 }
0x10a6   : > { %v4142_v36 = vmul.f32 %v5571_v18, %v4140_v29  ;;  %v5318_v30 = vmul.f32 -1.442695, %v7530_v5  ;;  %v4347_v38 = vadd.f32 %v4345_v39, %v4337_v45  ;;  %vm4147_vm15 = vweird.f32 %v5571_v18 }
0x10a7   : > { %vm4148_vm11 = vmor %vm4146_vm10, %vm4147_vm15  ;;  %v4385_v29 = vsel %vm401_vm5, %v4384_v51, %v7497_v43  ;;  %v4409_v43 = vstv %s7554_s1  ;;  %v4491_v39 = vrot.slane %v7535_v20, 1  ;;  %s5755_s1 = scalar_lea.hbm %s5754_s13, 1 }
0x10a8   : > { %v4143_v8 = vsub.f32 1.0, %v4142_v36  ;;  %5572 = vpow2.f32 %v5318_v30  ;;  %v4357_v49 = vadd.f32 %v4355_v53, %v4347_v38  ;;  %v4482_v30 = vsel %vm357_vm1, %v7518_v25, %v4481_v17  ;;  %p5756_p1 = scmp.ne.s32.totalorder %s5754_s13, %s5755_s1 }
0x10aa   : > { %v4363_v34 = vpop.permute.xlu0 %4362  ;;  %v4144_v42 = vmul.f32 %v5571_v18, %v4143_v8  ;;  %p5757_p3 = pnand %p5756_p1, %p5959_p5 }
0x10ab   : > { %v4364_v60 = vrot.slane %v4363_v34, 7 }
0x10ac   : > { %v4145_v3 = vadd.f32 %v5571_v18, %v4144_v42  ;;  %v4492_v42 = vsel %vm368_vm2, %v7535_v20, %v4491_v39  ;;  %p5758_p4 = pneg %p5757_p3 }
0x10ad   : > { %v4365_v40 = vsel %vm379_vm3, %v4364_v60, %v4363_v34  ;;  %4033 = vrot.lane.b32.xlu1 %v4026_v26, %s7776_s25 }
0x10ae   : > { %v5573_v9 = vpop.eup %5572  ;;  %v4149_v55 = vsel %vm4148_vm11, %v5571_v18, %v4145_v3  ;;  %v4367_v28 = vadd.f32 %v4365_v40, %v4357_v49  ;;  %v3480_v35 = vpop.permute.xlu2 %3479 }
0x10af   : > { %v4154_v44 = vsel %vm4151_vm12, %v4153_v0, %v4149_v55  ;;  %v4277_v58 = vadd.f32 1.0, %v5573_v9  ;;  %v4502_v0 = vsel %vm379_vm3, %v4501_v33, %v7538_v54 }
0x10b0   : > { %v4156_v11 = vmul.f32 %v4154_v44, %v7491_v13  ;;  %v4377_v12 = vadd.f32 %v4375_v6, %v4367_v28 }
0x10b1   : > { %5574 = vrcp.f32 %v4277_v58  ;;  %v4287_v27 = vand.u32 2147483647, %v4277_v58  ;;  %v4289_v22 = vand.u32 2147483648, %v4277_v58  ;;  %vm4283_vm14 = vweird.f32 %v4277_v58 }
0x10b2   : > { %v4470_v24 = vpop.permute.xlu0 %4469  ;;  %v4158_v41 = vmul.f32 %v4156_v11, %v6125_v56  ;;  %v4387_v16 = vadd.f32 %v4385_v29, %v4377_v12 }
0x10b3   : > { %v4471_v2 = vrot.slane %v4470_v24, 1  ;;  %v4290_v50 = vor.u32 1.1754944e-38, %v4289_v22  ;;  %vm4288_vm10 = vcmp.eq.f32.partialorder %v4287_v27, 8.507059e+37 }
0x10b4   : > { %v4161_v21 = vperm.slane %v4158_v41, 1  ;;  %v4160_v13 = vperm.slane %v4158_v41, 0  ;;  %v4397_v4 = vadd.f32 %v4395_v23, %v4387_v16  ;;  %v4163_v61 = vperm.slane %v4158_v41, 3 }
0x10b5   : > { %v4472_v46 = vsel %vm346_vm0, %v4470_v24, %v4471_v2  ;;  %v4162_v36 = vperm.slane %v4158_v41, 2 }
0x10b6   : > { %4166 = vrot.lane.b32.xlu1 %v4161_v21, %s7776_s25  ;;  %4164 = vrot.lane.b32.xlu0 %v4160_v13, %s7776_s25  ;;  %v4474_v19 = vadd.f32 %v4472_v46, %v4464_v31  ;;  %v4540_v44 = vpop.permute.xlu2 %4539 }
0x10b7   : > { %v5575_v63 = vpop.eup %5574  ;;  %v4541_v11 = vrot.slane %v4540_v44, 7 }
0x10b8   : > { %v4279_v10 = vmul.f32 %v5575_v63, %v4277_v58  ;;  %vm4284_vm13 = vweird.f32 %v5575_v63  ;;  %v4484_v8 = vadd.f32 %v4482_v30, %v4474_v19  ;;  %v4521_v58 = vrot.slane %v7548_v62, 7 }
0x10b9   : > { %vm4285_vm15 = vmor %vm4283_vm14, %vm4284_vm13  ;;  %v4542_v12 = vsel %vm423_vm7, %v4541_v11, %v4540_v44 }
0x10ba   : > { %v4403_v15 = vpop.permute.xlu0 %4402  ;;  %v4280_v52 = vsub.f32 1.0, %v4279_v10  ;;  %v4494_v3 = vadd.f32 %v4492_v42, %v4484_v8  ;;  %v4522_v41 = vsel %vm401_vm5, %v4521_v58, %v7548_v62 }
0x10bb   : > { %v4404_v14 = vrot.slane %v4403_v15, 7 }
0x10bc   : > { %v4281_v48 = vmul.f32 %v5575_v63, %v4280_v52  ;;  %v4504_v57 = vadd.f32 %v4502_v0, %v4494_v3 }
0x10bd   : > { %v4405_v18 = vsel %vm423_vm7, %v4404_v14, %v4403_v15 }
0x10be   : > { %v4407_v45 = vadd.f32 %v4405_v18, %v4397_v4  ;;  %v4282_v32 = vadd.f32 %v5575_v63, %v4281_v48  ;;  %4170 = vrot.lane.b32.xlu1 %v4163_v61, %s7776_s25  ;;  %4168 = vrot.lane.b32.xlu0 %v4162_v36, %s7776_s25  ;;  %v4637_v31 = vpop.permute.xlu2 %4636  ;;  %v4600_v4 = vstv %s5341_s15  ;;  %v4608_v61 = vrot.slane %v7556_v1, 1  ;;  %s5759_s15 = scalar_lea.hbm %s7757_s6, 2 }
0x10bf   : > { %v4601_v36 = vmul.f32 %v7418_v7, %v4600_v4  ;;  %p5761_p7 = scmp.lt.s32.totalorder %s5759_s15, %s5755_s1 }
0x10c0   : > { %v7579_v38 = vadd.f32 %v4409_v43, %v4407_v45  ;;  %v4286_v34 = vsel %vm4285_vm15, %v5575_v63, %v4282_v32  ;;  %v4618_v45 = vrot.slane %v7570_v47, 1  ;;  %vm3501_vm15 = vcmask 180400  }
0x10c1   : > { %v4291_v25 = vsel %vm4288_vm10, %v4290_v50, %v4286_v34  ;;  %vm3638_vm10 = vcmask 188600   ;;  %p5762_p8 = por %p5761_p7, %p5760_p12 }
0x10c2   : > { %v5329_v60 = vmul.f32 -1.442695, %v7579_v38  ;;  %v4510_v26 = vpop.permute.xlu0 %4509  ;;  %v4293_v53 = vmul.f32 %v4291_v25, %v7530_v5  ;;  %v4619_v25 = vsel %vm357_vm1, %v7570_v47, %v4618_v45 }
0x10c3   : > { %v4511_v40 = vrot.slane %v4510_v26, 7  ;;  %p5763_p9 = pnand %p5762_p8, %p5758_p4 }
0x10c4   : > { %5576 = vpow2.f32 %v5329_v60  ;;  %v7588_v49 = vmul.f32 %v4293_v53, %v6125_v56 }
0x10c5   : > { %v4512_v9 = vsel %vm390_vm4, %v4511_v40, %v4510_v26 }
0x10c6   : > { %v3484_v55 = vpop.permute.xlu1 %3483  ;;  %v4297_v20 = vperm.slane %v7588_v49, 0  ;;  %v4514_v5 = vadd.f32 %v4512_v9, %v4504_v57  ;;  %v4298_v13 = vperm.slane %v7588_v49, 1  ;;  %v4299_v27 = vperm.slane %v7588_v49, 2  ;;  %v4667_v30 = vpop.permute.xlu2 %4666 }
0x10c8   : > { %4301 = vrot.lane.b32.xlu1 %v4297_v20, %s7776_s25  ;;  %v4524_v6 = vadd.f32 %v4522_v41, %v4514_v5 }
0x10ca   : > { %v5577_v28 = vpop.eup %5576  ;;  %v4530_v54 = vpop.permute.xlu0 %4529 }
0x10cb   : > { %v4531_v24 = vrot.slane %v4530_v54, 7  ;;  %v7596_v51 = vadd.f32 1.0, %v5577_v28 }
0x10cd   : > { %v4532_v37 = vsel %vm412_vm6, %v4531_v24, %v4530_v54  ;;  %5578 = vrcp.f32 %v7596_v51  ;;  %v4426_v40 = vand.u32 2147483648, %v7596_v51 }
0x10ce   : > { %v3486_v2 = vpop.permute.xlu1 %3485  ;;  %v4534_v21 = vadd.f32 %v4532_v37, %v4524_v6  ;;  %v3621_v0 = vpop.permute.xlu2 %3620 }
0x10cf   : > { %v3489_v46 = vsel %vm471_vm8, %v3484_v55, %v3486_v2  ;;  %v4427_v5 = vor.u32 1.1754944e-38, %v4426_v40 }
0x10d0   : > { %v4544_v29 = vadd.f32 %v4542_v12, %v4534_v21  ;;  %4303 = vrot.lane.b32.xlu1 %v4298_v13, %s7776_s25  ;;  %v3496_v19 = vsel %vm478_vm9, %v3489_v46, 0.0  ;;  %v4668_v13 = vrot.slane %v4667_v30, 7 }
0x10d2   : > { %v3482_v62 = vpop.permute.xlu0 %3481  ;;  %v7603_v63 = vadd.f32 %v4546_v59, %v4544_v29 }
0x10d3   : > { %v3487_v16 = vsel %vm471_vm8, %v3480_v35, %v3482_v62  ;;  %v3488_v10 = vsel %vm471_vm8, %v3482_v62, %v3484_v55  ;;  %v5579_v52 = vpop.eup %5578  ;;  %v4609_v35 = vsel %vm346_vm0, %v7556_v1, %v4608_v61  ;;  %v4638_v1 = vrot.slane %v4637_v31, 7 }
0x10d4   : > { %v3493_v17 = vsel %vm478_vm9, %v3487_v16, 0.0  ;;  %v3494_v23 = vsel %vm478_vm9, %v3488_v10, 0.0  ;;  %v5340_v14 = vmul.f32 -1.442695, %v7603_v63  ;;  %v4416_v48 = vmul.f32 %v5579_v52, %v7596_v51 }
0x10d5   : > { %v3495_v15 = vadd.f32 %v3494_v23, %v3493_v17  ;;  %v4611_v50 = vadd.f32 %v4609_v35, %v4601_v36  ;;  %vm4421_vm11 = vweird.f32 %v5579_v52  ;;  %vm4420_vm0 = vweird.f32 %v7596_v51 }
0x10d6   : > { %v4657_v43 = vpop.permute.xlu1 %4656  ;;  %5580 = vpow2.f32 %v5340_v14  ;;  %v4417_v39 = vsub.f32 1.0, %v4416_v48  ;;  %v4424_v55 = vand.u32 2147483647, %v7596_v51  ;;  %vm4422_vm12 = vmor %vm4420_vm0, %vm4421_vm11  ;;  %v4639_v20 = vsel %vm379_vm3, %v4638_v1, %v4637_v31  ;;  %v3754_v16 = vpop.permute.xlu2 %3753 }
0x10d7   : > { %v3497_v22 = vadd.f32 %v3496_v19, %v3495_v15  ;;  %v4621_v26 = vadd.f32 %v4619_v25, %v4611_v50  ;;  %v4658_v54 = vrot.slane %v4657_v43, 7  ;;  %v4300_v62 = vperm.slane %v7588_v49, 3 }
0x10d8   : > { %4305 = vrot.lane.b32.xlu1 %v4299_v27, %s7776_s25  ;;  %v4418_v34 = vmul.f32 %v5579_v52, %v4417_v39  ;;  %vm4425_vm1 = vcmp.eq.f32.partialorder %v4424_v55, 8.507059e+37  ;;  %v4683_v27 = vstv %s5350_s27  ;;  %vm3775_vm11 = vcmask 196800  }
0x10d9   : > { %3498 = vadd.xlane.f32.xlu2 %v3497_v22  ;;  %v4659_v31 = vsel %vm401_vm5, %v4658_v54, %v4657_v43  ;;  %vm3912_vm0 = vcmask 205000  }
0x10da   : > { %v4627_v18 = vpop.permute.xlu0 %4626  ;;  %v4419_v53 = vadd.f32 %v5579_v52, %v4418_v34 }
0x10db   : > { %v4628_v8 = vrot.slane %v4627_v18, 1 }
0x10dc   : > { %v5581_v33 = vpop.eup %5580  ;;  %v4423_v57 = vsel %vm4422_vm12, %v5579_v52, %v4419_v53  ;;  %v4669_v52 = vsel %vm412_vm6, %v4668_v13, %v4667_v30  ;;  %vm4049_vm12 = vcmask 213200  }
0x10dd   : > { %v4629_v60 = vsel %vm368_vm2, %v4627_v18, %v4628_v8  ;;  %v7623_v7 = vadd.f32 1.0, %v5581_v33  ;;  %v4428_v51 = vsel %vm4425_vm1, %v4427_v5, %v4423_v57  ;;  %vm4186_vm1 = vcmask 221400  }
0x10de   : > { %v3619_v32 = vpop.permute.xlu1 %3618  ;;  %v4631_v9 = vadd.f32 %v4629_v60, %v4621_v26  ;;  %v4430_v29 = vmul.f32 %v4428_v51, %v7579_v38  ;;  %v3760_v18 = vpop.permute.xlu2 %3759 }
0x10df   : > { %5582 = vrcp.f32 %v7623_v7  ;;  %v3625_v44 = vsel %vm471_vm8, %v3619_v32, %v3621_v0  ;;  %v4563_v34 = vand.u32 2147483648, %v7623_v7  ;;  %vm4557_vm3 = vweird.f32 %v7623_v7 }
0x10e0   : > { %v4641_v28 = vadd.f32 %v4639_v20, %v4631_v9  ;;  %v3631_v6 = vsel %vm478_vm9, %v3625_v44, 0.0  ;;  %v4432_v15 = vmul.f32 %v4430_v29, %v6125_v56 }
0x10e2   : > { %v4647_v42 = vpop.permute.xlu0 %4646  ;;  %v4435_v22 = vperm.slane %v4432_v15, 1  ;;  %v4436_v60 = vperm.slane %v4432_v15, 2 }
0x10e3   : > { %v4648_v3 = vrot.slane %v4647_v42, 7 }
0x10e5   : > { %v4649_v58 = vsel %vm390_vm4, %v4648_v3, %v4647_v42  ;;  %v5583_v21 = vpop.eup %5582  ;;  %v4561_v42 = vand.u32 2147483647, %v7623_v7  ;;  %v4564_v3 = vor.u32 1.1754944e-38, %v4563_v34 }
0x10e6   : > { %v3623_v47 = vpop.permute.xlu1 %3622  ;;  %v4651_v12 = vadd.f32 %v4649_v58, %v4641_v28  ;;  %v4553_v17 = vmul.f32 %v5583_v21, %v7623_v7  ;;  %vm4558_vm2 = vweird.f32 %v5583_v21 }
0x10e7   : > { %v3626_v24 = vsel %vm471_vm8, %v3621_v0, %v3623_v47  ;;  %vm4559_vm4 = vmor %vm4557_vm3, %vm4558_vm2  ;;  %vm4562_vm5 = vcmp.eq.f32.partialorder %v4561_v42, 8.507059e+37  ;;  %v4434_v0 = vperm.slane %v4432_v15, 0  ;;  %v4437_v47 = vperm.slane %v4432_v15, 3 }
0x10e8   : > { %v3633_v59 = vsel %vm478_vm9, %v3626_v24, 0.0  ;;  %v4661_v10 = vadd.f32 %v4659_v31, %v4651_v12  ;;  %v4554_v38 = vsub.f32 1.0, %v4553_v17  ;;  %vm4597_vm2 = vcmask 246000  }
0x10e9   : > { %vm4734_vm3 = vcmask 254200  }
0x10ea   : > { %v3617_v11 = vpop.permute.xlu0 %3616  ;;  %v4671_v14 = vadd.f32 %v4669_v52, %v4661_v10  ;;  %v4555_v48 = vmul.f32 %v5583_v21, %v4554_v38 }
0x10eb   : > { %v3624_v41 = vsel %vm471_vm8, %v3617_v11, %v3619_v32 }
0x10ec   : > { %v3630_v37 = vsel %vm478_vm9, %v3624_v41, 0.0  ;;  %v4556_v50 = vadd.f32 %v5583_v21, %v4555_v48 }
0x10ed   : > { %v3632_v2 = vadd.f32 %v3631_v6, %v3630_v37 }
0x10ee   : > { %v3758_v4 = vpop.permute.xlu1 %3757  ;;  %v4560_v53 = vsel %vm4559_vm4, %v5583_v21, %v4556_v50  ;;  %vm4752_vm4 = vcmask 261120  }
0x10ef   : > { %v3634_v46 = vadd.f32 %v3633_v59, %v3632_v2  ;;  %v3763_v39 = vsel %vm471_vm8, %v3758_v4, %v3760_v18  ;;  %v4565_v9 = vsel %vm4562_vm5, %v4564_v3, %v4560_v53 }
0x10f0   : > { %v3770_v25 = vsel %vm478_vm9, %v3763_v39, 0.0  ;;  %v4567_v55 = vmul.f32 %v4565_v9, %v7603_v63 }
0x10f1   : > { %4307 = vrot.lane.b32.xlu2 %v4300_v62, %s7776_s25  ;;  %3635 = vadd.xlane.f32.xlu0 %v3634_v46  ;;  %v3895_v62 = vpop.permute.xlu2 %3894 }
0x10f2   : > { %v4677_v23 = vpop.permute.xlu0 %4676  ;;  %v4569_v57 = vmul.f32 %v4567_v55, %v6125_v56 }
0x10f3   : > { %v4678_v19 = vrot.slane %v4677_v23, 7 }
0x10f4   : > { %v4571_v58 = vperm.slane %v4569_v57, 0  ;;  %v4573_v51 = vperm.slane %v4569_v57, 2  ;;  %v4572_v37 = vperm.slane %v4569_v57, 1  ;;  %v4574_v21 = vperm.slane %v4569_v57, 3 }
0x10f5   : > { %v4679_v43 = vsel %vm423_vm7, %v4678_v19, %v4677_v23 }
0x10f6   : > { %v4681_v49 = vadd.f32 %v4679_v43, %v4671_v14 }
0x10f8   : > { %v4684_v61 = vadd.f32 %v4683_v27, %v4681_v49 }
0x10f9   : > { %4440 = vrot.lane.b32.xlu2 %v4435_v22, %s7776_s25 }
0x10fa   : > { %v5351_v36 = vmul.f32 -1.442695, %v4684_v61  ;;  %v3756_v35 = vpop.permute.xlu0 %3755  ;;  %v3893_v13 = vpop.permute.xlu1 %3892 }
0x10fb   : > { %v3761_v30 = vsel %vm471_vm8, %v3754_v16, %v3756_v35  ;;  %v3762_v45 = vsel %vm471_vm8, %v3756_v35, %v3758_v4  ;;  %v3899_v46 = vsel %vm471_vm8, %v3893_v13, %v3895_v62 }
0x10fc   : > { %5584 = vpow2.f32 %v5351_v36  ;;  %v3767_v32 = vsel %vm478_vm9, %v3761_v30, 0.0  ;;  %v3768_v8 = vsel %vm478_vm9, %v3762_v45, 0.0 }
0x10fd   : > { %v3769_v33 = vadd.f32 %v3768_v8, %v3767_v32 }
0x10fe   : > { %v4030_v49 = vpop.permute.xlu2 %4029 }
0x10ff   : > { %v3771_v26 = vadd.f32 %v3770_v25, %v3769_v33  ;;  %v3472_v33 = vld [vmem:[#allocation2] sm:$0x1] }
0x1101   : > { %4442 = vrot.lane.b32.xlu2 %v4436_v60, %s7776_s25 }
0x1102   : > { %v5585_v1 = vpop.eup %5584  ;;  %3772 = vadd.xlane.f32.xlu1 %v3771_v26  ;;  %v3891_v12 = vpop.permute.xlu0 %3890 }
0x1103   : > { %v4688_v40 = vadd.f32 1.0, %v5585_v1  ;;  %v3898_v31 = vsel %vm471_vm8, %v3891_v12, %v3893_v13 }
0x1104   : > { %v3904_v10 = vsel %vm478_vm9, %v3898_v31, 0.0 }
0x1105   : > { %5586 = vrcp.f32 %v4688_v40  ;;  %4438 = vrot.lane.b32.xlu0 %v4434_v0, %s7776_s25  ;;  %v4700_v28 = vand.u32 2147483648, %v4688_v40  ;;  %vm4694_vm7 = vweird.f32 %v4688_v40  ;;  %v4698_v54 = vand.u32 2147483647, %v4688_v40 }
0x1107   : > { %v4701_v63 = vor.u32 1.1754944e-38, %v4700_v28  ;;  %vm4699_vm14 = vcmp.eq.f32.partialorder %v4698_v54, 8.507059e+37 }
0x1109   : > { %4444 = vrot.lane.b32.xlu2 %v4437_v47, %s7776_s25 }
0x110a   : > { %v3897_v29 = vpop.permute.xlu0 %3896 }
0x110b   : > { %v5587_v7 = vpop.eup %5586  ;;  %v3900_v16 = vsel %vm471_vm8, %v3895_v62, %v3897_v29 }
0x110c   : > { %v4690_v20 = vmul.f32 %v5587_v7, %v4688_v40  ;;  %vm4695_vm6 = vweird.f32 %v5587_v7  ;;  %v3907_v23 = vsel %vm478_vm9, %v3900_v16, 0.0 }
0x110d   : > { %vm4696_vm13 = vmor %vm4694_vm7, %vm4695_vm6 }
0x110e   : > { %v4691_v44 = vsub.f32 1.0, %v4690_v20 }
0x1110   : > { %v4692_v5 = vmul.f32 %v5587_v7, %v4691_v44 }
0x1111   : > { %4575 = vrot.lane.b32.xlu2 %v4571_v58, %s7776_s25 }
0x1112   : > { %v4693_v11 = vadd.f32 %v5587_v7, %v4692_v5 }
0x1114   : > { %v4697_v24 = vsel %vm4696_vm13, %v5587_v7, %v4693_v11 }
0x1115   : > { %v4702_v41 = vsel %vm4699_vm14, %v4701_v63, %v4697_v24 }
0x1116   : > { %v4704_v6 = vmul.f32 %v4702_v41, %v4684_v61  ;;  %v4032_v43 = vpop.permute.xlu0 %4031 }
0x1117   : > { %v4028_v17 = vpop.permute.xlu1 %4027  ;;  %v4036_v22 = vsel %vm471_vm8, %v4030_v49, %v4032_v43 }
0x1118   : > { %v4706_v2 = vmul.f32 %v4704_v6, %v6125_v56  ;;  %v3905_v56 = vsel %vm478_vm9, %v3899_v46, 0.0  ;;  %v4035_v4 = vsel %vm471_vm8, %v4028_v17, %v4030_v49  ;;  %v4042_v18 = vsel %vm478_vm9, %v4036_v22, 0.0 }
0x1119   : > { %4579 = vrot.lane.b32.xlu2 %v4573_v51, %s7776_s25  ;;  %v3906_v52 = vadd.f32 %v3905_v56, %v3904_v10  ;;  %v4041_v36 = vsel %vm478_vm9, %v4035_v4, 0.0 }
0x111a   : > { %v4708_v59 = vperm.slane %v4706_v2, 0  ;;  %v4709_v15 = vperm.slane %v4706_v2, 1  ;;  %v4711_v38 = vperm.slane %v4706_v2, 3  ;;  %v4710_v61 = vperm.slane %v4706_v2, 2 }
0x111b   : > { %4577 = vrot.lane.b32.xlu1 %v4572_v37, %s7776_s25  ;;  %v3908_v19 = vadd.f32 %v3907_v23, %v3906_v52  ;;  %v4043_v45 = vadd.f32 %v4042_v18, %v4041_v36 }
0x111f   : > { %v4034_v14 = vpop.permute.xlu1 %4033 }
0x1120   : > { %v4037_v48 = vsel %vm471_vm8, %v4032_v43, %v4034_v14 }
0x1121   : > { %4581 = vrot.lane.b32.xlu2 %v4574_v21, %s7776_s25  ;;  %v4044_v39 = vsel %vm478_vm9, %v4037_v48, 0.0 }
0x1122   : > { %v4045_v32 = vadd.f32 %v4044_v39, %v4043_v45 }
0x1123   : > { %4712 = vrot.lane.b32.xlu1 %v4708_v59, %s7776_s25 }
0x1128   : > { %v4167_v27 = vpop.permute.xlu1 %4166  ;;  %v4165_v30 = vpop.permute.xlu0 %4164 }
0x1129   : > { %v4172_v60 = vsel %vm471_vm8, %v4165_v30, %v4167_v27 }
0x112a   : > { %v4178_v3 = vsel %vm478_vm9, %v4172_v60, 0.0 }
0x112b   : > { %4714 = vrot.lane.b32.xlu1 %v4709_v15, %s7776_s25 }
0x112f   : > { %3909 = vadd.xlane.f32.xlu0 %v3908_v19 }
0x1130   : > { %v4171_v35 = vpop.permute.xlu1 %4170  ;;  %v4169_v25 = vpop.permute.xlu0 %4168 }
0x1131   : > { %v4173_v42 = vsel %vm471_vm8, %v4167_v27, %v4169_v25  ;;  %v4174_v0 = vsel %vm471_vm8, %v4169_v25, %v4171_v35 }
0x1132   : > { %v4179_v53 = vsel %vm478_vm9, %v4173_v42, 0.0  ;;  %v4181_v9 = vsel %vm478_vm9, %v4174_v0, 0.0 }
0x1133   : > { %4718 = vrot.lane.b32.xlu1 %v4711_v38, %s7776_s25  ;;  %v4180_v40 = vadd.f32 %v4179_v53, %v4178_v3 }
0x1135   : > { %v4182_v55 = vadd.f32 %v4181_v9, %v4180_v40 }
0x113a   : > { %v4302_v8 = vpop.permute.xlu1 %4301 }
0x1142   : > { %v4304_v1 = vpop.permute.xlu1 %4303 }
0x1143   : > { %4716 = vrot.lane.b32.xlu0 %v4710_v61, %s7776_s25  ;;  %v4309_v5 = vsel %vm471_vm8, %v4302_v8, %v4304_v1 }
0x1144   : > { %v4315_v24 = vsel %vm478_vm9, %v4309_v5, 0.0  ;;  %v4746_v5 = vld [vmem:[#allocation10 + $0x38] sm:$0xff] }
0x1145   : > { %4788 = vmatpush.msra.mxu1 %v4746_v5 }
0x114a   : > { %4046 = vadd.xlane.f32.xlu2 %v4045_v32  ;;  %v4306_v7 = vpop.permute.xlu1 %4305 }
0x114b   : > { %v4310_v57 = vsel %vm471_vm8, %v4304_v1, %v4306_v7 }
0x114c   : > { %v3499_v50 = vpop.xlane.xlu2 %3498  ;;  %v4316_v54 = vsel %vm478_vm9, %v4310_v57, 0.0 }
0x114d   : > { %v3500_v34 = vadd.f32 %v3499_v50, %v3472_v33  ;;  %v4317_v41 = vadd.f32 %v4316_v54, %v4315_v24  ;;  %v4741_v54 = vld [vmem:[#allocation10 + $0x10] sm:$0xff]  ;;  %v4742_v24 = vld [vmem:[#allocation10 + $0x18] sm:$0xff] }
0x114f   : > { %3502 = vst.msk [vmem:[#allocation2] sm:$0x1] %vm3501_vm15, %v3500_v34 }
0x1154   : > { %v4308_v26 = vpop.permute.xlu2 %4307 }
0x1155   : > { %v4311_v28 = vsel %vm471_vm8, %v4306_v7, %v4308_v26 }
0x1156   : > { %v3609_v58 = vld [vmem:[#allocation2] sm:$0x1]  ;;  %v4318_v63 = vsel %vm478_vm9, %v4311_v28, 0.0  ;;  %v4743_v28 = vld [vmem:[#allocation10 + $0x20] sm:$0xff] }
0x1157   : > { %v4319_v51 = vadd.f32 %v4318_v63, %v4317_v41  ;;  %v4739_v63 = vld [vmem:[#allocation10] sm:$0xff]  ;;  %v4740_v41 = vld [vmem:[#allocation10 + $0x8] sm:$0xff] }
0x115c   : > { %v4441_v47 = vpop.permute.xlu2 %4440 }
0x115d   : > { %4183 = vadd.xlane.f32.xlu1 %v4182_v55 }
0x1164   : > { %v4443_v20 = vpop.permute.xlu2 %4442  ;;  %v3636_v44 = vpop.xlane.xlu0 %3635 }
0x1165   : > { %v3637_v11 = vadd.f32 %v3636_v44, %v3609_v58  ;;  %v4447_v12 = vsel %vm471_vm8, %v4441_v47, %v4443_v20  ;;  %v4745_v58 = vld [vmem:[#allocation10 + $0x30] sm:$0xff] }
0x1166   : > { %v4453_v62 = vsel %vm478_vm9, %v4447_v12, 0.0  ;;  %4768 = vmatpush.msra.mxu0 %v4745_v58  ;;  %v4810_v12 = vld [vmem:[#allocation11 + $0x70] sm:$0xff] }
0x1167   : > { %3639 = vst.msk [vmem:[#allocation2] sm:$0x1] %vm3638_vm10, %v3637_v11  ;;  %v4744_v11 = vld [vmem:[#allocation10 + $0x28] sm:$0xff] }
0x1168   : > { %4769 = vmatpush.msra.mxu0 %v4743_v28  ;;  %4789 = vmatpush.msra.mxu1 %v4744_v11 }
0x116a   : > { %4770 = vmatpush.msra.mxu0 %v4741_v54  ;;  %4790 = vmatpush.msra.mxu1 %v4742_v24 }
0x116c   : > { %v4445_v6 = vpop.permute.xlu2 %4444  ;;  %4771 = vmatpush.msra.mxu0 %v4739_v63  ;;  %4791 = vmatpush.msra.mxu1 %v4740_v41 }
0x116d   : > { %4320 = vadd.xlane.f32.xlu0 %v4319_v51  ;;  %v4448_v59 = vsel %vm471_vm8, %v4443_v20, %v4445_v6  ;;  %v4811_v51 = vld [vmem:[#allocation11 + $0x78] sm:$0xff] }
0x116e   : > { %v3746_v2 = vld [vmem:[#allocation2] sm:$0x1]  ;;  %v4455_v10 = vsel %vm478_vm9, %v4448_v59, 0.0  ;;  %v4827_v6 = vld [vmem:[#allocation11 + $0xf8] sm:$0xff]  ;;  %4828 = vmatpush.msra.mxu2 %v4811_v51  ;;  %v4824_v59 = vld [vmem:[#allocation11 + $0xe0] sm:$0xff] }
0x116f   : > { %4848 = vmatpush.msra.mxu3 %v4827_v6 }
0x1170   : > { %4829 = vmatpush.msra.mxu2 %v4810_v12 }
0x1174   : > { %v4576_v29 = vpop.permute.xlu2 %4575 }
0x1175   : > { %v3773_v37 = vpop.xlane.xlu1 %3772 }
0x1176   : > { %v3774_v21 = vadd.f32 %v3773_v37, %v3746_v2  ;;  %v4826_v37 = vld [vmem:[#allocation11 + $0xf0] sm:$0xff]  ;;  %v4809_v2 = vld [vmem:[#allocation11 + $0x68] sm:$0xff] }
0x1177   : > { %v4439_v13 = vpop.permute.xlu0 %4438  ;;  %4849 = vmatpush.msra.mxu3 %v4826_v37  ;;  %4830 = vmatpush.msra.mxu2 %v4809_v2 }
0x1178   : > { %v4446_v31 = vsel %vm471_vm8, %v4439_v13, %v4441_v47  ;;  %3776 = vst.msk [vmem:[#allocation2] sm:$0x1] %vm3775_vm11, %v3774_v21  ;;  %v4825_v21 = vld [vmem:[#allocation11 + $0xe8] sm:$0xff]  ;;  %v4808_v13 = vld [vmem:[#allocation11 + $0x60] sm:$0xff] }
0x1179   : > { %v4452_v46 = vsel %vm478_vm9, %v4446_v31, 0.0  ;;  %4850 = vmatpush.msra.mxu3 %v4825_v21  ;;  %v4823_v31 = vld [vmem:[#allocation11 + $0xd8] sm:$0xff]  ;;  %4831 = vmatpush.msra.mxu2 %v4808_v13 }
0x117a   : > { %v4454_v16 = vadd.f32 %v4453_v62, %v4452_v46  ;;  %v4806_v62 = vld [vmem:[#allocation11 + $0x50] sm:$0xff] }
0x117b   : > { %4851 = vmatpush.msra.mxu3 %v4824_v59  ;;  %v4822_v46 = vld [vmem:[#allocation11 + $0xd0] sm:$0xff] }
0x117c   : > { %v4456_v17 = vadd.f32 %v4455_v10, %v4454_v16  ;;  %v4580_v56 = vpop.permute.xlu2 %4579  ;;  %v4805_v16 = vld [vmem:[#allocation11 + $0x48] sm:$0xff] }
0x117d   : > { %4852 = vmatpush.msra.mxu3 %v4823_v31  ;;  %v4821_v10 = vld [vmem:[#allocation11 + $0xc8] sm:$0xff] }
0x117e   : > { %4457 = vadd.xlane.f32.xlu2 %v4456_v17  ;;  %v4804_v17 = vld [vmem:[#allocation11 + $0x40] sm:$0xff] }
0x117f   : > { %v3883_v48 = vld [vmem:[#allocation2] sm:$0x1]  ;;  %4853 = vmatpush.msra.mxu3 %v4822_v46 }
0x1181   : > { %4854 = vmatpush.msra.mxu3 %v4821_v10 }
0x1184   : > { %v4582_v23 = vpop.permute.xlu2 %4581 }
0x1185   : > { %v4585_v52 = vsel %vm471_vm8, %v4580_v56, %v4582_v23  ;;  %v4803_v23 = vld [vmem:[#allocation11 + $0x38] sm:$0xff] }
0x1186   : > { %v4592_v49 = vsel %vm478_vm9, %v4585_v52, 0.0  ;;  %v4802_v52 = vld [vmem:[#allocation11 + $0x30] sm:$0xff] }
0x118d   : > { %v4578_v15 = vpop.permute.xlu1 %4577 }
0x118e   : > { %v4583_v19 = vsel %vm471_vm8, %v4576_v29, %v4578_v15  ;;  %v4584_v14 = vsel %vm471_vm8, %v4578_v15, %v4580_v56  ;;  %v4807_v29 = vld [vmem:[#allocation11 + $0x58] sm:$0xff]  ;;  %v4820_v56 = vld [vmem:[#allocation11 + $0xc0] sm:$0xff] }
0x118f   : > { %v4589_v38 = vsel %vm478_vm9, %v4583_v19, 0.0  ;;  %v4590_v27 = vsel %vm478_vm9, %v4584_v14, 0.0  ;;  %4832 = vmatpush.msra.mxu2 %v4807_v29  ;;  %v4819_v15 = vld [vmem:[#allocation11 + $0xb8] sm:$0xff]  ;;  %4855 = vmatpush.msra.mxu3 %v4820_v56  ;;  %v4818_v19 = vld [vmem:[#allocation11 + $0xb0] sm:$0xff]  ;;  %v4801_v14 = vld [vmem:[#allocation11 + $0x28] sm:$0xff] }
0x1190   : > { %v4591_v43 = vadd.f32 %v4590_v27, %v4589_v38  ;;  %v4817_v38 = vld [vmem:[#allocation11 + $0xa8] sm:$0xff]  ;;  %v4800_v27 = vld [vmem:[#allocation11 + $0x20] sm:$0xff] }
0x1191   : > { %4833 = vmatpush.msra.mxu2 %v4806_v62  ;;  %4856 = vmatpush.msra.mxu3 %v4819_v15 }
0x1192   : > { %v4593_v22 = vadd.f32 %v4592_v49, %v4591_v43  ;;  %v4816_v43 = vld [vmem:[#allocation11 + $0xa0] sm:$0xff] }
0x1193   : > { %4834 = vmatpush.msra.mxu2 %v4805_v16  ;;  %4857 = vmatpush.msra.mxu3 %v4818_v19 }
0x1194   : > { %4594 = vadd.xlane.f32.xlu2 %v4593_v22 }
0x1195   : > { %v4713_v4 = vpop.permute.xlu1 %4712  ;;  %4835 = vmatpush.msra.mxu2 %v4804_v17  ;;  %4858 = vmatpush.msra.mxu3 %v4817_v38 }
0x1197   : > { %4836 = vmatpush.msra.mxu2 %v4803_v23  ;;  %4859 = vmatpush.msra.mxu3 %v4816_v43 }
0x1199   : > { %4837 = vmatpush.msra.mxu2 %v4802_v52 }
0x119b   : > { %4838 = vmatpush.msra.mxu2 %v4801_v14 }
0x119d   : > { %v4715_v36 = vpop.permute.xlu1 %4714  ;;  %4839 = vmatpush.msra.mxu2 %v4800_v27 }
0x119e   : > { %v4720_v35 = vsel %vm471_vm8, %v4713_v4, %v4715_v36 }
0x119f   : > { %v4726_v8 = vsel %vm478_vm9, %v4720_v35, 0.0 }
0x11a2   : > { %v3910_v61 = vpop.xlane.xlu0 %3909 }
0x11a3   : > { %v3911_v18 = vadd.f32 %v3910_v61, %v3883_v48  ;;  %v4799_v61 = vld [vmem:[#allocation11 + $0x18] sm:$0xff] }
0x11a4   : > { %v4815_v48 = vld [vmem:[#allocation11 + $0x98] sm:$0xff]  ;;  %4840 = vmatpush.msra.mxu2 %v4799_v61 }
0x11a5   : > { %3913 = vst.msk [vmem:[#allocation2] sm:$0x1] %vm3912_vm0, %v3911_v18  ;;  %v4719_v39 = vpop.permute.xlu1 %4718  ;;  %v4798_v18 = vld [vmem:[#allocation11 + $0x10] sm:$0xff]  ;;  %4860 = vmatpush.msra.mxu3 %v4815_v48 }
0x11a6   : > { %4841 = vmatpush.msra.mxu2 %v4798_v18 }
0x11ac   : > { %v4020_v60 = vld [vmem:[#allocation2] sm:$0x1] }
0x11b5   : > { %v4717_v30 = vpop.permute.xlu0 %4716 }
0x11b6   : > { %v4721_v45 = vsel %vm471_vm8, %v4715_v36, %v4717_v30  ;;  %v4722_v32 = vsel %vm471_vm8, %v4717_v30, %v4719_v39  ;;  %vm4323_vm8 = vcmask 229600   ;;  %v4814_v36 = vld [vmem:[#allocation11 + $0x90] sm:$0xff]  ;;  %v4797_v39 = vld [vmem:[#allocation11 + $0x8] sm:$0xff] }
0x11b7   : > { %v4727_v50 = vsel %vm478_vm9, %v4721_v45, 0.0  ;;  %v4729_v34 = vsel %vm478_vm9, %v4722_v32, 0.0  ;;  %vm4460_vm9 = vcmask 237800   ;;  %4861 = vmatpush.msra.mxu3 %v4814_v36  ;;  %v4813_v30 = vld [vmem:[#allocation11 + $0x88] sm:$0xff]  ;;  %v4796_v45 = vld [vmem:[#allocation11] sm:$0xff]  ;;  %4842 = vmatpush.msra.mxu2 %v4797_v39 }
0x11b8   : > { %v4728_v33 = vadd.f32 %v4727_v50, %v4726_v8  ;;  %v4812_v32 = vld [vmem:[#allocation11 + $0x80] sm:$0xff]  ;;  %v4737_v8 = vld [vmem:[%s7756_s5] sm:$0x3] }
0x11b9   : > { %4862 = vmatpush.msra.mxu3 %v4813_v30  ;;  %4843 = vmatpush.msra.mxu2 %v4796_v45  ;;  %v4748_v50 = vperm.slane %v4737_v8, 0 }
0x11ba   : > { %v4730_v25 = vadd.f32 %v4729_v34, %v4728_v33  ;;  %v4749_v33 = vperm.slane %v4737_v8, 1 }
0x11bb   : > { %4863 = vmatpush.msra.mxu3 %v4812_v32 }
0x11bc   : > { %4731 = vadd.xlane.f32.xlu2 %v4730_v25 }
0x11bd   : > { %v4047_v42 = vpop.xlane.xlu2 %4046 }
0x11be   : > { %v4048_v26 = vadd.f32 %v4047_v42, %v4020_v60 }
0x11c0   : > { %4050 = vst.msk [vmem:[#allocation2] sm:$0x1] %vm4049_vm12, %v4048_v26  ;;  %v4738_v26 = vld [vmem:[%s7756_s5 + $0x2] sm:$0x1] }
0x11c7   : > { %v4157_v1 = vld [vmem:[#allocation2] sm:$0x1] }
0x11d0   : > { %v4184_v53 = vpop.xlane.xlu1 %4183 }
0x11d1   : > { %v4185_v3 = vadd.f32 %v4184_v53, %v4157_v1 }
0x11d3   : > { %4187 = vst.msk [vmem:[#allocation2] sm:$0x1] %vm4186_vm1, %v4185_v3 }
0x11da   : > { %v4294_v0 = vld [vmem:[#allocation2] sm:$0x1] }
0x11e0   : > { %v4321_v40 = vpop.xlane.xlu0 %4320 }
0x11e1   : > { %v4322_v9 = vadd.f32 %v4321_v40, %v4294_v0 }
0x11e3   : > { %4324 = vst.msk [vmem:[#allocation2] sm:$0x1] %vm4323_vm8, %v4322_v9 }
0x11ea   : > { %v4431_v47 = vld [vmem:[#allocation2] sm:$0x1] }
0x11f1   : > { %v4458_v55 = vpop.xlane.xlu2 %4457 }
0x11f2   : > { %v4459_v7 = vadd.f32 %v4458_v55, %v4431_v47 }
0x11f4   : > { %4461 = vst.msk [vmem:[#allocation2] sm:$0x1] %vm4460_vm9, %v4459_v7 }
0x11fb   : > { %v4568_v20 = vld [vmem:[#allocation2] sm:$0x1] }
0x1207   : > { %v4595_v57 = vpop.xlane.xlu2 %4594 }
0x1208   : > { %v4596_v44 = vadd.f32 %v4595_v57, %v4568_v20 }
0x120a   : > { %4598 = vst.msk [vmem:[#allocation2] sm:$0x1] %vm4597_vm2, %v4596_v44 }
0x1211   : > { %v4705_v22 = vld [vmem:[#allocation2] sm:$0x1] }
0x122f   : > { %v4732_v49 = vpop.xlane.xlu2 %4731 }
0x1230   : > { %v4733_v4 = vadd.f32 %v4732_v49, %v4705_v22 }
0x1232   : > { %4735 = vst.msk [vmem:[#allocation2] sm:$0x1] %vm4734_vm3, %v4733_v4 }
0x1239   : > { %v4736_v35 = vld [vmem:[#allocation2] sm:$0x1] }
0x123a   : > { %5352 = vmatmul.msk.f32.vlgmr.msra.gmra.mxu0 %vm4752_vm4, %v4736_v35  ;;  %5353 = vmatmul.msk.f32.vlgmr.msra.gmra.mxu1 %vm4752_vm4, %v4736_v35 }
0x12b7   : > { %v4773_v34 = vpop.f32.mrf.mxu0  ;;  %v4793_v25 = vpop.f32.mrf.mxu1 }
0x12b8   : > { %v4774_v42 = vadd.f32 %v4773_v34, %v4748_v50  ;;  %v4794_v60 = vadd.f32 %v4793_v25, %v4749_v33 }
0x12ba   : > { %4844 = vmatmul.f32.vlgmr.msra.gmra.mxu2 %v4774_v42  ;;  %4864 = vmatmul.f32.vlgmr.msra.gmra.mxu3 %v4794_v60 }
0x133d   : > { %v4845_v53 = vpop.f32.mrf.mxu2  ;;  %v4865_v3 = vpop.f32.mrf.mxu3 }
0x133e   : > { %v4846_v1 = vadd.f32 %v4845_v53, %v4738_v26 }
0x1340   : > { %v4866_v40 = vadd.f32 %v4865_v3, %v4846_v1 }
0x1342   : > { %4868 = vst [vmem:[%s329_s18] sm:$0x1] %v4866_v40 }
0x1343   : > { %5766 = shalt.err (!%p5763_p9)
}
0x1344   : > { %5377 = dma.vmem_to_hbm [thread:$0]  (%p5959_p5), %s4881_s20, 16, %s4883_s30, %s4870_s29  }
0x1345 PF: > { %s4894_s11 = sand.u32 1, %s5809_s21   ;;  %p7779_p10 = scmp.ge.s32.totalorder %s5821_s24, 2 }
0x1346   : > { %s4895_s26 = scalar_lea.sflag [#allocation5], %s4894_s11 }
0x1347   : > { %p5397_p11 = pnand %p7779_p10, %p5963_p6 }
0x1349   : > { %p5398_p13 = pneg %p5397_p11 }
0x134b   : > { %5804 = dma.done.wait (%p5398_p13), %s4895_s26, 16  }
0x134c   : > { %5806 = vsyncadd (%p5398_p13), %s4895_s26, 4294967280  ;;  %p22_p0 = scmp.ge.s32.totalorder %s5937_s10, 4   ;;  %s7780_s21 = smov %s5813_s22 }
0x134d   : > { %s7781_s22 = smov %s5817_s23  ;;  %s7782_s23 = smov %s5948_s14 }
0x134e   : > { %s7783_s24 = smov %s5937_s10  ;;  %24 = sbr.rel (!%p22_p0) target bundleno = 11 (0xb), region = 106 }
0x1353   :  { %4900 = vsyncpa [#allocation4], 1 }
0x1354   :  { %4902 = vsyncpa [#allocation4 + $0x1], 1 }
0x1355   :  { %4903 = vsyncpa [#allocation8], 1 }
0x1356   :  { %4904 = vsyncpa [#allocation12], 1 }
0x1357   :  { %4905 = vsyncpa [#allocation5], 1 }
0x1358   :  { %4907 = vsyncpa [#allocation5 + $0x1], 1 }
0x1359   :  { %4908 = vsyncpa [#allocation6], 1 }
0x135a   :  { %4910 = vsyncpa [#allocation6 + $0x1], 1 }

</bundles_post_ra>
